<compile_context>
chip_gen: v7x
topology: tpu7x:2x2x1
jax: 0.10.0
libtpu: 0.0.40
codegen_flags: <defaults>
</compile_context>

<pallas_src>
import functools

import jax
import jax.numpy as jnp
from jax import lax
from jax.experimental import pallas as pl
from jax.experimental.pallas import tpu as pltpu

H = 128      # LSTM hidden size (fixed by the module)
H1 = 256     # linear_1 output size (fixed by the module)
G = 4 * H    # gate width (i, f, o, g after permutation)


def _round_up(x, m):
    return (x + m - 1) // m * m


def _apply_gates(gates, c):
    # Gate columns are pre-permuted to (i, f, o, g): one sigmoid over 3H, one tanh over H.
    sig = jax.nn.sigmoid(gates[:, :3 * H])
    g = jnp.tanh(gates[:, 3 * H:])
    i = sig[:, 0 * H:1 * H]
    f = sig[:, 1 * H:2 * H]
    o = sig[:, 2 * H:3 * H]
    c_new = f * c + i * g
    h_new = o * jnp.tanh(c_new)
    return h_new, c_new


def decoder_kernel(x_ref,
                   w0_ref, whh0_ref, b0_ref,
                   wih1_ref, whh1_ref, b1_ref,
                   wih2_ref, whh2_ref, b2_ref,
                   whead_ref, bhead_ref,
                   out_ref,
                   seq_ref, proj0_ref, proj_ref,
                   *, ts, out_pad):
    bt = x_ref.shape[0]              # batch tile (multiple of 8)

    # ---- layer-0 input projection for ALL timesteps: one (bt,in)x(in,ts*4H) matmul.
    # repeat_interleave is folded into w0 in the wrapper, so the expanded input never exists.
    relu_x = jnp.maximum(x_ref[...], 0.0)        # relu fused into the kernel
    proj0_ref[...] = (jnp.dot(relu_x, w0_ref[...], preferred_element_type=jnp.float32)
                      + b0_ref[...])

    zeros = jnp.zeros((bt, H), jnp.float32)

    # ---- layer 0 recurrence: only h @ whh + elementwise on the serial path (fully unrolled,
    # static slice offsets that are lane/sublane aligned).
    h, c = zeros, zeros
    for t in range(ts):
        gates = (proj0_ref[:, t * G:(t + 1) * G]
                 + jnp.dot(h, whh0_ref[...], preferred_element_type=jnp.float32))
        h, c = _apply_gates(gates, c)
        seq_ref[t * bt:(t + 1) * bt, :] = h

    # ---- layers 1 and 2: input projection hoisted to one (ts*bt,H)x(H,4H) matmul each.
    # TODO(synk): nn.LSTM inter-layer dropout (p=0.3) is training-only; inference forward omits it.
    for wih_ref, whh_ref, b_ref in ((wih1_ref, whh1_ref, b1_ref),
                                    (wih2_ref, whh2_ref, b2_ref)):
        proj_ref[...] = (jnp.dot(seq_ref[...], wih_ref[...],
                                 preferred_element_type=jnp.float32)
                         + b_ref[...])
        h, c = zeros, zeros
        for t in range(ts):
            gates = (proj_ref[t * bt:(t + 1) * bt, :]
                     + jnp.dot(h, whh_ref[...], preferred_element_type=jnp.float32))
            h, c = _apply_gates(gates, c)
            seq_ref[t * bt:(t + 1) * bt, :] = h

    # ---- fused head (linear_1 @ out pre-combined in wrapper) + sigmoid, written batch-first.
    # Output block is (bt, ts*out_pad): wide, lane-dense (multiple of 128) unmasked stores,
    # and no host-side transpose is needed afterwards.
    y = jax.nn.sigmoid(
        jnp.dot(seq_ref[...], whead_ref[...], preferred_element_type=jnp.float32)
        + bhead_ref[...])                                        # (ts*bt, out_pad)
    for t in range(ts):
        out_ref[:, t * out_pad:(t + 1) * out_pad] = y[t * bt:(t + 1) * bt, :]


def _permute_gate_cols(w):
    # PyTorch gate order (i, f, g, o) -> (i, f, o, g): sigmoid gates contiguous, tanh last.
    i, f, g, o = jnp.split(w, 4, axis=-1)
    return jnp.concatenate([i, f, o, g], axis=-1)


def prepare_params(p, ts, in_dim, out_dim):
    """Transform PyTorch-layout weights into the kernel's fused/permuted layout."""
    prep = {}

    lstm = []
    for l in range(3):
        wihT = _permute_gate_cols(p[f"w_ih_l{l}"].T.astype(jnp.float32))
        whhT = _permute_gate_cols(p[f"w_hh_l{l}"].T.astype(jnp.float32))
        b = _permute_gate_cols(
            (p[f"b_ih_l{l}"] + p[f"b_hh_l{l}"])[None, :].astype(jnp.float32))
        lstm.append((wihT, whhT, b))

    # ---- fold torch.repeat_interleave(x, ts, dim=1).reshape(-1, ts, in_dim) into layer 0's
    # input weight:  x_seq[t, d] = x[(t*in_dim + d)//ts]  =>  proj0[t] = relu(x) @ w0_fold[t].
    idx = (jnp.arange(ts)[:, None] * in_dim + jnp.arange(in_dim)[None, :]) // ts  # (ts, in_dim)
    wih0T = lstm[0][0]                                                            # (in_dim, 4H)

    def fold_one(ix):
        return jnp.zeros((in_dim, G), jnp.float32).at[ix].add(wih0T)

    w0_fold = jax.vmap(fold_one)(idx)                                             # (ts, in_dim, 4H)
    prep["w0_all"] = jnp.transpose(w0_fold, (1, 0, 2)).reshape(in_dim, ts * G)
    prep["b0_all"] = jnp.tile(lstm[0][2], (1, ts))                                # (1, ts*4H)
    prep["whh0"] = lstm[0][1]
    for l in (1, 2):
        prep[f"wih{l}"], prep[f"whh{l}"], prep[f"b{l}"] = lstm[l]

    # ---- fuse linear_1 -> out (no activation between them) and pad to a lane-dense width.
    w_head = jnp.dot(p["w_lin1"].T, p["w_out"].T, precision=lax.Precision.HIGHEST)  # (H, out_dim)
    b_head = (jnp.dot(p["b_lin1"][None, :], p["w_out"].T, precision=lax.Precision.HIGHEST)
              + p["b_out"][None, :])                                                # (1, out_dim)
    out_pad = _round_up(out_dim, 128)
    prep["w_head"] = jnp.pad(w_head, ((0, 0), (0, out_pad - out_dim))).astype(jnp.float32)
    prep["b_head"] = jnp.pad(b_head, ((0, 0), (0, out_pad - out_dim))).astype(jnp.float32)
    return prep


def _decoder_forward(inputs, params, ts):
    """inputs: (B, in_dim) float32 -> (B, ts * out_dim) float32."""
    B, in_dim = inputs.shape
    out_dim = params["w_out"].shape[0]
    prep = prepare_params(params, ts, in_dim, out_dim)
    out_pad = prep["w_head"].shape[1]

    # Batch tiling: sublane-aligned tile (multiple of 8), capped so VMEM scratch stays small
    # (proj0 + proj + seq + double-buffered output block, all scale with bt * ts).
    bytes_per_row = ts * (2 * G + H + 2 * out_pad) * 4
    bt_cap = max(8, (24 * 1024 * 1024 // max(bytes_per_row, 1)) // 8 * 8)
    bt = min(_round_up(B, 8), 256, bt_cap)
    b_pad = _round_up(B, bt)
    nb = b_pad // bt

    x = inputs.astype(jnp.float32)
    if b_pad != B:
        x = jnp.pad(x, ((0, b_pad - B), (0, 0)))

    args = (x,
            prep["w0_all"], prep["whh0"], prep["b0_all"],
            prep["wih1"], prep["whh1"], prep["b1"],
            prep["wih2"], prep["whh2"], prep["b2"],
            prep["w_head"], prep["b_head"])

    def full_spec(a):
        return pl.BlockSpec(a.shape, lambda i: (0, 0))

    in_specs = ([pl.BlockSpec((bt, in_dim), lambda i: (i, 0))]
                + [full_spec(a) for a in args[1:]])
    out_specs = pl.BlockSpec((bt, ts * out_pad), lambda i: (i, 0))

    kernel = functools.partial(decoder_kernel, ts=ts, out_pad=out_pad)

    y = pl.pallas_call(
        kernel,
        out_shape=jax.ShapeDtypeStruct((b_pad, ts * out_pad), jnp.float32),
        grid=(nb,),
        in_specs=in_specs,
        out_specs=out_specs,
        scratch_shapes=[pltpu.VMEM((ts * bt, H), jnp.float32),    # layer output sequence
                        pltpu.VMEM((bt, ts * G), jnp.float32),    # layer-0 gate projections
                        pltpu.VMEM((ts * bt, G), jnp.float32)],   # layer-1/2 gate projections
        compiler_params=pltpu.CompilerParams(
            dimension_semantics=("parallel",),
            vmem_limit_bytes=64 * 1024 * 1024),
    )(*args)

    # Output is already batch-first: (b_pad, ts*out_pad).  Drop batch-padding rows and the
    # per-timestep lane padding columns, then flatten to the PyTorch view (B, ts*out_dim).
    if out_pad == out_dim:
        return y[:B]
    return y[:B].reshape(B, ts, out_pad)[:, :, :out_dim].reshape(B, ts * out_dim)


decoder_forward = jax.jit(_decoder_forward, static_argnums=2)


def init_params(key, in_dim, out_dim):
    """Deterministic synthetic parameters in PyTorch-native layout."""
    ks = jax.random.split(key, 16)
    s = 1.0 / jnp.sqrt(jnp.float32(H))
    s1 = 1.0 / jnp.sqrt(jnp.float32(H))
    s2 = 1.0 / jnp.sqrt(jnp.float32(H1))

    def u(k, shape, scale):
        return jax.random.uniform(k, shape, jnp.float32, -scale, scale)

    p = {}
    p["w_ih_l0"] = u(ks[0], (G, in_dim), s)
    p["w_hh_l0"] = u(ks[1], (G, H), s)
    p["b_ih_l0"] = u(ks[2], (G,), s)
    p["b_hh_l0"] = u(ks[3], (G,), s)
    p["w_ih_l1"] = u(ks[4], (G, H), s)
    p["w_hh_l1"] = u(ks[5], (G, H), s)
    p["b_ih_l1"] = u(ks[6], (G,), s)
    p["b_hh_l1"] = u(ks[7], (G,), s)
    p["w_ih_l2"] = u(ks[8], (G, H), s)
    p["w_hh_l2"] = u(ks[9], (G, H), s)
    p["b_ih_l2"] = u(ks[10], (G,), s)
    p["b_hh_l2"] = u(ks[11], (G,), s)
    p["w_lin1"] = u(ks[12], (H1, H), s1)
    p["b_lin1"] = u(ks[13], (H1,), s1)
    p["w_out"] = u(ks[14], (out_dim, H1), s2)
    p["b_out"] = u(ks[15], (out_dim,), s2)
    return p


def reference_forward(inputs, params, ts):
    """Pure-JAX mirror of the PyTorch forward (PyTorch weight layout / gate order i,f,g,o)."""
    B, in_dim = inputs.shape
    x = jnp.maximum(inputs, 0.0)
    x = jnp.repeat(x, ts, axis=1).reshape(-1, ts, in_dim)   # == torch.repeat_interleave + reshape

    def run_layer(seq, w_ih, w_hh, b_ih, b_hh):
        wihT, whhT, b = w_ih.T, w_hh.T, b_ih + b_hh

        def step(carry, xt):
            h, c = carry
            gates = (jnp.dot(xt, wihT, precision=lax.Precision.HIGHEST)
                     + jnp.dot(h, whhT, precision=lax.Precision.HIGHEST) + b)
            i = jax.nn.sigmoid(gates[:, :H])
            f = jax.nn.sigmoid(gates[:, H:2 * H])
            g = jnp.tanh(gates[:, 2 * H:3 * H])
            o = jax.nn.sigmoid(gates[:, 3 * H:])
            c = f * c + i * g
            h = o * jnp.tanh(c)
            return (h, c), h

        init = (jnp.zeros((B, H), jnp.float32), jnp.zeros((B, H), jnp.float32))
        _, ys = lax.scan(step, init, jnp.transpose(seq, (1, 0, 2)))
        return jnp.transpose(ys, (1, 0, 2))

    seq = x
    for l in range(3):
        seq = run_layer(seq, params[f"w_ih_l{l}"], params[f"w_hh_l{l}"],
                        params[f"b_ih_l{l}"], params[f"b_hh_l{l}"])
    z = jnp.dot(seq, params["w_lin1"].T, precision=lax.Precision.HIGHEST) + params["b_lin1"]
    z = jnp.dot(z, params["w_out"].T, precision=lax.Precision.HIGHEST) + params["b_out"]
    return jax.nn.sigmoid(z).reshape(B, -1)


if __name__ == "__main__":
    B, in_dim, ts, out_dim = 2, 32, 8, 16

    key = jax.random.PRNGKey(0)
    k_in, k_par = jax.random.split(key)
    inputs = jax.random.normal(k_in, (B, in_dim), jnp.float32)
    params = init_params(k_par, in_dim, out_dim)

    out = jax.block_until_ready(decoder_forward(inputs, params, ts))
    assert out.shape == (B, ts * out_dim), out.shape

    ref = jax.block_until_ready(reference_forward(inputs, params, ts))
    err = float(jnp.max(jnp.abs(out - ref)))
    assert jnp.allclose(out, ref, atol=5e-3), err

    print("KERNEL_OK")
</pallas_src>

<mosaic_0001>
module attributes {stable_mosaic.version = 11 : i64} {
  func.func @decoder_kernel(%arg0: i32, %arg1: memref<8x32xf32, #tpu.memory_space<vmem>>, %arg2: memref<32x4096xf32, #tpu.memory_space<vmem>>, %arg3: memref<128x512xf32, #tpu.memory_space<vmem>>, %arg4: memref<1x4096xf32, #tpu.memory_space<vmem>>, %arg5: memref<128x512xf32, #tpu.memory_space<vmem>>, %arg6: memref<128x512xf32, #tpu.memory_space<vmem>>, %arg7: memref<1x512xf32, #tpu.memory_space<vmem>>, %arg8: memref<128x512xf32, #tpu.memory_space<vmem>>, %arg9: memref<128x512xf32, #tpu.memory_space<vmem>>, %arg10: memref<1x512xf32, #tpu.memory_space<vmem>>, %arg11: memref<128x128xf32, #tpu.memory_space<vmem>>, %arg12: memref<1x128xf32, #tpu.memory_space<vmem>>, %arg13: memref<8x1024xf32, #tpu.memory_space<vmem>>, %arg14: memref<64x128xf32, #tpu.memory_space<vmem>>, %arg15: memref<8x4096xf32, #tpu.memory_space<vmem>>, %arg16: memref<64x512xf32, #tpu.memory_space<vmem>>) attributes {dimension_semantics = [#tpu.dimension_semantics<parallel>], iteration_bounds = array<i64: 1>, scalar_prefetch = 0 : i64, scratch_operands = 3 : i64, tpu.core_type = #tpu.core_type<tc>, window_params = [{transform_indices = @transform_0, window_bounds = array<i64: 8, 32>}, {pipeline_mode = #tpu.pipeline_mode<synchronous>, transform_indices = @transform_1, window_bounds = array<i64: 32, 4096>}, {pipeline_mode = #tpu.pipeline_mode<synchronous>, transform_indices = @transform_2, window_bounds = array<i64: 128, 512>}, {pipeline_mode = #tpu.pipeline_mode<synchronous>, transform_indices = @transform_3, window_bounds = array<i64: 1, 4096>}, {pipeline_mode = #tpu.pipeline_mode<synchronous>, transform_indices = @transform_4, window_bounds = array<i64: 128, 512>}, {pipeline_mode = #tpu.pipeline_mode<synchronous>, transform_indices = @transform_5, window_bounds = array<i64: 128, 512>}, {pipeline_mode = #tpu.pipeline_mode<synchronous>, transform_indices = @transform_6, window_bounds = array<i64: 1, 512>}, {pipeline_mode = #tpu.pipeline_mode<synchronous>, transform_indices = @transform_7, window_bounds = array<i64: 128, 512>}, {pipeline_mode = #tpu.pipeline_mode<synchronous>, transform_indices = @transform_8, window_bounds = array<i64: 128, 512>}, {pipeline_mode = #tpu.pipeline_mode<synchronous>, transform_indices = @transform_9, window_bounds = array<i64: 1, 512>}, {pipeline_mode = #tpu.pipeline_mode<synchronous>, transform_indices = @transform_10, window_bounds = array<i64: 128, 128>}, {pipeline_mode = #tpu.pipeline_mode<synchronous>, transform_indices = @transform_11, window_bounds = array<i64: 1, 128>}, {transform_indices = @transform_12, window_bounds = array<i64: 8, 1024>}]} {
    %c0 = arith.constant 0 : index
    %c0_0 = arith.constant 0 : index
    %0 = vector.load %arg1[%c0, %c0_0] : memref<8x32xf32, #tpu.memory_space<vmem>>, vector<8x32xf32>
    %cst = arith.constant 0.000000e+00 : f32
    %1 = vector.broadcast %cst : f32 to vector<8x32xf32>
    %2 = arith.maximumf %0, %1 : vector<8x32xf32>
    %c0_1 = arith.constant 0 : index
    %c0_2 = arith.constant 0 : index
    %3 = vector.load %arg2[%c0_1, %c0_2] : memref<32x4096xf32, #tpu.memory_space<vmem>>, vector<32x4096xf32>
    %cst_3 = arith.constant dense<0.000000e+00> : vector<8x4096xf32>
    %4 = tpu.matmul %2, %3, %cst_3 {dimension_numbers = #tpu.dot_dimension_numbers<[1], [0], [0], [1], [0, 0, 1, 1], [], []>} : vector<8x32xf32>, vector<32x4096xf32>, vector<8x4096xf32> -> vector<8x4096xf32>
    %c0_4 = arith.constant 0 : index
    %c0_5 = arith.constant 0 : index
    %5 = vector.load %arg4[%c0_4, %c0_5] : memref<1x4096xf32, #tpu.memory_space<vmem>>, vector<1x4096xf32>
    %6 = vector.broadcast %5 : vector<1x4096xf32> to vector<8x4096xf32>
    %7 = arith.addf %4, %6 : vector<8x4096xf32>
    %c0_6 = arith.constant 0 : index
    %c0_7 = arith.constant 0 : index
    %8 = vector.load %arg15[%c0_6, %c0_7] : memref<8x4096xf32, #tpu.memory_space<vmem>>, vector<8x4096xf32>
    tpu.vector_store %arg15[%c0_6, %c0_7], %7 {strides = array<i32>} : memref<8x4096xf32, #tpu.memory_space<vmem>>, vector<8x4096xf32>,
    %cst_8 = arith.constant 0.000000e+00 : f32
    %9 = vector.broadcast %cst_8 : f32 to vector<8x128xf32>
    %c0_9 = arith.constant 0 : index
    %c0_10 = arith.constant 0 : index
    %10 = vector.load %arg15[%c0_9, %c0_10] : memref<8x4096xf32, #tpu.memory_space<vmem>>, vector<8x512xf32>
    %c0_11 = arith.constant 0 : index
    %c0_12 = arith.constant 0 : index
    %11 = vector.load %arg3[%c0_11, %c0_12] : memref<128x512xf32, #tpu.memory_space<vmem>>, vector<128x512xf32>
    %cst_13 = arith.constant dense<0.000000e+00> : vector<8x512xf32>
    %12 = tpu.matmul %9, %11, %cst_13 {dimension_numbers = #tpu.dot_dimension_numbers<[1], [0], [0], [1], [0, 0, 1, 1], [], []>} : vector<8x128xf32>, vector<128x512xf32>, vector<8x512xf32> -> vector<8x512xf32>
    %13 = arith.addf %10, %12 : vector<8x512xf32>
    %14 = vector.extract_strided_slice %13 {offsets = [0, 0], sizes = [8, 384], strides = [1, 1]} : vector<8x512xf32> to vector<8x384xf32>
    %15 = arith.negf %14 : vector<8x384xf32>
    %16 = math.exp %15 : vector<8x384xf32>
    %cst_14 = arith.constant 1.000000e+00 : f32
    %17 = vector.broadcast %cst_14 : f32 to vector<8x384xf32>
    %18 = arith.addf %17, %16 : vector<8x384xf32>
    %19 = arith.divf %17, %18 : vector<8x384xf32>
    %20 = vector.extract_strided_slice %13 {offsets = [0, 384], sizes = [8, 128], strides = [1, 1]} : vector<8x512xf32> to vector<8x128xf32>
    %21 = math.tanh %20 : vector<8x128xf32>
    %22 = vector.extract_strided_slice %19 {offsets = [0, 0], sizes = [8, 128], strides = [1, 1]} : vector<8x384xf32> to vector<8x128xf32>
    %23 = vector.extract_strided_slice %19 {offsets = [0, 128], sizes = [8, 128], strides = [1, 1]} : vector<8x384xf32> to vector<8x128xf32>
    %24 = vector.extract_strided_slice %19 {offsets = [0, 256], sizes = [8, 128], strides = [1, 1]} : vector<8x384xf32> to vector<8x128xf32>
    %25 = arith.mulf %23, %9 : vector<8x128xf32>
    %26 = arith.mulf %22, %21 : vector<8x128xf32>
    %27 = arith.addf %25, %26 : vector<8x128xf32>
    %28 = math.tanh %27 : vector<8x128xf32>
    %29 = arith.mulf %24, %28 : vector<8x128xf32>
    %c0_15 = arith.constant 0 : index
    %c0_16 = arith.constant 0 : index
    %30 = vector.load %arg14[%c0_15, %c0_16] : memref<64x128xf32, #tpu.memory_space<vmem>>, vector<8x128xf32>
    tpu.vector_store %arg14[%c0_15, %c0_16], %29 {strides = array<i32>} : memref<64x128xf32, #tpu.memory_space<vmem>>, vector<8x128xf32>,
    %c0_17 = arith.constant 0 : index
    %c512 = arith.constant 512 : index
    %31 = vector.load %arg15[%c0_17, %c512] : memref<8x4096xf32, #tpu.memory_space<vmem>>, vector<8x512xf32>
    %c0_18 = arith.constant 0 : index
    %c0_19 = arith.constant 0 : index
    %32 = vector.load %arg3[%c0_18, %c0_19] : memref<128x512xf32, #tpu.memory_space<vmem>>, vector<128x512xf32>
    %cst_20 = arith.constant dense<0.000000e+00> : vector<8x512xf32>
    %33 = tpu.matmul %29, %32, %cst_20 {dimension_numbers = #tpu.dot_dimension_numbers<[1], [0], [0], [1], [0, 0, 1, 1], [], []>} : vector<8x128xf32>, vector<128x512xf32>, vector<8x512xf32> -> vector<8x512xf32>
    %34 = arith.addf %31, %33 : vector<8x512xf32>
    %35 = vector.extract_strided_slice %34 {offsets = [0, 0], sizes = [8, 384], strides = [1, 1]} : vector<8x512xf32> to vector<8x384xf32>
    %36 = arith.negf %35 : vector<8x384xf32>
    %37 = math.exp %36 : vector<8x384xf32>
    %cst_21 = arith.constant 1.000000e+00 : f32
    %38 = vector.broadcast %cst_21 : f32 to vector<8x384xf32>
    %39 = arith.addf %38, %37 : vector<8x384xf32>
    %40 = arith.divf %38, %39 : vector<8x384xf32>
    %41 = vector.extract_strided_slice %34 {offsets = [0, 384], sizes = [8, 128], strides = [1, 1]} : vector<8x512xf32> to vector<8x128xf32>
    %42 = math.tanh %41 : vector<8x128xf32>
    %43 = vector.extract_strided_slice %40 {offsets = [0, 0], sizes = [8, 128], strides = [1, 1]} : vector<8x384xf32> to vector<8x128xf32>
    %44 = vector.extract_strided_slice %40 {offsets = [0, 128], sizes = [8, 128], strides = [1, 1]} : vector<8x384xf32> to vector<8x128xf32>
    %45 = vector.extract_strided_slice %40 {offsets = [0, 256], sizes = [8, 128], strides = [1, 1]} : vector<8x384xf32> to vector<8x128xf32>
    %46 = arith.mulf %44, %27 : vector<8x128xf32>
    %47 = arith.mulf %43, %42 : vector<8x128xf32>
    %48 = arith.addf %46, %47 : vector<8x128xf32>
    %49 = math.tanh %48 : vector<8x128xf32>
    %50 = arith.mulf %45, %49 : vector<8x128xf32>
    %c8 = arith.constant 8 : index
    %c0_22 = arith.constant 0 : index
    %51 = vector.load %arg14[%c8, %c0_22] : memref<64x128xf32, #tpu.memory_space<vmem>>, vector<8x128xf32>
    tpu.vector_store %arg14[%c8, %c0_22], %50 {strides = array<i32>} : memref<64x128xf32, #tpu.memory_space<vmem>>, vector<8x128xf32>,
    %c0_23 = arith.constant 0 : index
    %c1024 = arith.constant 1024 : index
    %52 = vector.load %arg15[%c0_23, %c1024] : memref<8x4096xf32, #tpu.memory_space<vmem>>, vector<8x512xf32>
    %c0_24 = arith.constant 0 : index
    %c0_25 = arith.constant 0 : index
    %53 = vector.load %arg3[%c0_24, %c0_25] : memref<128x512xf32, #tpu.memory_space<vmem>>, vector<128x512xf32>
    %cst_26 = arith.constant dense<0.000000e+00> : vector<8x512xf32>
    %54 = tpu.matmul %50, %53, %cst_26 {dimension_numbers = #tpu.dot_dimension_numbers<[1], [0], [0], [1], [0, 0, 1, 1], [], []>} : vector<8x128xf32>, vector<128x512xf32>, vector<8x512xf32> -> vector<8x512xf32>
    %55 = arith.addf %52, %54 : vector<8x512xf32>
    %56 = vector.extract_strided_slice %55 {offsets = [0, 0], sizes = [8, 384], strides = [1, 1]} : vector<8x512xf32> to vector<8x384xf32>
    %57 = arith.negf %56 : vector<8x384xf32>
    %58 = math.exp %57 : vector<8x384xf32>
    %cst_27 = arith.constant 1.000000e+00 : f32
    %59 = vector.broadcast %cst_27 : f32 to vector<8x384xf32>
    %60 = arith.addf %59, %58 : vector<8x384xf32>
    %61 = arith.divf %59, %60 : vector<8x384xf32>
    %62 = vector.extract_strided_slice %55 {offsets = [0, 384], sizes = [8, 128], strides = [1, 1]} : vector<8x512xf32> to vector<8x128xf32>
    %63 = math.tanh %62 : vector<8x128xf32>
    %64 = vector.extract_strided_slice %61 {offsets = [0, 0], sizes = [8, 128], strides = [1, 1]} : vector<8x384xf32> to vector<8x128xf32>
    %65 = vector.extract_strided_slice %61 {offsets = [0, 128], sizes = [8, 128], strides = [1, 1]} : vector<8x384xf32> to vector<8x128xf32>
    %66 = vector.extract_strided_slice %61 {offsets = [0, 256], sizes = [8, 128], strides = [1, 1]} : vector<8x384xf32> to vector<8x128xf32>
    %67 = arith.mulf %65, %48 : vector<8x128xf32>
    %68 = arith.mulf %64, %63 : vector<8x128xf32>
    %69 = arith.addf %67, %68 : vector<8x128xf32>
    %70 = math.tanh %69 : vector<8x128xf32>
    %71 = arith.mulf %66, %70 : vector<8x128xf32>
    %c16 = arith.constant 16 : index
    %c0_28 = arith.constant 0 : index
    %72 = vector.load %arg14[%c16, %c0_28] : memref<64x128xf32, #tpu.memory_space<vmem>>, vector<8x128xf32>
    tpu.vector_store %arg14[%c16, %c0_28], %71 {strides = array<i32>} : memref<64x128xf32, #tpu.memory_space<vmem>>, vector<8x128xf32>,
    %c0_29 = arith.constant 0 : index
    %c1536 = arith.constant 1536 : index
    %73 = vector.load %arg15[%c0_29, %c1536] : memref<8x4096xf32, #tpu.memory_space<vmem>>, vector<8x512xf32>
    %c0_30 = arith.constant 0 : index
    %c0_31 = arith.constant 0 : index
    %74 = vector.load %arg3[%c0_30, %c0_31] : memref<128x512xf32, #tpu.memory_space<vmem>>, vector<128x512xf32>
    %cst_32 = arith.constant dense<0.000000e+00> : vector<8x512xf32>
    %75 = tpu.matmul %71, %74, %cst_32 {dimension_numbers = #tpu.dot_dimension_numbers<[1], [0], [0], [1], [0, 0, 1, 1], [], []>} : vector<8x128xf32>, vector<128x512xf32>, vector<8x512xf32> -> vector<8x512xf32>
    %76 = arith.addf %73, %75 : vector<8x512xf32>
    %77 = vector.extract_strided_slice %76 {offsets = [0, 0], sizes = [8, 384], strides = [1, 1]} : vector<8x512xf32> to vector<8x384xf32>
    %78 = arith.negf %77 : vector<8x384xf32>
    %79 = math.exp %78 : vector<8x384xf32>
    %cst_33 = arith.constant 1.000000e+00 : f32
    %80 = vector.broadcast %cst_33 : f32 to vector<8x384xf32>
    %81 = arith.addf %80, %79 : vector<8x384xf32>
    %82 = arith.divf %80, %81 : vector<8x384xf32>
    %83 = vector.extract_strided_slice %76 {offsets = [0, 384], sizes = [8, 128], strides = [1, 1]} : vector<8x512xf32> to vector<8x128xf32>
    %84 = math.tanh %83 : vector<8x128xf32>
    %85 = vector.extract_strided_slice %82 {offsets = [0, 0], sizes = [8, 128], strides = [1, 1]} : vector<8x384xf32> to vector<8x128xf32>
    %86 = vector.extract_strided_slice %82 {offsets = [0, 128], sizes = [8, 128], strides = [1, 1]} : vector<8x384xf32> to vector<8x128xf32>
    %87 = vector.extract_strided_slice %82 {offsets = [0, 256], sizes = [8, 128], strides = [1, 1]} : vector<8x384xf32> to vector<8x128xf32>
    %88 = arith.mulf %86, %69 : vector<8x128xf32>
    %89 = arith.mulf %85, %84 : vector<8x128xf32>
    %90 = arith.addf %88, %89 : vector<8x128xf32>
    %91 = math.tanh %90 : vector<8x128xf32>
    %92 = arith.mulf %87, %91 : vector<8x128xf32>
    %c24 = arith.constant 24 : index
    %c0_34 = arith.constant 0 : index
    %93 = vector.load %arg14[%c24, %c0_34] : memref<64x128xf32, #tpu.memory_space<vmem>>, vector<8x128xf32>
    tpu.vector_store %arg14[%c24, %c0_34], %92 {strides = array<i32>} : memref<64x128xf32, #tpu.memory_space<vmem>>, vector<8x128xf32>,
    %c0_35 = arith.constant 0 : index
    %c2048 = arith.constant 2048 : index
    %94 = vector.load %arg15[%c0_35, %c2048] : memref<8x4096xf32, #tpu.memory_space<vmem>>, vector<8x512xf32>
    %c0_36 = arith.constant 0 : index
    %c0_37 = arith.constant 0 : index
    %95 = vector.load %arg3[%c0_36, %c0_37] : memref<128x512xf32, #tpu.memory_space<vmem>>, vector<128x512xf32>
    %cst_38 = arith.constant dense<0.000000e+00> : vector<8x512xf32>
    %96 = tpu.matmul %92, %95, %cst_38 {dimension_numbers = #tpu.dot_dimension_numbers<[1], [0], [0], [1], [0, 0, 1, 1], [], []>} : vector<8x128xf32>, vector<128x512xf32>, vector<8x512xf32> -> vector<8x512xf32>
    %97 = arith.addf %94, %96 : vector<8x512xf32>
    %98 = vector.extract_strided_slice %97 {offsets = [0, 0], sizes = [8, 384], strides = [1, 1]} : vector<8x512xf32> to vector<8x384xf32>
    %99 = arith.negf %98 : vector<8x384xf32>
    %100 = math.exp %99 : vector<8x384xf32>
    %cst_39 = arith.constant 1.000000e+00 : f32
    %101 = vector.broadcast %cst_39 : f32 to vector<8x384xf32>
    %102 = arith.addf %101, %100 : vector<8x384xf32>
    %103 = arith.divf %101, %102 : vector<8x384xf32>
    %104 = vector.extract_strided_slice %97 {offsets = [0, 384], sizes = [8, 128], strides = [1, 1]} : vector<8x512xf32> to vector<8x128xf32>
    %105 = math.tanh %104 : vector<8x128xf32>
    %106 = vector.extract_strided_slice %103 {offsets = [0, 0], sizes = [8, 128], strides = [1, 1]} : vector<8x384xf32> to vector<8x128xf32>
    %107 = vector.extract_strided_slice %103 {offsets = [0, 128], sizes = [8, 128], strides = [1, 1]} : vector<8x384xf32> to vector<8x128xf32>
    %108 = vector.extract_strided_slice %103 {offsets = [0, 256], sizes = [8, 128], strides = [1, 1]} : vector<8x384xf32> to vector<8x128xf32>
    %109 = arith.mulf %107, %90 : vector<8x128xf32>
    %110 = arith.mulf %106, %105 : vector<8x128xf32>
    %111 = arith.addf %109, %110 : vector<8x128xf32>
    %112 = math.tanh %111 : vector<8x128xf32>
    %113 = arith.mulf %108, %112 : vector<8x128xf32>
    %c32 = arith.constant 32 : index
    %c0_40 = arith.constant 0 : index
    %114 = vector.load %arg14[%c32, %c0_40] : memref<64x128xf32, #tpu.memory_space<vmem>>, vector<8x128xf32>
    tpu.vector_store %arg14[%c32, %c0_40], %113 {strides = array<i32>} : memref<64x128xf32, #tpu.memory_space<vmem>>, vector<8x128xf32>,
    %c0_41 = arith.constant 0 : index
    %c2560 = arith.constant 2560 : index
    %115 = vector.load %arg15[%c0_41, %c2560] : memref<8x4096xf32, #tpu.memory_space<vmem>>, vector<8x512xf32>
    %c0_42 = arith.constant 0 : index
    %c0_43 = arith.constant 0 : index
    %116 = vector.load %arg3[%c0_42, %c0_43] : memref<128x512xf32, #tpu.memory_space<vmem>>, vector<128x512xf32>
    %cst_44 = arith.constant dense<0.000000e+00> : vector<8x512xf32>
    %117 = tpu.matmul %113, %116, %cst_44 {dimension_numbers = #tpu.dot_dimension_numbers<[1], [0], [0], [1], [0, 0, 1, 1], [], []>} : vector<8x128xf32>, vector<128x512xf32>, vector<8x512xf32> -> vector<8x512xf32>
    %118 = arith.addf %115, %117 : vector<8x512xf32>
    %119 = vector.extract_strided_slice %118 {offsets = [0, 0], sizes = [8, 384], strides = [1, 1]} : vector<8x512xf32> to vector<8x384xf32>
    %120 = arith.negf %119 : vector<8x384xf32>
    %121 = math.exp %120 : vector<8x384xf32>
    %cst_45 = arith.constant 1.000000e+00 : f32
    %122 = vector.broadcast %cst_45 : f32 to vector<8x384xf32>
    %123 = arith.addf %122, %121 : vector<8x384xf32>
    %124 = arith.divf %122, %123 : vector<8x384xf32>
    %125 = vector.extract_strided_slice %118 {offsets = [0, 384], sizes = [8, 128], strides = [1, 1]} : vector<8x512xf32> to vector<8x128xf32>
    %126 = math.tanh %125 : vector<8x128xf32>
    %127 = vector.extract_strided_slice %124 {offsets = [0, 0], sizes = [8, 128], strides = [1, 1]} : vector<8x384xf32> to vector<8x128xf32>
    %128 = vector.extract_strided_slice %124 {offsets = [0, 128], sizes = [8, 128], strides = [1, 1]} : vector<8x384xf32> to vector<8x128xf32>
    %129 = vector.extract_strided_slice %124 {offsets = [0, 256], sizes = [8, 128], strides = [1, 1]} : vector<8x384xf32> to vector<8x128xf32>
    %130 = arith.mulf %128, %111 : vector<8x128xf32>
    %131 = arith.mulf %127, %126 : vector<8x128xf32>
    %132 = arith.addf %130, %131 : vector<8x128xf32>
    %133 = math.tanh %132 : vector<8x128xf32>
    %134 = arith.mulf %129, %133 : vector<8x128xf32>
    %c40 = arith.constant 40 : index
    %c0_46 = arith.constant 0 : index
    %135 = vector.load %arg14[%c40, %c0_46] : memref<64x128xf32, #tpu.memory_space<vmem>>, vector<8x128xf32>
    tpu.vector_store %arg14[%c40, %c0_46], %134 {strides = array<i32>} : memref<64x128xf32, #tpu.memory_space<vmem>>, vector<8x128xf32>,
    %c0_47 = arith.constant 0 : index
    %c3072 = arith.constant 3072 : index
    %136 = vector.load %arg15[%c0_47, %c3072] : memref<8x4096xf32, #tpu.memory_space<vmem>>, vector<8x512xf32>
    %c0_48 = arith.constant 0 : index
    %c0_49 = arith.constant 0 : index
    %137 = vector.load %arg3[%c0_48, %c0_49] : memref<128x512xf32, #tpu.memory_space<vmem>>, vector<128x512xf32>
    %cst_50 = arith.constant dense<0.000000e+00> : vector<8x512xf32>
    %138 = tpu.matmul %134, %137, %cst_50 {dimension_numbers = #tpu.dot_dimension_numbers<[1], [0], [0], [1], [0, 0, 1, 1], [], []>} : vector<8x128xf32>, vector<128x512xf32>, vector<8x512xf32> -> vector<8x512xf32>
    %139 = arith.addf %136, %138 : vector<8x512xf32>
    %140 = vector.extract_strided_slice %139 {offsets = [0, 0], sizes = [8, 384], strides = [1, 1]} : vector<8x512xf32> to vector<8x384xf32>
    %141 = arith.negf %140 : vector<8x384xf32>
    %142 = math.exp %141 : vector<8x384xf32>
    %cst_51 = arith.constant 1.000000e+00 : f32
    %143 = vector.broadcast %cst_51 : f32 to vector<8x384xf32>
    %144 = arith.addf %143, %142 : vector<8x384xf32>
    %145 = arith.divf %143, %144 : vector<8x384xf32>
    %146 = vector.extract_strided_slice %139 {offsets = [0, 384], sizes = [8, 128], strides = [1, 1]} : vector<8x512xf32> to vector<8x128xf32>
    %147 = math.tanh %146 : vector<8x128xf32>
    %148 = vector.extract_strided_slice %145 {offsets = [0, 0], sizes = [8, 128], strides = [1, 1]} : vector<8x384xf32> to vector<8x128xf32>
    %149 = vector.extract_strided_slice %145 {offsets = [0, 128], sizes = [8, 128], strides = [1, 1]} : vector<8x384xf32> to vector<8x128xf32>
    %150 = vector.extract_strided_slice %145 {offsets = [0, 256], sizes = [8, 128], strides = [1, 1]} : vector<8x384xf32> to vector<8x128xf32>
    %151 = arith.mulf %149, %132 : vector<8x128xf32>
    %152 = arith.mulf %148, %147 : vector<8x128xf32>
    %153 = arith.addf %151, %152 : vector<8x128xf32>
    %154 = math.tanh %153 : vector<8x128xf32>
    %155 = arith.mulf %150, %154 : vector<8x128xf32>
    %c48 = arith.constant 48 : index
    %c0_52 = arith.constant 0 : index
    %156 = vector.load %arg14[%c48, %c0_52] : memref<64x128xf32, #tpu.memory_space<vmem>>, vector<8x128xf32>
    tpu.vector_store %arg14[%c48, %c0_52], %155 {strides = array<i32>} : memref<64x128xf32, #tpu.memory_space<vmem>>, vector<8x128xf32>,
    %c0_53 = arith.constant 0 : index
    %c3584 = arith.constant 3584 : index
    %157 = vector.load %arg15[%c0_53, %c3584] : memref<8x4096xf32, #tpu.memory_space<vmem>>, vector<8x512xf32>
    %c0_54 = arith.constant 0 : index
    %c0_55 = arith.constant 0 : index
    %158 = vector.load %arg3[%c0_54, %c0_55] : memref<128x512xf32, #tpu.memory_space<vmem>>, vector<128x512xf32>
    %cst_56 = arith.constant dense<0.000000e+00> : vector<8x512xf32>
    %159 = tpu.matmul %155, %158, %cst_56 {dimension_numbers = #tpu.dot_dimension_numbers<[1], [0], [0], [1], [0, 0, 1, 1], [], []>} : vector<8x128xf32>, vector<128x512xf32>, vector<8x512xf32> -> vector<8x512xf32>
    %160 = arith.addf %157, %159 : vector<8x512xf32>
    %161 = vector.extract_strided_slice %160 {offsets = [0, 0], sizes = [8, 384], strides = [1, 1]} : vector<8x512xf32> to vector<8x384xf32>
    %162 = arith.negf %161 : vector<8x384xf32>
    %163 = math.exp %162 : vector<8x384xf32>
    %cst_57 = arith.constant 1.000000e+00 : f32
    %164 = vector.broadcast %cst_57 : f32 to vector<8x384xf32>
    %165 = arith.addf %164, %163 : vector<8x384xf32>
    %166 = arith.divf %164, %165 : vector<8x384xf32>
    %167 = vector.extract_strided_slice %160 {offsets = [0, 384], sizes = [8, 128], strides = [1, 1]} : vector<8x512xf32> to vector<8x128xf32>
    %168 = math.tanh %167 : vector<8x128xf32>
    %169 = vector.extract_strided_slice %166 {offsets = [0, 0], sizes = [8, 128], strides = [1, 1]} : vector<8x384xf32> to vector<8x128xf32>
    %170 = vector.extract_strided_slice %166 {offsets = [0, 128], sizes = [8, 128], strides = [1, 1]} : vector<8x384xf32> to vector<8x128xf32>
    %171 = vector.extract_strided_slice %166 {offsets = [0, 256], sizes = [8, 128], strides = [1, 1]} : vector<8x384xf32> to vector<8x128xf32>
    %172 = arith.mulf %170, %153 : vector<8x128xf32>
    %173 = arith.mulf %169, %168 : vector<8x128xf32>
    %174 = arith.addf %172, %173 : vector<8x128xf32>
    %175 = math.tanh %174 : vector<8x128xf32>
    %176 = arith.mulf %171, %175 : vector<8x128xf32>
    %c56 = arith.constant 56 : index
    %c0_58 = arith.constant 0 : index
    %177 = vector.load %arg14[%c56, %c0_58] : memref<64x128xf32, #tpu.memory_space<vmem>>, vector<8x128xf32>
    tpu.vector_store %arg14[%c56, %c0_58], %176 {strides = array<i32>} : memref<64x128xf32, #tpu.memory_space<vmem>>, vector<8x128xf32>,
    %c0_59 = arith.constant 0 : index
    %c0_60 = arith.constant 0 : index
    %178 = vector.load %arg14[%c0_59, %c0_60] : memref<64x128xf32, #tpu.memory_space<vmem>>, vector<64x128xf32>
    %c0_61 = arith.constant 0 : index
    %c0_62 = arith.constant 0 : index
    %179 = vector.load %arg5[%c0_61, %c0_62] : memref<128x512xf32, #tpu.memory_space<vmem>>, vector<128x512xf32>
    %cst_63 = arith.constant dense<0.000000e+00> : vector<64x512xf32>
    %180 = tpu.matmul %178, %179, %cst_63 {dimension_numbers = #tpu.dot_dimension_numbers<[1], [0], [0], [1], [0, 0, 1, 1], [], []>} : vector<64x128xf32>, vector<128x512xf32>, vector<64x512xf32> -> vector<64x512xf32>
    %c0_64 = arith.constant 0 : index
    %c0_65 = arith.constant 0 : index
    %181 = vector.load %arg7[%c0_64, %c0_65] : memref<1x512xf32, #tpu.memory_space<vmem>>, vector<1x512xf32>
    %182 = vector.broadcast %181 : vector<1x512xf32> to vector<64x512xf32>
    %183 = arith.addf %180, %182 : vector<64x512xf32>
    %c0_66 = arith.constant 0 : index
    %c0_67 = arith.constant 0 : index
    %184 = vector.load %arg16[%c0_66, %c0_67] : memref<64x512xf32, #tpu.memory_space<vmem>>, vector<64x512xf32>
    tpu.vector_store %arg16[%c0_66, %c0_67], %183 {strides = array<i32>} : memref<64x512xf32, #tpu.memory_space<vmem>>, vector<64x512xf32>,
    %c0_68 = arith.constant 0 : index
    %c0_69 = arith.constant 0 : index
    %185 = vector.load %arg16[%c0_68, %c0_69] : memref<64x512xf32, #tpu.memory_space<vmem>>, vector<8x512xf32>
    %c0_70 = arith.constant 0 : index
    %c0_71 = arith.constant 0 : index
    %186 = vector.load %arg6[%c0_70, %c0_71] : memref<128x512xf32, #tpu.memory_space<vmem>>, vector<128x512xf32>
    %cst_72 = arith.constant dense<0.000000e+00> : vector<8x512xf32>
    %187 = tpu.matmul %9, %186, %cst_72 {dimension_numbers = #tpu.dot_dimension_numbers<[1], [0], [0], [1], [0, 0, 1, 1], [], []>} : vector<8x128xf32>, vector<128x512xf32>, vector<8x512xf32> -> vector<8x512xf32>
    %188 = arith.addf %185, %187 : vector<8x512xf32>
    %189 = vector.extract_strided_slice %188 {offsets = [0, 0], sizes = [8, 384], strides = [1, 1]} : vector<8x512xf32> to vector<8x384xf32>
    %190 = arith.negf %189 : vector<8x384xf32>
    %191 = math.exp %190 : vector<8x384xf32>
    %cst_73 = arith.constant 1.000000e+00 : f32
    %192 = vector.broadcast %cst_73 : f32 to vector<8x384xf32>
    %193 = arith.addf %192, %191 : vector<8x384xf32>
    %194 = arith.divf %192, %193 : vector<8x384xf32>
    %195 = vector.extract_strided_slice %188 {offsets = [0, 384], sizes = [8, 128], strides = [1, 1]} : vector<8x512xf32> to vector<8x128xf32>
    %196 = math.tanh %195 : vector<8x128xf32>
    %197 = vector.extract_strided_slice %194 {offsets = [0, 0], sizes = [8, 128], strides = [1, 1]} : vector<8x384xf32> to vector<8x128xf32>
    %198 = vector.extract_strided_slice %194 {offsets = [0, 128], sizes = [8, 128], strides = [1, 1]} : vector<8x384xf32> to vector<8x128xf32>
    %199 = vector.extract_strided_slice %194 {offsets = [0, 256], sizes = [8, 128], strides = [1, 1]} : vector<8x384xf32> to vector<8x128xf32>
    %200 = arith.mulf %198, %9 : vector<8x128xf32>
    %201 = arith.mulf %197, %196 : vector<8x128xf32>
    %202 = arith.addf %200, %201 : vector<8x128xf32>
    %203 = math.tanh %202 : vector<8x128xf32>
    %204 = arith.mulf %199, %203 : vector<8x128xf32>
    %c0_74 = arith.constant 0 : index
    %c0_75 = arith.constant 0 : index
    %205 = vector.load %arg14[%c0_74, %c0_75] : memref<64x128xf32, #tpu.memory_space<vmem>>, vector<8x128xf32>
    tpu.vector_store %arg14[%c0_74, %c0_75], %204 {strides = array<i32>} : memref<64x128xf32, #tpu.memory_space<vmem>>, vector<8x128xf32>,
    %c8_76 = arith.constant 8 : index
    %c0_77 = arith.constant 0 : index
    %206 = vector.load %arg16[%c8_76, %c0_77] : memref<64x512xf32, #tpu.memory_space<vmem>>, vector<8x512xf32>
    %c0_78 = arith.constant 0 : index
    %c0_79 = arith.constant 0 : index
    %207 = vector.load %arg6[%c0_78, %c0_79] : memref<128x512xf32, #tpu.memory_space<vmem>>, vector<128x512xf32>
    %cst_80 = arith.constant dense<0.000000e+00> : vector<8x512xf32>
    %208 = tpu.matmul %204, %207, %cst_80 {dimension_numbers = #tpu.dot_dimension_numbers<[1], [0], [0], [1], [0, 0, 1, 1], [], []>} : vector<8x128xf32>, vector<128x512xf32>, vector<8x512xf32> -> vector<8x512xf32>
    %209 = arith.addf %206, %208 : vector<8x512xf32>
    %210 = vector.extract_strided_slice %209 {offsets = [0, 0], sizes = [8, 384], strides = [1, 1]} : vector<8x512xf32> to vector<8x384xf32>
    %211 = arith.negf %210 : vector<8x384xf32>
    %212 = math.exp %211 : vector<8x384xf32>
    %cst_81 = arith.constant 1.000000e+00 : f32
    %213 = vector.broadcast %cst_81 : f32 to vector<8x384xf32>
    %214 = arith.addf %213, %212 : vector<8x384xf32>
    %215 = arith.divf %213, %214 : vector<8x384xf32>
    %216 = vector.extract_strided_slice %209 {offsets = [0, 384], sizes = [8, 128], strides = [1, 1]} : vector<8x512xf32> to vector<8x128xf32>
    %217 = math.tanh %216 : vector<8x128xf32>
    %218 = vector.extract_strided_slice %215 {offsets = [0, 0], sizes = [8, 128], strides = [1, 1]} : vector<8x384xf32> to vector<8x128xf32>
    %219 = vector.extract_strided_slice %215 {offsets = [0, 128], sizes = [8, 128], strides = [1, 1]} : vector<8x384xf32> to vector<8x128xf32>
    %220 = vector.extract_strided_slice %215 {offsets = [0, 256], sizes = [8, 128], strides = [1, 1]} : vector<8x384xf32> to vector<8x128xf32>
    %221 = arith.mulf %219, %202 : vector<8x128xf32>
    %222 = arith.mulf %218, %217 : vector<8x128xf32>
    %223 = arith.addf %221, %222 : vector<8x128xf32>
    %224 = math.tanh %223 : vector<8x128xf32>
    %225 = arith.mulf %220, %224 : vector<8x128xf32>
    %c8_82 = arith.constant 8 : index
    %c0_83 = arith.constant 0 : index
    %226 = vector.load %arg14[%c8_82, %c0_83] : memref<64x128xf32, #tpu.memory_space<vmem>>, vector<8x128xf32>
    tpu.vector_store %arg14[%c8_82, %c0_83], %225 {strides = array<i32>} : memref<64x128xf32, #tpu.memory_space<vmem>>, vector<8x128xf32>,
    %c16_84 = arith.constant 16 : index
    %c0_85 = arith.constant 0 : index
    %227 = vector.load %arg16[%c16_84, %c0_85] : memref<64x512xf32, #tpu.memory_space<vmem>>, vector<8x512xf32>
    %c0_86 = arith.constant 0 : index
    %c0_87 = arith.constant 0 : index
    %228 = vector.load %arg6[%c0_86, %c0_87] : memref<128x512xf32, #tpu.memory_space<vmem>>, vector<128x512xf32>
    %cst_88 = arith.constant dense<0.000000e+00> : vector<8x512xf32>
    %229 = tpu.matmul %225, %228, %cst_88 {dimension_numbers = #tpu.dot_dimension_numbers<[1], [0], [0], [1], [0, 0, 1, 1], [], []>} : vector<8x128xf32>, vector<128x512xf32>, vector<8x512xf32> -> vector<8x512xf32>
    %230 = arith.addf %227, %229 : vector<8x512xf32>
    %231 = vector.extract_strided_slice %230 {offsets = [0, 0], sizes = [8, 384], strides = [1, 1]} : vector<8x512xf32> to vector<8x384xf32>
    %232 = arith.negf %231 : vector<8x384xf32>
    %233 = math.exp %232 : vector<8x384xf32>
    %cst_89 = arith.constant 1.000000e+00 : f32
    %234 = vector.broadcast %cst_89 : f32 to vector<8x384xf32>
    %235 = arith.addf %234, %233 : vector<8x384xf32>
    %236 = arith.divf %234, %235 : vector<8x384xf32>
    %237 = vector.extract_strided_slice %230 {offsets = [0, 384], sizes = [8, 128], strides = [1, 1]} : vector<8x512xf32> to vector<8x128xf32>
    %238 = math.tanh %237 : vector<8x128xf32>
    %239 = vector.extract_strided_slice %236 {offsets = [0, 0], sizes = [8, 128], strides = [1, 1]} : vector<8x384xf32> to vector<8x128xf32>
    %240 = vector.extract_strided_slice %236 {offsets = [0, 128], sizes = [8, 128], strides = [1, 1]} : vector<8x384xf32> to vector<8x128xf32>
    %241 = vector.extract_strided_slice %236 {offsets = [0, 256], sizes = [8, 128], strides = [1, 1]} : vector<8x384xf32> to vector<8x128xf32>
    %242 = arith.mulf %240, %223 : vector<8x128xf32>
    %243 = arith.mulf %239, %238 : vector<8x128xf32>
    %244 = arith.addf %242, %243 : vector<8x128xf32>
    %245 = math.tanh %244 : vector<8x128xf32>
    %246 = arith.mulf %241, %245 : vector<8x128xf32>
    %c16_90 = arith.constant 16 : index
    %c0_91 = arith.constant 0 : index
    %247 = vector.load %arg14[%c16_90, %c0_91] : memref<64x128xf32, #tpu.memory_space<vmem>>, vector<8x128xf32>
    tpu.vector_store %arg14[%c16_90, %c0_91], %246 {strides = array<i32>} : memref<64x128xf32, #tpu.memory_space<vmem>>, vector<8x128xf32>,
    %c24_92 = arith.constant 24 : index
    %c0_93 = arith.constant 0 : index
    %248 = vector.load %arg16[%c24_92, %c0_93] : memref<64x512xf32, #tpu.memory_space<vmem>>, vector<8x512xf32>
    %c0_94 = arith.constant 0 : index
    %c0_95 = arith.constant 0 : index
    %249 = vector.load %arg6[%c0_94, %c0_95] : memref<128x512xf32, #tpu.memory_space<vmem>>, vector<128x512xf32>
    %cst_96 = arith.constant dense<0.000000e+00> : vector<8x512xf32>
    %250 = tpu.matmul %246, %249, %cst_96 {dimension_numbers = #tpu.dot_dimension_numbers<[1], [0], [0], [1], [0, 0, 1, 1], [], []>} : vector<8x128xf32>, vector<128x512xf32>, vector<8x512xf32> -> vector<8x512xf32>
    %251 = arith.addf %248, %250 : vector<8x512xf32>
    %252 = vector.extract_strided_slice %251 {offsets = [0, 0], sizes = [8, 384], strides = [1, 1]} : vector<8x512xf32> to vector<8x384xf32>
    %253 = arith.negf %252 : vector<8x384xf32>
    %254 = math.exp %253 : vector<8x384xf32>
    %cst_97 = arith.constant 1.000000e+00 : f32
    %255 = vector.broadcast %cst_97 : f32 to vector<8x384xf32>
    %256 = arith.addf %255, %254 : vector<8x384xf32>
    %257 = arith.divf %255, %256 : vector<8x384xf32>
    %258 = vector.extract_strided_slice %251 {offsets = [0, 384], sizes = [8, 128], strides = [1, 1]} : vector<8x512xf32> to vector<8x128xf32>
    %259 = math.tanh %258 : vector<8x128xf32>
    %260 = vector.extract_strided_slice %257 {offsets = [0, 0], sizes = [8, 128], strides = [1, 1]} : vector<8x384xf32> to vector<8x128xf32>
    %261 = vector.extract_strided_slice %257 {offsets = [0, 128], sizes = [8, 128], strides = [1, 1]} : vector<8x384xf32> to vector<8x128xf32>
    %262 = vector.extract_strided_slice %257 {offsets = [0, 256], sizes = [8, 128], strides = [1, 1]} : vector<8x384xf32> to vector<8x128xf32>
    %263 = arith.mulf %261, %244 : vector<8x128xf32>
    %264 = arith.mulf %260, %259 : vector<8x128xf32>
    %265 = arith.addf %263, %264 : vector<8x128xf32>
    %266 = math.tanh %265 : vector<8x128xf32>
    %267 = arith.mulf %262, %266 : vector<8x128xf32>
    %c24_98 = arith.constant 24 : index
    %c0_99 = arith.constant 0 : index
    %268 = vector.load %arg14[%c24_98, %c0_99] : memref<64x128xf32, #tpu.memory_space<vmem>>, vector<8x128xf32>
    tpu.vector_store %arg14[%c24_98, %c0_99], %267 {strides = array<i32>} : memref<64x128xf32, #tpu.memory_space<vmem>>, vector<8x128xf32>,
    %c32_100 = arith.constant 32 : index
    %c0_101 = arith.constant 0 : index
    %269 = vector.load %arg16[%c32_100, %c0_101] : memref<64x512xf32, #tpu.memory_space<vmem>>, vector<8x512xf32>
    %c0_102 = arith.constant 0 : index
    %c0_103 = arith.constant 0 : index
    %270 = vector.load %arg6[%c0_102, %c0_103] : memref<128x512xf32, #tpu.memory_space<vmem>>, vector<128x512xf32>
    %cst_104 = arith.constant dense<0.000000e+00> : vector<8x512xf32>
    %271 = tpu.matmul %267, %270, %cst_104 {dimension_numbers = #tpu.dot_dimension_numbers<[1], [0], [0], [1], [0, 0, 1, 1], [], []>} : vector<8x128xf32>, vector<128x512xf32>, vector<8x512xf32> -> vector<8x512xf32>
    %272 = arith.addf %269, %271 : vector<8x512xf32>
    %273 = vector.extract_strided_slice %272 {offsets = [0, 0], sizes = [8, 384], strides = [1, 1]} : vector<8x512xf32> to vector<8x384xf32>
    %274 = arith.negf %273 : vector<8x384xf32>
    %275 = math.exp %274 : vector<8x384xf32>
    %cst_105 = arith.constant 1.000000e+00 : f32
    %276 = vector.broadcast %cst_105 : f32 to vector<8x384xf32>
    %277 = arith.addf %276, %275 : vector<8x384xf32>
    %278 = arith.divf %276, %277 : vector<8x384xf32>
    %279 = vector.extract_strided_slice %272 {offsets = [0, 384], sizes = [8, 128], strides = [1, 1]} : vector<8x512xf32> to vector<8x128xf32>
    %280 = math.tanh %279 : vector<8x128xf32>
    %281 = vector.extract_strided_slice %278 {offsets = [0, 0], sizes = [8, 128], strides = [1, 1]} : vector<8x384xf32> to vector<8x128xf32>
    %282 = vector.extract_strided_slice %278 {offsets = [0, 128], sizes = [8, 128], strides = [1, 1]} : vector<8x384xf32> to vector<8x128xf32>
    %283 = vector.extract_strided_slice %278 {offsets = [0, 256], sizes = [8, 128], strides = [1, 1]} : vector<8x384xf32> to vector<8x128xf32>
    %284 = arith.mulf %282, %265 : vector<8x128xf32>
    %285 = arith.mulf %281, %280 : vector<8x128xf32>
    %286 = arith.addf %284, %285 : vector<8x128xf32>
    %287 = math.tanh %286 : vector<8x128xf32>
    %288 = arith.mulf %283, %287 : vector<8x128xf32>
    %c32_106 = arith.constant 32 : index
    %c0_107 = arith.constant 0 : index
    %289 = vector.load %arg14[%c32_106, %c0_107] : memref<64x128xf32, #tpu.memory_space<vmem>>, vector<8x128xf32>
    tpu.vector_store %arg14[%c32_106, %c0_107], %288 {strides = array<i32>} : memref<64x128xf32, #tpu.memory_space<vmem>>, vector<8x128xf32>,
    %c40_108 = arith.constant 40 : index
    %c0_109 = arith.constant 0 : index
    %290 = vector.load %arg16[%c40_108, %c0_109] : memref<64x512xf32, #tpu.memory_space<vmem>>, vector<8x512xf32>
    %c0_110 = arith.constant 0 : index
    %c0_111 = arith.constant 0 : index
    %291 = vector.load %arg6[%c0_110, %c0_111] : memref<128x512xf32, #tpu.memory_space<vmem>>, vector<128x512xf32>
    %cst_112 = arith.constant dense<0.000000e+00> : vector<8x512xf32>
    %292 = tpu.matmul %288, %291, %cst_112 {dimension_numbers = #tpu.dot_dimension_numbers<[1], [0], [0], [1], [0, 0, 1, 1], [], []>} : vector<8x128xf32>, vector<128x512xf32>, vector<8x512xf32> -> vector<8x512xf32>
    %293 = arith.addf %290, %292 : vector<8x512xf32>
    %294 = vector.extract_strided_slice %293 {offsets = [0, 0], sizes = [8, 384], strides = [1, 1]} : vector<8x512xf32> to vector<8x384xf32>
    %295 = arith.negf %294 : vector<8x384xf32>
    %296 = math.exp %295 : vector<8x384xf32>
    %cst_113 = arith.constant 1.000000e+00 : f32
    %297 = vector.broadcast %cst_113 : f32 to vector<8x384xf32>
    %298 = arith.addf %297, %296 : vector<8x384xf32>
    %299 = arith.divf %297, %298 : vector<8x384xf32>
    %300 = vector.extract_strided_slice %293 {offsets = [0, 384], sizes = [8, 128], strides = [1, 1]} : vector<8x512xf32> to vector<8x128xf32>
    %301 = math.tanh %300 : vector<8x128xf32>
    %302 = vector.extract_strided_slice %299 {offsets = [0, 0], sizes = [8, 128], strides = [1, 1]} : vector<8x384xf32> to vector<8x128xf32>
    %303 = vector.extract_strided_slice %299 {offsets = [0, 128], sizes = [8, 128], strides = [1, 1]} : vector<8x384xf32> to vector<8x128xf32>
    %304 = vector.extract_strided_slice %299 {offsets = [0, 256], sizes = [8, 128], strides = [1, 1]} : vector<8x384xf32> to vector<8x128xf32>
    %305 = arith.mulf %303, %286 : vector<8x128xf32>
    %306 = arith.mulf %302, %301 : vector<8x128xf32>
    %307 = arith.addf %305, %306 : vector<8x128xf32>
    %308 = math.tanh %307 : vector<8x128xf32>
    %309 = arith.mulf %304, %308 : vector<8x128xf32>
    %c40_114 = arith.constant 40 : index
    %c0_115 = arith.constant 0 : index
    %310 = vector.load %arg14[%c40_114, %c0_115] : memref<64x128xf32, #tpu.memory_space<vmem>>, vector<8x128xf32>
    tpu.vector_store %arg14[%c40_114, %c0_115], %309 {strides = array<i32>} : memref<64x128xf32, #tpu.memory_space<vmem>>, vector<8x128xf32>,
    %c48_116 = arith.constant 48 : index
    %c0_117 = arith.constant 0 : index
    %311 = vector.load %arg16[%c48_116, %c0_117] : memref<64x512xf32, #tpu.memory_space<vmem>>, vector<8x512xf32>
    %c0_118 = arith.constant 0 : index
    %c0_119 = arith.constant 0 : index
    %312 = vector.load %arg6[%c0_118, %c0_119] : memref<128x512xf32, #tpu.memory_space<vmem>>, vector<128x512xf32>
    %cst_120 = arith.constant dense<0.000000e+00> : vector<8x512xf32>
    %313 = tpu.matmul %309, %312, %cst_120 {dimension_numbers = #tpu.dot_dimension_numbers<[1], [0], [0], [1], [0, 0, 1, 1], [], []>} : vector<8x128xf32>, vector<128x512xf32>, vector<8x512xf32> -> vector<8x512xf32>
    %314 = arith.addf %311, %313 : vector<8x512xf32>
    %315 = vector.extract_strided_slice %314 {offsets = [0, 0], sizes = [8, 384], strides = [1, 1]} : vector<8x512xf32> to vector<8x384xf32>
    %316 = arith.negf %315 : vector<8x384xf32>
    %317 = math.exp %316 : vector<8x384xf32>
    %cst_121 = arith.constant 1.000000e+00 : f32
    %318 = vector.broadcast %cst_121 : f32 to vector<8x384xf32>
    %319 = arith.addf %318, %317 : vector<8x384xf32>
    %320 = arith.divf %318, %319 : vector<8x384xf32>
    %321 = vector.extract_strided_slice %314 {offsets = [0, 384], sizes = [8, 128], strides = [1, 1]} : vector<8x512xf32> to vector<8x128xf32>
    %322 = math.tanh %321 : vector<8x128xf32>
    %323 = vector.extract_strided_slice %320 {offsets = [0, 0], sizes = [8, 128], strides = [1, 1]} : vector<8x384xf32> to vector<8x128xf32>
    %324 = vector.extract_strided_slice %320 {offsets = [0, 128], sizes = [8, 128], strides = [1, 1]} : vector<8x384xf32> to vector<8x128xf32>
    %325 = vector.extract_strided_slice %320 {offsets = [0, 256], sizes = [8, 128], strides = [1, 1]} : vector<8x384xf32> to vector<8x128xf32>
    %326 = arith.mulf %324, %307 : vector<8x128xf32>
    %327 = arith.mulf %323, %322 : vector<8x128xf32>
    %328 = arith.addf %326, %327 : vector<8x128xf32>
    %329 = math.tanh %328 : vector<8x128xf32>
    %330 = arith.mulf %325, %329 : vector<8x128xf32>
    %c48_122 = arith.constant 48 : index
    %c0_123 = arith.constant 0 : index
    %331 = vector.load %arg14[%c48_122, %c0_123] : memref<64x128xf32, #tpu.memory_space<vmem>>, vector<8x128xf32>
    tpu.vector_store %arg14[%c48_122, %c0_123], %330 {strides = array<i32>} : memref<64x128xf32, #tpu.memory_space<vmem>>, vector<8x128xf32>,
    %c56_124 = arith.constant 56 : index
    %c0_125 = arith.constant 0 : index
    %332 = vector.load %arg16[%c56_124, %c0_125] : memref<64x512xf32, #tpu.memory_space<vmem>>, vector<8x512xf32>
    %c0_126 = arith.constant 0 : index
    %c0_127 = arith.constant 0 : index
    %333 = vector.load %arg6[%c0_126, %c0_127] : memref<128x512xf32, #tpu.memory_space<vmem>>, vector<128x512xf32>
    %cst_128 = arith.constant dense<0.000000e+00> : vector<8x512xf32>
    %334 = tpu.matmul %330, %333, %cst_128 {dimension_numbers = #tpu.dot_dimension_numbers<[1], [0], [0], [1], [0, 0, 1, 1], [], []>} : vector<8x128xf32>, vector<128x512xf32>, vector<8x512xf32> -> vector<8x512xf32>
    %335 = arith.addf %332, %334 : vector<8x512xf32>
    %336 = vector.extract_strided_slice %335 {offsets = [0, 0], sizes = [8, 384], strides = [1, 1]} : vector<8x512xf32> to vector<8x384xf32>
    %337 = arith.negf %336 : vector<8x384xf32>
    %338 = math.exp %337 : vector<8x384xf32>
    %cst_129 = arith.constant 1.000000e+00 : f32
    %339 = vector.broadcast %cst_129 : f32 to vector<8x384xf32>
    %340 = arith.addf %339, %338 : vector<8x384xf32>
    %341 = arith.divf %339, %340 : vector<8x384xf32>
    %342 = vector.extract_strided_slice %335 {offsets = [0, 384], sizes = [8, 128], strides = [1, 1]} : vector<8x512xf32> to vector<8x128xf32>
    %343 = math.tanh %342 : vector<8x128xf32>
    %344 = vector.extract_strided_slice %341 {offsets = [0, 0], sizes = [8, 128], strides = [1, 1]} : vector<8x384xf32> to vector<8x128xf32>
    %345 = vector.extract_strided_slice %341 {offsets = [0, 128], sizes = [8, 128], strides = [1, 1]} : vector<8x384xf32> to vector<8x128xf32>
    %346 = vector.extract_strided_slice %341 {offsets = [0, 256], sizes = [8, 128], strides = [1, 1]} : vector<8x384xf32> to vector<8x128xf32>
    %347 = arith.mulf %345, %328 : vector<8x128xf32>
    %348 = arith.mulf %344, %343 : vector<8x128xf32>
    %349 = arith.addf %347, %348 : vector<8x128xf32>
    %350 = math.tanh %349 : vector<8x128xf32>
    %351 = arith.mulf %346, %350 : vector<8x128xf32>
    %c56_130 = arith.constant 56 : index
    %c0_131 = arith.constant 0 : index
    %352 = vector.load %arg14[%c56_130, %c0_131] : memref<64x128xf32, #tpu.memory_space<vmem>>, vector<8x128xf32>
    tpu.vector_store %arg14[%c56_130, %c0_131], %351 {strides = array<i32>} : memref<64x128xf32, #tpu.memory_space<vmem>>, vector<8x128xf32>,
    %c0_132 = arith.constant 0 : index
    %c0_133 = arith.constant 0 : index
    %353 = vector.load %arg14[%c0_132, %c0_133] : memref<64x128xf32, #tpu.memory_space<vmem>>, vector<64x128xf32>
    %c0_134 = arith.constant 0 : index
    %c0_135 = arith.constant 0 : index
    %354 = vector.load %arg8[%c0_134, %c0_135] : memref<128x512xf32, #tpu.memory_space<vmem>>, vector<128x512xf32>
    %cst_136 = arith.constant dense<0.000000e+00> : vector<64x512xf32>
    %355 = tpu.matmul %353, %354, %cst_136 {dimension_numbers = #tpu.dot_dimension_numbers<[1], [0], [0], [1], [0, 0, 1, 1], [], []>} : vector<64x128xf32>, vector<128x512xf32>, vector<64x512xf32> -> vector<64x512xf32>
    %c0_137 = arith.constant 0 : index
    %c0_138 = arith.constant 0 : index
    %356 = vector.load %arg10[%c0_137, %c0_138] : memref<1x512xf32, #tpu.memory_space<vmem>>, vector<1x512xf32>
    %357 = vector.broadcast %356 : vector<1x512xf32> to vector<64x512xf32>
    %358 = arith.addf %355, %357 : vector<64x512xf32>
    %c0_139 = arith.constant 0 : index
    %c0_140 = arith.constant 0 : index
    %359 = vector.load %arg16[%c0_139, %c0_140] : memref<64x512xf32, #tpu.memory_space<vmem>>, vector<64x512xf32>
    tpu.vector_store %arg16[%c0_139, %c0_140], %358 {strides = array<i32>} : memref<64x512xf32, #tpu.memory_space<vmem>>, vector<64x512xf32>,
    %c0_141 = arith.constant 0 : index
    %c0_142 = arith.constant 0 : index
    %360 = vector.load %arg16[%c0_141, %c0_142] : memref<64x512xf32, #tpu.memory_space<vmem>>, vector<8x512xf32>
    %c0_143 = arith.constant 0 : index
    %c0_144 = arith.constant 0 : index
    %361 = vector.load %arg9[%c0_143, %c0_144] : memref<128x512xf32, #tpu.memory_space<vmem>>, vector<128x512xf32>
    %cst_145 = arith.constant dense<0.000000e+00> : vector<8x512xf32>
    %362 = tpu.matmul %9, %361, %cst_145 {dimension_numbers = #tpu.dot_dimension_numbers<[1], [0], [0], [1], [0, 0, 1, 1], [], []>} : vector<8x128xf32>, vector<128x512xf32>, vector<8x512xf32> -> vector<8x512xf32>
    %363 = arith.addf %360, %362 : vector<8x512xf32>
    %364 = vector.extract_strided_slice %363 {offsets = [0, 0], sizes = [8, 384], strides = [1, 1]} : vector<8x512xf32> to vector<8x384xf32>
    %365 = arith.negf %364 : vector<8x384xf32>
    %366 = math.exp %365 : vector<8x384xf32>
    %cst_146 = arith.constant 1.000000e+00 : f32
    %367 = vector.broadcast %cst_146 : f32 to vector<8x384xf32>
    %368 = arith.addf %367, %366 : vector<8x384xf32>
    %369 = arith.divf %367, %368 : vector<8x384xf32>
    %370 = vector.extract_strided_slice %363 {offsets = [0, 384], sizes = [8, 128], strides = [1, 1]} : vector<8x512xf32> to vector<8x128xf32>
    %371 = math.tanh %370 : vector<8x128xf32>
    %372 = vector.extract_strided_slice %369 {offsets = [0, 0], sizes = [8, 128], strides = [1, 1]} : vector<8x384xf32> to vector<8x128xf32>
    %373 = vector.extract_strided_slice %369 {offsets = [0, 128], sizes = [8, 128], strides = [1, 1]} : vector<8x384xf32> to vector<8x128xf32>
    %374 = vector.extract_strided_slice %369 {offsets = [0, 256], sizes = [8, 128], strides = [1, 1]} : vector<8x384xf32> to vector<8x128xf32>
    %375 = arith.mulf %373, %9 : vector<8x128xf32>
    %376 = arith.mulf %372, %371 : vector<8x128xf32>
    %377 = arith.addf %375, %376 : vector<8x128xf32>
    %378 = math.tanh %377 : vector<8x128xf32>
    %379 = arith.mulf %374, %378 : vector<8x128xf32>
    %c0_147 = arith.constant 0 : index
    %c0_148 = arith.constant 0 : index
    %380 = vector.load %arg14[%c0_147, %c0_148] : memref<64x128xf32, #tpu.memory_space<vmem>>, vector<8x128xf32>
    tpu.vector_store %arg14[%c0_147, %c0_148], %379 {strides = array<i32>} : memref<64x128xf32, #tpu.memory_space<vmem>>, vector<8x128xf32>,
    %c8_149 = arith.constant 8 : index
    %c0_150 = arith.constant 0 : index
    %381 = vector.load %arg16[%c8_149, %c0_150] : memref<64x512xf32, #tpu.memory_space<vmem>>, vector<8x512xf32>
    %c0_151 = arith.constant 0 : index
    %c0_152 = arith.constant 0 : index
    %382 = vector.load %arg9[%c0_151, %c0_152] : memref<128x512xf32, #tpu.memory_space<vmem>>, vector<128x512xf32>
    %cst_153 = arith.constant dense<0.000000e+00> : vector<8x512xf32>
    %383 = tpu.matmul %379, %382, %cst_153 {dimension_numbers = #tpu.dot_dimension_numbers<[1], [0], [0], [1], [0, 0, 1, 1], [], []>} : vector<8x128xf32>, vector<128x512xf32>, vector<8x512xf32> -> vector<8x512xf32>
    %384 = arith.addf %381, %383 : vector<8x512xf32>
    %385 = vector.extract_strided_slice %384 {offsets = [0, 0], sizes = [8, 384], strides = [1, 1]} : vector<8x512xf32> to vector<8x384xf32>
    %386 = arith.negf %385 : vector<8x384xf32>
    %387 = math.exp %386 : vector<8x384xf32>
    %cst_154 = arith.constant 1.000000e+00 : f32
    %388 = vector.broadcast %cst_154 : f32 to vector<8x384xf32>
    %389 = arith.addf %388, %387 : vector<8x384xf32>
    %390 = arith.divf %388, %389 : vector<8x384xf32>
    %391 = vector.extract_strided_slice %384 {offsets = [0, 384], sizes = [8, 128], strides = [1, 1]} : vector<8x512xf32> to vector<8x128xf32>
    %392 = math.tanh %391 : vector<8x128xf32>
    %393 = vector.extract_strided_slice %390 {offsets = [0, 0], sizes = [8, 128], strides = [1, 1]} : vector<8x384xf32> to vector<8x128xf32>
    %394 = vector.extract_strided_slice %390 {offsets = [0, 128], sizes = [8, 128], strides = [1, 1]} : vector<8x384xf32> to vector<8x128xf32>
    %395 = vector.extract_strided_slice %390 {offsets = [0, 256], sizes = [8, 128], strides = [1, 1]} : vector<8x384xf32> to vector<8x128xf32>
    %396 = arith.mulf %394, %377 : vector<8x128xf32>
    %397 = arith.mulf %393, %392 : vector<8x128xf32>
    %398 = arith.addf %396, %397 : vector<8x128xf32>
    %399 = math.tanh %398 : vector<8x128xf32>
    %400 = arith.mulf %395, %399 : vector<8x128xf32>
    %c8_155 = arith.constant 8 : index
    %c0_156 = arith.constant 0 : index
    %401 = vector.load %arg14[%c8_155, %c0_156] : memref<64x128xf32, #tpu.memory_space<vmem>>, vector<8x128xf32>
    tpu.vector_store %arg14[%c8_155, %c0_156], %400 {strides = array<i32>} : memref<64x128xf32, #tpu.memory_space<vmem>>, vector<8x128xf32>,
    %c16_157 = arith.constant 16 : index
    %c0_158 = arith.constant 0 : index
    %402 = vector.load %arg16[%c16_157, %c0_158] : memref<64x512xf32, #tpu.memory_space<vmem>>, vector<8x512xf32>
    %c0_159 = arith.constant 0 : index
    %c0_160 = arith.constant 0 : index
    %403 = vector.load %arg9[%c0_159, %c0_160] : memref<128x512xf32, #tpu.memory_space<vmem>>, vector<128x512xf32>
    %cst_161 = arith.constant dense<0.000000e+00> : vector<8x512xf32>
    %404 = tpu.matmul %400, %403, %cst_161 {dimension_numbers = #tpu.dot_dimension_numbers<[1], [0], [0], [1], [0, 0, 1, 1], [], []>} : vector<8x128xf32>, vector<128x512xf32>, vector<8x512xf32> -> vector<8x512xf32>
    %405 = arith.addf %402, %404 : vector<8x512xf32>
    %406 = vector.extract_strided_slice %405 {offsets = [0, 0], sizes = [8, 384], strides = [1, 1]} : vector<8x512xf32> to vector<8x384xf32>
    %407 = arith.negf %406 : vector<8x384xf32>
    %408 = math.exp %407 : vector<8x384xf32>
    %cst_162 = arith.constant 1.000000e+00 : f32
    %409 = vector.broadcast %cst_162 : f32 to vector<8x384xf32>
    %410 = arith.addf %409, %408 : vector<8x384xf32>
    %411 = arith.divf %409, %410 : vector<8x384xf32>
    %412 = vector.extract_strided_slice %405 {offsets = [0, 384], sizes = [8, 128], strides = [1, 1]} : vector<8x512xf32> to vector<8x128xf32>
    %413 = math.tanh %412 : vector<8x128xf32>
    %414 = vector.extract_strided_slice %411 {offsets = [0, 0], sizes = [8, 128], strides = [1, 1]} : vector<8x384xf32> to vector<8x128xf32>
    %415 = vector.extract_strided_slice %411 {offsets = [0, 128], sizes = [8, 128], strides = [1, 1]} : vector<8x384xf32> to vector<8x128xf32>
    %416 = vector.extract_strided_slice %411 {offsets = [0, 256], sizes = [8, 128], strides = [1, 1]} : vector<8x384xf32> to vector<8x128xf32>
    %417 = arith.mulf %415, %398 : vector<8x128xf32>
    %418 = arith.mulf %414, %413 : vector<8x128xf32>
    %419 = arith.addf %417, %418 : vector<8x128xf32>
    %420 = math.tanh %419 : vector<8x128xf32>
    %421 = arith.mulf %416, %420 : vector<8x128xf32>
    %c16_163 = arith.constant 16 : index
    %c0_164 = arith.constant 0 : index
    %422 = vector.load %arg14[%c16_163, %c0_164] : memref<64x128xf32, #tpu.memory_space<vmem>>, vector<8x128xf32>
    tpu.vector_store %arg14[%c16_163, %c0_164], %421 {strides = array<i32>} : memref<64x128xf32, #tpu.memory_space<vmem>>, vector<8x128xf32>,
    %c24_165 = arith.constant 24 : index
    %c0_166 = arith.constant 0 : index
    %423 = vector.load %arg16[%c24_165, %c0_166] : memref<64x512xf32, #tpu.memory_space<vmem>>, vector<8x512xf32>
    %c0_167 = arith.constant 0 : index
    %c0_168 = arith.constant 0 : index
    %424 = vector.load %arg9[%c0_167, %c0_168] : memref<128x512xf32, #tpu.memory_space<vmem>>, vector<128x512xf32>
    %cst_169 = arith.constant dense<0.000000e+00> : vector<8x512xf32>
    %425 = tpu.matmul %421, %424, %cst_169 {dimension_numbers = #tpu.dot_dimension_numbers<[1], [0], [0], [1], [0, 0, 1, 1], [], []>} : vector<8x128xf32>, vector<128x512xf32>, vector<8x512xf32> -> vector<8x512xf32>
    %426 = arith.addf %423, %425 : vector<8x512xf32>
    %427 = vector.extract_strided_slice %426 {offsets = [0, 0], sizes = [8, 384], strides = [1, 1]} : vector<8x512xf32> to vector<8x384xf32>
    %428 = arith.negf %427 : vector<8x384xf32>
    %429 = math.exp %428 : vector<8x384xf32>
    %cst_170 = arith.constant 1.000000e+00 : f32
    %430 = vector.broadcast %cst_170 : f32 to vector<8x384xf32>
    %431 = arith.addf %430, %429 : vector<8x384xf32>
    %432 = arith.divf %430, %431 : vector<8x384xf32>
    %433 = vector.extract_strided_slice %426 {offsets = [0, 384], sizes = [8, 128], strides = [1, 1]} : vector<8x512xf32> to vector<8x128xf32>
    %434 = math.tanh %433 : vector<8x128xf32>
    %435 = vector.extract_strided_slice %432 {offsets = [0, 0], sizes = [8, 128], strides = [1, 1]} : vector<8x384xf32> to vector<8x128xf32>
    %436 = vector.extract_strided_slice %432 {offsets = [0, 128], sizes = [8, 128], strides = [1, 1]} : vector<8x384xf32> to vector<8x128xf32>
    %437 = vector.extract_strided_slice %432 {offsets = [0, 256], sizes = [8, 128], strides = [1, 1]} : vector<8x384xf32> to vector<8x128xf32>
    %438 = arith.mulf %436, %419 : vector<8x128xf32>
    %439 = arith.mulf %435, %434 : vector<8x128xf32>
    %440 = arith.addf %438, %439 : vector<8x128xf32>
    %441 = math.tanh %440 : vector<8x128xf32>
    %442 = arith.mulf %437, %441 : vector<8x128xf32>
    %c24_171 = arith.constant 24 : index
    %c0_172 = arith.constant 0 : index
    %443 = vector.load %arg14[%c24_171, %c0_172] : memref<64x128xf32, #tpu.memory_space<vmem>>, vector<8x128xf32>
    tpu.vector_store %arg14[%c24_171, %c0_172], %442 {strides = array<i32>} : memref<64x128xf32, #tpu.memory_space<vmem>>, vector<8x128xf32>,
    %c32_173 = arith.constant 32 : index
    %c0_174 = arith.constant 0 : index
    %444 = vector.load %arg16[%c32_173, %c0_174] : memref<64x512xf32, #tpu.memory_space<vmem>>, vector<8x512xf32>
    %c0_175 = arith.constant 0 : index
    %c0_176 = arith.constant 0 : index
    %445 = vector.load %arg9[%c0_175, %c0_176] : memref<128x512xf32, #tpu.memory_space<vmem>>, vector<128x512xf32>
    %cst_177 = arith.constant dense<0.000000e+00> : vector<8x512xf32>
    %446 = tpu.matmul %442, %445, %cst_177 {dimension_numbers = #tpu.dot_dimension_numbers<[1], [0], [0], [1], [0, 0, 1, 1], [], []>} : vector<8x128xf32>, vector<128x512xf32>, vector<8x512xf32> -> vector<8x512xf32>
    %447 = arith.addf %444, %446 : vector<8x512xf32>
    %448 = vector.extract_strided_slice %447 {offsets = [0, 0], sizes = [8, 384], strides = [1, 1]} : vector<8x512xf32> to vector<8x384xf32>
    %449 = arith.negf %448 : vector<8x384xf32>
    %450 = math.exp %449 : vector<8x384xf32>
    %cst_178 = arith.constant 1.000000e+00 : f32
    %451 = vector.broadcast %cst_178 : f32 to vector<8x384xf32>
    %452 = arith.addf %451, %450 : vector<8x384xf32>
    %453 = arith.divf %451, %452 : vector<8x384xf32>
    %454 = vector.extract_strided_slice %447 {offsets = [0, 384], sizes = [8, 128], strides = [1, 1]} : vector<8x512xf32> to vector<8x128xf32>
    %455 = math.tanh %454 : vector<8x128xf32>
    %456 = vector.extract_strided_slice %453 {offsets = [0, 0], sizes = [8, 128], strides = [1, 1]} : vector<8x384xf32> to vector<8x128xf32>
    %457 = vector.extract_strided_slice %453 {offsets = [0, 128], sizes = [8, 128], strides = [1, 1]} : vector<8x384xf32> to vector<8x128xf32>
    %458 = vector.extract_strided_slice %453 {offsets = [0, 256], sizes = [8, 128], strides = [1, 1]} : vector<8x384xf32> to vector<8x128xf32>
    %459 = arith.mulf %457, %440 : vector<8x128xf32>
    %460 = arith.mulf %456, %455 : vector<8x128xf32>
    %461 = arith.addf %459, %460 : vector<8x128xf32>
    %462 = math.tanh %461 : vector<8x128xf32>
    %463 = arith.mulf %458, %462 : vector<8x128xf32>
    %c32_179 = arith.constant 32 : index
    %c0_180 = arith.constant 0 : index
    %464 = vector.load %arg14[%c32_179, %c0_180] : memref<64x128xf32, #tpu.memory_space<vmem>>, vector<8x128xf32>
    tpu.vector_store %arg14[%c32_179, %c0_180], %463 {strides = array<i32>} : memref<64x128xf32, #tpu.memory_space<vmem>>, vector<8x128xf32>,
    %c40_181 = arith.constant 40 : index
    %c0_182 = arith.constant 0 : index
    %465 = vector.load %arg16[%c40_181, %c0_182] : memref<64x512xf32, #tpu.memory_space<vmem>>, vector<8x512xf32>
    %c0_183 = arith.constant 0 : index
    %c0_184 = arith.constant 0 : index
    %466 = vector.load %arg9[%c0_183, %c0_184] : memref<128x512xf32, #tpu.memory_space<vmem>>, vector<128x512xf32>
    %cst_185 = arith.constant dense<0.000000e+00> : vector<8x512xf32>
    %467 = tpu.matmul %463, %466, %cst_185 {dimension_numbers = #tpu.dot_dimension_numbers<[1], [0], [0], [1], [0, 0, 1, 1], [], []>} : vector<8x128xf32>, vector<128x512xf32>, vector<8x512xf32> -> vector<8x512xf32>
    %468 = arith.addf %465, %467 : vector<8x512xf32>
    %469 = vector.extract_strided_slice %468 {offsets = [0, 0], sizes = [8, 384], strides = [1, 1]} : vector<8x512xf32> to vector<8x384xf32>
    %470 = arith.negf %469 : vector<8x384xf32>
    %471 = math.exp %470 : vector<8x384xf32>
    %cst_186 = arith.constant 1.000000e+00 : f32
    %472 = vector.broadcast %cst_186 : f32 to vector<8x384xf32>
    %473 = arith.addf %472, %471 : vector<8x384xf32>
    %474 = arith.divf %472, %473 : vector<8x384xf32>
    %475 = vector.extract_strided_slice %468 {offsets = [0, 384], sizes = [8, 128], strides = [1, 1]} : vector<8x512xf32> to vector<8x128xf32>
    %476 = math.tanh %475 : vector<8x128xf32>
    %477 = vector.extract_strided_slice %474 {offsets = [0, 0], sizes = [8, 128], strides = [1, 1]} : vector<8x384xf32> to vector<8x128xf32>
    %478 = vector.extract_strided_slice %474 {offsets = [0, 128], sizes = [8, 128], strides = [1, 1]} : vector<8x384xf32> to vector<8x128xf32>
    %479 = vector.extract_strided_slice %474 {offsets = [0, 256], sizes = [8, 128], strides = [1, 1]} : vector<8x384xf32> to vector<8x128xf32>
    %480 = arith.mulf %478, %461 : vector<8x128xf32>
    %481 = arith.mulf %477, %476 : vector<8x128xf32>
    %482 = arith.addf %480, %481 : vector<8x128xf32>
    %483 = math.tanh %482 : vector<8x128xf32>
    %484 = arith.mulf %479, %483 : vector<8x128xf32>
    %c40_187 = arith.constant 40 : index
    %c0_188 = arith.constant 0 : index
    %485 = vector.load %arg14[%c40_187, %c0_188] : memref<64x128xf32, #tpu.memory_space<vmem>>, vector<8x128xf32>
    tpu.vector_store %arg14[%c40_187, %c0_188], %484 {strides = array<i32>} : memref<64x128xf32, #tpu.memory_space<vmem>>, vector<8x128xf32>,
    %c48_189 = arith.constant 48 : index
    %c0_190 = arith.constant 0 : index
    %486 = vector.load %arg16[%c48_189, %c0_190] : memref<64x512xf32, #tpu.memory_space<vmem>>, vector<8x512xf32>
    %c0_191 = arith.constant 0 : index
    %c0_192 = arith.constant 0 : index
    %487 = vector.load %arg9[%c0_191, %c0_192] : memref<128x512xf32, #tpu.memory_space<vmem>>, vector<128x512xf32>
    %cst_193 = arith.constant dense<0.000000e+00> : vector<8x512xf32>
    %488 = tpu.matmul %484, %487, %cst_193 {dimension_numbers = #tpu.dot_dimension_numbers<[1], [0], [0], [1], [0, 0, 1, 1], [], []>} : vector<8x128xf32>, vector<128x512xf32>, vector<8x512xf32> -> vector<8x512xf32>
    %489 = arith.addf %486, %488 : vector<8x512xf32>
    %490 = vector.extract_strided_slice %489 {offsets = [0, 0], sizes = [8, 384], strides = [1, 1]} : vector<8x512xf32> to vector<8x384xf32>
    %491 = arith.negf %490 : vector<8x384xf32>
    %492 = math.exp %491 : vector<8x384xf32>
    %cst_194 = arith.constant 1.000000e+00 : f32
    %493 = vector.broadcast %cst_194 : f32 to vector<8x384xf32>
    %494 = arith.addf %493, %492 : vector<8x384xf32>
    %495 = arith.divf %493, %494 : vector<8x384xf32>
    %496 = vector.extract_strided_slice %489 {offsets = [0, 384], sizes = [8, 128], strides = [1, 1]} : vector<8x512xf32> to vector<8x128xf32>
    %497 = math.tanh %496 : vector<8x128xf32>
    %498 = vector.extract_strided_slice %495 {offsets = [0, 0], sizes = [8, 128], strides = [1, 1]} : vector<8x384xf32> to vector<8x128xf32>
    %499 = vector.extract_strided_slice %495 {offsets = [0, 128], sizes = [8, 128], strides = [1, 1]} : vector<8x384xf32> to vector<8x128xf32>
    %500 = vector.extract_strided_slice %495 {offsets = [0, 256], sizes = [8, 128], strides = [1, 1]} : vector<8x384xf32> to vector<8x128xf32>
    %501 = arith.mulf %499, %482 : vector<8x128xf32>
    %502 = arith.mulf %498, %497 : vector<8x128xf32>
    %503 = arith.addf %501, %502 : vector<8x128xf32>
    %504 = math.tanh %503 : vector<8x128xf32>
    %505 = arith.mulf %500, %504 : vector<8x128xf32>
    %c48_195 = arith.constant 48 : index
    %c0_196 = arith.constant 0 : index
    %506 = vector.load %arg14[%c48_195, %c0_196] : memref<64x128xf32, #tpu.memory_space<vmem>>, vector<8x128xf32>
    tpu.vector_store %arg14[%c48_195, %c0_196], %505 {strides = array<i32>} : memref<64x128xf32, #tpu.memory_space<vmem>>, vector<8x128xf32>,
    %c56_197 = arith.constant 56 : index
    %c0_198 = arith.constant 0 : index
    %507 = vector.load %arg16[%c56_197, %c0_198] : memref<64x512xf32, #tpu.memory_space<vmem>>, vector<8x512xf32>
    %c0_199 = arith.constant 0 : index
    %c0_200 = arith.constant 0 : index
    %508 = vector.load %arg9[%c0_199, %c0_200] : memref<128x512xf32, #tpu.memory_space<vmem>>, vector<128x512xf32>
    %cst_201 = arith.constant dense<0.000000e+00> : vector<8x512xf32>
    %509 = tpu.matmul %505, %508, %cst_201 {dimension_numbers = #tpu.dot_dimension_numbers<[1], [0], [0], [1], [0, 0, 1, 1], [], []>} : vector<8x128xf32>, vector<128x512xf32>, vector<8x512xf32> -> vector<8x512xf32>
    %510 = arith.addf %507, %509 : vector<8x512xf32>
    %511 = vector.extract_strided_slice %510 {offsets = [0, 0], sizes = [8, 384], strides = [1, 1]} : vector<8x512xf32> to vector<8x384xf32>
    %512 = arith.negf %511 : vector<8x384xf32>
    %513 = math.exp %512 : vector<8x384xf32>
    %cst_202 = arith.constant 1.000000e+00 : f32
    %514 = vector.broadcast %cst_202 : f32 to vector<8x384xf32>
    %515 = arith.addf %514, %513 : vector<8x384xf32>
    %516 = arith.divf %514, %515 : vector<8x384xf32>
    %517 = vector.extract_strided_slice %510 {offsets = [0, 384], sizes = [8, 128], strides = [1, 1]} : vector<8x512xf32> to vector<8x128xf32>
    %518 = math.tanh %517 : vector<8x128xf32>
    %519 = vector.extract_strided_slice %516 {offsets = [0, 0], sizes = [8, 128], strides = [1, 1]} : vector<8x384xf32> to vector<8x128xf32>
    %520 = vector.extract_strided_slice %516 {offsets = [0, 128], sizes = [8, 128], strides = [1, 1]} : vector<8x384xf32> to vector<8x128xf32>
    %521 = vector.extract_strided_slice %516 {offsets = [0, 256], sizes = [8, 128], strides = [1, 1]} : vector<8x384xf32> to vector<8x128xf32>
    %522 = arith.mulf %520, %503 : vector<8x128xf32>
    %523 = arith.mulf %519, %518 : vector<8x128xf32>
    %524 = arith.addf %522, %523 : vector<8x128xf32>
    %525 = math.tanh %524 : vector<8x128xf32>
    %526 = arith.mulf %521, %525 : vector<8x128xf32>
    %c56_203 = arith.constant 56 : index
    %c0_204 = arith.constant 0 : index
    %527 = vector.load %arg14[%c56_203, %c0_204] : memref<64x128xf32, #tpu.memory_space<vmem>>, vector<8x128xf32>
    tpu.vector_store %arg14[%c56_203, %c0_204], %526 {strides = array<i32>} : memref<64x128xf32, #tpu.memory_space<vmem>>, vector<8x128xf32>,
    %c0_205 = arith.constant 0 : index
    %c0_206 = arith.constant 0 : index
    %528 = vector.load %arg14[%c0_205, %c0_206] : memref<64x128xf32, #tpu.memory_space<vmem>>, vector<64x128xf32>
    %c0_207 = arith.constant 0 : index
    %c0_208 = arith.constant 0 : index
    %529 = vector.load %arg11[%c0_207, %c0_208] : memref<128x128xf32, #tpu.memory_space<vmem>>, vector<128x128xf32>
    %cst_209 = arith.constant dense<0.000000e+00> : vector<64x128xf32>
    %530 = tpu.matmul %528, %529, %cst_209 {dimension_numbers = #tpu.dot_dimension_numbers<[1], [0], [0], [1], [0, 0, 1, 1], [], []>} : vector<64x128xf32>, vector<128x128xf32>, vector<64x128xf32> -> vector<64x128xf32>
    %c0_210 = arith.constant 0 : index
    %c0_211 = arith.constant 0 : index
    %531 = vector.load %arg12[%c0_210, %c0_211] : memref<1x128xf32, #tpu.memory_space<vmem>>, vector<1x128xf32>
    %532 = vector.broadcast %531 : vector<1x128xf32> to vector<64x128xf32>
    %533 = arith.addf %530, %532 : vector<64x128xf32>
    %534 = arith.negf %533 : vector<64x128xf32>
    %535 = math.exp %534 : vector<64x128xf32>
    %cst_212 = arith.constant 1.000000e+00 : f32
    %536 = vector.broadcast %cst_212 : f32 to vector<64x128xf32>
    %537 = arith.addf %536, %535 : vector<64x128xf32>
    %538 = arith.divf %536, %537 : vector<64x128xf32>
    %539 = vector.extract_strided_slice %538 {offsets = [0, 0], sizes = [8, 128], strides = [1, 1]} : vector<64x128xf32> to vector<8x128xf32>
    %c0_213 = arith.constant 0 : index
    %c0_214 = arith.constant 0 : index
    %540 = vector.load %arg13[%c0_213, %c0_214] : memref<8x1024xf32, #tpu.memory_space<vmem>>, vector<8x128xf32>
    tpu.vector_store %arg13[%c0_213, %c0_214], %539 {strides = array<i32>} : memref<8x1024xf32, #tpu.memory_space<vmem>>, vector<8x128xf32>,
    %541 = vector.extract_strided_slice %538 {offsets = [8, 0], sizes = [8, 128], strides = [1, 1]} : vector<64x128xf32> to vector<8x128xf32>
    %c0_215 = arith.constant 0 : index
    %c128 = arith.constant 128 : index
    %542 = vector.load %arg13[%c0_215, %c128] : memref<8x1024xf32, #tpu.memory_space<vmem>>, vector<8x128xf32>
    tpu.vector_store %arg13[%c0_215, %c128], %541 {strides = array<i32>} : memref<8x1024xf32, #tpu.memory_space<vmem>>, vector<8x128xf32>,
    %543 = vector.extract_strided_slice %538 {offsets = [16, 0], sizes = [8, 128], strides = [1, 1]} : vector<64x128xf32> to vector<8x128xf32>
    %c0_216 = arith.constant 0 : index
    %c256 = arith.constant 256 : index
    %544 = vector.load %arg13[%c0_216, %c256] : memref<8x1024xf32, #tpu.memory_space<vmem>>, vector<8x128xf32>
    tpu.vector_store %arg13[%c0_216, %c256], %543 {strides = array<i32>} : memref<8x1024xf32, #tpu.memory_space<vmem>>, vector<8x128xf32>,
    %545 = vector.extract_strided_slice %538 {offsets = [24, 0], sizes = [8, 128], strides = [1, 1]} : vector<64x128xf32> to vector<8x128xf32>
    %c0_217 = arith.constant 0 : index
    %c384 = arith.constant 384 : index
    %546 = vector.load %arg13[%c0_217, %c384] : memref<8x1024xf32, #tpu.memory_space<vmem>>, vector<8x128xf32>
    tpu.vector_store %arg13[%c0_217, %c384], %545 {strides = array<i32>} : memref<8x1024xf32, #tpu.memory_space<vmem>>, vector<8x128xf32>,
    %547 = vector.extract_strided_slice %538 {offsets = [32, 0], sizes = [8, 128], strides = [1, 1]} : vector<64x128xf32> to vector<8x128xf32>
    %c0_218 = arith.constant 0 : index
    %c512_219 = arith.constant 512 : index
    %548 = vector.load %arg13[%c0_218, %c512_219] : memref<8x1024xf32, #tpu.memory_space<vmem>>, vector<8x128xf32>
    tpu.vector_store %arg13[%c0_218, %c512_219], %547 {strides = array<i32>} : memref<8x1024xf32, #tpu.memory_space<vmem>>, vector<8x128xf32>,
    %549 = vector.extract_strided_slice %538 {offsets = [40, 0], sizes = [8, 128], strides = [1, 1]} : vector<64x128xf32> to vector<8x128xf32>
    %c0_220 = arith.constant 0 : index
    %c640 = arith.constant 640 : index
    %550 = vector.load %arg13[%c0_220, %c640] : memref<8x1024xf32, #tpu.memory_space<vmem>>, vector<8x128xf32>
    tpu.vector_store %arg13[%c0_220, %c640], %549 {strides = array<i32>} : memref<8x1024xf32, #tpu.memory_space<vmem>>, vector<8x128xf32>,
    %551 = vector.extract_strided_slice %538 {offsets = [48, 0], sizes = [8, 128], strides = [1, 1]} : vector<64x128xf32> to vector<8x128xf32>
    %c0_221 = arith.constant 0 : index
    %c768 = arith.constant 768 : index
    %552 = vector.load %arg13[%c0_221, %c768] : memref<8x1024xf32, #tpu.memory_space<vmem>>, vector<8x128xf32>
    tpu.vector_store %arg13[%c0_221, %c768], %551 {strides = array<i32>} : memref<8x1024xf32, #tpu.memory_space<vmem>>, vector<8x128xf32>,
    %553 = vector.extract_strided_slice %538 {offsets = [56, 0], sizes = [8, 128], strides = [1, 1]} : vector<64x128xf32> to vector<8x128xf32>
    %c0_222 = arith.constant 0 : index
    %c896 = arith.constant 896 : index
    %554 = vector.load %arg13[%c0_222, %c896] : memref<8x1024xf32, #tpu.memory_space<vmem>>, vector<8x128xf32>
    tpu.vector_store %arg13[%c0_222, %c896], %553 {strides = array<i32>} : memref<8x1024xf32, #tpu.memory_space<vmem>>, vector<8x128xf32>,
    return
  }
  func.func @transform_0(%arg0: i32) -> (i32, i32) {
    %c0_i32 = arith.constant 0 : i32
    %c0_i32_0 = arith.constant 0 : i32
    return %arg0, %c0_i32 : i32, i32
  }
  func.func @transform_1(%arg0: i32) -> (i32, i32) {
    %c0_i32 = arith.constant 0 : i32
    %c0_i32_0 = arith.constant 0 : i32
    %c0_i32_1 = arith.constant 0 : i32
    return %c0_i32, %c0_i32_0 : i32, i32
  }
  func.func @transform_2(%arg0: i32) -> (i32, i32) {
    %c0_i32 = arith.constant 0 : i32
    %c0_i32_0 = arith.constant 0 : i32
    %c0_i32_1 = arith.constant 0 : i32
    return %c0_i32, %c0_i32_0 : i32, i32
  }
  func.func @transform_3(%arg0: i32) -> (i32, i32) {
    %c0_i32 = arith.constant 0 : i32
    %c0_i32_0 = arith.constant 0 : i32
    %c0_i32_1 = arith.constant 0 : i32
    return %c0_i32, %c0_i32_0 : i32, i32
  }
  func.func @transform_4(%arg0: i32) -> (i32, i32) {
    %c0_i32 = arith.constant 0 : i32
    %c0_i32_0 = arith.constant 0 : i32
    %c0_i32_1 = arith.constant 0 : i32
    return %c0_i32, %c0_i32_0 : i32, i32
  }
  func.func @transform_5(%arg0: i32) -> (i32, i32) {
    %c0_i32 = arith.constant 0 : i32
    %c0_i32_0 = arith.constant 0 : i32
    %c0_i32_1 = arith.constant 0 : i32
    return %c0_i32, %c0_i32_0 : i32, i32
  }
  func.func @transform_6(%arg0: i32) -> (i32, i32) {
    %c0_i32 = arith.constant 0 : i32
    %c0_i32_0 = arith.constant 0 : i32
    %c0_i32_1 = arith.constant 0 : i32
    return %c0_i32, %c0_i32_0 : i32, i32
  }
  func.func @transform_7(%arg0: i32) -> (i32, i32) {
    %c0_i32 = arith.constant 0 : i32
    %c0_i32_0 = arith.constant 0 : i32
    %c0_i32_1 = arith.constant 0 : i32
    return %c0_i32, %c0_i32_0 : i32, i32
  }
  func.func @transform_8(%arg0: i32) -> (i32, i32) {
    %c0_i32 = arith.constant 0 : i32
    %c0_i32_0 = arith.constant 0 : i32
    %c0_i32_1 = arith.constant 0 : i32
    return %c0_i32, %c0_i32_0 : i32, i32
  }
  func.func @transform_9(%arg0: i32) -> (i32, i32) {
    %c0_i32 = arith.constant 0 : i32
    %c0_i32_0 = arith.constant 0 : i32
    %c0_i32_1 = arith.constant 0 : i32
    return %c0_i32, %c0_i32_0 : i32, i32
  }
  func.func @transform_10(%arg0: i32) -> (i32, i32) {
    %c0_i32 = arith.constant 0 : i32
    %c0_i32_0 = arith.constant 0 : i32
    %c0_i32_1 = arith.constant 0 : i32
    return %c0_i32, %c0_i32_0 : i32, i32
  }
  func.func @transform_11(%arg0: i32) -> (i32, i32) {
    %c0_i32 = arith.constant 0 : i32
    %c0_i32_0 = arith.constant 0 : i32
    %c0_i32_1 = arith.constant 0 : i32
    return %c0_i32, %c0_i32_0 : i32, i32
  }
  func.func @transform_12(%arg0: i32) -> (i32, i32) {
    %c0_i32 = arith.constant 0 : i32
    %c0_i32_0 = arith.constant 0 : i32
    return %arg0, %c0_i32 : i32, i32
  }
}

</mosaic_0001>

<bundles_post_ra>
// kernel: _decoder_forward.1
= control target key start
LH: loop header
LB: loop body
LE: loop exit
PB: predicated region body
PF: predicated region fallthrough
CT: control target
= control target key end

     0   :  { %17 = vsyncpa [#allocation6], 0  ;;  %s13203_s0 = inlined_call_operand.hbm [shape: f32[8,32], index: 0, kind: input, shape index: {}]   ;;  %s13204_s1 = inlined_call_operand.hbm [shape: f32[32,4096], index: 1, kind: input, shape index: {}]   ;;  %s13205_s2 = inlined_call_operand.hbm [shape: f32[128,512], index: 2, kind: input, shape index: {}]   ;;  %s13206_s3 = inlined_call_operand.hbm [shape: f32[1,4096], index: 3, kind: input, shape index: {}]   ;;  %s13207_s4 = inlined_call_operand.hbm [shape: f32[128,512], index: 4, kind: input, shape index: {}]   ;;  %s13208_s5 = inlined_call_operand.hbm [shape: f32[128,512], index: 5, kind: input, shape index: {}]   ;;  %s13209_s6 = inlined_call_operand.hbm [shape: f32[1,512], index: 6, kind: input, shape index: {}]   ;;  %s13210_s7 = inlined_call_operand.hbm [shape: f32[128,512], index: 7, kind: input, shape index: {}]   ;;  %s13211_s8 = inlined_call_operand.hbm [shape: f32[128,512], index: 8, kind: input, shape index: {}]   ;;  %s13212_s9 = inlined_call_operand.hbm [shape: f32[1,512], index: 9, kind: input, shape index: {}]   ;;  %s13213_s10 = inlined_call_operand.hbm [shape: f32[128,128], index: 10, kind: input, shape index: {}]   ;;  %s13214_s11 = inlined_call_operand.hbm [shape: f32[1,128], index: 11, kind: input, shape index: {}]   ;;  %s13215_s12 = inlined_call_operand.hbm [shape: f32[8,1024], index: 12, kind: output, shape index: {}]  }
   0x1   :  { %18 = vsyncpa [#allocation9], 0 }
   0x2   :  { %19 = vsyncpa [#allocation12], 0 }
   0x3   :  { %20 = vsyncpa [#allocation15], 0 }
   0x4   :  { %21 = vsyncpa [#allocation18], 0 }
   0x5   :  { %22 = vsyncpa [#allocation21], 0 }
   0x6   :  { %23 = vsyncpa [#allocation24], 0 }
   0x7   :  { %24 = vsyncpa [#allocation7], 0  ;;  %s11237_s21 = smov [#allocation8]   ;;  %s10935_s25 = scalar_lea.hbm %s13204_s1, 16384 }
   0x8   :  { %s40_s22 = sshll.u32 %s11237_s21, 4  ;;  %p10936_p0 = scmp.ne.s32.totalorder %s13204_s1, %s10935_s25  ;;  %s41_s22 = int_to_ptr.vmem [resolvable:$true] %s40_s22 }
   0x9   :  { %p10939_p1 = scmp.lt.u32.totalorder %s10935_s25, %s13204_s1 }
   0xb   :  { %p10941_p2 = pnand %p10939_p1, %p10936_p0 }
   0xd   :  { %10944 = shalt.err (!%p10941_p2)
}
   0xe   :  { %s10945_s30 = scalar_lea.vmem %s41_s22, 16384  ;;  %p10950_p4 = scmp.lt.s32.totalorder %s41_s22, %s41_s22 }
   0xf   :  { %p10946_p3 = scmp.ne.s32.totalorder %s41_s22, %s10945_s30  ;;  %p10951_p5 = scmp.lt.s32.totalorder %s10945_s30, %s10945_s30 }
  0x11   :  { %p10952_p6 = por %p10951_p5, %p10950_p4 }
  0x13   :  { %p10953_p7 = pnand %p10952_p6, %p10946_p3 }
  0x15   :  { %10956 = shalt.err (!%p10953_p7)
}
  0x16   :  { %s11238_s13 = smov 4096   ;;  %s11239_s14 = smov 256  }
  0x17   :  { %46 = dma.hbm_to_vmem [thread:$0]  %s13204_s1, 16384, %s41_s22, [#allocation9], %s11238_s13, %s11238_s13, %s11239_s14  }
  0x18   :  { %s11240_s17 = smov [#allocation11]   ;;  %s10957_s21 = scalar_lea.hbm %s13206_s3, 512 }
  0x19   :  { %s65_s18 = sshll.u32 %s11240_s17, 4  ;;  %p10958_p8 = scmp.ne.s32.totalorder %s13206_s3, %s10957_s21  ;;  %s66_s18 = int_to_ptr.vmem [resolvable:$true] %s65_s18 }
  0x1a   :  { %p10961_p9 = scmp.lt.u32.totalorder %s10957_s21, %s13206_s3 }
  0x1c   :  { %p10963_p10 = pnand %p10961_p9, %p10958_p8 }
  0x1e   :  { %10966 = shalt.err (!%p10963_p10)
}
  0x1f   :  { %s10967_s27 = scalar_lea.vmem %s66_s18, 512  ;;  %p10972_p12 = scmp.lt.s32.totalorder %s66_s18, %s66_s18 }
  0x20   :  { %p10968_p11 = scmp.ne.s32.totalorder %s66_s18, %s10967_s27  ;;  %p10973_p13 = scmp.lt.s32.totalorder %s10967_s27, %s10967_s27 }
  0x22   :  { %p10974_p0 = por %p10973_p13, %p10972_p12 }
  0x24   :  { %p10975_p1 = pnand %p10974_p0, %p10968_p11 }
  0x26   :  { %10978 = shalt.err (!%p10975_p1)
}
  0x27   :  { %68 = dma.hbm_to_vmem [thread:$0]  %s13206_s3, 512, %s66_s18, [#allocation12]  }
  0x28   :  { %s11241_s28 = smov [#allocation14]   ;;  %s11242_s30 = smov [#allocation17]  }
  0x29   :  { %s86_s29 = sshll.u32 %s11241_s28, 4  ;;  %s108_s13 = sshll.u32 %s11242_s30, 4  ;;  %s87_s29 = int_to_ptr.vmem [resolvable:$true] %s86_s29  ;;  %s11346_s13 = int_to_ptr.vmem [resolvable:$true] %s108_s13 }
  0x2a   :  { %s10979_s16 = scalar_lea.hbm %s13208_s5, 8192 }
  0x2b   :  { %p10980_p2 = scmp.ne.s32.totalorder %s13208_s5, %s10979_s16  ;;  %p10983_p3 = scmp.lt.u32.totalorder %s10979_s16, %s13208_s5 }
  0x2d   :  { %p10985_p4 = pnand %p10983_p3, %p10980_p2 }
  0x2f   :  { %10988 = shalt.err (!%p10985_p4)
}
  0x30   :  { %s10989_s3 = scalar_lea.vmem %s87_s29, 8192  ;;  %p10994_p6 = scmp.lt.s32.totalorder %s87_s29, %s87_s29 }
  0x31   :  { %p10990_p5 = scmp.ne.s32.totalorder %s87_s29, %s10989_s3  ;;  %p10995_p7 = scmp.lt.s32.totalorder %s10989_s3, %s10989_s3 }
  0x33   :  { %p10996_p8 = por %p10995_p7, %p10994_p6 }
  0x35   :  { %p10997_p9 = pnand %p10996_p8, %p10990_p5 }
  0x37   :  { %11000 = shalt.err (!%p10997_p9)
}
  0x38   :  { %s11243_s18 = smov 512   ;;  %s11244_s23 = smov 32  }
  0x39   :  { %92 = dma.hbm_to_vmem [thread:$0]  %s13208_s5, 8192, %s87_s29, [#allocation15], %s11243_s18, %s11243_s18, %s11244_s23  }
  0x3a   :  { %s11001_s1 = scalar_lea.hbm %s13210_s7, 8192 }
  0x3b   :  { %p11002_p10 = scmp.ne.s32.totalorder %s13210_s7, %s11001_s1  ;;  %p11005_p11 = scmp.lt.u32.totalorder %s11001_s1, %s13210_s7 }
  0x3d   :  { %p11007_p12 = pnand %p11005_p11, %p11002_p10 }
  0x3f   :  { %11010 = shalt.err (!%p11007_p12)
}
  0x40   :  { %s11011_s15 = scalar_lea.vmem %s11346_s13, 8192  ;;  %p11016_p0 = scmp.lt.s32.totalorder %s11346_s13, %s11346_s13 }
  0x41   :  { %p11012_p13 = scmp.ne.s32.totalorder %s11346_s13, %s11011_s15  ;;  %p11017_p1 = scmp.lt.s32.totalorder %s11011_s15, %s11011_s15 }
  0x43   :  { %p11018_p2 = por %p11017_p1, %p11016_p0 }
  0x45   :  { %p11019_p3 = pnand %p11018_p2, %p11012_p13 }
  0x47   :  { %11022 = shalt.err (!%p11019_p3)
}
  0x48   :  { %114 = dma.hbm_to_vmem [thread:$0]  %s13210_s7, 8192, %s11346_s13, [#allocation18], %s11243_s18, %s11243_s18, %s11244_s23  }
  0x49   :  { %s11245_s16 = smov [#allocation20]   ;;  %s11246_s19 = smov [#allocation5]  }
  0x4a   :  { %s133_s17 = sshll.u32 %s11245_s16, 4  ;;  %s31_s20 = sshll.u32 %s11246_s19, 4  ;;  %s134_s17 = int_to_ptr.vmem [resolvable:$true] %s133_s17  ;;  %s32_s20 = int_to_ptr.vmem [resolvable:$true] %s31_s20 }
  0x4b   :  { %s11023_s24 = scalar_lea.hbm %s13212_s9, 64 }
  0x4c   :  { %p11024_p4 = scmp.ne.s32.totalorder %s13212_s9, %s11023_s24  ;;  %p11027_p5 = scmp.lt.u32.totalorder %s11023_s24, %s13212_s9 }
  0x4e   :  { %p11029_p6 = pnand %p11027_p5, %p11024_p4 }
  0x50   :  { %11032 = shalt.err (!%p11029_p6)
}
  0x51   :  { %s11033_s7 = scalar_lea.vmem %s134_s17, 64  ;;  %p11038_p8 = scmp.lt.s32.totalorder %s134_s17, %s134_s17 }
  0x52   :  { %p11034_p7 = scmp.ne.s32.totalorder %s134_s17, %s11033_s7  ;;  %p11039_p9 = scmp.lt.s32.totalorder %s11033_s7, %s11033_s7 }
  0x54   :  { %p11040_p10 = por %p11039_p9, %p11038_p8 }
  0x56   :  { %p11041_p11 = pnand %p11040_p10, %p11034_p7 }
  0x58   :  { %11044 = shalt.err (!%p11041_p11)
}
  0x59   :  { %136 = dma.hbm_to_vmem [thread:$0]  %s13212_s9, 64, %s134_s17, [#allocation21]  }
  0x5a   :  { %s11045_s14 = scalar_lea.hbm %s13203_s0, 128 }
  0x5b   :  { %p11046_p12 = scmp.ne.s32.totalorder %s13203_s0, %s11045_s14  ;;  %p11049_p13 = scmp.lt.u32.totalorder %s11045_s14, %s13203_s0 }
  0x5d   :  { %p11051_p0 = pnand %p11049_p13, %p11046_p12 }
  0x5f   :  { %11054 = shalt.err (!%p11051_p0)
}
  0x60   :  { %s11055_s19 = scalar_lea.vmem %s32_s20, 128  ;;  %p11060_p2 = scmp.lt.s32.totalorder %s32_s20, %s32_s20 }
  0x61   :  { %p11056_p1 = scmp.ne.s32.totalorder %s32_s20, %s11055_s19  ;;  %p11061_p3 = scmp.lt.s32.totalorder %s11055_s19, %s11055_s19 }
  0x63   :  { %p11062_p4 = por %p11061_p3, %p11060_p2 }
  0x65   :  { %p11063_p5 = pnand %p11062_p4, %p11056_p1 }
  0x67   :  { %11066 = shalt.err (!%p11063_p5)
}
  0x68   :  { %34 = dma.hbm_to_vmem [thread:$0]  %s13203_s0, 128, %s32_s20, [#allocation6]  }
  0x69   :  { %s11247_s21 = smov [#allocation10]   ;;  %s11248_s24 = smov [#allocation13]  }
  0x6a   :  { %s52_s3 = sshll.u32 %s11247_s21, 4  ;;  %s74_s25 = sshll.u32 %s11248_s24, 4  ;;  %s53_s3 = int_to_ptr.vmem [resolvable:$true] %s52_s3  ;;  %s11407_s25 = int_to_ptr.vmem [resolvable:$true] %s74_s25 }
  0x6b   :  { %s11067_s1 = scalar_lea.hbm %s13205_s2, 8192 }
  0x6c   :  { %p11068_p6 = scmp.ne.s32.totalorder %s13205_s2, %s11067_s1  ;;  %p11071_p7 = scmp.lt.u32.totalorder %s11067_s1, %s13205_s2 }
  0x6e   :  { %p11073_p8 = pnand %p11071_p7, %p11068_p6 }
  0x70   :  { %11076 = shalt.err (!%p11073_p8)
}
  0x71   :  { %s11077_s0 = scalar_lea.vmem %s53_s3, 8192  ;;  %p11082_p10 = scmp.lt.s32.totalorder %s53_s3, %s53_s3 }
  0x72   :  { %p11078_p9 = scmp.ne.s32.totalorder %s53_s3, %s11077_s0  ;;  %p11083_p11 = scmp.lt.s32.totalorder %s11077_s0, %s11077_s0 }
  0x74   :  { %p11084_p12 = por %p11083_p11, %p11082_p10 }
  0x76   :  { %p11085_p13 = pnand %p11084_p12, %p11078_p9 }
  0x78   :  { %11088 = shalt.err (!%p11085_p13)
}
  0x79   :  { %58 = dma.hbm_to_vmem [thread:$0]  %s13205_s2, 8192, %s53_s3, [#allocation9], %s11243_s18, %s11243_s18, %s11244_s23  }
  0x7a   :  { %s11089_s5 = scalar_lea.hbm %s13207_s4, 8192 }
  0x7b   :  { %p11090_p0 = scmp.ne.s32.totalorder %s13207_s4, %s11089_s5  ;;  %p11093_p1 = scmp.lt.u32.totalorder %s11089_s5, %s13207_s4 }
  0x7d   :  { %p11095_p2 = pnand %p11093_p1, %p11090_p0 }
  0x7f   :  { %11098 = shalt.err (!%p11095_p2)
}
  0x80   :  { %s11099_s17 = scalar_lea.vmem %s11407_s25, 8192  ;;  %p11104_p4 = scmp.lt.s32.totalorder %s11407_s25, %s11407_s25 }
  0x81   :  { %p11100_p3 = scmp.ne.s32.totalorder %s11407_s25, %s11099_s17  ;;  %p11105_p5 = scmp.lt.s32.totalorder %s11099_s17, %s11099_s17 }
  0x83   :  { %p11106_p6 = por %p11105_p5, %p11104_p4 }
  0x85   :  { %p11107_p7 = pnand %p11106_p6, %p11100_p3 }
  0x87   :  { %11110 = shalt.err (!%p11107_p7)
}
  0x88   :  { %80 = dma.hbm_to_vmem [thread:$0]  %s13207_s4, 8192, %s11407_s25, [#allocation12], %s11243_s18, %s11243_s18, %s11244_s23  }
  0x89   :  { %s11249_s3 = smov [#allocation16]   ;;  %s11250_s26 = smov [#allocation19]  }
  0x8a   :  { %s99_s24 = sshll.u32 %s11249_s3, 4  ;;  %s120_s27 = sshll.u32 %s11250_s26, 4  ;;  %s100_s24 = int_to_ptr.vmem [resolvable:$true] %s99_s24  ;;  %s11444_s27 = int_to_ptr.vmem [resolvable:$true] %s120_s27 }
  0x8b   :  { %s11111_s13 = scalar_lea.hbm %s13209_s6, 64 }
  0x8c   :  { %p11112_p8 = scmp.ne.s32.totalorder %s13209_s6, %s11111_s13  ;;  %p11115_p9 = scmp.lt.u32.totalorder %s11111_s13, %s13209_s6 }
  0x8e   :  { %p11117_p10 = pnand %p11115_p9, %p11112_p8 }
  0x90   :  { %11120 = shalt.err (!%p11117_p10)
}
  0x91   :  { %s11121_s4 = scalar_lea.vmem %s100_s24, 64  ;;  %p11126_p12 = scmp.lt.s32.totalorder %s100_s24, %s100_s24 }
  0x92   :  { %p11122_p11 = scmp.ne.s32.totalorder %s100_s24, %s11121_s4  ;;  %p11127_p13 = scmp.lt.s32.totalorder %s11121_s4, %s11121_s4 }
  0x94   :  { %p11128_p0 = por %p11127_p13, %p11126_p12 }
  0x96   :  { %p11129_p1 = pnand %p11128_p0, %p11122_p11 }
  0x98   :  { %11132 = shalt.err (!%p11129_p1)
}
  0x99   :  { %102 = dma.hbm_to_vmem [thread:$0]  %s13209_s6, 64, %s100_s24, [#allocation15]  }
  0x9a   :  { %s11133_s5 = scalar_lea.hbm %s13211_s8, 8192 }
  0x9b   :  { %p11134_p2 = scmp.ne.s32.totalorder %s13211_s8, %s11133_s5  ;;  %p11137_p3 = scmp.lt.u32.totalorder %s11133_s5, %s13211_s8 }
  0x9d   :  { %p11139_p4 = pnand %p11137_p3, %p11134_p2 }
  0x9f   :  { %11142 = shalt.err (!%p11139_p4)
}
  0xa0   :  { %s11143_s17 = scalar_lea.vmem %s11444_s27, 8192  ;;  %p11148_p6 = scmp.lt.s32.totalorder %s11444_s27, %s11444_s27 }
  0xa1   :  { %p11144_p5 = scmp.ne.s32.totalorder %s11444_s27, %s11143_s17  ;;  %p11149_p7 = scmp.lt.s32.totalorder %s11143_s17, %s11143_s17 }
  0xa3   :  { %p11150_p8 = por %p11149_p7, %p11148_p6 }
  0xa5   :  { %p11151_p9 = pnand %p11150_p8, %p11144_p5 }
  0xa7   :  { %11154 = shalt.err (!%p11151_p9)
}
  0xa8   :  { %126 = dma.hbm_to_vmem [thread:$0]  %s13211_s8, 8192, %s11444_s27, [#allocation18], %s11243_s18, %s11243_s18, %s11244_s23  }
  0xa9   :  { %s11251_s21 = smov [#allocation22]   ;;  %s11155_s1 = scalar_lea.hbm %s13213_s10, 2048 }
  0xaa   :  { %s142_s3 = sshll.u32 %s11251_s21, 4  ;;  %p11156_p10 = scmp.ne.s32.totalorder %s13213_s10, %s11155_s1  ;;  %s143_s3 = int_to_ptr.vmem [resolvable:$true] %s142_s3 }
  0xab   :  { %p11159_p11 = scmp.lt.u32.totalorder %s11155_s1, %s13213_s10 }
  0xad   :  { %p11161_p12 = pnand %p11159_p11, %p11156_p10 }
  0xaf   :  { %11164 = shalt.err (!%p11161_p12)
}
  0xb0   :  { %s11165_s0 = scalar_lea.vmem %s143_s3, 2048  ;;  %p11170_p0 = scmp.lt.s32.totalorder %s143_s3, %s143_s3 }
  0xb1   :  { %p11166_p13 = scmp.ne.s32.totalorder %s143_s3, %s11165_s0  ;;  %p11171_p1 = scmp.lt.s32.totalorder %s11165_s0, %s11165_s0 }
  0xb3   :  { %p11172_p2 = por %p11171_p1, %p11170_p0 }
  0xb5   :  { %p11173_p3 = pnand %p11172_p2, %p11166_p13 }
  0xb7   :  { %11176 = shalt.err (!%p11173_p3)
}
  0xb8   :  { %s11252_s8 = smov 128   ;;  %s11253_s18 = smov 8  }
  0xb9   :  { %148 = dma.hbm_to_vmem [thread:$0]  %s13213_s10, 2048, %s143_s3, [#allocation21], %s11252_s8, %s11252_s8, %s11253_s18  }
  0xba   :  { %s11254_s20 = smov [#allocation23]   ;;  %s11177_s14 = scalar_lea.hbm %s13214_s11, 16 }
  0xbb   :  { %s155_s4 = sshll.u32 %s11254_s20, 4  ;;  %p11178_p4 = scmp.ne.s32.totalorder %s13214_s11, %s11177_s14  ;;  %s156_s4 = int_to_ptr.vmem [resolvable:$true] %s155_s4 }
  0xbc   :  { %p11181_p5 = scmp.lt.u32.totalorder %s11177_s14, %s13214_s11 }
  0xbe   :  { %p11183_p6 = pnand %p11181_p5, %p11178_p4 }
  0xc0   :  { %11186 = shalt.err (!%p11183_p6)
}
  0xc1   :  { %s11187_s19 = scalar_lea.vmem %s156_s4, 16  ;;  %s11191_s10 = scalar_lea.vmem %s156_s4, 32 }
  0xc2   :  { %p11188_p7 = scmp.ne.s32.totalorder %s156_s4, %s11187_s19  ;;  %p11192_p8 = scmp.lt.s32.totalorder %s156_s4, %s156_s4 }
  0xc3   :  { %p11193_p9 = scmp.lt.s32.totalorder %s11191_s10, %s11187_s19 }
  0xc5   :  { %p11194_p10 = por %p11193_p9, %p11192_p8 }
  0xc7   :  { %p11195_p11 = pnand %p11194_p10, %p11188_p7 }
  0xc9   :  { %11198 = shalt.err (!%p11195_p11)
}
  0xca   :  { %158 = dma.hbm_to_vmem [thread:$0]  %s13214_s11, 16, %s156_s4, [#allocation24]  }
  0xcb   :  { %11221 = dma.done.wait [#allocation6], 128  }
  0xcc   :  { %11222 = vsyncadd [#allocation6], 4294967168 }
  0xcd   :  { %11223 = dma.done.wait [#allocation9], 24576  }
  0xce   :  { %11224 = vsyncadd [#allocation9], 4294942720 }
  0xcf   :  { %11225 = dma.done.wait [#allocation12], 8704  }
  0xd0   :  { %11226 = vsyncadd [#allocation12], 4294958592 }
  0xd1   :  { %11227 = dma.done.wait [#allocation15], 8256  }
  0xd2   :  { %11228 = vsyncadd [#allocation15], 4294959040 }
  0xd3   :  { %11229 = dma.done.wait [#allocation18], 16384  }
  0xd4   :  { %11230 = vsyncadd [#allocation18], 4294950912 }
  0xd5   :  { %11231 = dma.done.wait [#allocation21], 2112  }
  0xd6   :  { %11232 = vsyncadd [#allocation21], 4294965184 }
  0xd7   :  { %11233 = dma.done.wait [#allocation24], 16  }
  0xd8   :  { %11234 = vsyncadd [#allocation24], 4294967280  ;;  %v11255_v0 = vmov 0.0   ;;  %v204_v1 = vld [vmem:[#allocation8 + $0x38] sm:$0xff]  ;;  %v203_v3 = vld [vmem:[#allocation8 + $0x30] sm:$0xff]  ;;  %vm493_vm0 = vcmask 261120  }
  0xd9   :  { %774 = vmatprep.mubr.f32.mxu1 %v11255_v0  ;;  %561 = vmatprep.mubr.f32.mxu0 %v11255_v0  ;;  %v236_v2 = vld [vmem:[#allocation8 + $0x138] sm:$0xff]  ;;  %v235_v5 = vld [vmem:[#allocation8 + $0x130] sm:$0xff]  ;;  %v198_v52 = vld [vmem:[#allocation8 + $0x8] sm:$0xff]  ;;  %s11256_s11 = smov [#allocation25]  }
  0xda   :  { %v8507_v4 = vpack.c.bf16 %v236_v2, %v204_v1  ;;  %v268_v6 = vld [vmem:[#allocation8 + $0x238] sm:$0xff]  ;;  %v8509_v8 = vpack.c.bf16 %v235_v5, %v203_v3  ;;  %v267_v10 = vld [vmem:[#allocation8 + $0x230] sm:$0xff]  ;;  %v230_v53 = vld [vmem:[#allocation8 + $0x108] sm:$0xff]  ;;  %s8303_s6 = sshll.u32 %s11256_s11, 4  ;;  %s8304_s6 = int_to_ptr.vmem [resolvable:$true] %s8303_s6 }
  0xdb   :  { %v300_v7 = vld [vmem:[#allocation8 + $0x338] sm:$0xff]  ;;  %v299_v11 = vld [vmem:[#allocation8 + $0x330] sm:$0xff]  ;;  %v197_v54 = vld [vmem:[#allocation8] sm:$0xff]  ;;  %v8483_v58 = vpack.c.bf16 %v230_v53, %v198_v52  ;;  %s11199_s2 = scalar_lea.vmem %s8304_s6, 1024  ;;  %p11204_p13 = scmp.lt.s32.totalorder %s8304_s6, %s8304_s6 }
  0xdc   :  { %v8511_v9 = vpack.c.bf16 %v300_v7, %v268_v6  ;;  %v208_v12 = vld [vmem:[#allocation8 + $0x58] sm:$0xff]  ;;  %8508 = vmatprep.subr.bf16.mxu1 %v8507_v4  ;;  %v8513_v14 = vpack.c.bf16 %v299_v11, %v267_v10  ;;  %v207_v17 = vld [vmem:[#allocation8 + $0x50] sm:$0xff]  ;;  %v229_v59 = vld [vmem:[#allocation8 + $0x100] sm:$0xff]  ;;  %p11200_p12 = scmp.ne.s32.totalorder %s8304_s6, %s11199_s2  ;;  %p11205_p0 = scmp.lt.s32.totalorder %s11199_s2, %s11199_s2 }
  0xdd   :  { %v240_v13 = vld [vmem:[#allocation8 + $0x158] sm:$0xff]  ;;  %8510 = vmatpush1.bf16.msra.mxu1 %v8509_v8  ;;  %v239_v18 = vld [vmem:[#allocation8 + $0x150] sm:$0xff]  ;;  %v8485_v63 = vpack.c.bf16 %v229_v59, %v197_v54  ;;  %v262_v1 = vld [vmem:[#allocation8 + $0x208] sm:$0xff]  ;;  %8484 = vmatprep.subr.bf16.mxu0 %v8483_v58 }
  0xde   :  { %v195_v15 = vld [vmem:[#allocation5] sm:$0xff]  ;;  %8512 = vmatprep.subr.bf16.mxu1 %v8511_v9  ;;  %v8523_v16 = vpack.c.bf16 %v240_v13, %v208_v12  ;;  %v8525_v22 = vpack.c.bf16 %v239_v18, %v207_v17  ;;  %v271_v24 = vld [vmem:[#allocation8 + $0x250] sm:$0xff]  ;;  %v294_v2 = vld [vmem:[#allocation8 + $0x308] sm:$0xff]  ;;  %p11206_p1 = por %p11205_p0, %p11204_p13 }
  0xdf   :  { %v272_v19 = vld [vmem:[#allocation8 + $0x258] sm:$0xff]  ;;  %v11504_v21 = vmax.f32 %v195_v15, 0.0  ;;  %v303_v25 = vld [vmem:[#allocation8 + $0x350] sm:$0xff]  ;;  %v261_v3 = vld [vmem:[#allocation8 + $0x200] sm:$0xff]  ;;  %8486 = vmatpush1.bf16.msra.mxu0 %v8485_v63  ;;  %v8487_v5 = vpack.c.bf16 %v294_v2, %v262_v1 }
  0xe0   :  { %v304_v20 = vld [vmem:[#allocation8 + $0x358] sm:$0xff]  ;;  %v8529_v28 = vpack.c.bf16 %v303_v25, %v271_v24  ;;  %v211_v30 = vld [vmem:[#allocation8 + $0x70] sm:$0xff]  ;;  %v293_v4 = vld [vmem:[#allocation8 + $0x300] sm:$0xff]  ;;  %p11207_p2 = pnand %p11206_p1, %p11200_p12 }
  0xe1   :  { %8514 = vmatpush1.bf16.msra.mxu1 %v8513_v14  ;;  %v8527_v23 = vpack.c.bf16 %v304_v20, %v272_v19  ;;  %v212_v26 = vld [vmem:[#allocation8 + $0x78] sm:$0xff]  ;;  %v243_v31 = vld [vmem:[#allocation8 + $0x170] sm:$0xff]  ;;  %v8489_v6 = vpack.c.bf16 %v293_v4, %v261_v3  ;;  %8488 = vmatprep.subr.bf16.mxu0 %v8487_v5  ;;  %v265_v59 = vld [vmem:[#allocation8 + $0x220] sm:$0xff] }
  0xe2   :  { %8524 = vmatprep.subr.bf16.mxu1 %v8523_v16  ;;  %v244_v27 = vld [vmem:[#allocation8 + $0x178] sm:$0xff]  ;;  %v8541_v34 = vpack.c.bf16 %v243_v31, %v211_v30  ;;  %v275_v36 = vld [vmem:[#allocation8 + $0x270] sm:$0xff]  ;;  %v238_v63 = vld [vmem:[#allocation8 + $0x148] sm:$0xff] }
  0xe3   :  { %v8539_v29 = vpack.c.bf16 %v244_v27, %v212_v26  ;;  %v276_v32 = vld [vmem:[#allocation8 + $0x278] sm:$0xff]  ;;  %v307_v37 = vld [vmem:[#allocation8 + $0x370] sm:$0xff]  ;;  %8490 = vmatpush1.bf16.msra.mxu0 %v8489_v6  ;;  %v1669_v2 = vld [vmem:[#allocation10] sm:$0xff] }
  0xe4   :  { %8321 = vmatmul.mubr.msk.f32.vlgmr.msra.gmra.mrb[0].mxu1 %vm493_vm0, %v11504_v21  ;;  %v308_v33 = vld [vmem:[#allocation8 + $0x378] sm:$0xff]  ;;  %v8545_v40 = vpack.c.bf16 %v307_v37, %v275_v36  ;;  %v215_v42 = vld [vmem:[#allocation8 + $0x90] sm:$0xff]  ;;  %v1673_v3 = vld [vmem:[#allocation10 + $0x20] sm:$0xff] }
  0xe5   :  { %8526 = vmatpush1.bf16.msra.mxu1 %v8525_v22  ;;  %916 = vmatprep.mubr.f32.mxu1 %v11255_v0  ;;  %v8543_v35 = vpack.c.bf16 %v308_v33, %v276_v32  ;;  %v216_v38 = vld [vmem:[#allocation8 + $0x98] sm:$0xff]  ;;  %v247_v43 = vld [vmem:[#allocation8 + $0x190] sm:$0xff]  ;;  %v1678_v4 = vld [vmem:[#allocation10 + $0x48] sm:$0xff] }
  0xe6   :  { %8528 = vmatprep.subr.bf16.mxu1 %v8527_v23  ;;  %v248_v39 = vld [vmem:[#allocation8 + $0x198] sm:$0xff]  ;;  %v8557_v46 = vpack.c.bf16 %v247_v43, %v215_v42  ;;  %v279_v48 = vld [vmem:[#allocation8 + $0x290] sm:$0xff]  ;;  %8318 = vmatmul.mubr.msk.f32.vlgmr.msra.gmra.mrb[0].mxu0 %vm493_vm0, %v11504_v21  ;;  %v202_v42 = vld [vmem:[#allocation8 + $0x28] sm:$0xff] }
  0xe7   :  { %v8555_v41 = vpack.c.bf16 %v248_v39, %v216_v38  ;;  %v280_v44 = vld [vmem:[#allocation8 + $0x298] sm:$0xff]  ;;  %v311_v49 = vld [vmem:[#allocation8 + $0x390] sm:$0xff]  ;;  %632 = vmatprep.mubr.f32.mxu0 %v11255_v0  ;;  %v1682_v5 = vld [vmem:[#allocation10 + $0x68] sm:$0xff] }
  0xe8   :  { %v312_v45 = vld [vmem:[#allocation8 + $0x398] sm:$0xff]  ;;  %v8561_v55 = vpack.c.bf16 %v311_v49, %v279_v48  ;;  %v219_v56 = vld [vmem:[#allocation8 + $0xb0] sm:$0xff]  ;;  %v233_v48 = vld [vmem:[#allocation8 + $0x120] sm:$0xff] }
  0xe9   :  { %8530 = vmatpush1.bf16.msra.mxu1 %v8529_v28  ;;  %v8559_v47 = vpack.c.bf16 %v312_v45, %v280_v44  ;;  %v220_v50 = vld [vmem:[#allocation8 + $0xb8] sm:$0xff]  ;;  %v251_v57 = vld [vmem:[#allocation8 + $0x1b0] sm:$0xff]  ;;  %v234_v45 = vld [vmem:[#allocation8 + $0x128] sm:$0xff] }
  0xea   :  { %8540 = vmatprep.subr.bf16.mxu1 %v8539_v29  ;;  %v252_v51 = vld [vmem:[#allocation8 + $0x1b8] sm:$0xff]  ;;  %v8573_v7 = vpack.c.bf16 %v251_v57, %v219_v56  ;;  %v283_v9 = vld [vmem:[#allocation8 + $0x2b0] sm:$0xff]  ;;  %v1674_v56 = vld [vmem:[#allocation10 + $0x28] sm:$0xff] }
  0xeb   :  { %v8571_v60 = vpack.c.bf16 %v252_v51, %v220_v50  ;;  %v284_v61 = vld [vmem:[#allocation8 + $0x2b8] sm:$0xff]  ;;  %v315_v10 = vld [vmem:[#allocation8 + $0x3b0] sm:$0xff]  ;;  %v266_v50 = vld [vmem:[#allocation8 + $0x228] sm:$0xff] }
  0xec   :  { %8323 = vmatmul.mubr.msk.f32.vlgmr.msra.gmra.mrb[2].mxu1 %vm493_vm0, %v11504_v21  ;;  %v316_v62 = vld [vmem:[#allocation8 + $0x3b8] sm:$0xff]  ;;  %v8577_v13 = vpack.c.bf16 %v315_v10, %v283_v9  ;;  %v223_v15 = vld [vmem:[#allocation8 + $0xd0] sm:$0xff]  ;;  %v298_v51 = vld [vmem:[#allocation8 + $0x328] sm:$0xff]  ;;  %v11532_v10 = vpack.c.bf16 %v1673_v3, %v1669_v2 }
  0xed   :  { %8542 = vmatpush1.bf16.msra.mxu1 %v8541_v34  ;;  %1058 = vmatprep.mubr.f32.mxu1 %v11255_v0  ;;  %v8575_v8 = vpack.c.bf16 %v316_v62, %v284_v61  ;;  %v224_v11 = vld [vmem:[#allocation8 + $0xd8] sm:$0xff]  ;;  %v255_v16 = vld [vmem:[#allocation8 + $0x1d0] sm:$0xff]  ;;  %v8503_v58 = vpack.c.bf16 %v298_v51, %v266_v50  ;;  %v206_v62 = vld [vmem:[#allocation8 + $0x48] sm:$0xff] }
  0xee   :  { %8544 = vmatprep.subr.bf16.mxu1 %v8543_v35  ;;  %v256_v12 = vld [vmem:[#allocation8 + $0x1d8] sm:$0xff]  ;;  %v8589_v20 = vpack.c.bf16 %v255_v16, %v223_v15  ;;  %v287_v22 = vld [vmem:[#allocation8 + $0x2d0] sm:$0xff]  ;;  %v237_v9 = vld [vmem:[#allocation8 + $0x140] sm:$0xff] }
  0xef   :  { %v8587_v14 = vpack.c.bf16 %v256_v12, %v224_v11  ;;  %v288_v17 = vld [vmem:[#allocation8 + $0x2d8] sm:$0xff]  ;;  %v319_v23 = vld [vmem:[#allocation8 + $0x3d0] sm:$0xff]  ;;  %v270_v11 = vld [vmem:[#allocation8 + $0x248] sm:$0xff] }
  0xf0   :  { %v320_v18 = vld [vmem:[#allocation8 + $0x3d8] sm:$0xff]  ;;  %v199_v28 = vld [vmem:[#allocation8 + $0x10] sm:$0xff]  ;;  %v8593_v36 = vpack.c.bf16 %v319_v23, %v287_v22  ;;  %v302_v12 = vld [vmem:[#allocation8 + $0x348] sm:$0xff] }
  0xf1   :  { %8546 = vmatpush1.bf16.msra.mxu1 %v8545_v40  ;;  %v200_v19 = vld [vmem:[#allocation8 + $0x18] sm:$0xff]  ;;  %v8591_v25 = vpack.c.bf16 %v320_v18, %v288_v17  ;;  %v231_v29 = vld [vmem:[#allocation8 + $0x110] sm:$0xff]  ;;  %v1681_v15 = vld [vmem:[#allocation10 + $0x60] sm:$0xff] }
  0xf2   :  { %8556 = vmatprep.subr.bf16.mxu1 %v8555_v41  ;;  %v232_v24 = vld [vmem:[#allocation8 + $0x118] sm:$0xff]  ;;  %v8493_v31 = vpack.c.bf16 %v231_v29, %v199_v28  ;;  %v263_v35 = vld [vmem:[#allocation8 + $0x210] sm:$0xff]  ;;  %v1686_v16 = vld [vmem:[#allocation10 + $0x88] sm:$0xff] }
  0xf3   :  { %v228_v26 = vld [vmem:[#allocation8 + $0xf8] sm:$0xff]  ;;  %v8491_v27 = vpack.c.bf16 %v232_v24, %v200_v19  ;;  %v295_v37 = vld [vmem:[#allocation8 + $0x310] sm:$0xff]  ;;  %v1690_v17 = vld [vmem:[#allocation10 + $0xa8] sm:$0xff]  ;;  %v8519_v19 = vpack.c.bf16 %v302_v12, %v270_v11 }
  0xf4   :  { %8325 = vmatmul.mubr.msk.f32.vlgmr.msra.gmra.mrb[4].mxu1 %vm493_vm0, %v11504_v21  ;;  %v260_v30 = vld [vmem:[#allocation8 + $0x1f8] sm:$0xff]  ;;  %v227_v39 = vld [vmem:[#allocation8 + $0xf0] sm:$0xff]  ;;  %v8497_v41 = vpack.c.bf16 %v295_v37, %v263_v35  ;;  %v301_v22 = vld [vmem:[#allocation8 + $0x340] sm:$0xff] }
  0xf5   :  { %8558 = vmatpush1.bf16.msra.mxu1 %v8557_v46  ;;  %1200 = vmatprep.mubr.f32.mxu1 %v11255_v0  ;;  %v264_v32 = vld [vmem:[#allocation8 + $0x218] sm:$0xff]  ;;  %v8603_v38 = vpack.c.bf16 %v260_v30, %v228_v26  ;;  %v259_v40 = vld [vmem:[#allocation8 + $0x1f0] sm:$0xff]  ;;  %v8499_v46 = vpack.c.bf16 %v234_v45, %v202_v42  ;;  %v210_v24 = vld [vmem:[#allocation8 + $0x68] sm:$0xff]  ;;  %v11544_v26 = vpack.c.bf16 %v1690_v17, %v1686_v16 }
  0xf6   :  { %8560 = vmatprep.subr.bf16.mxu1 %v8559_v47  ;;  %v296_v33 = vld [vmem:[#allocation8 + $0x318] sm:$0xff]  ;;  %8492 = vmatprep.subr.bf16.mxu0 %v8491_v27  ;;  %v201_v47 = vld [vmem:[#allocation8 + $0x20] sm:$0xff]  ;;  %v8605_v49 = vpack.c.bf16 %v259_v40, %v227_v39  ;;  %v291_v53 = vld [vmem:[#allocation8 + $0x2f0] sm:$0xff] }
  0xf7   :  { %v8495_v34 = vpack.c.bf16 %v296_v33, %v264_v32  ;;  %8494 = vmatpush1.bf16.msra.mxu0 %v8493_v31  ;;  %v292_v43 = vld [vmem:[#allocation8 + $0x2f8] sm:$0xff]  ;;  %v323_v54 = vld [vmem:[#allocation8 + $0x3f0] sm:$0xff]  ;;  %v8501_v57 = vpack.c.bf16 %v233_v48, %v201_v47  ;;  %v1685_v27 = vld [vmem:[#allocation10 + $0x80] sm:$0xff] }
  0xf8   :  { %v324_v44 = vld [vmem:[#allocation8 + $0x3f8] sm:$0xff]  ;;  %v8609_v61 = vpack.c.bf16 %v323_v54, %v291_v53  ;;  %v1689_v28 = vld [vmem:[#allocation10 + $0xa0] sm:$0xff]  ;;  %v1694_v29 = vld [vmem:[#allocation10 + $0xc8] sm:$0xff] }
  0xf9   :  { %8562 = vmatpush1.bf16.msra.mxu1 %v8561_v55  ;;  %8496 = vmatprep.subr.bf16.mxu0 %v8495_v34  ;;  %v8607_v52 = vpack.c.bf16 %v324_v44, %v292_v43  ;;  %v1670_v55 = vld [vmem:[#allocation10 + $0x8] sm:$0xff]  ;;  %v209_v33 = vld [vmem:[#allocation8 + $0x60] sm:$0xff]  ;;  %v11550_v35 = vpack.c.bf16 %v1689_v28, %v1685_v27  ;;  %v1680_v16 = vld [vmem:[#allocation10 + $0x58] sm:$0xff] }
  0xfa   :  { %8572 = vmatprep.subr.bf16.mxu1 %v8571_v60  ;;  %v297_v60 = vld [vmem:[#allocation8 + $0x320] sm:$0xff]  ;;  %v11527_v1 = vpack.c.bf16 %v1674_v56, %v1670_v55  ;;  %v1698_v30 = vld [vmem:[#allocation10 + $0xe8] sm:$0xff]  ;;  %v1684_v17 = vld [vmem:[#allocation10 + $0x78] sm:$0xff] }
  0xfb   :  { %8498 = vmatpush1.bf16.msra.mxu0 %v8497_v41  ;;  %v8505_v6 = vpack.c.bf16 %v297_v60, %v265_v59  ;;  %v241_v34 = vld [vmem:[#allocation8 + $0x160] sm:$0xff]  ;;  %v306_v37 = vld [vmem:[#allocation8 + $0x368] sm:$0xff] }
  0xfc   :  { %8327 = vmatmul.mubr.msk.f32.vlgmr.msra.gmra.mrb[6].mxu1 %vm493_vm0, %v11504_v21  ;;  %8500 = vmatprep.subr.bf16.mxu0 %v8499_v46  ;;  %v1693_v39 = vld [vmem:[#allocation10 + $0xc0] sm:$0xff]  ;;  %v1702_v41 = vld [vmem:[#allocation10 + $0x108] sm:$0xff]  ;;  %v8533_v43 = vpack.c.bf16 %v241_v34, %v209_v33 }
  0xfd   :  { %8574 = vmatpush1.bf16.msra.mxu1 %v8573_v7  ;;  %1342 = vmatprep.mubr.f32.mxu1 %v11255_v0  ;;  %v8515_v7 = vpack.c.bf16 %v238_v63, %v206_v62  ;;  %v1697_v40 = vld [vmem:[#allocation10 + $0xe0] sm:$0xff]  ;;  %v1706_v42 = vld [vmem:[#allocation10 + $0x128] sm:$0xff] }
  0xfe   :  { %8576 = vmatprep.subr.bf16.mxu1 %v8575_v8  ;;  %8319 = vmatmul.mubr.msk.f32.vlgmr.msra.gmra.mrb[2].mxu0 %vm493_vm0, %v11504_v21  ;;  %v205_v8 = vld [vmem:[#allocation8 + $0x40] sm:$0xff]  ;;  %v11556_v47 = vpack.c.bf16 %v1697_v40, %v1693_v39  ;;  %v11559_v48 = vpack.c.bf16 %v1706_v42, %v1702_v41  ;;  %v1710_v51 = vld [vmem:[#allocation10 + $0x148] sm:$0xff]  ;;  %v1704_v39 = vld [vmem:[#allocation10 + $0x118] sm:$0xff] }
  0xff   :  { %8502 = vmatpush1.bf16.msra.mxu0 %v8501_v57  ;;  %703 = vmatprep.mubr.f32.mxu0 %v11255_v0  ;;  %v8517_v18 = vpack.c.bf16 %v237_v9, %v205_v8  ;;  %v273_v45 = vld [vmem:[#allocation8 + $0x260] sm:$0xff]  ;;  %v1722_v59 = vld [vmem:[#allocation10 + $0x1a8] sm:$0xff]  ;;  %v1672_v8 = vld [vmem:[#allocation10 + $0x18] sm:$0xff] }
 0x100   :  { %8504 = vmatprep.subr.bf16.mxu0 %v8503_v58  ;;  %v305_v46 = vld [vmem:[#allocation8 + $0x360] sm:$0xff]  ;;  %v1718_v58 = vld [vmem:[#allocation10 + $0x188] sm:$0xff]  ;;  %v1676_v9 = vld [vmem:[#allocation10 + $0x38] sm:$0xff] }
 0x101   :  { %8578 = vmatpush1.bf16.msra.mxu1 %v8577_v13  ;;  %v11535_v13 = vpack.c.bf16 %v1682_v5, %v1678_v4  ;;  %v1705_v50 = vld [vmem:[#allocation10 + $0x120] sm:$0xff]  ;;  %v8537_v53 = vpack.c.bf16 %v305_v46, %v273_v45  ;;  %v1726_v2 = vld [vmem:[#allocation10 + $0x1c8] sm:$0xff]  ;;  %v11589_v12 = vpack.c.bf16 %v1676_v9, %v1672_v8  ;;  %v1708_v40 = vld [vmem:[#allocation10 + $0x138] sm:$0xff] }
 0x102   :  { %8588 = vmatprep.subr.bf16.mxu1 %v8587_v14  ;;  %v1677_v14 = vld [vmem:[#allocation10 + $0x40] sm:$0xff]  ;;  %v1730_v3 = vld [vmem:[#allocation10 + $0x1e8] sm:$0xff]  ;;  %v11615_v42 = vpack.c.bf16 %v1708_v40, %v1704_v39  ;;  %v1712_v45 = vld [vmem:[#allocation10 + $0x158] sm:$0xff] }
 0x103   :  { %8506 = vmatpush1.bf16.msra.mxu0 %v8505_v6  ;;  %v11540_v23 = vpack.c.bf16 %v1681_v15, %v1677_v14  ;;  %v1709_v56 = vld [vmem:[#allocation10 + $0x140] sm:$0xff]  ;;  %v11583_v5 = vpack.c.bf16 %v1730_v3, %v1726_v2  ;;  %v1671_v14 = vld [vmem:[#allocation10 + $0x10] sm:$0xff]  ;;  %v1716_v46 = vld [vmem:[#allocation10 + $0x178] sm:$0xff] }
 0x104   :  { %8329 = vmatmul.mubr.msk.f32.vlgmr.msra.gmra.mrb[8].mxu1 %vm493_vm0, %v11504_v21  ;;  %8516 = vmatprep.subr.bf16.mxu0 %v8515_v7  ;;  %v1713_v57 = vld [vmem:[#allocation10 + $0x160] sm:$0xff]  ;;  %v1675_v15 = vld [vmem:[#allocation10 + $0x30] sm:$0xff]  ;;  %v1732_v2 = vld [vmem:[#allocation10 + $0x1f8] sm:$0xff] }
 0x105   :  { %8590 = vmatpush1.bf16.msra.mxu1 %v8589_v20  ;;  %1484 = vmatprep.mubr.f32.mxu1 %v11255_v0  ;;  %v269_v20 = vld [vmem:[#allocation8 + $0x240] sm:$0xff]  ;;  %v11571_v60 = vpack.c.bf16 %v1713_v57, %v1709_v56  ;;  %v1724_v56 = vld [vmem:[#allocation10 + $0x1b8] sm:$0xff]  ;;  %v1731_v8 = vld [vmem:[#allocation10 + $0x1f0] sm:$0xff] }
 0x106   :  { %8592 = vmatprep.subr.bf16.mxu1 %v8591_v25  ;;  %v242_v25 = vld [vmem:[#allocation8 + $0x168] sm:$0xff]  ;;  %8320 = vmatmul.mubr.msk.f32.vlgmr.msra.gmra.mrb[4].mxu0 %vm493_vm0, %v11504_v21  ;;  %v8521_v31 = vpack.c.bf16 %v301_v22, %v269_v20  ;;  %v1717_v62 = vld [vmem:[#allocation10 + $0x180] sm:$0xff]  ;;  %v1679_v20 = vld [vmem:[#allocation10 + $0x50] sm:$0xff] }
 0x107   :  { %8518 = vmatpush1.bf16.msra.mxu0 %v8517_v18  ;;  %845 = vmatprep.mubr.f32.mxu0 %v11255_v0  ;;  %v8531_v32 = vpack.c.bf16 %v242_v25, %v210_v24  ;;  %v1721_v63 = vld [vmem:[#allocation10 + $0x1a0] sm:$0xff]  ;;  %v11592_v18 = vpack.c.bf16 %v1675_v15, %v1671_v14  ;;  %v1683_v22 = vld [vmem:[#allocation10 + $0x70] sm:$0xff]  ;;  %v1688_v24 = vld [vmem:[#allocation10 + $0x98] sm:$0xff] }
 0x108   :  { %8520 = vmatprep.subr.bf16.mxu0 %v8519_v19  ;;  %v11580_v4 = vpack.c.bf16 %v1721_v63, %v1717_v62  ;;  %v1725_v6 = vld [vmem:[#allocation10 + $0x1c0] sm:$0xff]  ;;  %v11595_v19 = vpack.c.bf16 %v1684_v17, %v1680_v16  ;;  %v1692_v25 = vld [vmem:[#allocation10 + $0xb8] sm:$0xff]  ;;  %v11599_v27 = vpack.c.bf16 %v1683_v22, %v1679_v20  ;;  %v1723_v62 = vld [vmem:[#allocation10 + $0x1b0] sm:$0xff] }
 0x109   :  { %8594 = vmatpush1.bf16.msra.mxu1 %v8593_v36  ;;  %v274_v36 = vld [vmem:[#allocation8 + $0x268] sm:$0xff]  ;;  %v1729_v7 = vld [vmem:[#allocation10 + $0x1e0] sm:$0xff]  ;;  %v11603_v28 = vpack.c.bf16 %v1692_v25, %v1688_v24  ;;  %v1728_v63 = vld [vmem:[#allocation10 + $0x1d8] sm:$0xff] }
 0x10a   :  { %8604 = vmatprep.subr.bf16.mxu1 %v8603_v38  ;;  %v11553_v38 = vpack.c.bf16 %v1698_v30, %v1694_v29  ;;  %v8535_v44 = vpack.c.bf16 %v306_v37, %v274_v36  ;;  %v11586_v11 = vpack.c.bf16 %v1729_v7, %v1725_v6  ;;  %v1687_v29 = vld [vmem:[#allocation10 + $0x90] sm:$0xff]  ;;  %v11633_v6 = vpack.c.bf16 %v1732_v2, %v1728_v63  ;;  %v214_v14 = vld [vmem:[#allocation8 + $0x88] sm:$0xff]  ;;  %v213_v17 = vld [vmem:[#allocation8 + $0x80] sm:$0xff] }
 0x10b   :  { %8522 = vmatpush1.bf16.msra.mxu0 %v8521_v31  ;;  %v1691_v30 = vld [vmem:[#allocation10 + $0xb0] sm:$0xff]  ;;  %v1696_v31 = vld [vmem:[#allocation10 + $0xd8] sm:$0xff]  ;;  %v246_v15 = vld [vmem:[#allocation8 + $0x188] sm:$0xff] }
 0x10c   :  { %8331 = vmatmul.mubr.msk.f32.vlgmr.msra.gmra.mrb[10].mxu1 %vm493_vm0, %v11504_v21  ;;  %8532 = vmatprep.subr.bf16.mxu0 %v8531_v32  ;;  %v1700_v32 = vld [vmem:[#allocation10 + $0xf8] sm:$0xff]  ;;  %v11606_v33 = vpack.c.bf16 %v1691_v30, %v1687_v29  ;;  %v1695_v36 = vld [vmem:[#allocation10 + $0xd0] sm:$0xff]  ;;  %v8547_v16 = vpack.c.bf16 %v246_v15, %v214_v14  ;;  %v245_v20 = vld [vmem:[#allocation8 + $0x180] sm:$0xff] }
 0x10d   :  { %8606 = vmatpush1.bf16.msra.mxu1 %v8605_v49  ;;  %1626 = vmatprep.mubr.f32.mxu1 %v11255_v0  ;;  %v1701_v49 = vld [vmem:[#allocation10 + $0x100] sm:$0xff]  ;;  %v11609_v34 = vpack.c.bf16 %v1700_v32, %v1696_v31  ;;  %v1699_v37 = vld [vmem:[#allocation10 + $0xf0] sm:$0xff]  ;;  %v8549_v22 = vpack.c.bf16 %v245_v20, %v213_v17  ;;  %v278_v24 = vld [vmem:[#allocation8 + $0x288] sm:$0xff] }
 0x10e   :  { %8608 = vmatprep.subr.bf16.mxu1 %v8607_v52  ;;  %8322 = vmatmul.mubr.msk.f32.vlgmr.msra.gmra.mrb[6].mxu0 %vm493_vm0, %v11504_v21  ;;  %v1714_v52 = vld [vmem:[#allocation10 + $0x168] sm:$0xff]  ;;  %v11565_v54 = vpack.c.bf16 %v1705_v50, %v1701_v49  ;;  %v11612_v41 = vpack.c.bf16 %v1699_v37, %v1695_v36  ;;  %v11621_v50 = vpack.c.bf16 %v1716_v46, %v1712_v45  ;;  %v1727_v7 = vld [vmem:[#allocation10 + $0x1d0] sm:$0xff]  ;;  %v277_v30 = vld [vmem:[#allocation8 + $0x280] sm:$0xff] }
 0x10f   :  { %8534 = vmatpush1.bf16.msra.mxu0 %v8533_v43  ;;  %987 = vmatprep.mubr.f32.mxu0 %v11255_v0  ;;  %v11568_v55 = vpack.c.bf16 %v1714_v52, %v1710_v51  ;;  %v1703_v43 = vld [vmem:[#allocation10 + $0x110] sm:$0xff]  ;;  %v11636_v9 = vpack.c.bf16 %v1731_v8, %v1727_v7  ;;  %v310_v25 = vld [vmem:[#allocation8 + $0x388] sm:$0xff]  ;;  %v309_v31 = vld [vmem:[#allocation8 + $0x380] sm:$0xff] }
 0x110   :  { %8536 = vmatprep.subr.bf16.mxu0 %v8535_v44  ;;  %v1707_v44 = vld [vmem:[#allocation10 + $0x130] sm:$0xff]  ;;  %v8551_v29 = vpack.c.bf16 %v310_v25, %v278_v24  ;;  %v8553_v32 = vpack.c.bf16 %v309_v31, %v277_v30  ;;  %v218_v36 = vld [vmem:[#allocation8 + $0xa8] sm:$0xff]  ;;  %v217_v40 = vld [vmem:[#allocation8 + $0xa0] sm:$0xff] }
 0x111   :  { %8610 = vmatpush1.bf16.msra.mxu1 %v8609_v61  ;;  %v11574_v61 = vpack.c.bf16 %v1722_v59, %v1718_v58  ;;  %v11618_v49 = vpack.c.bf16 %v1707_v44, %v1703_v43  ;;  %v1711_v51 = vld [vmem:[#allocation10 + $0x150] sm:$0xff]  ;;  %v250_v37 = vld [vmem:[#allocation8 + $0x1a8] sm:$0xff]  ;;  %v249_v43 = vld [vmem:[#allocation8 + $0x1a0] sm:$0xff] }
 0x112   :  { %8612 = vmatprep.subr.bf16.mxu1 %v11527_v1  ;;  %v1715_v52 = vld [vmem:[#allocation10 + $0x170] sm:$0xff]  ;;  %v8563_v39 = vpack.c.bf16 %v250_v37, %v218_v36  ;;  %v8565_v44 = vpack.c.bf16 %v249_v43, %v217_v40  ;;  %v314_v45 = vld [vmem:[#allocation8 + $0x3a8] sm:$0xff]  ;;  %v221_v63 = vld [vmem:[#allocation8 + $0xc0] sm:$0xff] }
 0x113   :  { %8538 = vmatpush1.bf16.msra.mxu0 %v8537_v53  ;;  %v1720_v53 = vld [vmem:[#allocation10 + $0x198] sm:$0xff]  ;;  %v11624_v57 = vpack.c.bf16 %v1715_v52, %v1711_v51  ;;  %v1719_v59 = vld [vmem:[#allocation10 + $0x190] sm:$0xff]  ;;  %v281_v51 = vld [vmem:[#allocation8 + $0x2a0] sm:$0xff] }
 0x114   :  { %8333 = vmatmul.mubr.msk.f32.vlgmr.msra.gmra.mrb[12].mxu1 %vm493_vm0, %v11504_v21  ;;  %v11627_v58 = vpack.c.bf16 %v1724_v56, %v1720_v53  ;;  %v11630_v3 = vpack.c.bf16 %v1723_v62, %v1719_v59  ;;  %8548 = vmatprep.subr.bf16.mxu0 %v8547_v16  ;;  %v313_v52 = vld [vmem:[#allocation8 + $0x3a0] sm:$0xff]  ;;  %v222_v56 = vld [vmem:[#allocation8 + $0xc8] sm:$0xff] }
 0x115   :  { %8614 = vmatpush1.bf16.msra.mxu1 %v11532_v10  ;;  %1797 = vmatprep.mubr.f32.mxu1 %v11255_v0  ;;  %v8569_v53 = vpack.c.bf16 %v313_v52, %v281_v51  ;;  %v254_v59 = vld [vmem:[#allocation8 + $0x1c8] sm:$0xff]  ;;  %v253_v2 = vld [vmem:[#allocation8 + $0x1c0] sm:$0xff] }
 0x116   :  { %8616 = vmatprep.subr.bf16.mxu1 %v11535_v13  ;;  %8324 = vmatmul.mubr.msk.f32.vlgmr.msra.gmra.mrb[8].mxu0 %vm493_vm0, %v11504_v21  ;;  %v8579_v62 = vpack.c.bf16 %v254_v59, %v222_v56  ;;  %v8581_v7 = vpack.c.bf16 %v253_v2, %v221_v63  ;;  %v286_v8 = vld [vmem:[#allocation8 + $0x2c8] sm:$0xff]  ;;  %v285_v16 = vld [vmem:[#allocation8 + $0x2c0] sm:$0xff] }
 0x117   :  { %1129 = vmatprep.mubr.f32.mxu0 %v11255_v0  ;;  %8550 = vmatpush1.bf16.msra.mxu0 %v8549_v22  ;;  %v318_v14 = vld [vmem:[#allocation8 + $0x3c8] sm:$0xff]  ;;  %v317_v17 = vld [vmem:[#allocation8 + $0x3c0] sm:$0xff] }
 0x118   :  { %8552 = vmatprep.subr.bf16.mxu0 %v8551_v29  ;;  %v8583_v15 = vpack.c.bf16 %v318_v14, %v286_v8  ;;  %v8585_v20 = vpack.c.bf16 %v317_v17, %v285_v16  ;;  %v226_v22 = vld [vmem:[#allocation8 + $0xe8] sm:$0xff]  ;;  %v225_v29 = vld [vmem:[#allocation8 + $0xe0] sm:$0xff] }
 0x119   :  { %8618 = vmatpush1.bf16.msra.mxu1 %v11540_v23  ;;  %v258_v24 = vld [vmem:[#allocation8 + $0x1e8] sm:$0xff]  ;;  %v257_v30 = vld [vmem:[#allocation8 + $0x1e0] sm:$0xff] }
 0x11a   :  { %8620 = vmatprep.subr.bf16.mxu1 %v11544_v26  ;;  %v8595_v25 = vpack.c.bf16 %v258_v24, %v226_v22  ;;  %v8597_v31 = vpack.c.bf16 %v257_v30, %v225_v29  ;;  %v322_v36 = vld [vmem:[#allocation8 + $0x3e8] sm:$0xff]  ;;  %v321_v40 = vld [vmem:[#allocation8 + $0x3e0] sm:$0xff] }
 0x11b   :  { %8554 = vmatpush1.bf16.msra.mxu0 %v8553_v32  ;;  %v290_v32 = vld [vmem:[#allocation8 + $0x2e8] sm:$0xff] }
 0x11c   :  { %8564 = vmatprep.subr.bf16.mxu0 %v8563_v39  ;;  %v8599_v37 = vpack.c.bf16 %v322_v36, %v290_v32  ;;  %v289_v39 = vld [vmem:[#allocation8 + $0x2e0] sm:$0xff] }
 0x11d   :  { %8622 = vmatpush1.bf16.msra.mxu1 %v11550_v35  ;;  %v8601_v43 = vpack.c.bf16 %v321_v40, %v289_v39 }
 0x11e   :  { %8624 = vmatprep.subr.bf16.mxu1 %v11553_v38  ;;  %8326 = vmatmul.mubr.msk.f32.vlgmr.msra.gmra.mrb[10].mxu0 %vm493_vm0, %v11504_v21 }
 0x11f   :  { %8566 = vmatpush1.bf16.msra.mxu0 %v8565_v44  ;;  %1271 = vmatprep.mubr.f32.mxu0 %v11255_v0 }
 0x121   :  { %8626 = vmatpush1.bf16.msra.mxu1 %v11556_v47 }
 0x122   :  { %8628 = vmatprep.subr.bf16.mxu1 %v11559_v48 }
 0x125   :  { %8630 = vmatpush1.bf16.msra.mxu1 %v11565_v54 }
 0x126   :  { %8632 = vmatprep.subr.bf16.mxu1 %v11568_v55 }
 0x129   :  { %8634 = vmatpush1.bf16.msra.mxu1 %v11571_v60 }
 0x12a   :  { %8636 = vmatprep.subr.bf16.mxu1 %v11574_v61 }
 0x12d   :  { %8638 = vmatpush1.bf16.msra.mxu1 %v11580_v4 }
 0x12e   :  { %8640 = vmatprep.subr.bf16.mxu1 %v11583_v5 }
 0x131   :  { %8642 = vmatpush1.bf16.msra.mxu1 %v11586_v11 }
 0x132   :  { %8644 = vmatprep.subr.bf16.mxu1 %v11589_v12 }
 0x134   :  { %1798 = vmatmul.mubr.f32.vlgmr.msra.gmra.mrb[14].mxu1 %v11255_v0 }
 0x135   :  { %8646 = vmatpush1.bf16.msra.mxu1 %v11592_v18  ;;  %1868 = vmatprep.mubr.f32.mxu1 %v11255_v0 }
 0x136   :  { %8648 = vmatprep.subr.bf16.mxu1 %v11595_v19 }
 0x139   :  { %8650 = vmatpush1.bf16.msra.mxu1 %v11599_v27 }
 0x13a   :  { %8652 = vmatprep.subr.bf16.mxu1 %v11603_v28 }
 0x13d   :  { %8654 = vmatpush1.bf16.msra.mxu1 %v11606_v33 }
 0x13e   :  { %8656 = vmatprep.subr.bf16.mxu1 %v11609_v34 }
 0x141   :  { %8658 = vmatpush1.bf16.msra.mxu1 %v11612_v41 }
 0x142   :  { %8660 = vmatprep.subr.bf16.mxu1 %v11615_v42 }
 0x145   :  { %8662 = vmatpush1.bf16.msra.mxu1 %v11618_v49 }
 0x146   :  { %8664 = vmatprep.subr.bf16.mxu1 %v11621_v50 }
 0x149   :  { %8666 = vmatpush1.bf16.msra.mxu1 %v11624_v57 }
 0x14a   :  { %8668 = vmatprep.subr.bf16.mxu1 %v11627_v58 }
 0x14d   :  { %8670 = vmatpush1.bf16.msra.mxu1 %v11630_v3 }
 0x14e   :  { %8672 = vmatprep.subr.bf16.mxu1 %v11633_v6 }
 0x151   :  { %8674 = vmatpush1.bf16.msra.mxu1 %v11636_v9 }
 0x152   :  { %8708 = vmatprep.subr.bf16.mxu1 %v11589_v12 }
 0x154   :  { %1869 = vmatmul.mubr.f32.vlgmr.msra.gmra.mrb[16].mxu1 %v11255_v0 }
 0x155   :  { %8710 = vmatpush1.bf16.msra.mxu1 %v11592_v18  ;;  %2107 = vmatprep.mubr.f32.mxu1 %v11255_v0 }
 0x156   :  { %8712 = vmatprep.subr.bf16.mxu1 %v11595_v19 }
 0x159   :  { %8714 = vmatpush1.bf16.msra.mxu1 %v11599_v27 }
 0x15a   :  { %8716 = vmatprep.subr.bf16.mxu1 %v11603_v28 }
 0x15d   :  { %8718 = vmatpush1.bf16.msra.mxu1 %v11606_v33 }
 0x15e   :  { %8720 = vmatprep.subr.bf16.mxu1 %v11609_v34 }
 0x161   :  { %8722 = vmatpush1.bf16.msra.mxu1 %v11612_v41 }
 0x162   :  { %8724 = vmatprep.subr.bf16.mxu1 %v11615_v42 }
 0x165   :  { %8726 = vmatpush1.bf16.msra.mxu1 %v11618_v49 }
 0x166   :  { %8728 = vmatprep.subr.bf16.mxu1 %v11621_v50 }
 0x169   :  { %8730 = vmatpush1.bf16.msra.mxu1 %v11624_v57 }
 0x16a   :  { %8732 = vmatprep.subr.bf16.mxu1 %v11627_v58 }
 0x16d   :  { %8734 = vmatpush1.bf16.msra.mxu1 %v11630_v3 }
 0x16e   :  { %8736 = vmatprep.subr.bf16.mxu1 %v11633_v6 }
 0x171   :  { %8738 = vmatpush1.bf16.msra.mxu1 %v11636_v9 }
 0x172   :  { %8772 = vmatprep.subr.bf16.mxu1 %v11589_v12  ;;  %v282_v12 = vld [vmem:[#allocation8 + $0x2a8] sm:$0xff] }
 0x173   :  { %v8567_v46 = vpack.c.bf16 %v314_v45, %v282_v12 }
 0x175   :  { %8568 = vmatprep.subr.bf16.mxu0 %v8567_v46 }
 0x176   :  { %8570 = vmatpush1.bf16.msra.mxu0 %v8569_v53 }
 0x177   :  { %8580 = vmatprep.subr.bf16.mxu0 %v8579_v62 }
 0x179   :  { %8328 = vmatmul.mubr.msk.f32.vlgmr.msra.gmra.mrb[12].mxu0 %vm493_vm0, %v11504_v21 }
 0x17a   :  { %8582 = vmatpush1.bf16.msra.mxu0 %v8581_v7  ;;  %1413 = vmatprep.mubr.f32.mxu0 %v11255_v0 }
 0x17b   :  { %8584 = vmatprep.subr.bf16.mxu0 %v8583_v15 }
 0x17e   :  { %8586 = vmatpush1.bf16.msra.mxu0 %v8585_v20 }
 0x17f   :  { %8596 = vmatprep.subr.bf16.mxu0 %v8595_v25 }
 0x181   :  { %8330 = vmatmul.mubr.msk.f32.vlgmr.msra.gmra.mrb[14].mxu0 %vm493_vm0, %v11504_v21 }
 0x182   :  { %8598 = vmatpush1.bf16.msra.mxu0 %v8597_v31  ;;  %1555 = vmatprep.mubr.f32.mxu0 %v11255_v0 }
 0x183   :  { %8600 = vmatprep.subr.bf16.mxu0 %v8599_v37 }
 0x186   :  { %8602 = vmatpush1.bf16.msra.mxu0 %v8601_v43 }
 0x187   :  { %8676 = vmatprep.subr.bf16.mxu0 %v11527_v1 }
 0x189   :  { %8332 = vmatmul.mubr.msk.f32.vlgmr.msra.gmra.mrb[16].mxu0 %vm493_vm0, %v11504_v21 }
 0x18a   :  { %8678 = vmatpush1.bf16.msra.mxu0 %v11532_v10  ;;  %2036 = vmatprep.mubr.f32.mxu0 %v11255_v0 }
 0x18b   :  { %8680 = vmatprep.subr.bf16.mxu0 %v11535_v13 }
 0x18e   :  { %8682 = vmatpush1.bf16.msra.mxu0 %v11540_v23 }
 0x18f   :  { %8684 = vmatprep.subr.bf16.mxu0 %v11544_v26 }
 0x192   :  { %8686 = vmatpush1.bf16.msra.mxu0 %v11550_v35 }
 0x193   :  { %8688 = vmatprep.subr.bf16.mxu0 %v11553_v38  ;;  %v333_v38 = vlaneseq }
 0x196   :  { %8690 = vmatpush1.bf16.msra.mxu0 %v11556_v47  ;;  %v11688_v47 = vshrl.u32 %v333_v38, 7  ;;  %v2192_v38 = vld [vmem:[#allocation10 + $0x168] sm:$0xff] }
 0x197   :  { %8692 = vmatprep.subr.bf16.mxu0 %v11559_v48 }
 0x198   :  { %v11691_v48 = vsub.s32 0, %v11688_v47  ;;  %v11703_v51 = vsub.s32 2, %v11688_v47  ;;  %v11706_v52 = vsub.s32 3, %v11688_v47 }
 0x19a   :  { %8694 = vmatpush1.bf16.msra.mxu0 %v11565_v54  ;;  %v11693_v54 = vld [vmem:[#allocation11] sm:$0xff] }
 0x19b   :  { %8696 = vmatprep.subr.bf16.mxu0 %v11568_v55  ;;  %v11696_v55 = vsub.s32 1, %v11688_v47  ;;  %v344_v53 = vrot.slane %v11693_v54, %v11703_v51  ;;  %v348_v56 = vrot.slane %v11693_v54, %v11706_v52 }
 0x19e   :  { %8698 = vmatpush1.bf16.msra.mxu0 %v11571_v60  ;;  %v336_v60 = vrot.slane %v11693_v54, %v11691_v48 }
 0x19f   :  { %8700 = vmatprep.subr.bf16.mxu0 %v11574_v61 }
 0x1a2   :  { %8702 = vmatpush1.bf16.msra.mxu0 %v11580_v4 }
 0x1a3   :  { %8704 = vmatprep.subr.bf16.mxu0 %v11583_v5 }
 0x1a6   :  { %8706 = vmatpush1.bf16.msra.mxu0 %v11586_v11 }
 0x1a7   :  { %8740 = vmatprep.subr.bf16.mxu0 %v11527_v1  ;;  %v340_v1 = vrot.slane %v11693_v54, %v11696_v55 }
 0x1b9   :  { %v563_v21 = vpop.f32.mrb[0].mxu0 }
 0x1ba   :  { %v565_v23 = vpop.f32.mrb[1].mxu0  ;;  %v564_v61 = vadd.f32 %v563_v21, %v336_v60  ;;  %v2179_v21 = vld [vmem:[#allocation10 + $0x100] sm:$0xff] }
 0x1bb   :  { %v566_v4 = vadd.f32 %v565_v23, %v340_v1  ;;  %v2183_v23 = vld [vmem:[#allocation10 + $0x120] sm:$0xff] }
 0x1bc   :  { %v2187_v1 = vld [vmem:[#allocation10 + $0x140] sm:$0xff] }
 0x1d1   :  { %v634_v26 = vpop.f32.mrb[2].mxu0 }
 0x1d2   :  { %v636_v35 = vpop.f32.mrb[3].mxu0  ;;  %v635_v63 = vadd.f32 %v634_v26, %v344_v53  ;;  %v11755_v26 = vpack.c.bf16 %v2183_v23, %v2179_v21  ;;  %v2208_v53 = vld [vmem:[#allocation10 + $0x1e8] sm:$0xff] }
 0x1d3   :  { %v637_v7 = vadd.f32 %v636_v35, %v348_v56  ;;  %v2188_v35 = vld [vmem:[#allocation10 + $0x148] sm:$0xff] }
 0x1d4   :  { %v11759_v60 = vpack.c.bf16 %v2192_v38, %v2188_v35 }
 0x207   :  { %v1799_v5 = vpop.f32.mrb[14].mxu1 }
 0x208   :  { %v1875_v11 = vadd.f32 %v1799_v5, %v564_v61  ;;  %v1801_v44 = vpop.f32.mrb[15].mxu1  ;;  %v2191_v61 = vld [vmem:[#allocation10 + $0x160] sm:$0xff]  ;;  %v2196_v5 = vld [vmem:[#allocation10 + $0x188] sm:$0xff] }
 0x209   :  { %v1876_v12 = vadd.f32 %v1801_v44, %v566_v4  ;;  %v11761_v4 = vpack.c.bf16 %v2191_v61, %v2187_v1  ;;  %v2195_v44 = vld [vmem:[#allocation10 + $0x180] sm:$0xff]  ;;  %v2387_v1 = vld [vmem:[#allocation10 + $0x8] sm:$0xff] }
 0x20a   :  { %v8334_v46 = vmul.f32 -1.442695, %v1875_v11  ;;  %v2200_v11 = vld [vmem:[#allocation10 + $0x1a8] sm:$0xff] }
 0x20b   :  { %v8335_v45 = vmul.f32 -1.442695, %v1876_v12  ;;  %v11764_v12 = vpack.c.bf16 %v2200_v11, %v2196_v5  ;;  %v2391_v61 = vld [vmem:[#allocation10 + $0x28] sm:$0xff]  ;;  %v2393_v11 = vld [vmem:[#allocation10 + $0x38] sm:$0xff] }
 0x20c   :  { %v11807_v5 = vpack.c.bf16 %v2391_v61, %v2387_v1  ;;  %v2429_v1 = vld [vmem:[#allocation10 + $0x158] sm:$0xff] }
 0x20d   :  { %10519 = vpow2.f32 %v8335_v45  ;;  %v2199_v45 = vld [vmem:[#allocation10 + $0x1a0] sm:$0xff]  ;;  %v2433_v61 = vld [vmem:[#allocation10 + $0x178] sm:$0xff] }
 0x20e   :  { %10521 = vpow2.f32 %v8334_v46  ;;  %v2204_v46 = vld [vmem:[#allocation10 + $0x1c8] sm:$0xff]  ;;  %v11767_v56 = vpack.c.bf16 %v2199_v45, %v2195_v44  ;;  %v2386_v44 = vld [vmem:[#allocation10] sm:$0xff] }
 0x20f   :  { %v2390_v45 = vld [vmem:[#allocation10 + $0x20] sm:$0xff] }
 0x217   :  { %v10520_v59 = vpop.eup %10519 }
 0x218   :  { %v10522_v62 = vpop.eup %10521  ;;  %v1889_v2 = vadd.f32 1.0, %v10520_v59  ;;  %v11770_v59 = vpack.c.bf16 %v2208_v53, %v2204_v46  ;;  %v11811_v53 = vpack.c.bf16 %v2390_v45, %v2386_v44  ;;  %v2432_v44 = vld [vmem:[#allocation10 + $0x170] sm:$0xff] }
 0x219   :  { %v1888_v8 = vadd.f32 1.0, %v10522_v62  ;;  %v2203_v62 = vld [vmem:[#allocation10 + $0x1c0] sm:$0xff] }
 0x21a   :  { %10523 = vrcp.f32 %v1889_v2 }
 0x21b   :  { %10525 = vrcp.f32 %v1888_v8  ;;  %v11781_v8 = vsub.s32 5, %v11688_v47 }
 0x224   :  { %v10524_v22 = vpop.eup %10523 }
 0x225   :  { %v10526_v24 = vpop.eup %10525  ;;  %v1898_v30 = vmul.f32 0.0, %v10524_v22  ;;  %v11788_v22 = vsub.s32 6, %v11688_v47 }
 0x227   :  { %v1870_v14 = vpop.f32.mrb[16].mxu1 }
 0x228   :  { %v1877_v15 = vadd.f32 %v1870_v14, %v635_v63  ;;  %v1872_v16 = vpop.f32.mrb[17].mxu1  ;;  %v2207_v63 = vld [vmem:[#allocation10 + $0x1e0] sm:$0xff] }
 0x229   :  { %v1878_v17 = vadd.f32 %v1872_v16, %v637_v7  ;;  %v11773_v2 = vpack.c.bf16 %v2207_v63, %v2203_v62  ;;  %v11778_v7 = vsub.s32 4, %v11688_v47  ;;  %v2388_v62 = vld [vmem:[#allocation10 + $0x10] sm:$0xff] }
 0x22a   :  { %v8336_v20 = vmul.f32 -1.442695, %v1877_v15  ;;  %v356_v15 = vrot.slane %v11693_v54, %v11781_v8  ;;  %v2392_v63 = vld [vmem:[#allocation10 + $0x30] sm:$0xff] }
 0x22b   :  { %10527 = vtanh.f32 %v1878_v17  ;;  %v352_v14 = vrot.slane %v11693_v54, %v11778_v7 }
 0x22c   :  { %10529 = vpow2.f32 %v8336_v20 }
 0x235   :  { %v10528_v25 = vpop.eup %10527 }
 0x236   :  { %v10530_v29 = vpop.eup %10529  ;;  %v1899_v31 = vmul.f32 %v10528_v25, %v10526_v24 }
 0x237   :  { %v1890_v32 = vadd.f32 1.0, %v10530_v29 }
 0x238   :  { %v11712_v36 = vadd.f32 %v1899_v31, %v1898_v30 }
 0x239   :  { %10531 = vrcp.f32 %v1890_v32  ;;  %v11791_v32 = vsub.s32 7, %v11688_v47 }
 0x23a   :  { %10533 = vtanh.f32 %v11712_v36 }
 0x243   :  { %v10532_v37 = vpop.eup %10531 }
 0x244   :  { %v10534_v39 = vpop.eup %10533 }
 0x245   :  { %v11715_v40 = vmul.f32 %v10534_v39, %v10532_v37  ;;  %v360_v37 = vrot.slane %v11693_v54, %v11788_v22  ;;  %v364_v39 = vrot.slane %v11693_v54, %v11791_v32 }
 0x247   :  { %2037 = vmatmul.mubr.f32.vlgmr.msra.gmra.mrb[4].mxu0 %v11715_v40  ;;  %2108 = vmatmul.mubr.f32.vlgmr.msra.gmra.mrb[0].mxu1 %v11715_v40 }
 0x248   :  { %8742 = vmatpush1.bf16.msra.mxu0 %v11532_v10  ;;  %8774 = vmatpush1.bf16.msra.mxu1 %v11592_v18  ;;  %v2155_v10 = vld [vmem:[#allocation10 + $0x40] sm:$0xff] }
 0x249   :  { %8744 = vmatprep.subr.bf16.mxu0 %v11535_v13  ;;  %8776 = vmatprep.subr.bf16.mxu1 %v11595_v19  ;;  %v2159_v13 = vld [vmem:[#allocation10 + $0x60] sm:$0xff]  ;;  %v2164_v19 = vld [vmem:[#allocation10 + $0x88] sm:$0xff] }
 0x24a   :  { %2275 = vmatprep.mubr.f32.mxu0 %v11255_v0  ;;  %2346 = vmatprep.mubr.f32.mxu1 %v11255_v0  ;;  %v11738_v18 = vpack.c.bf16 %v2159_v13, %v2155_v10 }
 0x24c   :  { %8778 = vmatpush1.bf16.msra.mxu1 %v11599_v27  ;;  %8746 = vmatpush1.bf16.msra.mxu0 %v11738_v18  ;;  %v2168_v27 = vld [vmem:[#allocation10 + $0xa8] sm:$0xff] }
 0x24d   :  { %8780 = vmatprep.subr.bf16.mxu1 %v11603_v28  ;;  %v11741_v28 = vpack.c.bf16 %v2168_v27, %v2164_v19 }
 0x24f   :  { %8748 = vmatprep.subr.bf16.mxu0 %v11741_v28 }
 0x250   :  { %8782 = vmatpush1.bf16.msra.mxu1 %v11606_v33  ;;  %v2163_v33 = vld [vmem:[#allocation10 + $0x80] sm:$0xff] }
 0x251   :  { %8784 = vmatprep.subr.bf16.mxu1 %v11609_v34  ;;  %v2167_v34 = vld [vmem:[#allocation10 + $0xa0] sm:$0xff] }
 0x254   :  { %8786 = vmatpush1.bf16.msra.mxu1 %v11612_v41  ;;  %v11743_v41 = vpack.c.bf16 %v2167_v34, %v2163_v33 }
 0x255   :  { %8788 = vmatprep.subr.bf16.mxu1 %v11615_v42  ;;  %v2172_v42 = vld [vmem:[#allocation10 + $0xc8] sm:$0xff] }
 0x256   :  { %8750 = vmatpush1.bf16.msra.mxu0 %v11743_v41 }
 0x258   :  { %8790 = vmatpush1.bf16.msra.mxu1 %v11618_v49  ;;  %v2176_v49 = vld [vmem:[#allocation10 + $0xe8] sm:$0xff] }
 0x259   :  { %8792 = vmatprep.subr.bf16.mxu1 %v11621_v50  ;;  %v11747_v50 = vpack.c.bf16 %v2176_v49, %v2172_v42 }
 0x25b   :  { %8752 = vmatprep.subr.bf16.mxu0 %v11747_v50 }
 0x25c   :  { %8794 = vmatpush1.bf16.msra.mxu1 %v11624_v57  ;;  %v2171_v57 = vld [vmem:[#allocation10 + $0xc0] sm:$0xff] }
 0x25d   :  { %8796 = vmatprep.subr.bf16.mxu1 %v11627_v58  ;;  %v2175_v58 = vld [vmem:[#allocation10 + $0xe0] sm:$0xff] }
 0x260   :  { %8798 = vmatpush1.bf16.msra.mxu1 %v11630_v3  ;;  %v11749_v3 = vpack.c.bf16 %v2175_v58, %v2171_v57 }
 0x261   :  { %8800 = vmatprep.subr.bf16.mxu1 %v11633_v6  ;;  %v2180_v6 = vld [vmem:[#allocation10 + $0x108] sm:$0xff] }
 0x262   :  { %8754 = vmatpush1.bf16.msra.mxu0 %v11749_v3 }
 0x264   :  { %8802 = vmatpush1.bf16.msra.mxu1 %v11636_v9  ;;  %v2184_v9 = vld [vmem:[#allocation10 + $0x128] sm:$0xff] }
 0x265   :  { %v11753_v43 = vpack.c.bf16 %v2184_v9, %v2180_v6 }
 0x267   :  { %8756 = vmatprep.subr.bf16.mxu0 %v11753_v43 }
 0x268   :  { %8758 = vmatpush1.bf16.msra.mxu0 %v11755_v26 }
 0x269   :  { %8760 = vmatprep.subr.bf16.mxu0 %v11759_v60 }
 0x26c   :  { %8762 = vmatpush1.bf16.msra.mxu0 %v11761_v4 }
 0x26d   :  { %8764 = vmatprep.subr.bf16.mxu0 %v11764_v12 }
 0x270   :  { %8766 = vmatpush1.bf16.msra.mxu0 %v11767_v56 }
 0x271   :  { %8768 = vmatprep.subr.bf16.mxu0 %v11770_v59 }
 0x274   :  { %8770 = vmatpush1.bf16.msra.mxu0 %v11773_v2 }
 0x275   :  { %8804 = vmatprep.subr.bf16.mxu0 %v11807_v5 }
 0x31a   :  { %v2038_v16 = vpop.f32.mrb[4].mxu0  ;;  %v2109_v17 = vpop.f32.mrb[0].mxu1 }
 0x31b   :  { %v10315_v20 = vadd.f32 %v2038_v16, %v352_v14  ;;  %v2040_v24 = vpop.f32.mrb[5].mxu0  ;;  %v2111_v25 = vpop.f32.mrb[1].mxu1  ;;  %v10317_v10 = vadd.f32 %v2109_v17, %v360_v37  ;;  %v11814_v14 = vpack.c.bf16 %v2392_v63, %v2388_v62  ;;  %v2399_v16 = vld [vmem:[#allocation10 + $0x68] sm:$0xff]  ;;  %v2397_v17 = vld [vmem:[#allocation10 + $0x58] sm:$0xff] }
 0x31c   :  { %v10316_v29 = vadd.f32 %v2040_v24, %v356_v15  ;;  %v10318_v13 = vadd.f32 %v2111_v25, %v364_v39  ;;  %v2395_v15 = vld [vmem:[#allocation10 + $0x48] sm:$0xff]  ;;  %v2401_v24 = vld [vmem:[#allocation10 + $0x78] sm:$0xff]  ;;  %v2396_v25 = vld [vmem:[#allocation10 + $0x50] sm:$0xff] }
 0x31d   :  { %v8337_v30 = vmul.f32 -1.442695, %v10315_v20  ;;  %v8339_v19 = vmul.f32 -1.442695, %v10317_v10  ;;  %v11819_v20 = vpack.c.bf16 %v2399_v16, %v2395_v15  ;;  %v2405_v37 = vld [vmem:[#allocation10 + $0x98] sm:$0xff]  ;;  %v2436_v15 = vld [vmem:[#allocation10 + $0x190] sm:$0xff] }
 0x31e   :  { %v8338_v31 = vmul.f32 -1.442695, %v10316_v29  ;;  %v2400_v29 = vld [vmem:[#allocation10 + $0x70] sm:$0xff]  ;;  %v2409_v39 = vld [vmem:[#allocation10 + $0xb8] sm:$0xff] }
 0x31f   :  { %10535 = vpow2.f32 %v8337_v30  ;;  %v11821_v30 = vpack.c.bf16 %v2401_v24, %v2397_v17  ;;  %v11830_v10 = vpack.c.bf16 %v2409_v39, %v2405_v37  ;;  %v2437_v62 = vld [vmem:[#allocation10 + $0x198] sm:$0xff]  ;;  %v2440_v17 = vld [vmem:[#allocation10 + $0x1b0] sm:$0xff] }
 0x320   :  { %10537 = vpow2.f32 %v8338_v31  ;;  %v11823_v31 = vpack.c.bf16 %v2400_v29, %v2396_v25  ;;  %v2441_v63 = vld [vmem:[#allocation10 + $0x1b8] sm:$0xff]  ;;  %v11864_v29 = vpack.c.bf16 %v2440_v17, %v2436_v15  ;;  %v2444_v39 = vld [vmem:[#allocation10 + $0x1d0] sm:$0xff] }
 0x321   :  { %10539 = vtanh.f32 %v10318_v13  ;;  %v2404_v13 = vld [vmem:[#allocation10 + $0x90] sm:$0xff]  ;;  %v11859_v16 = vpack.c.bf16 %v2441_v63, %v2437_v62  ;;  %v2445_v24 = vld [vmem:[#allocation10 + $0x1d8] sm:$0xff] }
 0x322   :  { %10541 = vpow2.f32 %v8339_v19  ;;  %v2408_v19 = vld [vmem:[#allocation10 + $0xb0] sm:$0xff]  ;;  %v2449_v25 = vld [vmem:[#allocation10 + $0x1f8] sm:$0xff] }
 0x323   :  { %v11867_v37 = vpack.c.bf16 %v2449_v25, %v2445_v24 }
 0x329   :  { %v10536_v27 = vpop.eup %10535 }
 0x32a   :  { %v2127_v33 = vadd.f32 1.0, %v10536_v27  ;;  %v10538_v34 = vpop.eup %10537  ;;  %v11832_v27 = vpack.c.bf16 %v2408_v19, %v2404_v13  ;;  %v2448_v13 = vld [vmem:[#allocation10 + $0x1f0] sm:$0xff] }
 0x32b   :  { %v2128_v42 = vadd.f32 1.0, %v10538_v34  ;;  %v10540_v47 = vpop.eup %10539  ;;  %v2417_v34 = vld [vmem:[#allocation10 + $0xf8] sm:$0xff]  ;;  %v11872_v19 = vpack.c.bf16 %v2448_v13, %v2444_v39 }
 0x32c   :  { %10543 = vrcp.f32 %v2127_v33  ;;  %v10542_v49 = vpop.eup %10541  ;;  %v2413_v33 = vld [vmem:[#allocation10 + $0xd8] sm:$0xff] }
 0x32d   :  { %10545 = vrcp.f32 %v2128_v42  ;;  %v2129_v9 = vadd.f32 1.0, %v10542_v49  ;;  %v11838_v42 = vpack.c.bf16 %v2417_v34, %v2413_v33  ;;  %v2416_v49 = vld [vmem:[#allocation10 + $0xf0] sm:$0xff]  ;;  %v11879_v33 = vld [vmem:[#allocation11 + $0x8] sm:$0xff] }
 0x32e   :  { %v368_v34 = vrot.slane %v11879_v33, %v11691_v48  ;;  %v380_v62 = vrot.slane %v11879_v33, %v11706_v52 }
 0x32f   :  { %10547 = vrcp.f32 %v2129_v9 }
 0x336   :  { %v10544_v57 = vpop.eup %10543 }
 0x337   :  { %v2138_v58 = vmul.f32 %v10544_v57, %v10540_v47  ;;  %v10546_v6 = vpop.eup %10545  ;;  %v2412_v47 = vld [vmem:[#allocation10 + $0xd0] sm:$0xff] }
 0x338   :  { %v2137_v21 = vmul.f32 %v10546_v6, %v11712_v36  ;;  %v2389_v36 = vld [vmem:[#allocation10 + $0x18] sm:$0xff]  ;;  %v11840_v57 = vpack.c.bf16 %v2416_v49, %v2412_v47  ;;  %v372_v47 = vrot.slane %v11879_v33, %v11696_v55 }
 0x339   :  { %v10548_v23 = vpop.eup %10547  ;;  %v11809_v46 = vpack.c.bf16 %v2393_v11, %v2389_v36  ;;  %v2425_v6 = vld [vmem:[#allocation10 + $0x138] sm:$0xff]  ;;  %v11854_v36 = vpack.c.bf16 %v2433_v61, %v2429_v1  ;;  %v2428_v11 = vld [vmem:[#allocation10 + $0x150] sm:$0xff] }
 0x33a   :  { %v11798_v54 = vadd.f32 %v2138_v58, %v2137_v21  ;;  %v2421_v58 = vld [vmem:[#allocation10 + $0x118] sm:$0xff]  ;;  %v2420_v21 = vld [vmem:[#allocation10 + $0x110] sm:$0xff]  ;;  %v11856_v45 = vpack.c.bf16 %v2432_v44, %v2428_v11  ;;  %v376_v44 = vrot.slane %v11879_v33, %v11703_v51 }
 0x33b   :  { %8836 = vmatprep.subr.bf16.mxu1 %v11809_v46  ;;  %v11846_v9 = vpack.c.bf16 %v2425_v6, %v2421_v58 }
 0x33c   :  { %10549 = vtanh.f32 %v11798_v54 }
 0x346   :  { %v10550_v35 = vpop.eup %10549 }
 0x347   :  { %v11801_v38 = vmul.f32 %v10550_v35, %v10548_v23  ;;  %v2424_v23 = vld [vmem:[#allocation10 + $0x130] sm:$0xff] }
 0x348   :  { %v11848_v35 = vpack.c.bf16 %v2424_v23, %v2420_v21 }
 0x349   :  { %2276 = vmatmul.mubr.f32.vlgmr.msra.gmra.mrb[6].mxu0 %v11801_v38  ;;  %2347 = vmatmul.mubr.f32.vlgmr.msra.gmra.mrb[2].mxu1 %v11801_v38 }
 0x34a   :  { %2514 = vmatprep.mubr.f32.mxu0 %v11255_v0  ;;  %2585 = vmatprep.mubr.f32.mxu1 %v11255_v0 }
 0x34b   :  { %8806 = vmatpush1.bf16.msra.mxu0 %v11811_v53  ;;  %8838 = vmatpush1.bf16.msra.mxu1 %v11814_v14 }
 0x34c   :  { %8808 = vmatprep.subr.bf16.mxu0 %v11819_v20  ;;  %8840 = vmatprep.subr.bf16.mxu1 %v11821_v30 }
 0x34f   :  { %8810 = vmatpush1.bf16.msra.mxu0 %v11738_v18  ;;  %8842 = vmatpush1.bf16.msra.mxu1 %v11823_v31 }
 0x350   :  { %8812 = vmatprep.subr.bf16.mxu0 %v11741_v28  ;;  %8844 = vmatprep.subr.bf16.mxu1 %v11830_v10 }
 0x353   :  { %8814 = vmatpush1.bf16.msra.mxu0 %v11743_v41  ;;  %8846 = vmatpush1.bf16.msra.mxu1 %v11832_v27 }
 0x354   :  { %8816 = vmatprep.subr.bf16.mxu0 %v11747_v50  ;;  %8848 = vmatprep.subr.bf16.mxu1 %v11838_v42 }
 0x357   :  { %8818 = vmatpush1.bf16.msra.mxu0 %v11749_v3  ;;  %8850 = vmatpush1.bf16.msra.mxu1 %v11840_v57 }
 0x358   :  { %8820 = vmatprep.subr.bf16.mxu0 %v11753_v43  ;;  %8852 = vmatprep.subr.bf16.mxu1 %v11846_v9 }
 0x35b   :  { %8822 = vmatpush1.bf16.msra.mxu0 %v11755_v26  ;;  %8854 = vmatpush1.bf16.msra.mxu1 %v11848_v35 }
 0x35c   :  { %8824 = vmatprep.subr.bf16.mxu0 %v11759_v60  ;;  %8856 = vmatprep.subr.bf16.mxu1 %v11854_v36 }
 0x35f   :  { %8826 = vmatpush1.bf16.msra.mxu0 %v11761_v4  ;;  %8858 = vmatpush1.bf16.msra.mxu1 %v11856_v45 }
 0x360   :  { %8828 = vmatprep.subr.bf16.mxu0 %v11764_v12  ;;  %8860 = vmatprep.subr.bf16.mxu1 %v11859_v16 }
 0x363   :  { %8830 = vmatpush1.bf16.msra.mxu0 %v11767_v56  ;;  %8862 = vmatpush1.bf16.msra.mxu1 %v11864_v29 }
 0x364   :  { %8832 = vmatprep.subr.bf16.mxu0 %v11770_v59  ;;  %8864 = vmatprep.subr.bf16.mxu1 %v11867_v37 }
 0x367   :  { %8834 = vmatpush1.bf16.msra.mxu0 %v11773_v2  ;;  %8866 = vmatpush1.bf16.msra.mxu1 %v11872_v19 }
 0x368   :  { %8868 = vmatprep.subr.bf16.mxu0 %v11807_v5  ;;  %8900 = vmatprep.subr.bf16.mxu1 %v11809_v46 }
 0x41c   :  { %v2277_v49 = vpop.f32.mrb[6].mxu0  ;;  %v2348_v58 = vpop.f32.mrb[2].mxu1 }
 0x41d   :  { %v10319_v6 = vadd.f32 %v2277_v49, %v368_v34  ;;  %v2279_v21 = vpop.f32.mrb[7].mxu0  ;;  %v2350_v23 = vpop.f32.mrb[3].mxu1  ;;  %v10321_v63 = vadd.f32 %v2348_v58, %v376_v44 }
 0x41e   :  { %v10320_v1 = vadd.f32 %v2279_v21, %v372_v47  ;;  %v10322_v15 = vadd.f32 %v2350_v23, %v380_v62  ;;  %v388_v62 = vrot.slane %v11879_v33, %v11781_v8 }
 0x41f   :  { %v8340_v61 = vmul.f32 -1.442695, %v10319_v6  ;;  %v8342_v17 = vmul.f32 -1.442695, %v10321_v63 }
 0x420   :  { %v8341_v11 = vmul.f32 -1.442695, %v10320_v1 }
 0x421   :  { %10551 = vpow2.f32 %v8340_v61 }
 0x422   :  { %10553 = vpow2.f32 %v8341_v11 }
 0x423   :  { %10555 = vtanh.f32 %v10322_v15 }
 0x424   :  { %10557 = vpow2.f32 %v8342_v17 }
 0x42b   :  { %v10552_v24 = vpop.eup %10551 }
 0x42c   :  { %v2366_v25 = vadd.f32 1.0, %v10552_v24  ;;  %v10554_v39 = vpop.eup %10553 }
 0x42d   :  { %v2367_v13 = vadd.f32 1.0, %v10554_v39  ;;  %v10556_v34 = vpop.eup %10555 }
 0x42e   :  { %10559 = vrcp.f32 %v2366_v25  ;;  %v10558_v47 = vpop.eup %10557 }
 0x42f   :  { %10561 = vrcp.f32 %v2367_v13  ;;  %v2368_v1 = vadd.f32 1.0, %v10558_v47  ;;  %v392_v47 = vrot.slane %v11879_v33, %v11788_v22 }
 0x431   :  { %10563 = vrcp.f32 %v2368_v1 }
 0x438   :  { %v10560_v49 = vpop.eup %10559 }
 0x439   :  { %v2377_v6 = vmul.f32 %v10560_v49, %v10556_v34  ;;  %v10562_v21 = vpop.eup %10561  ;;  %v396_v49 = vrot.slane %v11879_v33, %v11791_v32 }
 0x43a   :  { %v2376_v61 = vmul.f32 %v10562_v21, %v11798_v54  ;;  %v384_v54 = vrot.slane %v11879_v33, %v11778_v7 }
 0x43b   :  { %v10564_v58 = vpop.eup %10563 }
 0x43c   :  { %v11890_v11 = vadd.f32 %v2377_v6, %v2376_v61 }
 0x43e   :  { %10565 = vtanh.f32 %v11890_v11 }
 0x448   :  { %v10566_v23 = vpop.eup %10565 }
 0x449   :  { %v11893_v44 = vmul.f32 %v10566_v23, %v10564_v58 }
 0x44b   :  { %2515 = vmatmul.mubr.f32.vlgmr.msra.gmra.mrb[8].mxu0 %v11893_v44  ;;  %2586 = vmatmul.mubr.f32.vlgmr.msra.gmra.mrb[4].mxu1 %v11893_v44 }
 0x44c   :  { %8870 = vmatpush1.bf16.msra.mxu0 %v11811_v53  ;;  %8902 = vmatpush1.bf16.msra.mxu1 %v11814_v14 }
 0x44d   :  { %8872 = vmatprep.subr.bf16.mxu0 %v11819_v20  ;;  %8904 = vmatprep.subr.bf16.mxu1 %v11821_v30 }
 0x44e   :  { %2753 = vmatprep.mubr.f32.mxu0 %v11255_v0  ;;  %2824 = vmatprep.mubr.f32.mxu1 %v11255_v0 }
 0x450   :  { %8874 = vmatpush1.bf16.msra.mxu0 %v11738_v18  ;;  %8906 = vmatpush1.bf16.msra.mxu1 %v11823_v31 }
 0x451   :  { %8876 = vmatprep.subr.bf16.mxu0 %v11741_v28  ;;  %8908 = vmatprep.subr.bf16.mxu1 %v11830_v10 }
 0x454   :  { %8878 = vmatpush1.bf16.msra.mxu0 %v11743_v41  ;;  %8910 = vmatpush1.bf16.msra.mxu1 %v11832_v27 }
 0x455   :  { %8880 = vmatprep.subr.bf16.mxu0 %v11747_v50  ;;  %8912 = vmatprep.subr.bf16.mxu1 %v11838_v42 }
 0x458   :  { %8882 = vmatpush1.bf16.msra.mxu0 %v11749_v3  ;;  %8914 = vmatpush1.bf16.msra.mxu1 %v11840_v57 }
 0x459   :  { %8884 = vmatprep.subr.bf16.mxu0 %v11753_v43  ;;  %8916 = vmatprep.subr.bf16.mxu1 %v11846_v9 }
 0x45c   :  { %8886 = vmatpush1.bf16.msra.mxu0 %v11755_v26  ;;  %8918 = vmatpush1.bf16.msra.mxu1 %v11848_v35 }
 0x45d   :  { %8888 = vmatprep.subr.bf16.mxu0 %v11759_v60  ;;  %8920 = vmatprep.subr.bf16.mxu1 %v11854_v36 }
 0x460   :  { %8890 = vmatpush1.bf16.msra.mxu0 %v11761_v4  ;;  %8922 = vmatpush1.bf16.msra.mxu1 %v11856_v45 }
 0x461   :  { %8892 = vmatprep.subr.bf16.mxu0 %v11764_v12  ;;  %8924 = vmatprep.subr.bf16.mxu1 %v11859_v16 }
 0x464   :  { %8894 = vmatpush1.bf16.msra.mxu0 %v11767_v56  ;;  %8926 = vmatpush1.bf16.msra.mxu1 %v11864_v29 }
 0x465   :  { %8896 = vmatprep.subr.bf16.mxu0 %v11770_v59  ;;  %8928 = vmatprep.subr.bf16.mxu1 %v11867_v37 }
 0x468   :  { %8898 = vmatpush1.bf16.msra.mxu0 %v11773_v2  ;;  %8930 = vmatpush1.bf16.msra.mxu1 %v11872_v19 }
 0x469   :  { %8932 = vmatprep.subr.bf16.mxu0 %v11807_v5  ;;  %8964 = vmatprep.subr.bf16.mxu1 %v11809_v46 }
 0x51e   :  { %v2516_v63 = vpop.f32.mrb[8].mxu0  ;;  %v2587_v15 = vpop.f32.mrb[4].mxu1 }
 0x51f   :  { %v10323_v17 = vadd.f32 %v2516_v63, %v384_v54  ;;  %v2518_v24 = vpop.f32.mrb[9].mxu0  ;;  %v2589_v25 = vpop.f32.mrb[5].mxu1  ;;  %v10325_v6 = vadd.f32 %v2587_v15, %v392_v47 }
 0x520   :  { %v10324_v39 = vadd.f32 %v2518_v24, %v388_v62  ;;  %v10326_v21 = vadd.f32 %v2589_v25, %v396_v49 }
 0x521   :  { %v8343_v13 = vmul.f32 -1.442695, %v10323_v17  ;;  %v8345_v1 = vmul.f32 -1.442695, %v10325_v6 }
 0x522   :  { %v8344_v34 = vmul.f32 -1.442695, %v10324_v39 }
 0x523   :  { %10567 = vpow2.f32 %v8343_v13 }
 0x524   :  { %10569 = vpow2.f32 %v8344_v34 }
 0x525   :  { %10571 = vtanh.f32 %v10326_v21 }
 0x526   :  { %10573 = vpow2.f32 %v8345_v1 }
 0x52d   :  { %v10568_v61 = vpop.eup %10567 }
 0x52e   :  { %v2605_v58 = vadd.f32 1.0, %v10568_v61  ;;  %v10570_v23 = vpop.eup %10569 }
 0x52f   :  { %v2606_v54 = vadd.f32 1.0, %v10570_v23  ;;  %v10572_v62 = vpop.eup %10571 }
 0x530   :  { %10575 = vrcp.f32 %v2605_v58  ;;  %v10574_v63 = vpop.eup %10573 }
 0x531   :  { %10577 = vrcp.f32 %v2606_v54  ;;  %v2607_v13 = vadd.f32 1.0, %v10574_v63 }
 0x533   :  { %10579 = vrcp.f32 %v2607_v13 }
 0x53a   :  { %v10576_v17 = vpop.eup %10575 }
 0x53b   :  { %v2616_v24 = vmul.f32 %v10576_v17, %v10572_v62  ;;  %v10578_v39 = vpop.eup %10577 }
 0x53c   :  { %v2615_v34 = vmul.f32 %v10578_v39, %v11890_v11 }
 0x53d   :  { %v10580_v15 = vpop.eup %10579 }
 0x53e   :  { %v11940_v33 = vadd.f32 %v2616_v24, %v2615_v34 }
 0x540   :  { %10581 = vtanh.f32 %v11940_v33 }
 0x54a   :  { %v10582_v25 = vpop.eup %10581 }
 0x54b   :  { %v11943_v47 = vmul.f32 %v10582_v25, %v10580_v15  ;;  %v3135_v15 = vld [vmem:[#allocation10 + $0x100] sm:$0xff] }
 0x54c   :  { %v3139_v25 = vld [vmem:[#allocation10 + $0x120] sm:$0xff] }
 0x54d   :  { %2754 = vmatmul.mubr.f32.vlgmr.msra.gmra.mrb[10].mxu0 %v11943_v47  ;;  %2825 = vmatmul.mubr.f32.vlgmr.msra.gmra.mrb[6].mxu1 %v11943_v47 }
 0x54e   :  { %8934 = vmatpush1.bf16.msra.mxu0 %v11811_v53  ;;  %8966 = vmatpush1.bf16.msra.mxu1 %v11814_v14 }
 0x54f   :  { %8936 = vmatprep.subr.bf16.mxu0 %v11819_v20  ;;  %8968 = vmatprep.subr.bf16.mxu1 %v11821_v30 }
 0x550   :  { %2992 = vmatprep.mubr.f32.mxu0 %v11255_v0  ;;  %3063 = vmatprep.mubr.f32.mxu1 %v11255_v0 }
 0x552   :  { %8938 = vmatpush1.bf16.msra.mxu0 %v11738_v18  ;;  %8970 = vmatpush1.bf16.msra.mxu1 %v11823_v31  ;;  %v11981_v18 = vld [vmem:[#allocation11 + $0x10] sm:$0xff] }
 0x553   :  { %8940 = vmatprep.subr.bf16.mxu0 %v11741_v28  ;;  %8972 = vmatprep.subr.bf16.mxu1 %v11830_v10  ;;  %v400_v28 = vrot.slane %v11981_v18, %v11691_v48 }
 0x556   :  { %8942 = vmatpush1.bf16.msra.mxu0 %v11743_v41  ;;  %8974 = vmatpush1.bf16.msra.mxu1 %v11832_v27  ;;  %v404_v41 = vrot.slane %v11981_v18, %v11696_v55 }
 0x557   :  { %8944 = vmatprep.subr.bf16.mxu0 %v11747_v50  ;;  %8976 = vmatprep.subr.bf16.mxu1 %v11838_v42 }
 0x55a   :  { %8946 = vmatpush1.bf16.msra.mxu0 %v11749_v3  ;;  %8978 = vmatpush1.bf16.msra.mxu1 %v11840_v57 }
 0x55b   :  { %8948 = vmatprep.subr.bf16.mxu0 %v11753_v43  ;;  %8980 = vmatprep.subr.bf16.mxu1 %v11846_v9 }
 0x55e   :  { %8950 = vmatpush1.bf16.msra.mxu0 %v11755_v26  ;;  %8982 = vmatpush1.bf16.msra.mxu1 %v11848_v35 }
 0x55f   :  { %8952 = vmatprep.subr.bf16.mxu0 %v11759_v60  ;;  %8984 = vmatprep.subr.bf16.mxu1 %v11854_v36 }
 0x562   :  { %8954 = vmatpush1.bf16.msra.mxu0 %v11761_v4  ;;  %8986 = vmatpush1.bf16.msra.mxu1 %v11856_v45 }
 0x563   :  { %8956 = vmatprep.subr.bf16.mxu0 %v11764_v12  ;;  %8988 = vmatprep.subr.bf16.mxu1 %v11859_v16 }
 0x566   :  { %8958 = vmatpush1.bf16.msra.mxu0 %v11767_v56  ;;  %8990 = vmatpush1.bf16.msra.mxu1 %v11864_v29 }
 0x567   :  { %8960 = vmatprep.subr.bf16.mxu0 %v11770_v59  ;;  %8992 = vmatprep.subr.bf16.mxu1 %v11867_v37  ;;  %v408_v59 = vrot.slane %v11981_v18, %v11703_v51 }
 0x56a   :  { %8962 = vmatpush1.bf16.msra.mxu0 %v11773_v2  ;;  %8994 = vmatpush1.bf16.msra.mxu1 %v11872_v19  ;;  %v412_v2 = vrot.slane %v11981_v18, %v11706_v52 }
 0x56b   :  { %8996 = vmatprep.subr.bf16.mxu0 %v11807_v5  ;;  %9028 = vmatprep.subr.bf16.mxu1 %v11809_v46 }
 0x620   :  { %v2755_v50 = vpop.f32.mrb[10].mxu0  ;;  %v2826_v3 = vpop.f32.mrb[6].mxu1 }
 0x621   :  { %v10327_v43 = vadd.f32 %v2755_v50, %v400_v28  ;;  %v2757_v26 = vpop.f32.mrb[11].mxu0  ;;  %v2828_v60 = vpop.f32.mrb[7].mxu1  ;;  %v10329_v5 = vadd.f32 %v2826_v3, %v408_v59  ;;  %v12035_v28 = vpack.c.bf16 %v3139_v25, %v3135_v15  ;;  %v3148_v50 = vld [vmem:[#allocation10 + $0x168] sm:$0xff] }
 0x622   :  { %v10328_v4 = vadd.f32 %v2757_v26, %v404_v41  ;;  %v10330_v46 = vadd.f32 %v2828_v60, %v412_v2  ;;  %v3144_v41 = vld [vmem:[#allocation10 + $0x148] sm:$0xff]  ;;  %v3147_v26 = vld [vmem:[#allocation10 + $0x160] sm:$0xff] }
 0x623   :  { %v8346_v12 = vmul.f32 -1.442695, %v10327_v43  ;;  %v8348_v11 = vmul.f32 -1.442695, %v10329_v5  ;;  %v12039_v3 = vpack.c.bf16 %v3148_v50, %v3144_v41  ;;  %v3143_v43 = vld [vmem:[#allocation10 + $0x140] sm:$0xff]  ;;  %v3160_v5 = vld [vmem:[#allocation10 + $0x1c8] sm:$0xff] }
 0x624   :  { %v8347_v56 = vmul.f32 -1.442695, %v10328_v4  ;;  %v12041_v60 = vpack.c.bf16 %v3147_v26, %v3143_v43  ;;  %v3152_v4 = vld [vmem:[#allocation10 + $0x188] sm:$0xff]  ;;  %v3155_v2 = vld [vmem:[#allocation10 + $0x1a0] sm:$0xff] }
 0x625   :  { %10583 = vpow2.f32 %v8346_v12  ;;  %v3156_v12 = vld [vmem:[#allocation10 + $0x1a8] sm:$0xff] }
 0x626   :  { %10585 = vpow2.f32 %v8347_v56  ;;  %v3151_v56 = vld [vmem:[#allocation10 + $0x180] sm:$0xff]  ;;  %v12044_v59 = vpack.c.bf16 %v3156_v12, %v3152_v4 }
 0x627   :  { %10587 = vtanh.f32 %v10330_v46  ;;  %v3164_v46 = vld [vmem:[#allocation10 + $0x1e8] sm:$0xff] }
 0x628   :  { %10589 = vpow2.f32 %v8348_v11  ;;  %v12047_v11 = vpack.c.bf16 %v3155_v2, %v3151_v56  ;;  %v3343_v56 = vld [vmem:[#allocation10 + $0x8] sm:$0xff] }
 0x629   :  { %v3347_v2 = vld [vmem:[#allocation10 + $0x28] sm:$0xff] }
 0x62f   :  { %v10584_v49 = vpop.eup %10583 }
 0x630   :  { %v2844_v6 = vadd.f32 1.0, %v10584_v49  ;;  %v10586_v21 = vpop.eup %10585  ;;  %v12050_v49 = vpack.c.bf16 %v3164_v46, %v3160_v5  ;;  %v9059_v5 = vpack.c.bf16 %v3347_v2, %v3343_v56  ;;  %v3349_v46 = vld [vmem:[#allocation10 + $0x38] sm:$0xff] }
 0x631   :  { %v2845_v1 = vadd.f32 1.0, %v10586_v21  ;;  %v10588_v61 = vpop.eup %10587  ;;  %v3163_v21 = vld [vmem:[#allocation10 + $0x1e0] sm:$0xff]  ;;  %v3389_v2 = vld [vmem:[#allocation10 + $0x178] sm:$0xff] }
 0x632   :  { %10591 = vrcp.f32 %v2844_v6  ;;  %v10590_v58 = vpop.eup %10589  ;;  %v3159_v6 = vld [vmem:[#allocation10 + $0x1c0] sm:$0xff] }
 0x633   :  { %10593 = vrcp.f32 %v2845_v1  ;;  %v2846_v63 = vadd.f32 1.0, %v10590_v58  ;;  %v12053_v1 = vpack.c.bf16 %v3163_v21, %v3159_v6  ;;  %v420_v58 = vrot.slane %v11981_v18, %v11781_v8  ;;  %v3342_v6 = vld [vmem:[#allocation10] sm:$0xff] }
 0x634   :  { %v3346_v21 = vld [vmem:[#allocation10 + $0x20] sm:$0xff] }
 0x635   :  { %10595 = vrcp.f32 %v2846_v63 }
 0x63c   :  { %v10592_v23 = vpop.eup %10591 }
 0x63d   :  { %v2855_v54 = vmul.f32 %v10592_v23, %v10588_v61  ;;  %v10594_v62 = vpop.eup %10593  ;;  %v416_v61 = vrot.slane %v11981_v18, %v11778_v7 }
 0x63e   :  { %v2854_v17 = vmul.f32 %v10594_v62, %v11940_v33 }
 0x63f   :  { %v10596_v39 = vpop.eup %10595 }
 0x640   :  { %v11992_v24 = vadd.f32 %v2855_v54, %v2854_v17 }
 0x642   :  { %10597 = vtanh.f32 %v11992_v24 }
 0x64c   :  { %v10598_v13 = vpop.eup %10597 }
 0x64d   :  { %v11995_v34 = vmul.f32 %v10598_v13, %v10596_v39 }
 0x64f   :  { %2993 = vmatmul.mubr.f32.vlgmr.msra.gmra.mrb[12].mxu0 %v11995_v34  ;;  %3064 = vmatmul.mubr.f32.vlgmr.msra.gmra.mrb[8].mxu1 %v11995_v34 }
 0x650   :  { %8998 = vmatpush1.bf16.msra.mxu0 %v11811_v53  ;;  %9030 = vmatpush1.bf16.msra.mxu1 %v11814_v14  ;;  %v3111_v53 = vld [vmem:[#allocation10 + $0x40] sm:$0xff] }
 0x651   :  { %9000 = vmatprep.subr.bf16.mxu0 %v11819_v20  ;;  %9032 = vmatprep.subr.bf16.mxu1 %v11821_v30  ;;  %v3115_v14 = vld [vmem:[#allocation10 + $0x60] sm:$0xff]  ;;  %v3120_v30 = vld [vmem:[#allocation10 + $0x88] sm:$0xff] }
 0x652   :  { %3231 = vmatprep.mubr.f32.mxu0 %v11255_v0  ;;  %3302 = vmatprep.mubr.f32.mxu1 %v11255_v0  ;;  %v12018_v20 = vpack.c.bf16 %v3115_v14, %v3111_v53  ;;  %v424_v14 = vrot.slane %v11981_v18, %v11788_v22 }
 0x654   :  { %9034 = vmatpush1.bf16.msra.mxu1 %v11823_v31  ;;  %9002 = vmatpush1.bf16.msra.mxu0 %v12018_v20  ;;  %v3124_v31 = vld [vmem:[#allocation10 + $0xa8] sm:$0xff] }
 0x655   :  { %9036 = vmatprep.subr.bf16.mxu1 %v11830_v10  ;;  %v12021_v10 = vpack.c.bf16 %v3124_v31, %v3120_v30  ;;  %v428_v30 = vrot.slane %v11981_v18, %v11791_v32 }
 0x657   :  { %9004 = vmatprep.subr.bf16.mxu0 %v12021_v10 }
 0x658   :  { %9038 = vmatpush1.bf16.msra.mxu1 %v11832_v27  ;;  %v3119_v27 = vld [vmem:[#allocation10 + $0x80] sm:$0xff] }
 0x659   :  { %9040 = vmatprep.subr.bf16.mxu1 %v11838_v42  ;;  %v3123_v42 = vld [vmem:[#allocation10 + $0xa0] sm:$0xff] }
 0x65c   :  { %9042 = vmatpush1.bf16.msra.mxu1 %v11840_v57  ;;  %v12023_v57 = vpack.c.bf16 %v3123_v42, %v3119_v27 }
 0x65d   :  { %9044 = vmatprep.subr.bf16.mxu1 %v11846_v9  ;;  %v3128_v9 = vld [vmem:[#allocation10 + $0xc8] sm:$0xff] }
 0x65e   :  { %9006 = vmatpush1.bf16.msra.mxu0 %v12023_v57 }
 0x660   :  { %9046 = vmatpush1.bf16.msra.mxu1 %v11848_v35  ;;  %v3132_v35 = vld [vmem:[#allocation10 + $0xe8] sm:$0xff] }
 0x661   :  { %9048 = vmatprep.subr.bf16.mxu1 %v11854_v36  ;;  %v12027_v36 = vpack.c.bf16 %v3132_v35, %v3128_v9 }
 0x663   :  { %9008 = vmatprep.subr.bf16.mxu0 %v12027_v36 }
 0x664   :  { %9050 = vmatpush1.bf16.msra.mxu1 %v11856_v45  ;;  %v3127_v45 = vld [vmem:[#allocation10 + $0xc0] sm:$0xff] }
 0x665   :  { %9052 = vmatprep.subr.bf16.mxu1 %v11859_v16  ;;  %v3131_v16 = vld [vmem:[#allocation10 + $0xe0] sm:$0xff] }
 0x668   :  { %9054 = vmatpush1.bf16.msra.mxu1 %v11864_v29  ;;  %v12029_v29 = vpack.c.bf16 %v3131_v16, %v3127_v45 }
 0x669   :  { %9056 = vmatprep.subr.bf16.mxu1 %v11867_v37  ;;  %v3136_v37 = vld [vmem:[#allocation10 + $0x108] sm:$0xff] }
 0x66a   :  { %9010 = vmatpush1.bf16.msra.mxu0 %v12029_v29 }
 0x66c   :  { %9058 = vmatpush1.bf16.msra.mxu1 %v11872_v19  ;;  %v3140_v19 = vld [vmem:[#allocation10 + $0x128] sm:$0xff] }
 0x66d   :  { %v12033_v33 = vpack.c.bf16 %v3140_v19, %v3136_v37 }
 0x66f   :  { %9012 = vmatprep.subr.bf16.mxu0 %v12033_v33 }
 0x670   :  { %9014 = vmatpush1.bf16.msra.mxu0 %v12035_v28 }
 0x671   :  { %9016 = vmatprep.subr.bf16.mxu0 %v12039_v3 }
 0x674   :  { %9018 = vmatpush1.bf16.msra.mxu0 %v12041_v60 }
 0x675   :  { %9020 = vmatprep.subr.bf16.mxu0 %v12044_v59 }
 0x678   :  { %9022 = vmatpush1.bf16.msra.mxu0 %v12047_v11 }
 0x679   :  { %9024 = vmatprep.subr.bf16.mxu0 %v12050_v49 }
 0x67c   :  { %9026 = vmatpush1.bf16.msra.mxu0 %v12053_v1 }
 0x67d   :  { %9060 = vmatprep.subr.bf16.mxu0 %v9059_v5  ;;  %v3384_v5 = vld [vmem:[#allocation10 + $0x150] sm:$0xff] }
 0x722   :  { %v2994_v23 = vpop.f32.mrb[12].mxu0  ;;  %v3065_v54 = vpop.f32.mrb[8].mxu1 }
 0x723   :  { %v10331_v62 = vadd.f32 %v2994_v23, %v416_v61  ;;  %v2996_v63 = vpop.f32.mrb[13].mxu0  ;;  %v3067_v17 = vpop.f32.mrb[9].mxu1  ;;  %v10333_v31 = vadd.f32 %v3065_v54, %v424_v14  ;;  %v3344_v23 = vld [vmem:[#allocation10 + $0x10] sm:$0xff] }
 0x724   :  { %v10332_v39 = vadd.f32 %v2996_v63, %v420_v58  ;;  %v10334_v27 = vadd.f32 %v3067_v17, %v428_v30  ;;  %v9061_v58 = vpack.c.bf16 %v3346_v21, %v3342_v6  ;;  %v3348_v54 = vld [vmem:[#allocation10 + $0x30] sm:$0xff]  ;;  %v3351_v63 = vld [vmem:[#allocation10 + $0x48] sm:$0xff]  ;;  %v3393_v6 = vld [vmem:[#allocation10 + $0x198] sm:$0xff] }
 0x725   :  { %v8349_v13 = vmul.f32 -1.442695, %v10331_v62  ;;  %v8351_v42 = vmul.f32 -1.442695, %v10333_v31  ;;  %v9093_v62 = vpack.c.bf16 %v3348_v54, %v3344_v23  ;;  %v3355_v17 = vld [vmem:[#allocation10 + $0x68] sm:$0xff]  ;;  %v3352_v14 = vld [vmem:[#allocation10 + $0x50] sm:$0xff] }
 0x726   :  { %v8350_v53 = vmul.f32 -1.442695, %v10332_v39  ;;  %v3353_v39 = vld [vmem:[#allocation10 + $0x58] sm:$0xff]  ;;  %v3356_v30 = vld [vmem:[#allocation10 + $0x70] sm:$0xff] }
 0x727   :  { %10599 = vpow2.f32 %v8349_v13  ;;  %v9063_v13 = vpack.c.bf16 %v3355_v17, %v3351_v63  ;;  %v3397_v21 = vld [vmem:[#allocation10 + $0x1b8] sm:$0xff]  ;;  %v3404_v63 = vld [vmem:[#allocation10 + $0x1f0] sm:$0xff]  ;;  %v3586_v17 = vld [vmem:[#allocation13 + $0x8] sm:$0xff] }
 0x728   :  { %10601 = vpow2.f32 %v8350_v53  ;;  %v3357_v53 = vld [vmem:[#allocation10 + $0x78] sm:$0xff] }
 0x729   :  { %10603 = vtanh.f32 %v10334_v27  ;;  %v9095_v31 = vpack.c.bf16 %v3357_v53, %v3353_v39  ;;  %v9097_v27 = vpack.c.bf16 %v3356_v30, %v3352_v14  ;;  %v3401_v23 = vld [vmem:[#allocation10 + $0x1d8] sm:$0xff]  ;;  %v3590_v39 = vld [vmem:[#allocation13 + $0x28] sm:$0xff] }
 0x72a   :  { %10605 = vpow2.f32 %v8351_v42  ;;  %v3361_v42 = vld [vmem:[#allocation10 + $0x98] sm:$0xff]  ;;  %v9123_v14 = vpack.c.bf16 %v3590_v39, %v3586_v17  ;;  %v3597_v17 = vld [vmem:[#allocation13 + $0x60] sm:$0xff] }
 0x72b   :  { %v3405_v54 = vld [vmem:[#allocation10 + $0x1f8] sm:$0xff] }
 0x72c   :  { %v3592_v53 = vld [vmem:[#allocation13 + $0x38] sm:$0xff] }
 0x731   :  { %v10600_v9 = vpop.eup %10599 }
 0x732   :  { %v3083_v35 = vadd.f32 1.0, %v10600_v9  ;;  %v10602_v45 = vpop.eup %10601  ;;  %v3365_v9 = vld [vmem:[#allocation10 + $0xb8] sm:$0xff] }
 0x733   :  { %v3084_v16 = vadd.f32 1.0, %v10602_v45  ;;  %v10604_v37 = vpop.eup %10603  ;;  %v3360_v45 = vld [vmem:[#allocation10 + $0x90] sm:$0xff] }
 0x734   :  { %10607 = vrcp.f32 %v3083_v35  ;;  %v10606_v19 = vpop.eup %10605  ;;  %v9099_v35 = vpack.c.bf16 %v3365_v9, %v3361_v42 }
 0x735   :  { %10609 = vrcp.f32 %v3084_v16  ;;  %v3085_v50 = vadd.f32 1.0, %v10606_v19  ;;  %v3364_v16 = vld [vmem:[#allocation10 + $0xb0] sm:$0xff]  ;;  %v3369_v19 = vld [vmem:[#allocation10 + $0xd8] sm:$0xff] }
 0x737   :  { %10611 = vrcp.f32 %v3085_v50 }
 0x73e   :  { %v10608_v15 = vpop.eup %10607 }
 0x73f   :  { %v3094_v25 = vmul.f32 %v10608_v15, %v10604_v37  ;;  %v10610_v41 = vpop.eup %10609  ;;  %v9101_v37 = vpack.c.bf16 %v3364_v16, %v3360_v45  ;;  %v3373_v15 = vld [vmem:[#allocation10 + $0xf8] sm:$0xff] }
 0x740   :  { %v3093_v43 = vmul.f32 %v10610_v41, %v11992_v24  ;;  %v3345_v24 = vld [vmem:[#allocation10 + $0x18] sm:$0xff]  ;;  %v3368_v41 = vld [vmem:[#allocation10 + $0xd0] sm:$0xff] }
 0x741   :  { %v10612_v26 = vpop.eup %10611  ;;  %v9091_v61 = vpack.c.bf16 %v3349_v46, %v3345_v24 }
 0x742   :  { %v12066_v18 = vadd.f32 %v3094_v25, %v3093_v43  ;;  %v9103_v25 = vpack.c.bf16 %v3373_v15, %v3369_v19  ;;  %v3381_v43 = vld [vmem:[#allocation10 + $0x138] sm:$0xff] }
 0x743   :  { %9092 = vmatprep.subr.bf16.mxu1 %v9091_v61  ;;  %v9115_v61 = vpack.c.bf16 %v3397_v21, %v3393_v6  ;;  %v3587_v6 = vld [vmem:[#allocation13 + $0x10] sm:$0xff] }
 0x744   :  { %10613 = vtanh.f32 %v12066_v18  ;;  %v3591_v21 = vld [vmem:[#allocation13 + $0x30] sm:$0xff] }
 0x74e   :  { %v10614_v4 = vpop.eup %10613 }
 0x74f   :  { %v12069_v12 = vmul.f32 %v10614_v4, %v10612_v26  ;;  %v3376_v4 = vld [vmem:[#allocation10 + $0x110] sm:$0xff] }
 0x751   :  { %3232 = vmatmul.mubr.f32.vlgmr.msra.gmra.mrb[14].mxu0 %v12069_v12  ;;  %3303 = vmatmul.mubr.f32.vlgmr.msra.gmra.mrb[10].mxu1 %v12069_v12 }
 0x752   :  { %3470 = vmatprep.mubr.f32.mxu0 %v11255_v0  ;;  %3541 = vmatprep.mubr.f32.mxu1 %v11255_v0 }
 0x753   :  { %9062 = vmatpush1.bf16.msra.mxu0 %v9061_v58  ;;  %9094 = vmatpush1.bf16.msra.mxu1 %v9093_v62  ;;  %v3396_v58 = vld [vmem:[#allocation10 + $0x1b0] sm:$0xff] }
 0x754   :  { %9064 = vmatprep.subr.bf16.mxu0 %v9063_v13  ;;  %9096 = vmatprep.subr.bf16.mxu1 %v9095_v31  ;;  %v3400_v62 = vld [vmem:[#allocation10 + $0x1d0] sm:$0xff]  ;;  %v3588_v13 = vld [vmem:[#allocation13 + $0x18] sm:$0xff] }
 0x755   :  { %v9155_v30 = vpack.c.bf16 %v3592_v53, %v3588_v13  ;;  %v3595_v53 = vld [vmem:[#allocation13 + $0x50] sm:$0xff] }
 0x757   :  { %9066 = vmatpush1.bf16.msra.mxu0 %v12018_v20  ;;  %9098 = vmatpush1.bf16.msra.mxu1 %v9097_v27  ;;  %v3372_v20 = vld [vmem:[#allocation10 + $0xf0] sm:$0xff] }
 0x758   :  { %9068 = vmatprep.subr.bf16.mxu0 %v12021_v10  ;;  %9100 = vmatprep.subr.bf16.mxu1 %v9099_v35  ;;  %v9105_v50 = vpack.c.bf16 %v3372_v20, %v3368_v41  ;;  %v3377_v10 = vld [vmem:[#allocation10 + $0x118] sm:$0xff] }
 0x759   :  { %v9107_v26 = vpack.c.bf16 %v3381_v43, %v3377_v10 }
 0x75b   :  { %9070 = vmatpush1.bf16.msra.mxu0 %v12023_v57  ;;  %9102 = vmatpush1.bf16.msra.mxu1 %v9101_v37  ;;  %v3380_v57 = vld [vmem:[#allocation10 + $0x130] sm:$0xff] }
 0x75c   :  { %9072 = vmatprep.subr.bf16.mxu0 %v12027_v36  ;;  %9104 = vmatprep.subr.bf16.mxu1 %v9103_v25  ;;  %v9109_v56 = vpack.c.bf16 %v3380_v57, %v3376_v4  ;;  %v3385_v36 = vld [vmem:[#allocation10 + $0x158] sm:$0xff] }
 0x75d   :  { %v9111_v24 = vpack.c.bf16 %v3389_v2, %v3385_v36 }
 0x75f   :  { %9074 = vmatpush1.bf16.msra.mxu0 %v12029_v29  ;;  %9106 = vmatpush1.bf16.msra.mxu1 %v9105_v50  ;;  %v3388_v29 = vld [vmem:[#allocation10 + $0x170] sm:$0xff] }
 0x760   :  { %9076 = vmatprep.subr.bf16.mxu0 %v12033_v33  ;;  %9108 = vmatprep.subr.bf16.mxu1 %v9107_v26  ;;  %v9113_v46 = vpack.c.bf16 %v3388_v29, %v3384_v5  ;;  %v3392_v33 = vld [vmem:[#allocation10 + $0x190] sm:$0xff]  ;;  %v3585_v29 = vld [vmem:[#allocation13] sm:$0xff] }
 0x763   :  { %9078 = vmatpush1.bf16.msra.mxu0 %v12035_v28  ;;  %9110 = vmatpush1.bf16.msra.mxu1 %v9109_v56  ;;  %v9117_v28 = vpack.c.bf16 %v3396_v58, %v3392_v33  ;;  %v3594_v33 = vld [vmem:[#allocation13 + $0x48] sm:$0xff]  ;;  %v3596_v58 = vld [vmem:[#allocation13 + $0x58] sm:$0xff] }
 0x764   :  { %9080 = vmatprep.subr.bf16.mxu0 %v12039_v3  ;;  %9112 = vmatprep.subr.bf16.mxu1 %v9111_v24  ;;  %v9119_v3 = vpack.c.bf16 %v3405_v54, %v3401_v23  ;;  %v3600_v23 = vld [vmem:[#allocation13 + $0x78] sm:$0xff] }
 0x765   :  { %v9159_v13 = vpack.c.bf16 %v3600_v23, %v3596_v58  ;;  %v3619_v58 = vld [vmem:[#allocation13 + $0x110] sm:$0xff] }
 0x766   :  { %v3623_v23 = vld [vmem:[#allocation13 + $0x130] sm:$0xff] }
 0x767   :  { %9082 = vmatpush1.bf16.msra.mxu0 %v12041_v60  ;;  %9114 = vmatpush1.bf16.msra.mxu1 %v9113_v46  ;;  %v9121_v60 = vpack.c.bf16 %v3404_v63, %v3400_v62  ;;  %v3589_v46 = vld [vmem:[#allocation13 + $0x20] sm:$0xff] }
 0x768   :  { %9084 = vmatprep.subr.bf16.mxu0 %v12044_v59  ;;  %9116 = vmatprep.subr.bf16.mxu1 %v9115_v61  ;;  %v12088_v59 = vld [vmem:[#allocation11 + $0x18] sm:$0xff]  ;;  %v3598_v61 = vld [vmem:[#allocation13 + $0x68] sm:$0xff]  ;;  %v9125_v62 = vpack.c.bf16 %v3589_v46, %v3585_v29  ;;  %v3593_v63 = vld [vmem:[#allocation13 + $0x40] sm:$0xff] }
 0x769   :  { %v432_v31 = vrot.slane %v12088_v59, %v11691_v48  ;;  %v444_v19 = vrot.slane %v12088_v59, %v11706_v52  ;;  %v9127_v39 = vpack.c.bf16 %v3598_v61, %v3594_v33 }
 0x76b   :  { %9086 = vmatpush1.bf16.msra.mxu0 %v12047_v11  ;;  %9118 = vmatpush1.bf16.msra.mxu1 %v9117_v28  ;;  %v436_v11 = vrot.slane %v12088_v59, %v11696_v55 }
 0x76c   :  { %9088 = vmatprep.subr.bf16.mxu0 %v12050_v49  ;;  %9120 = vmatprep.subr.bf16.mxu1 %v9119_v3  ;;  %v9157_v3 = vpack.c.bf16 %v3591_v21, %v3587_v6  ;;  %v3617_v6 = vld [vmem:[#allocation13 + $0x100] sm:$0xff] }
 0x76d   :  { %v3621_v21 = vld [vmem:[#allocation13 + $0x120] sm:$0xff] }
 0x76f   :  { %9090 = vmatpush1.bf16.msra.mxu0 %v12053_v1  ;;  %9122 = vmatpush1.bf16.msra.mxu1 %v9121_v60  ;;  %v440_v1 = vrot.slane %v12088_v59, %v11703_v51  ;;  %v3599_v60 = vld [vmem:[#allocation13 + $0x70] sm:$0xff] }
 0x770   :  { %9124 = vmatprep.subr.bf16.mxu0 %v9123_v14  ;;  %9156 = vmatprep.subr.bf16.mxu1 %v9155_v30  ;;  %v3602_v14 = vld [vmem:[#allocation13 + $0x88] sm:$0xff] }
 0x771   :  { %v3606_v30 = vld [vmem:[#allocation13 + $0xa8] sm:$0xff] }
 0x824   :  { %v3233_v27 = vpop.f32.mrb[14].mxu0  ;;  %v3304_v42 = vpop.f32.mrb[10].mxu1 }
 0x825   :  { %v10335_v49 = vadd.f32 %v3233_v27, %v432_v31  ;;  %v3235_v9 = vpop.f32.mrb[15].mxu0  ;;  %v3306_v35 = vpop.f32.mrb[11].mxu1  ;;  %v10337_v15 = vadd.f32 %v3304_v42, %v440_v1  ;;  %v3604_v31 = vld [vmem:[#allocation13 + $0x98] sm:$0xff]  ;;  %v9129_v27 = vpack.c.bf16 %v3597_v17, %v3593_v63  ;;  %v9161_v42 = vpack.c.bf16 %v3599_v60, %v3595_v53  ;;  %v3610_v1 = vld [vmem:[#allocation13 + $0xc8] sm:$0xff] }
 0x826   :  { %v10336_v45 = vadd.f32 %v3235_v9, %v436_v11  ;;  %v10338_v25 = vadd.f32 %v3306_v35, %v444_v19  ;;  %v3608_v11 = vld [vmem:[#allocation13 + $0xb8] sm:$0xff]  ;;  %v3605_v9 = vld [vmem:[#allocation13 + $0xa0] sm:$0xff]  ;;  %v9131_v35 = vpack.c.bf16 %v3606_v30, %v3602_v14  ;;  %v3614_v19 = vld [vmem:[#allocation13 + $0xe8] sm:$0xff]  ;;  %v9141_v63 = vpack.c.bf16 %v3621_v21, %v3617_v6 }
 0x827   :  { %v8352_v16 = vmul.f32 -1.442695, %v10335_v49  ;;  %v8354_v41 = vmul.f32 -1.442695, %v10337_v15  ;;  %v3601_v49 = vld [vmem:[#allocation13 + $0x80] sm:$0xff]  ;;  %v3612_v15 = vld [vmem:[#allocation13 + $0xd8] sm:$0xff]  ;;  %v9173_v17 = vpack.c.bf16 %v3623_v23, %v3619_v58 }
 0x828   :  { %v8353_v37 = vmul.f32 -1.442695, %v10336_v45  ;;  %v9163_v45 = vpack.c.bf16 %v3608_v11, %v3604_v31  ;;  %v3627_v14 = vld [vmem:[#allocation13 + $0x150] sm:$0xff]  ;;  %v3634_v31 = vld [vmem:[#allocation13 + $0x188] sm:$0xff]  ;;  %v3944_v23 = vld [vmem:[#allocation14 + $0x58] sm:$0xff] }
 0x829   :  { %10615 = vpow2.f32 %v8352_v16  ;;  %v3603_v16 = vld [vmem:[#allocation13 + $0x90] sm:$0xff]  ;;  %v3638_v11 = vld [vmem:[#allocation13 + $0x1a8] sm:$0xff] }
 0x82a   :  { %10617 = vpow2.f32 %v8353_v37  ;;  %v3607_v37 = vld [vmem:[#allocation13 + $0xb0] sm:$0xff]  ;;  %v3946_v58 = vld [vmem:[#allocation14 + $0x68] sm:$0xff] }
 0x82b   :  { %10619 = vtanh.f32 %v10338_v25  ;;  %v3616_v25 = vld [vmem:[#allocation13 + $0xf8] sm:$0xff]  ;;  %v3631_v30 = vld [vmem:[#allocation13 + $0x170] sm:$0xff] }
 0x82c   :  { %10621 = vpow2.f32 %v8354_v41  ;;  %v9133_v41 = vpack.c.bf16 %v3605_v9, %v3601_v49  ;;  %v9177_v9 = vpack.c.bf16 %v3631_v30, %v3627_v14  ;;  %v3935_v21 = vld [vmem:[#allocation14 + $0x10] sm:$0xff]  ;;  %v3954_v14 = vld [vmem:[#allocation14 + $0xa8] sm:$0xff]  ;;  %v3952_v30 = vld [vmem:[#allocation14 + $0x98] sm:$0xff] }
 0x833   :  { %v10616_v20 = vpop.eup %10615 }
 0x834   :  { %v3322_v50 = vadd.f32 1.0, %v10616_v20  ;;  %v10618_v10 = vpop.eup %10617  ;;  %v9165_v20 = vpack.c.bf16 %v3607_v37, %v3603_v16  ;;  %v9147_v16 = vpack.c.bf16 %v3638_v11, %v3634_v31  ;;  %v3949_v11 = vld [vmem:[#allocation14 + $0x80] sm:$0xff] }
 0x835   :  { %v3323_v43 = vadd.f32 1.0, %v10618_v10  ;;  %v10620_v26 = vpop.eup %10619  ;;  %v3613_v10 = vld [vmem:[#allocation13 + $0xe0] sm:$0xff] }
 0x836   :  { %10623 = vrcp.f32 %v3322_v50  ;;  %v10622_v4 = vpop.eup %10621  ;;  %v3609_v50 = vld [vmem:[#allocation13 + $0xc0] sm:$0xff] }
 0x837   :  { %10625 = vrcp.f32 %v3323_v43  ;;  %v3324_v2 = vadd.f32 1.0, %v10622_v4  ;;  %v9135_v43 = vpack.c.bf16 %v3614_v19, %v3610_v1  ;;  %v3611_v4 = vld [vmem:[#allocation13 + $0xd0] sm:$0xff]  ;;  %v9137_v29 = vpack.c.bf16 %v3613_v10, %v3609_v50 }
 0x838   :  { %v3635_v1 = vld [vmem:[#allocation13 + $0x190] sm:$0xff] }
 0x839   :  { %10627 = vrcp.f32 %v3324_v2  ;;  %v3620_v2 = vld [vmem:[#allocation13 + $0x118] sm:$0xff]  ;;  %v3639_v19 = vld [vmem:[#allocation13 + $0x1b0] sm:$0xff] }
 0x83a   :  { %v9181_v10 = vpack.c.bf16 %v3639_v19, %v3635_v1  ;;  %v3962_v1 = vld [vmem:[#allocation14 + $0xe8] sm:$0xff]  ;;  %v3960_v19 = vld [vmem:[#allocation14 + $0xd8] sm:$0xff] }
 0x840   :  { %v10624_v57 = vpop.eup %10623 }
 0x841   :  { %v3333_v56 = vmul.f32 %v10624_v57, %v10620_v26  ;;  %v10626_v36 = vpop.eup %10625  ;;  %v9167_v26 = vpack.c.bf16 %v3616_v25, %v3612_v15  ;;  %v3615_v57 = vld [vmem:[#allocation13 + $0xf0] sm:$0xff]  ;;  %v3642_v15 = vld [vmem:[#allocation13 + $0x1c8] sm:$0xff] }
 0x842   :  { %v3332_v24 = vmul.f32 %v10626_v36, %v12066_v18  ;;  %v3622_v36 = vld [vmem:[#allocation13 + $0x128] sm:$0xff]  ;;  %v9169_v46 = vpack.c.bf16 %v3615_v57, %v3611_v4  ;;  %v3645_v57 = vld [vmem:[#allocation13 + $0x1e0] sm:$0xff] }
 0x843   :  { %v10628_v54 = vpop.eup %10627  ;;  %v3646_v25 = vld [vmem:[#allocation13 + $0x1e8] sm:$0xff] }
 0x844   :  { %v12099_v5 = vadd.f32 %v3333_v56, %v3332_v24  ;;  %v3618_v56 = vld [vmem:[#allocation13 + $0x108] sm:$0xff]  ;;  %v3624_v24 = vld [vmem:[#allocation13 + $0x138] sm:$0xff] }
 0x845   :  { %v9139_v33 = vpack.c.bf16 %v3622_v36, %v3618_v56  ;;  %v9171_v61 = vpack.c.bf16 %v3624_v24, %v3620_v2  ;;  %v3643_v56 = vld [vmem:[#allocation13 + $0x1d0] sm:$0xff] }
 0x846   :  { %10629 = vtanh.f32 %v12099_v5  ;;  %v3647_v36 = vld [vmem:[#allocation13 + $0x1f0] sm:$0xff] }
 0x847   :  { %v9185_v24 = vpack.c.bf16 %v3647_v36, %v3643_v56  ;;  %v3970_v56 = vld [vmem:[#allocation14 + $0x128] sm:$0xff]  ;;  %v3968_v36 = vld [vmem:[#allocation14 + $0x118] sm:$0xff] }
 0x850   :  { %v10630_v28 = vpop.eup %10629 }
 0x851   :  { %v12102_v18 = vmul.f32 %v10630_v28, %v10628_v54  ;;  %v3626_v54 = vld [vmem:[#allocation13 + $0x148] sm:$0xff] }
 0x852   :  { %v3630_v28 = vld [vmem:[#allocation13 + $0x168] sm:$0xff] }
 0x853   :  { %3471 = vmatmul.mubr.f32.vlgmr.msra.gmra.mrb[16].mxu0 %v12102_v18  ;;  %3542 = vmatmul.mubr.f32.vlgmr.msra.gmra.mrb[12].mxu1 %v12102_v18  ;;  %v9143_v53 = vpack.c.bf16 %v3630_v28, %v3626_v54  ;;  %v3941_v28 = vld [vmem:[#allocation14 + $0x40] sm:$0xff] }
 0x854   :  { %9126 = vmatpush1.bf16.msra.mxu0 %v9125_v62  ;;  %9158 = vmatpush1.bf16.msra.mxu1 %v9157_v3  ;;  %v3628_v62 = vld [vmem:[#allocation13 + $0x158] sm:$0xff] }
 0x855   :  { %9128 = vmatprep.subr.bf16.mxu0 %v9127_v39  ;;  %9160 = vmatprep.subr.bf16.mxu1 %v9159_v13  ;;  %v3632_v3 = vld [vmem:[#allocation13 + $0x178] sm:$0xff]  ;;  %v3625_v39 = vld [vmem:[#allocation13 + $0x140] sm:$0xff] }
 0x856   :  { %3735 = vmatprep.mubr.f32.mxu0 %v11255_v0  ;;  %3848 = vmatprep.mubr.f32.mxu1 %v11255_v0  ;;  %v3629_v13 = vld [vmem:[#allocation13 + $0x160] sm:$0xff]  ;;  %v9175_v60 = vpack.c.bf16 %v3632_v3, %v3628_v62  ;;  %v3948_v3 = vld [vmem:[#allocation14 + $0x78] sm:$0xff] }
 0x857   :  { %v9145_v49 = vpack.c.bf16 %v3629_v13, %v3625_v39  ;;  %v3945_v62 = vld [vmem:[#allocation14 + $0x60] sm:$0xff]  ;;  %v3943_v39 = vld [vmem:[#allocation14 + $0x50] sm:$0xff] }
 0x858   :  { %9130 = vmatpush1.bf16.msra.mxu0 %v9129_v27  ;;  %9162 = vmatpush1.bf16.msra.mxu1 %v9161_v42  ;;  %v3636_v27 = vld [vmem:[#allocation13 + $0x198] sm:$0xff]  ;;  %v3947_v13 = vld [vmem:[#allocation14 + $0x70] sm:$0xff] }
 0x859   :  { %9132 = vmatprep.subr.bf16.mxu0 %v9131_v35  ;;  %9164 = vmatprep.subr.bf16.mxu1 %v9163_v45  ;;  %v3640_v42 = vld [vmem:[#allocation13 + $0x1b8] sm:$0xff]  ;;  %v3633_v35 = vld [vmem:[#allocation13 + $0x180] sm:$0xff] }
 0x85a   :  { %v3637_v45 = vld [vmem:[#allocation13 + $0x1a0] sm:$0xff]  ;;  %v9179_v37 = vpack.c.bf16 %v3640_v42, %v3636_v27  ;;  %v3956_v42 = vld [vmem:[#allocation14 + $0xb8] sm:$0xff] }
 0x85b   :  { %v9149_v50 = vpack.c.bf16 %v3637_v45, %v3633_v35  ;;  %v3953_v27 = vld [vmem:[#allocation14 + $0xa0] sm:$0xff]  ;;  %v3951_v35 = vld [vmem:[#allocation14 + $0x90] sm:$0xff] }
 0x85c   :  { %9134 = vmatpush1.bf16.msra.mxu0 %v9133_v41  ;;  %9166 = vmatpush1.bf16.msra.mxu1 %v9165_v20  ;;  %v3644_v41 = vld [vmem:[#allocation13 + $0x1d8] sm:$0xff]  ;;  %v3955_v45 = vld [vmem:[#allocation14 + $0xb0] sm:$0xff] }
 0x85d   :  { %9136 = vmatprep.subr.bf16.mxu0 %v9135_v43  ;;  %9168 = vmatprep.subr.bf16.mxu1 %v9167_v26  ;;  %v3648_v20 = vld [vmem:[#allocation13 + $0x1f8] sm:$0xff]  ;;  %v3641_v43 = vld [vmem:[#allocation13 + $0x1c0] sm:$0xff]  ;;  %v9151_v26 = vpack.c.bf16 %v3646_v25, %v3642_v15 }
 0x85e   :  { %v9183_v4 = vpack.c.bf16 %v3648_v20, %v3644_v41  ;;  %v9153_v2 = vpack.c.bf16 %v3645_v57, %v3641_v43  ;;  %v3957_v25 = vld [vmem:[#allocation14 + $0xc0] sm:$0xff]  ;;  %v3964_v20 = vld [vmem:[#allocation14 + $0xf8] sm:$0xff]  ;;  %v3959_v43 = vld [vmem:[#allocation14 + $0xd0] sm:$0xff] }
 0x85f   :  { %v3961_v41 = vld [vmem:[#allocation14 + $0xe0] sm:$0xff]  ;;  %v3966_v57 = vld [vmem:[#allocation14 + $0x108] sm:$0xff] }
 0x860   :  { %9138 = vmatpush1.bf16.msra.mxu0 %v9137_v29  ;;  %9170 = vmatpush1.bf16.msra.mxu1 %v9169_v46  ;;  %v3937_v29 = vld [vmem:[#allocation14 + $0x20] sm:$0xff] }
 0x861   :  { %9140 = vmatprep.subr.bf16.mxu0 %v9139_v33  ;;  %9172 = vmatprep.subr.bf16.mxu1 %v9171_v61  ;;  %v3939_v33 = vld [vmem:[#allocation14 + $0x30] sm:$0xff]  ;;  %v3942_v61 = vld [vmem:[#allocation14 + $0x48] sm:$0xff] }
 0x862   :  { %v12148_v54 = vpack.c.bf16 %v3946_v58, %v3942_v61  ;;  %v3978_v61 = vld [vmem:[#allocation14 + $0x168] sm:$0xff]  ;;  %v3973_v58 = vld [vmem:[#allocation14 + $0x140] sm:$0xff] }
 0x864   :  { %9142 = vmatpush1.bf16.msra.mxu0 %v9141_v63  ;;  %9174 = vmatpush1.bf16.msra.mxu1 %v9173_v17  ;;  %v12150_v63 = vpack.c.bf16 %v3945_v62, %v3941_v28  ;;  %v12152_v17 = vpack.c.bf16 %v3948_v3, %v3944_v23  ;;  %v3977_v23 = vld [vmem:[#allocation14 + $0x160] sm:$0xff]  ;;  %v3976_v3 = vld [vmem:[#allocation14 + $0x158] sm:$0xff] }
 0x865   :  { %9144 = vmatprep.subr.bf16.mxu0 %v9143_v53  ;;  %9176 = vmatprep.subr.bf16.mxu1 %v9175_v60  ;;  %v12155_v53 = vpack.c.bf16 %v3947_v13, %v3943_v39  ;;  %v3950_v60 = vld [vmem:[#allocation14 + $0x88] sm:$0xff]  ;;  %v12197_v62 = vpack.c.bf16 %v3977_v23, %v3973_v58  ;;  %v3980_v39 = vld [vmem:[#allocation14 + $0x178] sm:$0xff]  ;;  %v3975_v13 = vld [vmem:[#allocation14 + $0x150] sm:$0xff]  ;;  %v448_v23 = vrot.slane %v12088_v59, %v11778_v7 }
 0x866   :  { %v12160_v31 = vpack.c.bf16 %v3954_v14, %v3950_v60  ;;  %v12200_v60 = vpack.c.bf16 %v3980_v39, %v3976_v3  ;;  %v3979_v14 = vld [vmem:[#allocation14 + $0x170] sm:$0xff]  ;;  %v452_v3 = vrot.slane %v12088_v59, %v11781_v8 }
 0x868   :  { %9146 = vmatpush1.bf16.msra.mxu0 %v9145_v49  ;;  %9178 = vmatpush1.bf16.msra.mxu1 %v9177_v9  ;;  %v12162_v49 = vpack.c.bf16 %v3953_v27, %v3949_v11  ;;  %v12164_v9 = vpack.c.bf16 %v3956_v42, %v3952_v30  ;;  %v3982_v30 = vld [vmem:[#allocation14 + $0x188] sm:$0xff]  ;;  %v12203_v27 = vpack.c.bf16 %v3979_v14, %v3975_v13 }
 0x869   :  { %9148 = vmatprep.subr.bf16.mxu0 %v9147_v16  ;;  %9180 = vmatprep.subr.bf16.mxu1 %v9179_v37  ;;  %v12167_v16 = vpack.c.bf16 %v3955_v45, %v3951_v35  ;;  %v3958_v37 = vld [vmem:[#allocation14 + $0xc8] sm:$0xff]  ;;  %v3981_v35 = vld [vmem:[#allocation14 + $0x180] sm:$0xff] }
 0x86a   :  { %v12172_v15 = vpack.c.bf16 %v3962_v1, %v3958_v37  ;;  %v3986_v11 = vld [vmem:[#allocation14 + $0x1a8] sm:$0xff]  ;;  %v3985_v45 = vld [vmem:[#allocation14 + $0x1a0] sm:$0xff]  ;;  %v3984_v37 = vld [vmem:[#allocation14 + $0x198] sm:$0xff] }
 0x86b   :  { %v12205_v42 = vpack.c.bf16 %v3986_v11, %v3982_v30  ;;  %v3988_v1 = vld [vmem:[#allocation14 + $0x1b8] sm:$0xff] }
 0x86c   :  { %9150 = vmatpush1.bf16.msra.mxu0 %v9149_v50  ;;  %9182 = vmatpush1.bf16.msra.mxu1 %v9181_v10  ;;  %v12174_v50 = vpack.c.bf16 %v3961_v41, %v3957_v25  ;;  %v12176_v10 = vpack.c.bf16 %v3964_v20, %v3960_v19  ;;  %v3983_v19 = vld [vmem:[#allocation14 + $0x190] sm:$0xff]  ;;  %v12209_v41 = vpack.c.bf16 %v3985_v45, %v3981_v35 }
 0x86d   :  { %9152 = vmatprep.subr.bf16.mxu0 %v9151_v26  ;;  %9184 = vmatprep.subr.bf16.mxu1 %v9183_v4  ;;  %v3963_v26 = vld [vmem:[#allocation14 + $0xf0] sm:$0xff]  ;;  %v12211_v20 = vpack.c.bf16 %v3988_v1, %v3984_v37  ;;  %v456_v1 = vrot.slane %v12088_v59, %v11788_v22 }
 0x86e   :  { %v12179_v4 = vpack.c.bf16 %v3963_v26, %v3959_v43  ;;  %v3987_v25 = vld [vmem:[#allocation14 + $0x1b0] sm:$0xff]  ;;  %v3990_v43 = vld [vmem:[#allocation14 + $0x1c8] sm:$0xff] }
 0x86f   :  { %v3994_v26 = vld [vmem:[#allocation14 + $0x1e8] sm:$0xff] }
 0x870   :  { %9154 = vmatpush1.bf16.msra.mxu0 %v9153_v2  ;;  %9186 = vmatpush1.bf16.msra.mxu1 %v9185_v24  ;;  %v12184_v2 = vpack.c.bf16 %v3970_v56, %v3966_v57  ;;  %v3965_v24 = vld [vmem:[#allocation14 + $0x100] sm:$0xff]  ;;  %v12215_v57 = vpack.c.bf16 %v3987_v25, %v3983_v19  ;;  %v12217_v56 = vpack.c.bf16 %v3994_v26, %v3990_v43 }
 0x871   :  { %v460_v19 = vrot.slane %v12088_v59, %v11791_v32 }
 0x873   :  { %3736 = vmatmul.mubr.f32.vlgmr.msra.gmra.mrb[18].mxu0 %v11715_v40  ;;  %3849 = vmatmul.mubr.f32.vlgmr.msra.gmra.mrb[18].mxu1 %v11715_v40  ;;  %v3934_v40 = vld [vmem:[#allocation14 + $0x8] sm:$0xff] }
 0x874   :  { %3741 = vmatprep.mubr.f32.mxu0 %v11255_v0  ;;  %3854 = vmatprep.mubr.f32.mxu1 %v11255_v0 }
 0x877   :  { %3742 = vmatmul.mubr.f32.gmra.mrb[20].mxu0 %v11801_v38  ;;  %3855 = vmatmul.mubr.f32.gmra.mrb[20].mxu1 %v11801_v38  ;;  %v3938_v38 = vld [vmem:[#allocation14 + $0x28] sm:$0xff] }
 0x878   :  { %3747 = vmatprep.mubr.f32.mxu0 %v11255_v0  ;;  %3860 = vmatprep.mubr.f32.mxu1 %v11255_v0 }
 0x87b   :  { %3748 = vmatmul.mubr.f32.gmra.mrb[22].mxu0 %v11893_v44  ;;  %3861 = vmatmul.mubr.f32.gmra.mrb[22].mxu1 %v11893_v44  ;;  %v3936_v44 = vld [vmem:[#allocation14 + $0x18] sm:$0xff] }
 0x87c   :  { %3753 = vmatprep.mubr.f32.mxu0 %v11255_v0  ;;  %3866 = vmatprep.mubr.f32.mxu1 %v11255_v0 }
 0x87f   :  { %3754 = vmatmul.mubr.f32.gmra.mrb[24].mxu0 %v11943_v47  ;;  %3867 = vmatmul.mubr.f32.gmra.mrb[24].mxu1 %v11943_v47  ;;  %v12136_v47 = vpack.c.bf16 %v3938_v38, %v3934_v40  ;;  %v3969_v40 = vld [vmem:[#allocation14 + $0x120] sm:$0xff]  ;;  %v3972_v38 = vld [vmem:[#allocation14 + $0x138] sm:$0xff] }
 0x880   :  { %3759 = vmatprep.mubr.f32.mxu0 %v11255_v0  ;;  %3872 = vmatprep.mubr.f32.mxu1 %v11255_v0 }
 0x881   :  { %9188 = vmatprep.subr.bf16.mxu0 %v12136_v47 }
 0x883   :  { %3760 = vmatmul.mubr.f32.gmra.mrb[26].mxu0 %v11995_v34  ;;  %3873 = vmatmul.mubr.f32.gmra.mrb[26].mxu1 %v11995_v34  ;;  %v3933_v34 = vld [vmem:[#allocation14] sm:$0xff] }
 0x884   :  { %3765 = vmatprep.mubr.f32.mxu0 %v11255_v0  ;;  %3878 = vmatprep.mubr.f32.mxu1 %v11255_v0  ;;  %v12138_v46 = vpack.c.bf16 %v3937_v29, %v3933_v34  ;;  %v12188_v34 = vpack.c.bf16 %v3972_v38, %v3968_v36  ;;  %v3967_v29 = vld [vmem:[#allocation14 + $0x110] sm:$0xff]  ;;  %v3992_v36 = vld [vmem:[#allocation14 + $0x1d8] sm:$0xff]  ;;  %v3993_v38 = vld [vmem:[#allocation14 + $0x1e0] sm:$0xff] }
 0x886   :  { %9190 = vmatpush1.bf16.msra.mxu0 %v12138_v46 }
 0x887   :  { %3766 = vmatmul.mubr.f32.gmra.mrb[28].mxu0 %v12069_v12  ;;  %3879 = vmatmul.mubr.f32.gmra.mrb[28].mxu1 %v12069_v12  ;;  %v3940_v12 = vld [vmem:[#allocation14 + $0x38] sm:$0xff] }
 0x888   :  { %3771 = vmatprep.mubr.f32.mxu0 %v11255_v0  ;;  %3884 = vmatprep.mubr.f32.mxu1 %v11255_v0  ;;  %v12140_v6 = vpack.c.bf16 %v3940_v12, %v3936_v44  ;;  %v12186_v44 = vpack.c.bf16 %v3969_v40, %v3965_v24  ;;  %v3971_v12 = vld [vmem:[#allocation14 + $0x130] sm:$0xff]  ;;  %v3996_v24 = vld [vmem:[#allocation14 + $0x1f8] sm:$0xff]  ;;  %v3989_v40 = vld [vmem:[#allocation14 + $0x1c0] sm:$0xff] }
 0x889   :  { %9192 = vmatprep.subr.bf16.mxu0 %v12148_v54 }
 0x88a   :  { %9220 = vmatprep.subr.bf16.mxu1 %v12140_v6  ;;  %9194 = vmatpush1.bf16.msra.mxu0 %v12150_v63 }
 0x88b   :  { %3772 = vmatmul.mubr.f32.gmra.mrb[30].mxu0 %v12102_v18  ;;  %3885 = vmatmul.mubr.f32.gmra.mrb[30].mxu1 %v12102_v18  ;;  %v12143_v18 = vpack.c.bf16 %v3939_v33, %v3935_v21  ;;  %v3974_v21 = vld [vmem:[#allocation14 + $0x148] sm:$0xff]  ;;  %v12191_v33 = vpack.c.bf16 %v3971_v12, %v3967_v29  ;;  %v12223_v29 = vpack.c.bf16 %v3996_v24, %v3992_v36  ;;  %v3991_v12 = vld [vmem:[#allocation14 + $0x1d0] sm:$0xff] }
 0x88c   :  { %3777 = vmatprep.mubr.f32.mxu0 %v11255_v0  ;;  %3890 = vmatprep.mubr.f32.mxu1 %v11255_v0  ;;  %v12195_v28 = vpack.c.bf16 %v3978_v61, %v3974_v21  ;;  %v12225_v21 = vpack.c.bf16 %v3993_v38, %v3989_v40  ;;  %v3995_v61 = vld [vmem:[#allocation14 + $0x1f0] sm:$0xff] }
 0x88d   :  { %9222 = vmatpush1.bf16.msra.mxu1 %v12143_v18  ;;  %9196 = vmatprep.subr.bf16.mxu0 %v12160_v31  ;;  %v12228_v58 = vpack.c.bf16 %v3995_v61, %v3991_v12 }
 0x88e   :  { %9224 = vmatprep.subr.bf16.mxu1 %v12152_v17  ;;  %9198 = vmatpush1.bf16.msra.mxu0 %v12162_v49 }
 0x88f   :  { %9200 = vmatprep.subr.bf16.mxu0 %v12172_v15 }
 0x891   :  { %9226 = vmatpush1.bf16.msra.mxu1 %v12155_v53 }
 0x892   :  { %9228 = vmatprep.subr.bf16.mxu1 %v12164_v9  ;;  %9202 = vmatpush1.bf16.msra.mxu0 %v12174_v50 }
 0x893   :  { %9204 = vmatprep.subr.bf16.mxu0 %v12184_v2 }
 0x895   :  { %9230 = vmatpush1.bf16.msra.mxu1 %v12167_v16 }
 0x896   :  { %9232 = vmatprep.subr.bf16.mxu1 %v12176_v10  ;;  %9206 = vmatpush1.bf16.msra.mxu0 %v12186_v44 }
 0x897   :  { %9208 = vmatprep.subr.bf16.mxu0 %v12195_v28 }
 0x899   :  { %9234 = vmatpush1.bf16.msra.mxu1 %v12179_v4 }
 0x89a   :  { %9236 = vmatprep.subr.bf16.mxu1 %v12188_v34  ;;  %9210 = vmatpush1.bf16.msra.mxu0 %v12197_v62 }
 0x89b   :  { %9212 = vmatprep.subr.bf16.mxu0 %v12205_v42 }
 0x89d   :  { %9238 = vmatpush1.bf16.msra.mxu1 %v12191_v33 }
 0x89e   :  { %9240 = vmatprep.subr.bf16.mxu1 %v12200_v60  ;;  %9214 = vmatpush1.bf16.msra.mxu0 %v12209_v41 }
 0x89f   :  { %9216 = vmatprep.subr.bf16.mxu0 %v12217_v56 }
 0x8a1   :  { %9242 = vmatpush1.bf16.msra.mxu1 %v12203_v27 }
 0x8a2   :  { %9244 = vmatprep.subr.bf16.mxu1 %v12211_v20  ;;  %9218 = vmatpush1.bf16.msra.mxu0 %v12225_v21 }
 0x8a3   :  { %9252 = vmatprep.subr.bf16.mxu0 %v12136_v47 }
 0x8a5   :  { %9246 = vmatpush1.bf16.msra.mxu1 %v12215_v57 }
 0x8a6   :  { %9248 = vmatprep.subr.bf16.mxu1 %v12223_v29 }
 0x8a9   :  { %9250 = vmatpush1.bf16.msra.mxu1 %v12228_v58 }
 0x8aa   :  { %9284 = vmatprep.subr.bf16.mxu1 %v12140_v6 }
 0x926   :  { %v3472_v39 = vpop.f32.mrb[16].mxu0  ;;  %v3543_v13 = vpop.f32.mrb[12].mxu1 }
 0x927   :  { %v10339_v14 = vadd.f32 %v3472_v39, %v448_v23  ;;  %v3474_v30 = vpop.f32.mrb[17].mxu0  ;;  %v3545_v11 = vpop.f32.mrb[13].mxu1  ;;  %v10341_v7 = vadd.f32 %v3543_v13, %v456_v1 }
 0x928   :  { %v10340_v35 = vadd.f32 %v3474_v30, %v452_v3  ;;  %v10342_v25 = vadd.f32 %v3545_v11, %v460_v19 }
 0x929   :  { %v8355_v45 = vmul.f32 -1.442695, %v10339_v14  ;;  %v8357_v43 = vmul.f32 -1.442695, %v10341_v7 }
 0x92a   :  { %v8356_v37 = vmul.f32 -1.442695, %v10340_v35 }
 0x92b   :  { %10631 = vpow2.f32 %v8355_v45 }
 0x92c   :  { %10633 = vpow2.f32 %v8356_v37 }
 0x92d   :  { %10635 = vtanh.f32 %v10342_v25 }
 0x92e   :  { %10637 = vpow2.f32 %v8357_v43 }
 0x935   :  { %v10632_v8 = vpop.eup %10631 }
 0x936   :  { %v3561_v26 = vadd.f32 1.0, %v10632_v8  ;;  %v10634_v36 = vpop.eup %10633 }
 0x937   :  { %v3562_v24 = vadd.f32 1.0, %v10634_v36  ;;  %v10636_v40 = vpop.eup %10635 }
 0x938   :  { %10639 = vrcp.f32 %v3561_v26  ;;  %v10638_v38 = vpop.eup %10637 }
 0x939   :  { %10641 = vrcp.f32 %v3562_v24  ;;  %v3563_v23 = vadd.f32 1.0, %v10638_v38 }
 0x93b   :  { %10643 = vrcp.f32 %v3563_v23 }
 0x942   :  { %v10640_v12 = vpop.eup %10639 }
 0x943   :  { %v3572_v61 = vmul.f32 %v10640_v12, %v10636_v40  ;;  %v10642_v22 = vpop.eup %10641 }
 0x944   :  { %v3571_v3 = vmul.f32 %v10642_v22, %v12099_v5  ;;  %v3649_v5 = vld [vmem:[#allocation16] sm:$0xf] }
 0x945   :  { %v10644_v59 = vpop.eup %10643  ;;  %v12282_v14 = vrot.slane %v3649_v5, %v11691_v48  ;;  %v12285_v30 = vrot.slane %v3649_v5, %v11696_v55  ;;  %v12290_v43 = vrot.slane %v3649_v5, %v11703_v51  ;;  %v12293_v8 = vrot.slane %v3649_v5, %v11706_v52 }
 0x946   :  { %v3573_v32 = vadd.f32 %v3572_v61, %v3571_v3 }
 0x948   :  { %10645 = vtanh.f32 %v3573_v32 }
 0x952   :  { %v10646_v39 = vpop.eup %10645 }
 0x953   :  { %v3575_v13 = vmul.f32 %v10646_v39, %v10644_v59 }
 0x955   :  { %3778 = vmatmul.mubr.f32.gmra.mrb[32].mxu0 %v3575_v13  ;;  %3891 = vmatmul.mubr.f32.gmra.mrb[32].mxu1 %v3575_v13 }
 0x956   :  { %4061 = vmatprep.mubr.f32.mxu0 %v11255_v0  ;;  %4132 = vmatprep.mubr.f32.mxu1 %v11255_v0 }
 0x959   :  { %4062 = vmatmul.mubr.f32.vlgmr.msra.gmra.mrb[18].mxu0 %v11255_v0  ;;  %4133 = vmatmul.mubr.f32.vlgmr.msra.gmra.mrb[18].mxu1 %v11255_v0 }
 0x95a   :  { %9254 = vmatpush1.bf16.msra.mxu0 %v12138_v46  ;;  %9286 = vmatpush1.bf16.msra.mxu1 %v12143_v18 }
 0x95b   :  { %9256 = vmatprep.subr.bf16.mxu0 %v12148_v54  ;;  %9288 = vmatprep.subr.bf16.mxu1 %v12152_v17 }
 0x95c   :  { %4300 = vmatprep.mubr.f32.mxu0 %v11255_v0  ;;  %4371 = vmatprep.mubr.f32.mxu1 %v11255_v0 }
 0x95e   :  { %9258 = vmatpush1.bf16.msra.mxu0 %v12150_v63  ;;  %9290 = vmatpush1.bf16.msra.mxu1 %v12155_v53 }
 0x95f   :  { %9260 = vmatprep.subr.bf16.mxu0 %v12160_v31  ;;  %9292 = vmatprep.subr.bf16.mxu1 %v12164_v9 }
 0x962   :  { %9262 = vmatpush1.bf16.msra.mxu0 %v12162_v49  ;;  %9294 = vmatpush1.bf16.msra.mxu1 %v12167_v16 }
 0x963   :  { %9264 = vmatprep.subr.bf16.mxu0 %v12172_v15  ;;  %9296 = vmatprep.subr.bf16.mxu1 %v12176_v10 }
 0x966   :  { %9266 = vmatpush1.bf16.msra.mxu0 %v12174_v50  ;;  %9298 = vmatpush1.bf16.msra.mxu1 %v12179_v4 }
 0x967   :  { %9268 = vmatprep.subr.bf16.mxu0 %v12184_v2  ;;  %9300 = vmatprep.subr.bf16.mxu1 %v12188_v34 }
 0x96a   :  { %9270 = vmatpush1.bf16.msra.mxu0 %v12186_v44  ;;  %9302 = vmatpush1.bf16.msra.mxu1 %v12191_v33 }
 0x96b   :  { %9272 = vmatprep.subr.bf16.mxu0 %v12195_v28  ;;  %9304 = vmatprep.subr.bf16.mxu1 %v12200_v60 }
 0x96e   :  { %9274 = vmatpush1.bf16.msra.mxu0 %v12197_v62  ;;  %9306 = vmatpush1.bf16.msra.mxu1 %v12203_v27 }
 0x96f   :  { %9276 = vmatprep.subr.bf16.mxu0 %v12205_v42  ;;  %9308 = vmatprep.subr.bf16.mxu1 %v12211_v20 }
 0x972   :  { %9278 = vmatpush1.bf16.msra.mxu0 %v12209_v41  ;;  %9310 = vmatpush1.bf16.msra.mxu1 %v12215_v57 }
 0x973   :  { %9280 = vmatprep.subr.bf16.mxu0 %v12217_v56  ;;  %9312 = vmatprep.subr.bf16.mxu1 %v12223_v29 }
 0x976   :  { %9282 = vmatpush1.bf16.msra.mxu0 %v12225_v21  ;;  %9314 = vmatpush1.bf16.msra.mxu1 %v12228_v58 }
 0x977   :  { %9316 = vmatprep.subr.bf16.mxu0 %v12136_v47  ;;  %9348 = vmatprep.subr.bf16.mxu1 %v12140_v6 }
 0xa2c   :  { %v4063_v11 = vpop.f32.mrb[18].mxu0  ;;  %v4134_v35 = vpop.f32.mrb[18].mxu1 }
 0xa2d   :  { %v10343_v45 = vadd.f32 %v4063_v11, %v12282_v14  ;;  %v4065_v37 = vpop.f32.mrb[19].mxu0  ;;  %v4136_v1 = vpop.f32.mrb[19].mxu1  ;;  %v10359_v26 = vadd.f32 %v4134_v35, %v12290_v43 }
 0xa2e   :  { %v10344_v19 = vadd.f32 %v4065_v37, %v12285_v30  ;;  %v10360_v36 = vadd.f32 %v4136_v1, %v12293_v8 }
 0xa2f   :  { %v8358_v7 = vmul.f32 -1.442695, %v10343_v45  ;;  %v8360_v24 = vmul.f32 -1.442695, %v10359_v26 }
 0xa30   :  { %v8359_v25 = vmul.f32 -1.442695, %v10344_v19 }
 0xa31   :  { %10647 = vpow2.f32 %v8358_v7 }
 0xa32   :  { %10649 = vpow2.f32 %v8359_v25 }
 0xa33   :  { %10651 = vtanh.f32 %v10360_v36 }
 0xa34   :  { %10653 = vpow2.f32 %v8360_v24 }
 0xa3b   :  { %v10648_v40 = vpop.eup %10647 }
 0xa3c   :  { %v4152_v38 = vadd.f32 1.0, %v10648_v40  ;;  %v10650_v12 = vpop.eup %10649 }
 0xa3d   :  { %v4153_v61 = vadd.f32 1.0, %v10650_v12  ;;  %v10652_v22 = vpop.eup %10651 }
 0xa3e   :  { %10655 = vrcp.f32 %v4152_v38  ;;  %v10654_v23 = vpop.eup %10653 }
 0xa3f   :  { %10657 = vrcp.f32 %v4153_v61  ;;  %v4154_v39 = vadd.f32 1.0, %v10654_v23 }
 0xa41   :  { %10659 = vrcp.f32 %v4154_v39 }
 0xa48   :  { %v10656_v3 = vpop.eup %10655 }
 0xa49   :  { %v4163_v32 = vmul.f32 %v10656_v3, %v10652_v22  ;;  %v10658_v59 = vpop.eup %10657 }
 0xa4a   :  { %v4162_v13 = vmul.f32 0.0, %v10658_v59 }
 0xa4b   :  { %v10660_v11 = vpop.eup %10659 }
 0xa4c   :  { %v12297_v5 = vadd.f32 %v4163_v32, %v4162_v13 }
 0xa4e   :  { %10661 = vtanh.f32 %v12297_v5 }
 0xa58   :  { %v10662_v35 = vpop.eup %10661 }
 0xa59   :  { %v12300_v45 = vmul.f32 %v10662_v35, %v10660_v11 }
 0xa5b   :  { %4301 = vmatmul.mubr.f32.vlgmr.msra.gmra.mrb[20].mxu0 %v12300_v45  ;;  %4372 = vmatmul.mubr.f32.vlgmr.msra.gmra.mrb[20].mxu1 %v12300_v45 }
 0xa5c   :  { %9318 = vmatpush1.bf16.msra.mxu0 %v12138_v46  ;;  %9350 = vmatpush1.bf16.msra.mxu1 %v12143_v18 }
 0xa5d   :  { %9320 = vmatprep.subr.bf16.mxu0 %v12148_v54  ;;  %9352 = vmatprep.subr.bf16.mxu1 %v12152_v17 }
 0xa5e   :  { %4539 = vmatprep.mubr.f32.mxu0 %v11255_v0  ;;  %4610 = vmatprep.mubr.f32.mxu1 %v11255_v0 }
 0xa60   :  { %9322 = vmatpush1.bf16.msra.mxu0 %v12150_v63  ;;  %9354 = vmatpush1.bf16.msra.mxu1 %v12155_v53 }
 0xa61   :  { %9324 = vmatprep.subr.bf16.mxu0 %v12160_v31  ;;  %9356 = vmatprep.subr.bf16.mxu1 %v12164_v9 }
 0xa64   :  { %9326 = vmatpush1.bf16.msra.mxu0 %v12162_v49  ;;  %9358 = vmatpush1.bf16.msra.mxu1 %v12167_v16 }
 0xa65   :  { %9328 = vmatprep.subr.bf16.mxu0 %v12172_v15  ;;  %9360 = vmatprep.subr.bf16.mxu1 %v12176_v10 }
 0xa68   :  { %9330 = vmatpush1.bf16.msra.mxu0 %v12174_v50  ;;  %9362 = vmatpush1.bf16.msra.mxu1 %v12179_v4 }
 0xa69   :  { %9332 = vmatprep.subr.bf16.mxu0 %v12184_v2  ;;  %9364 = vmatprep.subr.bf16.mxu1 %v12188_v34 }
 0xa6c   :  { %9334 = vmatpush1.bf16.msra.mxu0 %v12186_v44  ;;  %9366 = vmatpush1.bf16.msra.mxu1 %v12191_v33 }
 0xa6d   :  { %9336 = vmatprep.subr.bf16.mxu0 %v12195_v28  ;;  %9368 = vmatprep.subr.bf16.mxu1 %v12200_v60 }
 0xa70   :  { %9338 = vmatpush1.bf16.msra.mxu0 %v12197_v62  ;;  %9370 = vmatpush1.bf16.msra.mxu1 %v12203_v27 }
 0xa71   :  { %9340 = vmatprep.subr.bf16.mxu0 %v12205_v42  ;;  %9372 = vmatprep.subr.bf16.mxu1 %v12211_v20 }
 0xa74   :  { %9342 = vmatpush1.bf16.msra.mxu0 %v12209_v41  ;;  %9374 = vmatpush1.bf16.msra.mxu1 %v12215_v57 }
 0xa75   :  { %9344 = vmatprep.subr.bf16.mxu0 %v12217_v56  ;;  %9376 = vmatprep.subr.bf16.mxu1 %v12223_v29 }
 0xa78   :  { %9346 = vmatpush1.bf16.msra.mxu0 %v12225_v21  ;;  %9378 = vmatpush1.bf16.msra.mxu1 %v12228_v58 }
 0xa79   :  { %9380 = vmatprep.subr.bf16.mxu0 %v12136_v47  ;;  %9412 = vmatprep.subr.bf16.mxu1 %v12140_v6 }
 0xb2e   :  { %v4302_v37 = vpop.f32.mrb[20].mxu0  ;;  %v4373_v1 = vpop.f32.mrb[20].mxu1 }
 0xb2f   :  { %v10345_v19 = vadd.f32 %v4302_v37, %v12282_v14  ;;  %v4304_v7 = vpop.f32.mrb[21].mxu0  ;;  %v4375_v25 = vpop.f32.mrb[21].mxu1  ;;  %v10361_v40 = vadd.f32 %v4373_v1, %v12290_v43 }
 0xb30   :  { %v10346_v26 = vadd.f32 %v4304_v7, %v12285_v30  ;;  %v10362_v38 = vadd.f32 %v4375_v25, %v12293_v8  ;;  %v4889_v7 = vld [vmem:[#allocation14] sm:$0xff] }
 0xb31   :  { %v8361_v36 = vmul.f32 -1.442695, %v10345_v19  ;;  %v8363_v12 = vmul.f32 -1.442695, %v10361_v40  ;;  %v4893_v25 = vld [vmem:[#allocation14 + $0x20] sm:$0xff]  ;;  %v4895_v40 = vld [vmem:[#allocation14 + $0x30] sm:$0xff] }
 0xb32   :  { %v8362_v24 = vmul.f32 -1.442695, %v10346_v26 }
 0xb33   :  { %10663 = vpow2.f32 %v8361_v36  ;;  %v12400_v36 = vpack.c.bf16 %v4893_v25, %v4889_v7 }
 0xb34   :  { %10665 = vpow2.f32 %v8362_v24  ;;  %v4891_v24 = vld [vmem:[#allocation14 + $0x10] sm:$0xff] }
 0xb35   :  { %10667 = vtanh.f32 %v10362_v38  ;;  %v12403_v38 = vpack.c.bf16 %v4895_v40, %v4891_v24  ;;  %v4923_v24 = vld [vmem:[#allocation14 + $0x110] sm:$0xff] }
 0xb36   :  { %10669 = vpow2.f32 %v8363_v12  ;;  %v4898_v12 = vld [vmem:[#allocation14 + $0x48] sm:$0xff]  ;;  %v4927_v40 = vld [vmem:[#allocation14 + $0x130] sm:$0xff] }
 0xb3d   :  { %v10664_v47 = vpop.eup %10663 }
 0xb3e   :  { %v4391_v61 = vadd.f32 1.0, %v10664_v47  ;;  %v10666_v6 = vpop.eup %10665  ;;  %v4902_v47 = vld [vmem:[#allocation14 + $0x68] sm:$0xff] }
 0xb3f   :  { %v4392_v22 = vadd.f32 1.0, %v10666_v6  ;;  %v10668_v23 = vpop.eup %10667  ;;  %v12408_v6 = vpack.c.bf16 %v4902_v47, %v4898_v12  ;;  %v12451_v12 = vpack.c.bf16 %v4927_v40, %v4923_v24  ;;  %v4930_v47 = vld [vmem:[#allocation14 + $0x148] sm:$0xff]  ;;  %v4945_v24 = vld [vmem:[#allocation14 + $0x1c0] sm:$0xff] }
 0xb40   :  { %10671 = vrcp.f32 %v4391_v61  ;;  %v10670_v3 = vpop.eup %10669  ;;  %v4900_v61 = vld [vmem:[#allocation14 + $0x58] sm:$0xff] }
 0xb41   :  { %10673 = vrcp.f32 %v4392_v22  ;;  %v4393_v13 = vadd.f32 1.0, %v10670_v3  ;;  %v4904_v22 = vld [vmem:[#allocation14 + $0x78] sm:$0xff]  ;;  %v4901_v3 = vld [vmem:[#allocation14 + $0x60] sm:$0xff] }
 0xb43   :  { %10675 = vrcp.f32 %v4393_v13  ;;  %v4903_v13 = vld [vmem:[#allocation14 + $0x70] sm:$0xff] }
 0xb4a   :  { %v10672_v32 = vpop.eup %10671 }
 0xb4b   :  { %v4402_v59 = vmul.f32 %v10672_v32, %v10668_v23  ;;  %v10674_v39 = vpop.eup %10673  ;;  %v4897_v23 = vld [vmem:[#allocation14 + $0x40] sm:$0xff]  ;;  %v12410_v32 = vpack.c.bf16 %v4904_v22, %v4900_v61  ;;  %v4934_v61 = vld [vmem:[#allocation14 + $0x168] sm:$0xff]  ;;  %v4932_v22 = vld [vmem:[#allocation14 + $0x158] sm:$0xff] }
 0xb4c   :  { %v4401_v11 = vmul.f32 %v10674_v39, %v12297_v5  ;;  %v4896_v5 = vld [vmem:[#allocation14 + $0x38] sm:$0xff]  ;;  %v4899_v39 = vld [vmem:[#allocation14 + $0x50] sm:$0xff] }
 0xb4d   :  { %v10676_v37 = vpop.eup %10675 }
 0xb4e   :  { %v12343_v35 = vadd.f32 %v4402_v59, %v4401_v11  ;;  %v12412_v59 = vpack.c.bf16 %v4901_v3, %v4897_v23  ;;  %v12415_v11 = vpack.c.bf16 %v4903_v13, %v4899_v39  ;;  %v12456_v23 = vpack.c.bf16 %v4934_v61, %v4930_v47  ;;  %v4936_v3 = vld [vmem:[#allocation14 + $0x178] sm:$0xff]  ;;  %v4929_v39 = vld [vmem:[#allocation14 + $0x140] sm:$0xff]  ;;  %v4947_v61 = vld [vmem:[#allocation14 + $0x1d0] sm:$0xff] }
 0xb4f   :  { %v4933_v13 = vld [vmem:[#allocation14 + $0x160] sm:$0xff] }
 0xb50   :  { %10677 = vtanh.f32 %v12343_v35  ;;  %v4949_v47 = vld [vmem:[#allocation14 + $0x1e0] sm:$0xff] }
 0xb5a   :  { %v10678_v1 = vpop.eup %10677 }
 0xb5b   :  { %v12346_v19 = vmul.f32 %v10678_v1, %v10676_v37  ;;  %v4910_v37 = vld [vmem:[#allocation14 + $0xa8] sm:$0xff]  ;;  %v4908_v1 = vld [vmem:[#allocation14 + $0x98] sm:$0xff] }
 0xb5d   :  { %4540 = vmatmul.mubr.f32.vlgmr.msra.gmra.mrb[22].mxu0 %v12346_v19  ;;  %4611 = vmatmul.mubr.f32.vlgmr.msra.gmra.mrb[22].mxu1 %v12346_v19 }
 0xb5e   :  { %9382 = vmatpush1.bf16.msra.mxu0 %v12138_v46  ;;  %9414 = vmatpush1.bf16.msra.mxu1 %v12143_v18 }
 0xb5f   :  { %9384 = vmatprep.subr.bf16.mxu0 %v12148_v54  ;;  %9416 = vmatprep.subr.bf16.mxu1 %v12152_v17 }
 0xb60   :  { %4778 = vmatprep.mubr.f32.mxu0 %v11255_v0  ;;  %4849 = vmatprep.mubr.f32.mxu1 %v11255_v0 }
 0xb62   :  { %9386 = vmatpush1.bf16.msra.mxu0 %v12150_v63  ;;  %9418 = vmatpush1.bf16.msra.mxu1 %v12155_v53 }
 0xb63   :  { %9388 = vmatprep.subr.bf16.mxu0 %v12160_v31  ;;  %9420 = vmatprep.subr.bf16.mxu1 %v12164_v9 }
 0xb66   :  { %9390 = vmatpush1.bf16.msra.mxu0 %v12162_v49  ;;  %9422 = vmatpush1.bf16.msra.mxu1 %v12167_v16 }
 0xb67   :  { %9392 = vmatprep.subr.bf16.mxu0 %v12172_v15  ;;  %9424 = vmatprep.subr.bf16.mxu1 %v12176_v10 }
 0xb6a   :  { %9394 = vmatpush1.bf16.msra.mxu0 %v12174_v50  ;;  %9426 = vmatpush1.bf16.msra.mxu1 %v12179_v4 }
 0xb6b   :  { %9396 = vmatprep.subr.bf16.mxu0 %v12184_v2  ;;  %9428 = vmatprep.subr.bf16.mxu1 %v12188_v34 }
 0xb6e   :  { %9398 = vmatpush1.bf16.msra.mxu0 %v12186_v44  ;;  %9430 = vmatpush1.bf16.msra.mxu1 %v12191_v33 }
 0xb6f   :  { %9400 = vmatprep.subr.bf16.mxu0 %v12195_v28  ;;  %9432 = vmatprep.subr.bf16.mxu1 %v12200_v60 }
 0xb72   :  { %9402 = vmatpush1.bf16.msra.mxu0 %v12197_v62  ;;  %9434 = vmatpush1.bf16.msra.mxu1 %v12203_v27 }
 0xb73   :  { %9404 = vmatprep.subr.bf16.mxu0 %v12205_v42  ;;  %9436 = vmatprep.subr.bf16.mxu1 %v12211_v20 }
 0xb76   :  { %9406 = vmatpush1.bf16.msra.mxu0 %v12209_v41  ;;  %9438 = vmatpush1.bf16.msra.mxu1 %v12215_v57 }
 0xb77   :  { %9408 = vmatprep.subr.bf16.mxu0 %v12217_v56  ;;  %9440 = vmatprep.subr.bf16.mxu1 %v12223_v29  ;;  %v4890_v56 = vld [vmem:[#allocation14 + $0x8] sm:$0xff] }
 0xb78   :  { %v4894_v29 = vld [vmem:[#allocation14 + $0x28] sm:$0xff] }
 0xb7a   :  { %9410 = vmatpush1.bf16.msra.mxu0 %v12225_v21  ;;  %9442 = vmatpush1.bf16.msra.mxu1 %v12228_v58  ;;  %v4892_v21 = vld [vmem:[#allocation14 + $0x18] sm:$0xff]  ;;  %v12396_v58 = vpack.c.bf16 %v4894_v29, %v4890_v56 }
 0xb7b   :  { %v12398_v26 = vpack.c.bf16 %v4896_v5, %v4892_v21  ;;  %v4928_v29 = vld [vmem:[#allocation14 + $0x138] sm:$0xff]  ;;  %v4921_v21 = vld [vmem:[#allocation14 + $0x100] sm:$0xff] }
 0xb7c   :  { %9444 = vmatprep.subr.bf16.mxu0 %v12396_v58  ;;  %v4925_v5 = vld [vmem:[#allocation14 + $0x120] sm:$0xff] }
 0xb7d   :  { %9476 = vmatprep.subr.bf16.mxu1 %v12398_v26  ;;  %v12448_v25 = vpack.c.bf16 %v4925_v5, %v4921_v21  ;;  %v4948_v21 = vld [vmem:[#allocation14 + $0x1d8] sm:$0xff] }
 0xb7e   :  { %v4952_v5 = vld [vmem:[#allocation14 + $0x1f8] sm:$0xff] }
 0xb7f   :  { %v12480_v40 = vpack.c.bf16 %v4952_v5, %v4948_v21 }
 0xc30   :  { %v4541_v46 = vpop.f32.mrb[22].mxu0  ;;  %v4612_v18 = vpop.f32.mrb[22].mxu1 }
 0xc31   :  { %v10347_v54 = vadd.f32 %v4541_v46, %v12282_v14  ;;  %v4543_v63 = vpop.f32.mrb[23].mxu0  ;;  %v4614_v17 = vpop.f32.mrb[23].mxu1  ;;  %v10363_v9 = vadd.f32 %v4612_v18, %v12290_v43  ;;  %v4912_v18 = vld [vmem:[#allocation14 + $0xb8] sm:$0xff] }
 0xc32   :  { %v10348_v53 = vadd.f32 %v4543_v63, %v12285_v30  ;;  %v10364_v16 = vadd.f32 %v4614_v17, %v12293_v8  ;;  %v4909_v63 = vld [vmem:[#allocation14 + $0xa0] sm:$0xff]  ;;  %v12422_v17 = vpack.c.bf16 %v4912_v18, %v4908_v1  ;;  %v4931_v1 = vld [vmem:[#allocation14 + $0x150] sm:$0xff] }
 0xc33   :  { %v8364_v31 = vmul.f32 -1.442695, %v10347_v54  ;;  %v8366_v15 = vmul.f32 -1.442695, %v10363_v9  ;;  %v4905_v54 = vld [vmem:[#allocation14 + $0x80] sm:$0xff]  ;;  %v4935_v18 = vld [vmem:[#allocation14 + $0x170] sm:$0xff] }
 0xc34   :  { %v8365_v49 = vmul.f32 -1.442695, %v10348_v53  ;;  %v12424_v53 = vpack.c.bf16 %v4909_v63, %v4905_v54  ;;  %v4938_v54 = vld [vmem:[#allocation14 + $0x188] sm:$0xff]  ;;  %v12463_v63 = vpack.c.bf16 %v4935_v18, %v4931_v1 }
 0xc35   :  { %10679 = vpow2.f32 %v8364_v31  ;;  %v4907_v31 = vld [vmem:[#allocation14 + $0x90] sm:$0xff] }
 0xc36   :  { %10681 = vpow2.f32 %v8365_v49  ;;  %v4911_v49 = vld [vmem:[#allocation14 + $0xb0] sm:$0xff] }
 0xc37   :  { %10683 = vtanh.f32 %v10364_v16  ;;  %v12427_v9 = vpack.c.bf16 %v4911_v49, %v4907_v31  ;;  %v4914_v16 = vld [vmem:[#allocation14 + $0xc8] sm:$0xff]  ;;  %v4940_v49 = vld [vmem:[#allocation14 + $0x198] sm:$0xff] }
 0xc38   :  { %10685 = vpow2.f32 %v8366_v15  ;;  %v4918_v15 = vld [vmem:[#allocation14 + $0xe8] sm:$0xff] }
 0xc39   :  { %v4942_v31 = vld [vmem:[#allocation14 + $0x1a8] sm:$0xff] }
 0xc3f   :  { %v10680_v50 = vpop.eup %10679 }
 0xc40   :  { %v4630_v10 = vadd.f32 1.0, %v10680_v50  ;;  %v10682_v4 = vpop.eup %10681  ;;  %v4916_v50 = vld [vmem:[#allocation14 + $0xd8] sm:$0xff] }
 0xc41   :  { %v4631_v2 = vadd.f32 1.0, %v10682_v4  ;;  %v10684_v44 = vpop.eup %10683  ;;  %v4920_v4 = vld [vmem:[#allocation14 + $0xf8] sm:$0xff] }
 0xc42   :  { %10687 = vrcp.f32 %v4630_v10  ;;  %v10686_v34 = vpop.eup %10685  ;;  %v12432_v10 = vpack.c.bf16 %v4918_v15, %v4914_v16  ;;  %v4944_v16 = vld [vmem:[#allocation14 + $0x1b8] sm:$0xff]  ;;  %v12467_v15 = vpack.c.bf16 %v4942_v31, %v4938_v54 }
 0xc43   :  { %10689 = vrcp.f32 %v4631_v2  ;;  %v4632_v60 = vadd.f32 1.0, %v10686_v34  ;;  %v4913_v2 = vld [vmem:[#allocation14 + $0xc0] sm:$0xff]  ;;  %v12434_v34 = vpack.c.bf16 %v4920_v4, %v4916_v50  ;;  %v12469_v50 = vpack.c.bf16 %v4944_v16, %v4940_v49 }
 0xc44   :  { %v4937_v4 = vld [vmem:[#allocation14 + $0x180] sm:$0xff] }
 0xc45   :  { %10691 = vrcp.f32 %v4632_v60 }
 0xc4c   :  { %v10688_v33 = vpop.eup %10687 }
 0xc4d   :  { %v4641_v28 = vmul.f32 %v10688_v33, %v10684_v44  ;;  %v10690_v62 = vpop.eup %10689  ;;  %v4917_v44 = vld [vmem:[#allocation14 + $0xe0] sm:$0xff] }
 0xc4e   :  { %v4640_v27 = vmul.f32 %v10690_v62, %v12343_v35  ;;  %v4906_v35 = vld [vmem:[#allocation14 + $0x88] sm:$0xff]  ;;  %v12436_v33 = vpack.c.bf16 %v4917_v44, %v4913_v2  ;;  %v4919_v62 = vld [vmem:[#allocation14 + $0xf0] sm:$0xff]  ;;  %v4941_v2 = vld [vmem:[#allocation14 + $0x1a0] sm:$0xff] }
 0xc4f   :  { %v10692_v41 = vpop.eup %10691  ;;  %v12420_v46 = vpack.c.bf16 %v4910_v37, %v4906_v35  ;;  %v12458_v35 = vpack.c.bf16 %v4936_v3, %v4932_v22  ;;  %v12460_v37 = vpack.c.bf16 %v4933_v13, %v4929_v39  ;;  %v4939_v44 = vld [vmem:[#allocation14 + $0x190] sm:$0xff]  ;;  %v12483_v3 = vpack.c.bf16 %v4949_v47, %v4945_v24 }
 0xc50   :  { %v12387_v42 = vadd.f32 %v4641_v28, %v4640_v27  ;;  %v4915_v28 = vld [vmem:[#allocation14 + $0xd0] sm:$0xff]  ;;  %v4922_v27 = vld [vmem:[#allocation14 + $0x108] sm:$0xff] }
 0xc51   :  { %v12439_v60 = vpack.c.bf16 %v4919_v62, %v4915_v28  ;;  %v12472_v28 = vpack.c.bf16 %v4941_v2, %v4937_v4  ;;  %v4943_v62 = vld [vmem:[#allocation14 + $0x1b0] sm:$0xff] }
 0xc52   :  { %10693 = vtanh.f32 %v12387_v42  ;;  %v4951_v22 = vld [vmem:[#allocation14 + $0x1f0] sm:$0xff] }
 0xc53   :  { %v12487_v39 = vpack.c.bf16 %v4951_v22, %v4947_v61 }
 0xc5c   :  { %v10694_v20 = vpop.eup %10693 }
 0xc5d   :  { %v12390_v57 = vmul.f32 %v10694_v20, %v10692_v41  ;;  %v4926_v41 = vld [vmem:[#allocation14 + $0x128] sm:$0xff]  ;;  %v4924_v20 = vld [vmem:[#allocation14 + $0x118] sm:$0xff] }
 0xc5e   :  { %v12444_v56 = vpack.c.bf16 %v4926_v41, %v4922_v27  ;;  %v12446_v7 = vpack.c.bf16 %v4928_v29, %v4924_v20  ;;  %v4946_v27 = vld [vmem:[#allocation14 + $0x1c8] sm:$0xff]  ;;  %v12476_v20 = vpack.c.bf16 %v4943_v62, %v4939_v44 }
 0xc5f   :  { %4779 = vmatmul.mubr.f32.vlgmr.msra.gmra.mrb[24].mxu0 %v12390_v57  ;;  %4850 = vmatmul.mubr.f32.vlgmr.msra.gmra.mrb[24].mxu1 %v12390_v57  ;;  %v4950_v41 = vld [vmem:[#allocation14 + $0x1e8] sm:$0xff] }
 0xc60   :  { %5017 = vmatprep.mubr.f32.mxu0 %v11255_v0  ;;  %5088 = vmatprep.mubr.f32.mxu1 %v11255_v0  ;;  %v12478_v29 = vpack.c.bf16 %v4950_v41, %v4946_v27 }
 0xc61   :  { %9446 = vmatpush1.bf16.msra.mxu0 %v12400_v36  ;;  %9478 = vmatpush1.bf16.msra.mxu1 %v12403_v38 }
 0xc62   :  { %9448 = vmatprep.subr.bf16.mxu0 %v12408_v6  ;;  %9480 = vmatprep.subr.bf16.mxu1 %v12410_v32 }
 0xc65   :  { %9450 = vmatpush1.bf16.msra.mxu0 %v12412_v59  ;;  %9482 = vmatpush1.bf16.msra.mxu1 %v12415_v11 }
 0xc66   :  { %9452 = vmatprep.subr.bf16.mxu0 %v12420_v46  ;;  %9484 = vmatprep.subr.bf16.mxu1 %v12422_v17 }
 0xc69   :  { %9454 = vmatpush1.bf16.msra.mxu0 %v12424_v53  ;;  %9486 = vmatpush1.bf16.msra.mxu1 %v12427_v9 }
 0xc6a   :  { %9456 = vmatprep.subr.bf16.mxu0 %v12432_v10  ;;  %9488 = vmatprep.subr.bf16.mxu1 %v12434_v34 }
 0xc6d   :  { %9458 = vmatpush1.bf16.msra.mxu0 %v12436_v33  ;;  %9490 = vmatpush1.bf16.msra.mxu1 %v12439_v60 }
 0xc6e   :  { %9460 = vmatprep.subr.bf16.mxu0 %v12444_v56  ;;  %9492 = vmatprep.subr.bf16.mxu1 %v12446_v7 }
 0xc71   :  { %9462 = vmatpush1.bf16.msra.mxu0 %v12448_v25  ;;  %9494 = vmatpush1.bf16.msra.mxu1 %v12451_v12 }
 0xc72   :  { %9464 = vmatprep.subr.bf16.mxu0 %v12456_v23  ;;  %9496 = vmatprep.subr.bf16.mxu1 %v12458_v35 }
 0xc75   :  { %9466 = vmatpush1.bf16.msra.mxu0 %v12460_v37  ;;  %9498 = vmatpush1.bf16.msra.mxu1 %v12463_v63 }
 0xc76   :  { %9468 = vmatprep.subr.bf16.mxu0 %v12467_v15  ;;  %9500 = vmatprep.subr.bf16.mxu1 %v12469_v50 }
 0xc79   :  { %9470 = vmatpush1.bf16.msra.mxu0 %v12472_v28  ;;  %9502 = vmatpush1.bf16.msra.mxu1 %v12476_v20 }
 0xc7a   :  { %9472 = vmatprep.subr.bf16.mxu0 %v12478_v29  ;;  %9504 = vmatprep.subr.bf16.mxu1 %v12480_v40 }
 0xc7d   :  { %9474 = vmatpush1.bf16.msra.mxu0 %v12483_v3  ;;  %9506 = vmatpush1.bf16.msra.mxu1 %v12487_v39 }
 0xc7e   :  { %9508 = vmatprep.subr.bf16.mxu0 %v12396_v58  ;;  %9540 = vmatprep.subr.bf16.mxu1 %v12398_v26 }
 0xd32   :  { %v4780_v13 = vpop.f32.mrb[24].mxu0  ;;  %v4851_v1 = vpop.f32.mrb[24].mxu1 }
 0xd33   :  { %v10349_v18 = vadd.f32 %v4780_v13, %v12282_v14  ;;  %v4782_v54 = vpop.f32.mrb[25].mxu0  ;;  %v4853_v31 = vpop.f32.mrb[25].mxu1  ;;  %v10365_v2 = vadd.f32 %v4851_v1, %v12290_v43 }
 0xd34   :  { %v10350_v49 = vadd.f32 %v4782_v54, %v12285_v30  ;;  %v10366_v44 = vadd.f32 %v4853_v31, %v12293_v8 }
 0xd35   :  { %v8367_v16 = vmul.f32 -1.442695, %v10349_v18  ;;  %v8369_v62 = vmul.f32 -1.442695, %v10365_v2 }
 0xd36   :  { %v8368_v4 = vmul.f32 -1.442695, %v10350_v49 }
 0xd37   :  { %10695 = vpow2.f32 %v8367_v16 }
 0xd38   :  { %10697 = vpow2.f32 %v8368_v4 }
 0xd39   :  { %10699 = vtanh.f32 %v10366_v44 }
 0xd3a   :  { %10701 = vpow2.f32 %v8369_v62 }
 0xd41   :  { %v10696_v27 = vpop.eup %10695 }
 0xd42   :  { %v4869_v41 = vadd.f32 1.0, %v10696_v27  ;;  %v10698_v21 = vpop.eup %10697 }
 0xd43   :  { %v4870_v5 = vadd.f32 1.0, %v10698_v21  ;;  %v10700_v24 = vpop.eup %10699 }
 0xd44   :  { %10703 = vrcp.f32 %v4869_v41  ;;  %v10702_v47 = vpop.eup %10701 }
 0xd45   :  { %10705 = vrcp.f32 %v4870_v5  ;;  %v4871_v18 = vadd.f32 1.0, %v10702_v47 }
 0xd47   :  { %10707 = vrcp.f32 %v4871_v18 }
 0xd4e   :  { %v10704_v61 = vpop.eup %10703 }
 0xd4f   :  { %v4880_v22 = vmul.f32 %v10704_v61, %v10700_v24  ;;  %v10706_v13 = vpop.eup %10705 }
 0xd50   :  { %v4879_v54 = vmul.f32 %v10706_v13, %v12387_v42 }
 0xd51   :  { %v10708_v31 = vpop.eup %10707 }
 0xd52   :  { %v12499_v1 = vadd.f32 %v4880_v22, %v4879_v54 }
 0xd54   :  { %10709 = vtanh.f32 %v12499_v1 }
 0xd5e   :  { %v10710_v49 = vpop.eup %10709 }
 0xd5f   :  { %v12502_v16 = vmul.f32 %v10710_v49, %v10708_v31 }
 0xd61   :  { %5018 = vmatmul.mubr.f32.vlgmr.msra.gmra.mrb[26].mxu0 %v12502_v16  ;;  %5089 = vmatmul.mubr.f32.vlgmr.msra.gmra.mrb[26].mxu1 %v12502_v16 }
 0xd62   :  { %9510 = vmatpush1.bf16.msra.mxu0 %v12400_v36  ;;  %9542 = vmatpush1.bf16.msra.mxu1 %v12403_v38 }
 0xd63   :  { %9512 = vmatprep.subr.bf16.mxu0 %v12408_v6  ;;  %9544 = vmatprep.subr.bf16.mxu1 %v12410_v32 }
 0xd64   :  { %5256 = vmatprep.mubr.f32.mxu0 %v11255_v0  ;;  %5327 = vmatprep.mubr.f32.mxu1 %v11255_v0 }
 0xd66   :  { %9514 = vmatpush1.bf16.msra.mxu0 %v12412_v59  ;;  %9546 = vmatpush1.bf16.msra.mxu1 %v12415_v11 }
 0xd67   :  { %9516 = vmatprep.subr.bf16.mxu0 %v12420_v46  ;;  %9548 = vmatprep.subr.bf16.mxu1 %v12422_v17 }
 0xd6a   :  { %9518 = vmatpush1.bf16.msra.mxu0 %v12424_v53  ;;  %9550 = vmatpush1.bf16.msra.mxu1 %v12427_v9 }
 0xd6b   :  { %9520 = vmatprep.subr.bf16.mxu0 %v12432_v10  ;;  %9552 = vmatprep.subr.bf16.mxu1 %v12434_v34 }
 0xd6e   :  { %9522 = vmatpush1.bf16.msra.mxu0 %v12436_v33  ;;  %9554 = vmatpush1.bf16.msra.mxu1 %v12439_v60 }
 0xd6f   :  { %9524 = vmatprep.subr.bf16.mxu0 %v12444_v56  ;;  %9556 = vmatprep.subr.bf16.mxu1 %v12446_v7 }
 0xd72   :  { %9526 = vmatpush1.bf16.msra.mxu0 %v12448_v25  ;;  %9558 = vmatpush1.bf16.msra.mxu1 %v12451_v12 }
 0xd73   :  { %9528 = vmatprep.subr.bf16.mxu0 %v12456_v23  ;;  %9560 = vmatprep.subr.bf16.mxu1 %v12458_v35 }
 0xd76   :  { %9530 = vmatpush1.bf16.msra.mxu0 %v12460_v37  ;;  %9562 = vmatpush1.bf16.msra.mxu1 %v12463_v63 }
 0xd77   :  { %9532 = vmatprep.subr.bf16.mxu0 %v12467_v15  ;;  %9564 = vmatprep.subr.bf16.mxu1 %v12469_v50 }
 0xd7a   :  { %9534 = vmatpush1.bf16.msra.mxu0 %v12472_v28  ;;  %9566 = vmatpush1.bf16.msra.mxu1 %v12476_v20 }
 0xd7b   :  { %9536 = vmatprep.subr.bf16.mxu0 %v12478_v29  ;;  %9568 = vmatprep.subr.bf16.mxu1 %v12480_v40 }
 0xd7e   :  { %9538 = vmatpush1.bf16.msra.mxu0 %v12483_v3  ;;  %9570 = vmatpush1.bf16.msra.mxu1 %v12487_v39 }
 0xd7f   :  { %9572 = vmatprep.subr.bf16.mxu0 %v12396_v58  ;;  %9604 = vmatprep.subr.bf16.mxu1 %v12398_v26 }
 0xe34   :  { %v5019_v42 = vpop.f32.mrb[26].mxu0  ;;  %v5090_v4 = vpop.f32.mrb[26].mxu1 }
 0xe35   :  { %v10351_v2 = vadd.f32 %v5019_v42, %v12282_v14  ;;  %v5021_v44 = vpop.f32.mrb[27].mxu0  ;;  %v5092_v62 = vpop.f32.mrb[27].mxu1  ;;  %v10367_v5 = vadd.f32 %v5090_v4, %v12290_v43 }
 0xe36   :  { %v10352_v27 = vadd.f32 %v5021_v44, %v12285_v30  ;;  %v10368_v24 = vadd.f32 %v5092_v62, %v12293_v8 }
 0xe37   :  { %v8370_v41 = vmul.f32 -1.442695, %v10351_v2  ;;  %v8372_v47 = vmul.f32 -1.442695, %v10367_v5 }
 0xe38   :  { %v8371_v21 = vmul.f32 -1.442695, %v10352_v27 }
 0xe39   :  { %10711 = vpow2.f32 %v8370_v41 }
 0xe3a   :  { %10713 = vpow2.f32 %v8371_v21 }
 0xe3b   :  { %10715 = vtanh.f32 %v10368_v24 }
 0xe3c   :  { %10717 = vpow2.f32 %v8372_v47 }
 0xe43   :  { %v10712_v61 = vpop.eup %10711 }
 0xe44   :  { %v5108_v22 = vadd.f32 1.0, %v10712_v61  ;;  %v10714_v13 = vpop.eup %10713 }
 0xe45   :  { %v5109_v18 = vadd.f32 1.0, %v10714_v13  ;;  %v10716_v54 = vpop.eup %10715 }
 0xe46   :  { %10719 = vrcp.f32 %v5108_v22  ;;  %v10718_v31 = vpop.eup %10717 }
 0xe47   :  { %10721 = vrcp.f32 %v5109_v18  ;;  %v5110_v44 = vadd.f32 1.0, %v10718_v31 }
 0xe49   :  { %10723 = vrcp.f32 %v5110_v44 }
 0xe50   :  { %v10720_v49 = vpop.eup %10719 }
 0xe51   :  { %v5119_v42 = vmul.f32 %v10720_v49, %v10716_v54  ;;  %v10722_v2 = vpop.eup %10721 }
 0xe52   :  { %v5118_v27 = vmul.f32 %v10722_v2, %v12499_v1 }
 0xe53   :  { %v10724_v62 = vpop.eup %10723 }
 0xe54   :  { %v12545_v4 = vadd.f32 %v5119_v42, %v5118_v27 }
 0xe56   :  { %10725 = vtanh.f32 %v12545_v4 }
 0xe60   :  { %v10726_v41 = vpop.eup %10725 }
 0xe61   :  { %v12548_v21 = vmul.f32 %v10726_v41, %v10724_v62 }
 0xe63   :  { %5257 = vmatmul.mubr.f32.vlgmr.msra.gmra.mrb[28].mxu0 %v12548_v21  ;;  %5328 = vmatmul.mubr.f32.vlgmr.msra.gmra.mrb[28].mxu1 %v12548_v21 }
 0xe64   :  { %9574 = vmatpush1.bf16.msra.mxu0 %v12400_v36  ;;  %9606 = vmatpush1.bf16.msra.mxu1 %v12403_v38 }
 0xe65   :  { %9576 = vmatprep.subr.bf16.mxu0 %v12408_v6  ;;  %9608 = vmatprep.subr.bf16.mxu1 %v12410_v32 }
 0xe66   :  { %5495 = vmatprep.mubr.f32.mxu0 %v11255_v0  ;;  %5566 = vmatprep.mubr.f32.mxu1 %v11255_v0 }
 0xe68   :  { %9578 = vmatpush1.bf16.msra.mxu0 %v12412_v59  ;;  %9610 = vmatpush1.bf16.msra.mxu1 %v12415_v11 }
 0xe69   :  { %9580 = vmatprep.subr.bf16.mxu0 %v12420_v46  ;;  %9612 = vmatprep.subr.bf16.mxu1 %v12422_v17 }
 0xe6c   :  { %9582 = vmatpush1.bf16.msra.mxu0 %v12424_v53  ;;  %9614 = vmatpush1.bf16.msra.mxu1 %v12427_v9 }
 0xe6d   :  { %9584 = vmatprep.subr.bf16.mxu0 %v12432_v10  ;;  %9616 = vmatprep.subr.bf16.mxu1 %v12434_v34 }
 0xe70   :  { %9586 = vmatpush1.bf16.msra.mxu0 %v12436_v33  ;;  %9618 = vmatpush1.bf16.msra.mxu1 %v12439_v60 }
 0xe71   :  { %9588 = vmatprep.subr.bf16.mxu0 %v12444_v56  ;;  %9620 = vmatprep.subr.bf16.mxu1 %v12446_v7 }
 0xe74   :  { %9590 = vmatpush1.bf16.msra.mxu0 %v12448_v25  ;;  %9622 = vmatpush1.bf16.msra.mxu1 %v12451_v12 }
 0xe75   :  { %9592 = vmatprep.subr.bf16.mxu0 %v12456_v23  ;;  %9624 = vmatprep.subr.bf16.mxu1 %v12458_v35 }
 0xe78   :  { %9594 = vmatpush1.bf16.msra.mxu0 %v12460_v37  ;;  %9626 = vmatpush1.bf16.msra.mxu1 %v12463_v63 }
 0xe79   :  { %9596 = vmatprep.subr.bf16.mxu0 %v12467_v15  ;;  %9628 = vmatprep.subr.bf16.mxu1 %v12469_v50 }
 0xe7c   :  { %9598 = vmatpush1.bf16.msra.mxu0 %v12472_v28  ;;  %9630 = vmatpush1.bf16.msra.mxu1 %v12476_v20 }
 0xe7d   :  { %9600 = vmatprep.subr.bf16.mxu0 %v12478_v29  ;;  %9632 = vmatprep.subr.bf16.mxu1 %v12480_v40 }
 0xe80   :  { %9602 = vmatpush1.bf16.msra.mxu0 %v12483_v3  ;;  %9634 = vmatpush1.bf16.msra.mxu1 %v12487_v39 }
 0xe81   :  { %9636 = vmatprep.subr.bf16.mxu0 %v12396_v58  ;;  %9668 = vmatprep.subr.bf16.mxu1 %v12398_v26 }
 0xf36   :  { %v5258_v1 = vpop.f32.mrb[28].mxu0  ;;  %v5329_v5 = vpop.f32.mrb[28].mxu1 }
 0xf37   :  { %v10353_v24 = vadd.f32 %v5258_v1, %v12282_v14  ;;  %v5260_v47 = vpop.f32.mrb[29].mxu0  ;;  %v5331_v61 = vpop.f32.mrb[29].mxu1  ;;  %v10369_v54 = vadd.f32 %v5329_v5, %v12290_v43 }
 0xf38   :  { %v10354_v22 = vadd.f32 %v5260_v47, %v12285_v30  ;;  %v10370_v31 = vadd.f32 %v5331_v61, %v12293_v8 }
 0xf39   :  { %v8373_v13 = vmul.f32 -1.442695, %v10353_v24  ;;  %v8375_v49 = vmul.f32 -1.442695, %v10369_v54  ;;  %v5855_v54 = vld [vmem:[#allocation17 + $0x30] sm:$0xff] }
 0xf3a   :  { %v8374_v18 = vmul.f32 -1.442695, %v10354_v22 }
 0xf3b   :  { %10727 = vpow2.f32 %v8373_v13 }
 0xf3c   :  { %10729 = vpow2.f32 %v8374_v18  ;;  %v5851_v18 = vld [vmem:[#allocation17 + $0x10] sm:$0xff] }
 0xf3d   :  { %10731 = vtanh.f32 %v10370_v31  ;;  %v5858_v31 = vld [vmem:[#allocation17 + $0x48] sm:$0xff] }
 0xf3e   :  { %10733 = vpow2.f32 %v8375_v49  ;;  %v5862_v49 = vld [vmem:[#allocation17 + $0x68] sm:$0xff] }
 0xf45   :  { %v10728_v58 = vpop.eup %10727 }
 0xf46   :  { %v5347_v42 = vadd.f32 1.0, %v10728_v58  ;;  %v10730_v26 = vpop.eup %10729  ;;  %v5860_v58 = vld [vmem:[#allocation17 + $0x58] sm:$0xff] }
 0xf47   :  { %v5348_v2 = vadd.f32 1.0, %v10730_v26  ;;  %v10732_v44 = vpop.eup %10731 }
 0xf48   :  { %10735 = vrcp.f32 %v5347_v42  ;;  %v10734_v27 = vpop.eup %10733  ;;  %v5864_v42 = vld [vmem:[#allocation17 + $0x78] sm:$0xff] }
 0xf49   :  { %10737 = vrcp.f32 %v5348_v2  ;;  %v5349_v24 = vadd.f32 1.0, %v10734_v27  ;;  %v9733_v27 = vpack.c.bf16 %v5855_v54, %v5851_v18  ;;  %v5885_v18 = vld [vmem:[#allocation17 + $0x120] sm:$0xff] }
 0xf4b   :  { %10739 = vrcp.f32 %v5349_v24  ;;  %v9703_v24 = vpack.c.bf16 %v5862_v49, %v5858_v31  ;;  %v5883_v49 = vld [vmem:[#allocation17 + $0x110] sm:$0xff] }
 0xf52   :  { %v10736_v62 = vpop.eup %10735 }
 0xf53   :  { %v5358_v41 = vmul.f32 %v10736_v62, %v10732_v44  ;;  %v10738_v1 = vpop.eup %10737  ;;  %v5857_v62 = vld [vmem:[#allocation17 + $0x40] sm:$0xff] }
 0xf54   :  { %v5357_v47 = vmul.f32 %v10738_v1, %v12545_v4  ;;  %v5853_v4 = vld [vmem:[#allocation17 + $0x20] sm:$0xff] }
 0xf55   :  { %v10740_v61 = vpop.eup %10739 }
 0xf56   :  { %v12591_v5 = vadd.f32 %v5358_v41, %v5357_v47  ;;  %v5861_v41 = vld [vmem:[#allocation17 + $0x60] sm:$0xff]  ;;  %v9735_v47 = vpack.c.bf16 %v5864_v42, %v5860_v58  ;;  %v5887_v58 = vld [vmem:[#allocation17 + $0x130] sm:$0xff]  ;;  %v5890_v42 = vld [vmem:[#allocation17 + $0x148] sm:$0xff] }
 0xf58   :  { %10741 = vtanh.f32 %v12591_v5 }
 0xf62   :  { %v10742_v22 = vpop.eup %10741 }
 0xf63   :  { %v12594_v13 = vmul.f32 %v10742_v22, %v10740_v61  ;;  %v5863_v61 = vld [vmem:[#allocation17 + $0x70] sm:$0xff]  ;;  %v5866_v22 = vld [vmem:[#allocation17 + $0x88] sm:$0xff] }
 0xf65   :  { %5496 = vmatmul.mubr.f32.vlgmr.msra.gmra.mrb[30].mxu0 %v12594_v13  ;;  %5567 = vmatmul.mubr.f32.vlgmr.msra.gmra.mrb[30].mxu1 %v12594_v13 }
 0xf66   :  { %9638 = vmatpush1.bf16.msra.mxu0 %v12400_v36  ;;  %9670 = vmatpush1.bf16.msra.mxu1 %v12403_v38  ;;  %v5850_v36 = vld [vmem:[#allocation17 + $0x8] sm:$0xff] }
 0xf67   :  { %9640 = vmatprep.subr.bf16.mxu0 %v12408_v6  ;;  %9672 = vmatprep.subr.bf16.mxu1 %v12410_v32  ;;  %v5854_v38 = vld [vmem:[#allocation17 + $0x28] sm:$0xff]  ;;  %v5852_v6 = vld [vmem:[#allocation17 + $0x18] sm:$0xff] }
 0xf68   :  { %5734 = vmatprep.mubr.f32.mxu0 %v11255_v0  ;;  %5805 = vmatprep.mubr.f32.mxu1 %v11255_v0  ;;  %v9699_v32 = vpack.c.bf16 %v5854_v38, %v5850_v36  ;;  %v5870_v36 = vld [vmem:[#allocation17 + $0xa8] sm:$0xff]  ;;  %v5868_v38 = vld [vmem:[#allocation17 + $0x98] sm:$0xff] }
 0xf6a   :  { %9642 = vmatpush1.bf16.msra.mxu0 %v12412_v59  ;;  %9674 = vmatpush1.bf16.msra.mxu1 %v12415_v11  ;;  %v5856_v59 = vld [vmem:[#allocation17 + $0x38] sm:$0xff] }
 0xf6b   :  { %9644 = vmatprep.subr.bf16.mxu0 %v12420_v46  ;;  %9676 = vmatprep.subr.bf16.mxu1 %v12422_v17  ;;  %v9731_v11 = vpack.c.bf16 %v5856_v59, %v5852_v6  ;;  %v5872_v6 = vld [vmem:[#allocation17 + $0xb8] sm:$0xff] }
 0xf6e   :  { %9646 = vmatpush1.bf16.msra.mxu0 %v12424_v53  ;;  %9678 = vmatpush1.bf16.msra.mxu1 %v12427_v9 }
 0xf6f   :  { %9648 = vmatprep.subr.bf16.mxu0 %v12432_v10  ;;  %9680 = vmatprep.subr.bf16.mxu1 %v12434_v34 }
 0xf72   :  { %9650 = vmatpush1.bf16.msra.mxu0 %v12436_v33  ;;  %9682 = vmatpush1.bf16.msra.mxu1 %v12439_v60 }
 0xf73   :  { %9652 = vmatprep.subr.bf16.mxu0 %v12444_v56  ;;  %9684 = vmatprep.subr.bf16.mxu1 %v12446_v7 }
 0xf76   :  { %9654 = vmatpush1.bf16.msra.mxu0 %v12448_v25  ;;  %9686 = vmatpush1.bf16.msra.mxu1 %v12451_v12 }
 0xf77   :  { %9656 = vmatprep.subr.bf16.mxu0 %v12456_v23  ;;  %9688 = vmatprep.subr.bf16.mxu1 %v12458_v35 }
 0xf7a   :  { %9658 = vmatpush1.bf16.msra.mxu0 %v12460_v37  ;;  %9690 = vmatpush1.bf16.msra.mxu1 %v12463_v63 }
 0xf7b   :  { %9660 = vmatprep.subr.bf16.mxu0 %v12467_v15  ;;  %9692 = vmatprep.subr.bf16.mxu1 %v12469_v50 }
 0xf7e   :  { %9662 = vmatpush1.bf16.msra.mxu0 %v12472_v28  ;;  %9694 = vmatpush1.bf16.msra.mxu1 %v12476_v20 }
 0xf7f   :  { %9664 = vmatprep.subr.bf16.mxu0 %v12478_v29  ;;  %9696 = vmatprep.subr.bf16.mxu1 %v12480_v40 }
 0xf82   :  { %9666 = vmatpush1.bf16.msra.mxu0 %v12483_v3  ;;  %9698 = vmatpush1.bf16.msra.mxu1 %v12487_v39  ;;  %v5849_v39 = vld [vmem:[#allocation17] sm:$0xff] }
 0xf83   :  { %9700 = vmatprep.subr.bf16.mxu0 %v9699_v32  ;;  %9732 = vmatprep.subr.bf16.mxu1 %v9731_v11  ;;  %v9701_v44 = vpack.c.bf16 %v5853_v4, %v5849_v39  ;;  %v9705_v32 = vpack.c.bf16 %v5861_v41, %v5857_v62  ;;  %v5865_v11 = vld [vmem:[#allocation17 + $0x80] sm:$0xff]  ;;  %v9749_v62 = vpack.c.bf16 %v5887_v58, %v5883_v49  ;;  %v6208_v49 = vld [vmem:[#allocation19 + $0x58] sm:$0xff] }
 0xf84   :  { %v5881_v4 = vld [vmem:[#allocation17 + $0x100] sm:$0xff] }
 0xf85   :  { %v5889_v41 = vld [vmem:[#allocation17 + $0x140] sm:$0xff] }
0x1038   :  { %v5497_v46 = vpop.f32.mrb[30].mxu0  ;;  %v5568_v17 = vpop.f32.mrb[30].mxu1 }
0x1039   :  { %v10355_v53 = vadd.f32 %v5497_v46, %v12282_v14  ;;  %v5499_v9 = vpop.f32.mrb[31].mxu0  ;;  %v5570_v10 = vpop.f32.mrb[31].mxu1  ;;  %v10371_v56 = vadd.f32 %v5568_v17, %v12290_v43  ;;  %v5869_v46 = vld [vmem:[#allocation17 + $0xa0] sm:$0xff]  ;;  %v9707_v17 = vpack.c.bf16 %v5870_v36, %v5866_v22  ;;  %v5895_v22 = vld [vmem:[#allocation17 + $0x170] sm:$0xff]  ;;  %v5898_v36 = vld [vmem:[#allocation17 + $0x188] sm:$0xff] }
0x103a   :  { %v10356_v34 = vadd.f32 %v5499_v9, %v12285_v30  ;;  %v10372_v7 = vadd.f32 %v5570_v10, %v12293_v8  ;;  %v5867_v9 = vld [vmem:[#allocation17 + $0x90] sm:$0xff] }
0x103b   :  { %v8376_v33 = vmul.f32 -1.442695, %v10355_v53  ;;  %v8378_v25 = vmul.f32 -1.442695, %v10371_v56  ;;  %v9739_v53 = vpack.c.bf16 %v5872_v6, %v5868_v38  ;;  %v5871_v10 = vld [vmem:[#allocation17 + $0xb0] sm:$0xff]  ;;  %v5880_v56 = vld [vmem:[#allocation17 + $0xf8] sm:$0xff] }
0x103c   :  { %v8377_v60 = vmul.f32 -1.442695, %v10356_v34  ;;  %v5874_v34 = vld [vmem:[#allocation17 + $0xc8] sm:$0xff]  ;;  %v5900_v6 = vld [vmem:[#allocation17 + $0x198] sm:$0xff] }
0x103d   :  { %10743 = vpow2.f32 %v8376_v33  ;;  %v5878_v33 = vld [vmem:[#allocation17 + $0xe8] sm:$0xff] }
0x103e   :  { %10745 = vpow2.f32 %v8377_v60  ;;  %v5876_v60 = vld [vmem:[#allocation17 + $0xd8] sm:$0xff]  ;;  %v5902_v38 = vld [vmem:[#allocation17 + $0x1a8] sm:$0xff] }
0x103f   :  { %10747 = vtanh.f32 %v10372_v7  ;;  %v9709_v7 = vpack.c.bf16 %v5869_v46, %v5865_v11  ;;  %v5897_v46 = vld [vmem:[#allocation17 + $0x180] sm:$0xff] }
0x1040   :  { %10749 = vpow2.f32 %v8378_v25  ;;  %v9741_v25 = vpack.c.bf16 %v5871_v10, %v5867_v9  ;;  %v5899_v10 = vld [vmem:[#allocation17 + $0x190] sm:$0xff] }
0x1047   :  { %v10744_v12 = vpop.eup %10743 }
0x1048   :  { %v5586_v23 = vadd.f32 1.0, %v10744_v12  ;;  %v10746_v35 = vpop.eup %10745  ;;  %v5873_v12 = vld [vmem:[#allocation17 + $0xc0] sm:$0xff] }
0x1049   :  { %v5587_v37 = vadd.f32 1.0, %v10746_v35  ;;  %v10748_v63 = vpop.eup %10747  ;;  %v9711_v35 = vpack.c.bf16 %v5878_v33, %v5874_v34  ;;  %v5903_v34 = vld [vmem:[#allocation17 + $0x1b0] sm:$0xff]  ;;  %v5906_v33 = vld [vmem:[#allocation17 + $0x1c8] sm:$0xff] }
0x104a   :  { %10751 = vrcp.f32 %v5586_v23  ;;  %v10750_v15 = vpop.eup %10749  ;;  %v5877_v23 = vld [vmem:[#allocation17 + $0xe0] sm:$0xff] }
0x104b   :  { %10753 = vrcp.f32 %v5587_v37  ;;  %v5588_v29 = vadd.f32 1.0, %v10750_v15  ;;  %v9743_v37 = vpack.c.bf16 %v5880_v56, %v5876_v60  ;;  %v5879_v15 = vld [vmem:[#allocation17 + $0xf0] sm:$0xff]  ;;  %v5910_v60 = vld [vmem:[#allocation17 + $0x1e8] sm:$0xff]  ;;  %v5908_v56 = vld [vmem:[#allocation17 + $0x1d8] sm:$0xff] }
0x104d   :  { %10755 = vrcp.f32 %v5588_v29  ;;  %v5888_v29 = vld [vmem:[#allocation17 + $0x138] sm:$0xff] }
0x1054   :  { %v10752_v50 = vpop.eup %10751 }
0x1055   :  { %v5597_v28 = vmul.f32 %v10752_v50, %v10748_v63  ;;  %v10754_v20 = vpop.eup %10753  ;;  %v5875_v63 = vld [vmem:[#allocation17 + $0xd0] sm:$0xff]  ;;  %v5882_v50 = vld [vmem:[#allocation17 + $0x108] sm:$0xff] }
0x1056   :  { %v5596_v40 = vmul.f32 %v10754_v20, %v12591_v5  ;;  %v5859_v5 = vld [vmem:[#allocation17 + $0x50] sm:$0xff]  ;;  %v5884_v20 = vld [vmem:[#allocation17 + $0x118] sm:$0xff]  ;;  %v9745_v39 = vpack.c.bf16 %v5879_v15, %v5875_v63  ;;  %v5909_v63 = vld [vmem:[#allocation17 + $0x1e0] sm:$0xff] }
0x1057   :  { %v10756_v26 = vpop.eup %10755  ;;  %v9737_v59 = vpack.c.bf16 %v5863_v61, %v5859_v5  ;;  %v9747_v31 = vpack.c.bf16 %v5888_v29, %v5884_v20  ;;  %v5891_v61 = vld [vmem:[#allocation17 + $0x150] sm:$0xff]  ;;  %v6201_v29 = vld [vmem:[#allocation19 + $0x20] sm:$0xff] }
0x1058   :  { %v12635_v3 = vadd.f32 %v5597_v28, %v5596_v40  ;;  %v5886_v28 = vld [vmem:[#allocation17 + $0x128] sm:$0xff]  ;;  %v9713_v40 = vpack.c.bf16 %v5877_v23, %v5873_v12  ;;  %v9753_v11 = vpack.c.bf16 %v5895_v22, %v5891_v61  ;;  %v9757_v12 = vpack.c.bf16 %v5903_v34, %v5899_v10  ;;  %v5905_v23 = vld [vmem:[#allocation17 + $0x1c0] sm:$0xff]  ;;  %v5907_v15 = vld [vmem:[#allocation17 + $0x1d0] sm:$0xff] }
0x1059   :  { %v9715_v54 = vpack.c.bf16 %v5886_v28, %v5882_v50  ;;  %v5911_v50 = vld [vmem:[#allocation17 + $0x1f0] sm:$0xff]  ;;  %v9729_v28 = vpack.c.bf16 %v5909_v63, %v5905_v23  ;;  %v6216_v61 = vld [vmem:[#allocation19 + $0x98] sm:$0xff]  ;;  %v6234_v63 = vld [vmem:[#allocation19 + $0x128] sm:$0xff] }
0x105a   :  { %10757 = vtanh.f32 %v12635_v3  ;;  %v9761_v20 = vpack.c.bf16 %v5911_v50, %v5907_v15  ;;  %v6224_v10 = vld [vmem:[#allocation19 + $0xd8] sm:$0xff]  ;;  %v6227_v23 = vld [vmem:[#allocation19 + $0xf0] sm:$0xff] }
0x105b   :  { %v6232_v15 = vld [vmem:[#allocation19 + $0x118] sm:$0xff] }
0x1064   :  { %v10758_v2 = vpop.eup %10757 }
0x1065   :  { %v12638_v1 = vmul.f32 %v10758_v2, %v10756_v26  ;;  %v5894_v26 = vld [vmem:[#allocation17 + $0x168] sm:$0xff]  ;;  %v5892_v2 = vld [vmem:[#allocation17 + $0x158] sm:$0xff] }
0x1067   :  { %5735 = vmatmul.mubr.f32.vlgmr.msra.gmra.mrb[32].mxu0 %v12638_v1  ;;  %5806 = vmatmul.mubr.f32.vlgmr.msra.gmra.mrb[32].mxu1 %v12638_v1 }
0x1068   :  { %9702 = vmatpush1.bf16.msra.mxu0 %v9701_v44  ;;  %9734 = vmatpush1.bf16.msra.mxu1 %v9733_v27  ;;  %v5896_v44 = vld [vmem:[#allocation17 + $0x178] sm:$0xff]  ;;  %v9717_v27 = vpack.c.bf16 %v5885_v18, %v5881_v4  ;;  %v6199_v4 = vld [vmem:[#allocation19 + $0x10] sm:$0xff] }
0x1069   :  { %9704 = vmatprep.subr.bf16.mxu0 %v9703_v24  ;;  %9736 = vmatprep.subr.bf16.mxu1 %v9735_v47  ;;  %v5893_v24 = vld [vmem:[#allocation17 + $0x160] sm:$0xff]  ;;  %v9719_v47 = vpack.c.bf16 %v5894_v26, %v5890_v42  ;;  %v9751_v5 = vpack.c.bf16 %v5896_v44, %v5892_v2  ;;  %v6203_v18 = vld [vmem:[#allocation19 + $0x30] sm:$0xff]  ;;  %v6212_v2 = vld [vmem:[#allocation19 + $0x78] sm:$0xff] }
0x106a   :  { %5999 = vmatprep.mubr.f32.mxu0 %v11255_v0  ;;  %6112 = vmatprep.mubr.f32.mxu1 %v11255_v0  ;;  %v6205_v42 = vld [vmem:[#allocation19 + $0x40] sm:$0xff] }
0x106b   :  { %v6209_v26 = vld [vmem:[#allocation19 + $0x60] sm:$0xff] }
0x106c   :  { %9706 = vmatpush1.bf16.msra.mxu0 %v9705_v32  ;;  %9738 = vmatpush1.bf16.msra.mxu1 %v9737_v59  ;;  %v5904_v32 = vld [vmem:[#allocation17 + $0x1b8] sm:$0xff]  ;;  %v9721_v59 = vpack.c.bf16 %v5893_v24, %v5889_v41  ;;  %v12686_v44 = vpack.c.bf16 %v6209_v26, %v6205_v42  ;;  %v6211_v41 = vld [vmem:[#allocation19 + $0x70] sm:$0xff] }
0x106d   :  { %9708 = vmatprep.subr.bf16.mxu0 %v9707_v17  ;;  %9740 = vmatprep.subr.bf16.mxu1 %v9739_v53  ;;  %v5901_v17 = vld [vmem:[#allocation17 + $0x1a0] sm:$0xff]  ;;  %v9723_v53 = vpack.c.bf16 %v5902_v38, %v5898_v36  ;;  %v9755_v9 = vpack.c.bf16 %v5904_v32, %v5900_v6  ;;  %v6220_v6 = vld [vmem:[#allocation19 + $0xb8] sm:$0xff] }
0x106e   :  { %v6213_v36 = vld [vmem:[#allocation19 + $0x80] sm:$0xff]  ;;  %v6240_v26 = vld [vmem:[#allocation19 + $0x158] sm:$0xff] }
0x106f   :  { %v6217_v38 = vld [vmem:[#allocation19 + $0xa0] sm:$0xff] }
0x1070   :  { %9710 = vmatpush1.bf16.msra.mxu0 %v9709_v7  ;;  %9742 = vmatpush1.bf16.msra.mxu1 %v9741_v25  ;;  %v5912_v7 = vld [vmem:[#allocation17 + $0x1f8] sm:$0xff]  ;;  %v9725_v25 = vpack.c.bf16 %v5901_v17, %v5897_v46  ;;  %v12698_v32 = vpack.c.bf16 %v6217_v38, %v6213_v36  ;;  %v6219_v46 = vld [vmem:[#allocation19 + $0xb0] sm:$0xff] }
0x1071   :  { %9712 = vmatprep.subr.bf16.mxu0 %v9711_v35  ;;  %9744 = vmatprep.subr.bf16.mxu1 %v9743_v37  ;;  %v9727_v35 = vpack.c.bf16 %v5910_v60, %v5906_v33  ;;  %v9759_v37 = vpack.c.bf16 %v5912_v7, %v5908_v56  ;;  %v6221_v33 = vld [vmem:[#allocation19 + $0xc0] sm:$0xff]  ;;  %v6228_v56 = vld [vmem:[#allocation19 + $0xf8] sm:$0xff] }
0x1072   :  { %v6225_v60 = vld [vmem:[#allocation19 + $0xe0] sm:$0xff] }
0x1073   :  { %v12710_v7 = vpack.c.bf16 %v6225_v60, %v6221_v33 }
0x1074   :  { %9714 = vmatpush1.bf16.msra.mxu0 %v9713_v40  ;;  %9746 = vmatpush1.bf16.msra.mxu1 %v9745_v39 }
0x1075   :  { %9716 = vmatprep.subr.bf16.mxu0 %v9715_v54  ;;  %9748 = vmatprep.subr.bf16.mxu1 %v9747_v31  ;;  %v6206_v54 = vld [vmem:[#allocation19 + $0x48] sm:$0xff] }
0x1076   :  { %v6210_v31 = vld [vmem:[#allocation19 + $0x68] sm:$0xff] }
0x1077   :  { %v12684_v58 = vpack.c.bf16 %v6210_v31, %v6206_v54  ;;  %v6237_v54 = vld [vmem:[#allocation19 + $0x140] sm:$0xff] }
0x1078   :  { %9718 = vmatpush1.bf16.msra.mxu0 %v9717_v27  ;;  %9750 = vmatpush1.bf16.msra.mxu1 %v9749_v62  ;;  %v12688_v27 = vpack.c.bf16 %v6212_v2, %v6208_v49  ;;  %v6207_v62 = vld [vmem:[#allocation19 + $0x50] sm:$0xff]  ;;  %v6241_v31 = vld [vmem:[#allocation19 + $0x160] sm:$0xff]  ;;  %v6244_v2 = vld [vmem:[#allocation19 + $0x178] sm:$0xff] }
0x1079   :  { %9720 = vmatprep.subr.bf16.mxu0 %v9719_v47  ;;  %9752 = vmatprep.subr.bf16.mxu1 %v9751_v5  ;;  %v12691_v24 = vpack.c.bf16 %v6211_v41, %v6207_v62  ;;  %v6214_v47 = vld [vmem:[#allocation19 + $0x88] sm:$0xff]  ;;  %v12733_v42 = vpack.c.bf16 %v6241_v31, %v6237_v54  ;;  %v6239_v62 = vld [vmem:[#allocation19 + $0x150] sm:$0xff]  ;;  %v12736_v41 = vpack.c.bf16 %v6244_v2, %v6240_v26 }
0x107a   :  { %v6218_v5 = vld [vmem:[#allocation19 + $0xa8] sm:$0xff] }
0x107b   :  { %v12696_v22 = vpack.c.bf16 %v6218_v5, %v6214_v47  ;;  %v6243_v47 = vld [vmem:[#allocation19 + $0x170] sm:$0xff]  ;;  %v6246_v5 = vld [vmem:[#allocation19 + $0x188] sm:$0xff] }
0x107c   :  { %9722 = vmatpush1.bf16.msra.mxu0 %v9721_v59  ;;  %9754 = vmatpush1.bf16.msra.mxu1 %v9753_v11  ;;  %v12700_v59 = vpack.c.bf16 %v6220_v6, %v6216_v61  ;;  %v6215_v11 = vld [vmem:[#allocation19 + $0x90] sm:$0xff]  ;;  %v6250_v61 = vld [vmem:[#allocation19 + $0x1a8] sm:$0xff]  ;;  %v12739_v36 = vpack.c.bf16 %v6243_v47, %v6239_v62  ;;  %v6245_v6 = vld [vmem:[#allocation19 + $0x180] sm:$0xff] }
0x107d   :  { %9724 = vmatprep.subr.bf16.mxu0 %v9723_v53  ;;  %9756 = vmatprep.subr.bf16.mxu1 %v9755_v9  ;;  %v12703_v17 = vpack.c.bf16 %v6219_v46, %v6215_v11  ;;  %v6222_v53 = vld [vmem:[#allocation19 + $0xc8] sm:$0xff]  ;;  %v12741_v38 = vpack.c.bf16 %v6250_v61, %v6246_v5  ;;  %v6249_v11 = vld [vmem:[#allocation19 + $0x1a0] sm:$0xff]  ;;  %v6248_v46 = vld [vmem:[#allocation19 + $0x198] sm:$0xff] }
0x107e   :  { %v6226_v9 = vld [vmem:[#allocation19 + $0xe8] sm:$0xff]  ;;  %v12745_v33 = vpack.c.bf16 %v6249_v11, %v6245_v6 }
0x107f   :  { %v12708_v34 = vpack.c.bf16 %v6226_v9, %v6222_v53  ;;  %v6252_v53 = vld [vmem:[#allocation19 + $0x1b8] sm:$0xff]  ;;  %v6247_v9 = vld [vmem:[#allocation19 + $0x190] sm:$0xff] }
0x1080   :  { %9726 = vmatpush1.bf16.msra.mxu0 %v9725_v25  ;;  %9758 = vmatpush1.bf16.msra.mxu1 %v9757_v12  ;;  %v12712_v25 = vpack.c.bf16 %v6228_v56, %v6224_v10  ;;  %v6223_v12 = vld [vmem:[#allocation19 + $0xd0] sm:$0xff]  ;;  %v12747_v60 = vpack.c.bf16 %v6252_v53, %v6248_v46  ;;  %v6254_v56 = vld [vmem:[#allocation19 + $0x1c8] sm:$0xff] }
0x1081   :  { %9728 = vmatprep.subr.bf16.mxu0 %v9727_v35  ;;  %9760 = vmatprep.subr.bf16.mxu1 %v9759_v37  ;;  %v12715_v35 = vpack.c.bf16 %v6227_v23, %v6223_v12  ;;  %v6230_v37 = vld [vmem:[#allocation19 + $0x108] sm:$0xff]  ;;  %v6251_v10 = vld [vmem:[#allocation19 + $0x1b0] sm:$0xff] }
0x1082   :  { %v12720_v50 = vpack.c.bf16 %v6234_v63, %v6230_v37  ;;  %v6258_v12 = vld [vmem:[#allocation19 + $0x1e8] sm:$0xff]  ;;  %v12751_v23 = vpack.c.bf16 %v6251_v10, %v6247_v9  ;;  %v6256_v63 = vld [vmem:[#allocation19 + $0x1d8] sm:$0xff] }
0x1083   :  { %v12753_v37 = vpack.c.bf16 %v6258_v12, %v6254_v56 }
0x1084   :  { %9730 = vmatpush1.bf16.msra.mxu0 %v9729_v28  ;;  %9762 = vmatpush1.bf16.msra.mxu1 %v9761_v20  ;;  %v6229_v28 = vld [vmem:[#allocation19 + $0x100] sm:$0xff] }
0x1085   :  { %v6233_v20 = vld [vmem:[#allocation19 + $0x120] sm:$0xff] }
0x1087   :  { %6000 = vmatmul.mubr.f32.vlgmr.msra.gmra.mrb[34].mxu0 %v12300_v45  ;;  %6113 = vmatmul.mubr.f32.vlgmr.msra.gmra.mrb[34].mxu1 %v12300_v45  ;;  %v6198_v45 = vld [vmem:[#allocation19 + $0x8] sm:$0xff] }
0x1088   :  { %6005 = vmatprep.mubr.f32.mxu0 %v11255_v0  ;;  %6118 = vmatprep.mubr.f32.mxu1 %v11255_v0 }
0x108b   :  { %6006 = vmatmul.mubr.f32.gmra.mrb[36].mxu0 %v12346_v19  ;;  %6119 = vmatmul.mubr.f32.gmra.mrb[36].mxu1 %v12346_v19  ;;  %v6202_v19 = vld [vmem:[#allocation19 + $0x28] sm:$0xff] }
0x108c   :  { %6011 = vmatprep.mubr.f32.mxu0 %v11255_v0  ;;  %6124 = vmatprep.mubr.f32.mxu1 %v11255_v0 }
0x108f   :  { %6012 = vmatmul.mubr.f32.gmra.mrb[38].mxu0 %v12390_v57  ;;  %6125 = vmatmul.mubr.f32.gmra.mrb[38].mxu1 %v12390_v57  ;;  %v6200_v57 = vld [vmem:[#allocation19 + $0x18] sm:$0xff] }
0x1090   :  { %6017 = vmatprep.mubr.f32.mxu0 %v11255_v0  ;;  %6130 = vmatprep.mubr.f32.mxu1 %v11255_v0 }
0x1093   :  { %6018 = vmatmul.mubr.f32.gmra.mrb[40].mxu0 %v12502_v16  ;;  %6131 = vmatmul.mubr.f32.gmra.mrb[40].mxu1 %v12502_v16  ;;  %v12672_v16 = vpack.c.bf16 %v6202_v19, %v6198_v45  ;;  %v6236_v45 = vld [vmem:[#allocation19 + $0x138] sm:$0xff]  ;;  %v12722_v19 = vpack.c.bf16 %v6233_v20, %v6229_v28  ;;  %v6253_v28 = vld [vmem:[#allocation19 + $0x1c0] sm:$0xff] }
0x1094   :  { %6023 = vmatprep.mubr.f32.mxu0 %v11255_v0  ;;  %6136 = vmatprep.mubr.f32.mxu1 %v11255_v0  ;;  %v6257_v20 = vld [vmem:[#allocation19 + $0x1e0] sm:$0xff] }
0x1095   :  { %9764 = vmatprep.subr.bf16.mxu0 %v12672_v16 }
0x1097   :  { %6024 = vmatmul.mubr.f32.gmra.mrb[42].mxu0 %v12548_v21  ;;  %6137 = vmatmul.mubr.f32.gmra.mrb[42].mxu1 %v12548_v21  ;;  %v6197_v21 = vld [vmem:[#allocation19] sm:$0xff] }
0x1098   :  { %6029 = vmatprep.mubr.f32.mxu0 %v11255_v0  ;;  %6142 = vmatprep.mubr.f32.mxu1 %v11255_v0  ;;  %v12674_v40 = vpack.c.bf16 %v6201_v29, %v6197_v21  ;;  %v6231_v21 = vld [vmem:[#allocation19 + $0x110] sm:$0xff] }
0x1099   :  { %v6235_v29 = vld [vmem:[#allocation19 + $0x130] sm:$0xff] }
0x109a   :  { %9766 = vmatpush1.bf16.msra.mxu0 %v12674_v40 }
0x109b   :  { %6030 = vmatmul.mubr.f32.gmra.mrb[44].mxu0 %v12594_v13  ;;  %6143 = vmatmul.mubr.f32.gmra.mrb[44].mxu1 %v12594_v13  ;;  %v6204_v13 = vld [vmem:[#allocation19 + $0x38] sm:$0xff] }
0x109c   :  { %6035 = vmatprep.mubr.f32.mxu0 %v11255_v0  ;;  %6148 = vmatprep.mubr.f32.mxu1 %v11255_v0  ;;  %v12676_v39 = vpack.c.bf16 %v6204_v13, %v6200_v57  ;;  %v12724_v57 = vpack.c.bf16 %v6236_v45, %v6232_v15  ;;  %v6238_v13 = vld [vmem:[#allocation19 + $0x148] sm:$0xff]  ;;  %v6260_v15 = vld [vmem:[#allocation19 + $0x1f8] sm:$0xff] }
0x109d   :  { %9768 = vmatprep.subr.bf16.mxu0 %v12684_v58  ;;  %v12759_v45 = vpack.c.bf16 %v6260_v15, %v6256_v63 }
0x109e   :  { %9796 = vmatprep.subr.bf16.mxu1 %v12676_v39  ;;  %9770 = vmatpush1.bf16.msra.mxu0 %v12686_v44 }
0x109f   :  { %6036 = vmatmul.mubr.f32.gmra.mrb[46].mxu0 %v12638_v1  ;;  %6149 = vmatmul.mubr.f32.gmra.mrb[46].mxu1 %v12638_v1  ;;  %v12679_v1 = vpack.c.bf16 %v6203_v18, %v6199_v4  ;;  %v12727_v4 = vpack.c.bf16 %v6235_v29, %v6231_v21  ;;  %v6242_v18 = vld [vmem:[#allocation19 + $0x168] sm:$0xff]  ;;  %v6255_v21 = vld [vmem:[#allocation19 + $0x1d0] sm:$0xff]  ;;  %v12761_v29 = vpack.c.bf16 %v6257_v20, %v6253_v28 }
0x10a0   :  { %6041 = vmatprep.mubr.f32.mxu0 %v11255_v0  ;;  %6154 = vmatprep.mubr.f32.mxu1 %v11255_v0  ;;  %v12731_v49 = vpack.c.bf16 %v6242_v18, %v6238_v13  ;;  %v6259_v13 = vld [vmem:[#allocation19 + $0x1f0] sm:$0xff] }
0x10a1   :  { %9798 = vmatpush1.bf16.msra.mxu1 %v12679_v1  ;;  %9772 = vmatprep.subr.bf16.mxu0 %v12696_v22  ;;  %v12764_v18 = vpack.c.bf16 %v6259_v13, %v6255_v21 }
0x10a2   :  { %9800 = vmatprep.subr.bf16.mxu1 %v12688_v27  ;;  %9774 = vmatpush1.bf16.msra.mxu0 %v12698_v32 }
0x10a3   :  { %9776 = vmatprep.subr.bf16.mxu0 %v12708_v34 }
0x10a5   :  { %9802 = vmatpush1.bf16.msra.mxu1 %v12691_v24 }
0x10a6   :  { %9804 = vmatprep.subr.bf16.mxu1 %v12700_v59  ;;  %9778 = vmatpush1.bf16.msra.mxu0 %v12710_v7 }
0x10a7   :  { %9780 = vmatprep.subr.bf16.mxu0 %v12720_v50 }
0x10a9   :  { %9806 = vmatpush1.bf16.msra.mxu1 %v12703_v17 }
0x10aa   :  { %9808 = vmatprep.subr.bf16.mxu1 %v12712_v25  ;;  %9782 = vmatpush1.bf16.msra.mxu0 %v12722_v19 }
0x10ab   :  { %9784 = vmatprep.subr.bf16.mxu0 %v12731_v49 }
0x10ad   :  { %9810 = vmatpush1.bf16.msra.mxu1 %v12715_v35 }
0x10ae   :  { %9812 = vmatprep.subr.bf16.mxu1 %v12724_v57  ;;  %9786 = vmatpush1.bf16.msra.mxu0 %v12733_v42 }
0x10af   :  { %9788 = vmatprep.subr.bf16.mxu0 %v12741_v38 }
0x10b1   :  { %9814 = vmatpush1.bf16.msra.mxu1 %v12727_v4 }
0x10b2   :  { %9816 = vmatprep.subr.bf16.mxu1 %v12736_v41  ;;  %9790 = vmatpush1.bf16.msra.mxu0 %v12745_v33 }
0x10b3   :  { %9792 = vmatprep.subr.bf16.mxu0 %v12753_v37 }
0x10b5   :  { %9818 = vmatpush1.bf16.msra.mxu1 %v12739_v36 }
0x10b6   :  { %9820 = vmatprep.subr.bf16.mxu1 %v12747_v60  ;;  %9794 = vmatpush1.bf16.msra.mxu0 %v12761_v29 }
0x10b7   :  { %9828 = vmatprep.subr.bf16.mxu0 %v12672_v16 }
0x10b9   :  { %9822 = vmatpush1.bf16.msra.mxu1 %v12751_v23 }
0x10ba   :  { %9824 = vmatprep.subr.bf16.mxu1 %v12759_v45 }
0x10bd   :  { %9826 = vmatpush1.bf16.msra.mxu1 %v12764_v18 }
0x10be   :  { %9860 = vmatprep.subr.bf16.mxu1 %v12676_v39 }
0x113a   :  { %v5736_v54 = vpop.f32.mrb[32].mxu0  ;;  %v5807_v31 = vpop.f32.mrb[32].mxu1 }
0x113b   :  { %v10357_v26 = vadd.f32 %v5736_v54, %v12282_v14  ;;  %v5738_v2 = vpop.f32.mrb[33].mxu0  ;;  %v5809_v62 = vpop.f32.mrb[33].mxu1  ;;  %v10373_v6 = vadd.f32 %v5807_v31, %v12290_v43 }
0x113c   :  { %v10358_v47 = vadd.f32 %v5738_v2, %v12285_v30  ;;  %v10374_v11 = vadd.f32 %v5809_v62, %v12293_v8 }
0x113d   :  { %v8379_v5 = vmul.f32 -1.442695, %v10357_v26  ;;  %v8381_v46 = vmul.f32 -1.442695, %v10373_v6 }
0x113e   :  { %v8380_v61 = vmul.f32 -1.442695, %v10358_v47 }
0x113f   :  { %10759 = vpow2.f32 %v8379_v5 }
0x1140   :  { %10761 = vpow2.f32 %v8380_v61 }
0x1141   :  { %10763 = vtanh.f32 %v10374_v11 }
0x1142   :  { %10765 = vpow2.f32 %v8381_v46 }
0x1149   :  { %v10760_v53 = vpop.eup %10759 }
0x114a   :  { %v5825_v9 = vadd.f32 1.0, %v10760_v53  ;;  %v10762_v10 = vpop.eup %10761 }
0x114b   :  { %v5826_v14 = vadd.f32 1.0, %v10762_v10  ;;  %v10764_v56 = vpop.eup %10763 }
0x114c   :  { %10767 = vrcp.f32 %v5825_v9  ;;  %v10766_v12 = vpop.eup %10765 }
0x114d   :  { %10769 = vrcp.f32 %v5826_v14  ;;  %v5827_v28 = vadd.f32 1.0, %v10766_v12 }
0x114f   :  { %10771 = vrcp.f32 %v5827_v28 }
0x1156   :  { %v10768_v30 = vpop.eup %10767 }
0x1157   :  { %v5836_v63 = vmul.f32 %v10768_v30, %v10764_v56  ;;  %v10770_v15 = vpop.eup %10769 }
0x1158   :  { %v5835_v20 = vmul.f32 %v10770_v15, %v12635_v3  ;;  %v5913_v3 = vld [vmem:[#allocation20] sm:$0xf] }
0x1159   :  { %v10772_v8 = vpop.eup %10771  ;;  %v12814_v54 = vrot.slane %v5913_v3, %v11691_v48  ;;  %v12817_v31 = vrot.slane %v5913_v3, %v11696_v55  ;;  %v12822_v46 = vrot.slane %v5913_v3, %v11703_v51  ;;  %v12825_v48 = vrot.slane %v5913_v3, %v11706_v52 }
0x115a   :  { %v5837_v43 = vadd.f32 %v5836_v63, %v5835_v20 }
0x115c   :  { %10773 = vtanh.f32 %v5837_v43 }
0x1166   :  { %v10774_v21 = vpop.eup %10773 }
0x1167   :  { %v5839_v13 = vmul.f32 %v10774_v21, %v10772_v8 }
0x1169   :  { %6042 = vmatmul.mubr.f32.gmra.mrb[48].mxu0 %v5839_v13  ;;  %6155 = vmatmul.mubr.f32.gmra.mrb[48].mxu1 %v5839_v13 }
0x116a   :  { %6325 = vmatprep.mubr.f32.mxu0 %v11255_v0  ;;  %6396 = vmatprep.mubr.f32.mxu1 %v11255_v0 }
0x116d   :  { %6326 = vmatmul.mubr.f32.vlgmr.msra.gmra.mrb[34].mxu0 %v11255_v0  ;;  %6397 = vmatmul.mubr.f32.vlgmr.msra.gmra.mrb[34].mxu1 %v11255_v0 }
0x116e   :  { %9830 = vmatpush1.bf16.msra.mxu0 %v12674_v40  ;;  %9862 = vmatpush1.bf16.msra.mxu1 %v12679_v1 }
0x116f   :  { %9832 = vmatprep.subr.bf16.mxu0 %v12684_v58  ;;  %9864 = vmatprep.subr.bf16.mxu1 %v12688_v27 }
0x1170   :  { %6564 = vmatprep.mubr.f32.mxu0 %v11255_v0  ;;  %6635 = vmatprep.mubr.f32.mxu1 %v11255_v0 }
0x1172   :  { %9834 = vmatpush1.bf16.msra.mxu0 %v12686_v44  ;;  %9866 = vmatpush1.bf16.msra.mxu1 %v12691_v24 }
0x1173   :  { %9836 = vmatprep.subr.bf16.mxu0 %v12696_v22  ;;  %9868 = vmatprep.subr.bf16.mxu1 %v12700_v59 }
0x1176   :  { %9838 = vmatpush1.bf16.msra.mxu0 %v12698_v32  ;;  %9870 = vmatpush1.bf16.msra.mxu1 %v12703_v17 }
0x1177   :  { %9840 = vmatprep.subr.bf16.mxu0 %v12708_v34  ;;  %9872 = vmatprep.subr.bf16.mxu1 %v12712_v25 }
0x117a   :  { %9842 = vmatpush1.bf16.msra.mxu0 %v12710_v7  ;;  %9874 = vmatpush1.bf16.msra.mxu1 %v12715_v35 }
0x117b   :  { %9844 = vmatprep.subr.bf16.mxu0 %v12720_v50  ;;  %9876 = vmatprep.subr.bf16.mxu1 %v12724_v57 }
0x117e   :  { %9846 = vmatpush1.bf16.msra.mxu0 %v12722_v19  ;;  %9878 = vmatpush1.bf16.msra.mxu1 %v12727_v4 }
0x117f   :  { %9848 = vmatprep.subr.bf16.mxu0 %v12731_v49  ;;  %9880 = vmatprep.subr.bf16.mxu1 %v12736_v41 }
0x1182   :  { %9850 = vmatpush1.bf16.msra.mxu0 %v12733_v42  ;;  %9882 = vmatpush1.bf16.msra.mxu1 %v12739_v36 }
0x1183   :  { %9852 = vmatprep.subr.bf16.mxu0 %v12741_v38  ;;  %9884 = vmatprep.subr.bf16.mxu1 %v12747_v60 }
0x1186   :  { %9854 = vmatpush1.bf16.msra.mxu0 %v12745_v33  ;;  %9886 = vmatpush1.bf16.msra.mxu1 %v12751_v23 }
0x1187   :  { %9856 = vmatprep.subr.bf16.mxu0 %v12753_v37  ;;  %9888 = vmatprep.subr.bf16.mxu1 %v12759_v45 }
0x118a   :  { %9858 = vmatpush1.bf16.msra.mxu0 %v12761_v29  ;;  %9890 = vmatpush1.bf16.msra.mxu1 %v12764_v18 }
0x118b   :  { %9892 = vmatprep.subr.bf16.mxu0 %v12672_v16  ;;  %9924 = vmatprep.subr.bf16.mxu1 %v12676_v39 }
0x1240   :  { %v6327_v26 = vpop.f32.mrb[34].mxu0  ;;  %v6398_v2 = vpop.f32.mrb[34].mxu1 }
0x1241   :  { %v10375_v62 = vadd.f32 %v6327_v26, %v12814_v54  ;;  %v6329_v47 = vpop.f32.mrb[35].mxu0  ;;  %v6400_v5 = vpop.f32.mrb[35].mxu1  ;;  %v10391_v55 = vadd.f32 %v6398_v2, %v12822_v46 }
0x1242   :  { %v10376_v61 = vadd.f32 %v6329_v47, %v12817_v31  ;;  %v10392_v53 = vadd.f32 %v6400_v5, %v12825_v48 }
0x1243   :  { %v8382_v6 = vmul.f32 -1.442695, %v10375_v62  ;;  %v8384_v9 = vmul.f32 -1.442695, %v10391_v55 }
0x1244   :  { %v8383_v11 = vmul.f32 -1.442695, %v10376_v61 }
0x1245   :  { %10775 = vpow2.f32 %v8382_v6 }
0x1246   :  { %10777 = vpow2.f32 %v8383_v11 }
0x1247   :  { %10779 = vtanh.f32 %v10392_v53 }
0x1248   :  { %10781 = vpow2.f32 %v8384_v9 }
0x124f   :  { %v10776_v10 = vpop.eup %10775 }
0x1250   :  { %v6416_v14 = vadd.f32 1.0, %v10776_v10  ;;  %v10778_v56 = vpop.eup %10777 }
0x1251   :  { %v6417_v12 = vadd.f32 1.0, %v10778_v56  ;;  %v10780_v30 = vpop.eup %10779 }
0x1252   :  { %10783 = vrcp.f32 %v6416_v14  ;;  %v10782_v51 = vpop.eup %10781 }
0x1253   :  { %10785 = vrcp.f32 %v6417_v12  ;;  %v6418_v52 = vadd.f32 1.0, %v10782_v51 }
0x1255   :  { %10787 = vrcp.f32 %v6418_v52 }
0x125c   :  { %v10784_v63 = vpop.eup %10783 }
0x125d   :  { %v6427_v15 = vmul.f32 %v10784_v63, %v10780_v30  ;;  %v10786_v28 = vpop.eup %10785 }
0x125e   :  { %v6426_v20 = vmul.f32 0.0, %v10786_v28 }
0x125f   :  { %v10788_v8 = vpop.eup %10787 }
0x1260   :  { %v12829_v43 = vadd.f32 %v6427_v15, %v6426_v20 }
0x1262   :  { %10789 = vtanh.f32 %v12829_v43 }
0x126c   :  { %v10790_v21 = vpop.eup %10789 }
0x126d   :  { %v12832_v13 = vmul.f32 %v10790_v21, %v10788_v8  ;;  %v7153_v21 = vld [vmem:[#allocation19] sm:$0xff] }
0x126f   :  { %6565 = vmatmul.mubr.f32.vlgmr.msra.gmra.mrb[36].mxu0 %v12832_v13  ;;  %6636 = vmatmul.mubr.f32.vlgmr.msra.gmra.mrb[36].mxu1 %v12832_v13 }
0x1270   :  { %9894 = vmatpush1.bf16.msra.mxu0 %v12674_v40  ;;  %9926 = vmatpush1.bf16.msra.mxu1 %v12679_v1 }
0x1271   :  { %9896 = vmatprep.subr.bf16.mxu0 %v12684_v58  ;;  %9928 = vmatprep.subr.bf16.mxu1 %v12688_v27 }
0x1272   :  { %6803 = vmatprep.mubr.f32.mxu0 %v11255_v0  ;;  %6874 = vmatprep.mubr.f32.mxu1 %v11255_v0 }
0x1274   :  { %9898 = vmatpush1.bf16.msra.mxu0 %v12686_v44  ;;  %9930 = vmatpush1.bf16.msra.mxu1 %v12691_v24 }
0x1275   :  { %9900 = vmatprep.subr.bf16.mxu0 %v12696_v22  ;;  %9932 = vmatprep.subr.bf16.mxu1 %v12700_v59 }
0x1278   :  { %9902 = vmatpush1.bf16.msra.mxu0 %v12698_v32  ;;  %9934 = vmatpush1.bf16.msra.mxu1 %v12703_v17 }
0x1279   :  { %9904 = vmatprep.subr.bf16.mxu0 %v12708_v34  ;;  %9936 = vmatprep.subr.bf16.mxu1 %v12712_v25 }
0x127c   :  { %9906 = vmatpush1.bf16.msra.mxu0 %v12710_v7  ;;  %9938 = vmatpush1.bf16.msra.mxu1 %v12715_v35 }
0x127d   :  { %9908 = vmatprep.subr.bf16.mxu0 %v12720_v50  ;;  %9940 = vmatprep.subr.bf16.mxu1 %v12724_v57 }
0x1280   :  { %9910 = vmatpush1.bf16.msra.mxu0 %v12722_v19  ;;  %9942 = vmatpush1.bf16.msra.mxu1 %v12727_v4 }
0x1281   :  { %9912 = vmatprep.subr.bf16.mxu0 %v12731_v49  ;;  %9944 = vmatprep.subr.bf16.mxu1 %v12736_v41 }
0x1284   :  { %9914 = vmatpush1.bf16.msra.mxu0 %v12733_v42  ;;  %9946 = vmatpush1.bf16.msra.mxu1 %v12739_v36 }
0x1285   :  { %9916 = vmatprep.subr.bf16.mxu0 %v12741_v38  ;;  %9948 = vmatprep.subr.bf16.mxu1 %v12747_v60 }
0x1288   :  { %9918 = vmatpush1.bf16.msra.mxu0 %v12745_v33  ;;  %9950 = vmatpush1.bf16.msra.mxu1 %v12751_v23 }
0x1289   :  { %9920 = vmatprep.subr.bf16.mxu0 %v12753_v37  ;;  %9952 = vmatprep.subr.bf16.mxu1 %v12759_v45 }
0x128c   :  { %9922 = vmatpush1.bf16.msra.mxu0 %v12761_v29  ;;  %9954 = vmatpush1.bf16.msra.mxu1 %v12764_v18 }
0x128d   :  { %9956 = vmatprep.subr.bf16.mxu0 %v12672_v16  ;;  %9988 = vmatprep.subr.bf16.mxu1 %v12676_v39 }
0x1342   :  { %v6566_v3 = vpop.f32.mrb[36].mxu0  ;;  %v6637_v26 = vpop.f32.mrb[36].mxu1 }
0x1343   :  { %v10377_v2 = vadd.f32 %v6566_v3, %v12814_v54  ;;  %v6568_v62 = vpop.f32.mrb[37].mxu0  ;;  %v6639_v47 = vpop.f32.mrb[37].mxu1  ;;  %v10393_v11 = vadd.f32 %v6637_v26, %v12822_v46  ;;  %v7157_v3 = vld [vmem:[#allocation19 + $0x20] sm:$0xff] }
0x1344   :  { %v10378_v5 = vadd.f32 %v6568_v62, %v12817_v31  ;;  %v10394_v55 = vadd.f32 %v6639_v47, %v12825_v48  ;;  %v7155_v62 = vld [vmem:[#allocation19 + $0x10] sm:$0xff] }
0x1345   :  { %v8385_v61 = vmul.f32 -1.442695, %v10377_v2  ;;  %v8387_v53 = vmul.f32 -1.442695, %v10393_v11  ;;  %v12932_v2 = vpack.c.bf16 %v7157_v3, %v7153_v21  ;;  %v7159_v47 = vld [vmem:[#allocation19 + $0x30] sm:$0xff]  ;;  %v7164_v11 = vld [vmem:[#allocation19 + $0x58] sm:$0xff] }
0x1346   :  { %v8386_v6 = vmul.f32 -1.442695, %v10378_v5  ;;  %v12935_v5 = vpack.c.bf16 %v7159_v47, %v7155_v62  ;;  %v7194_v3 = vld [vmem:[#allocation19 + $0x148] sm:$0xff]  ;;  %v7196_v47 = vld [vmem:[#allocation19 + $0x158] sm:$0xff] }
0x1347   :  { %10791 = vpow2.f32 %v8385_v61  ;;  %v7162_v61 = vld [vmem:[#allocation19 + $0x48] sm:$0xff] }
0x1348   :  { %10793 = vpow2.f32 %v8386_v6  ;;  %v7166_v6 = vld [vmem:[#allocation19 + $0x68] sm:$0xff] }
0x1349   :  { %10795 = vtanh.f32 %v10394_v55  ;;  %v12940_v55 = vpack.c.bf16 %v7166_v6, %v7162_v61  ;;  %v7198_v62 = vld [vmem:[#allocation19 + $0x168] sm:$0xff]  ;;  %v7200_v6 = vld [vmem:[#allocation19 + $0x178] sm:$0xff] }
0x134a   :  { %10797 = vpow2.f32 %v8387_v53  ;;  %v7168_v53 = vld [vmem:[#allocation19 + $0x78] sm:$0xff]  ;;  %v12988_v61 = vpack.c.bf16 %v7198_v62, %v7194_v3 }
0x1351   :  { %v10792_v16 = vpop.eup %10791 }
0x1352   :  { %v6655_v9 = vadd.f32 1.0, %v10792_v16  ;;  %v10794_v39 = vpop.eup %10793  ;;  %v7161_v16 = vld [vmem:[#allocation19 + $0x40] sm:$0xff] }
0x1353   :  { %v6656_v10 = vadd.f32 1.0, %v10794_v39  ;;  %v10796_v14 = vpop.eup %10795  ;;  %v12942_v39 = vpack.c.bf16 %v7168_v53, %v7164_v11  ;;  %v7193_v11 = vld [vmem:[#allocation19 + $0x140] sm:$0xff] }
0x1354   :  { %10799 = vrcp.f32 %v6655_v9  ;;  %v10798_v56 = vpop.eup %10797  ;;  %v7165_v9 = vld [vmem:[#allocation19 + $0x60] sm:$0xff] }
0x1355   :  { %10801 = vrcp.f32 %v6656_v10  ;;  %v6657_v63 = vadd.f32 1.0, %v10798_v56  ;;  %v12944_v10 = vpack.c.bf16 %v7165_v9, %v7161_v16  ;;  %v7167_v56 = vld [vmem:[#allocation19 + $0x70] sm:$0xff]  ;;  %v7197_v53 = vld [vmem:[#allocation19 + $0x160] sm:$0xff]  ;;  %v12990_v16 = vpack.c.bf16 %v7200_v6, %v7196_v47 }
0x1356   :  { %v12992_v9 = vpack.c.bf16 %v7197_v53, %v7193_v11 }
0x1357   :  { %10803 = vrcp.f32 %v6657_v63  ;;  %v7172_v63 = vld [vmem:[#allocation19 + $0x98] sm:$0xff] }
0x135e   :  { %v10800_v12 = vpop.eup %10799 }
0x135f   :  { %v6666_v30 = vmul.f32 %v10800_v12, %v10796_v14  ;;  %v10802_v51 = vpop.eup %10801  ;;  %v7163_v14 = vld [vmem:[#allocation19 + $0x50] sm:$0xff] }
0x1360   :  { %v6665_v15 = vmul.f32 %v10802_v51, %v12829_v43  ;;  %v7160_v43 = vld [vmem:[#allocation19 + $0x38] sm:$0xff]  ;;  %v12947_v12 = vpack.c.bf16 %v7167_v56, %v7163_v14  ;;  %v7174_v51 = vld [vmem:[#allocation19 + $0xa8] sm:$0xff]  ;;  %v7195_v14 = vld [vmem:[#allocation19 + $0x150] sm:$0xff] }
0x1361   :  { %v10804_v52 = vpop.eup %10803  ;;  %v7199_v56 = vld [vmem:[#allocation19 + $0x170] sm:$0xff] }
0x1362   :  { %v12875_v28 = vadd.f32 %v6666_v30, %v6665_v15  ;;  %v7170_v30 = vld [vmem:[#allocation19 + $0x88] sm:$0xff] }
0x1363   :  { %v12952_v15 = vpack.c.bf16 %v7174_v51, %v7170_v30  ;;  %v7202_v30 = vld [vmem:[#allocation19 + $0x188] sm:$0xff]  ;;  %v12995_v51 = vpack.c.bf16 %v7199_v56, %v7195_v14 }
0x1364   :  { %10805 = vtanh.f32 %v12875_v28 }
0x136e   :  { %v10806_v20 = vpop.eup %10805 }
0x136f   :  { %v12878_v8 = vmul.f32 %v10806_v20, %v10804_v52  ;;  %v7169_v52 = vld [vmem:[#allocation19 + $0x80] sm:$0xff] }
0x1370   :  { %v7173_v20 = vld [vmem:[#allocation19 + $0xa0] sm:$0xff] }
0x1371   :  { %6804 = vmatmul.mubr.f32.vlgmr.msra.gmra.mrb[38].mxu0 %v12878_v8  ;;  %6875 = vmatmul.mubr.f32.vlgmr.msra.gmra.mrb[38].mxu1 %v12878_v8 }
0x1372   :  { %9958 = vmatpush1.bf16.msra.mxu0 %v12674_v40  ;;  %9990 = vmatpush1.bf16.msra.mxu1 %v12679_v1 }
0x1373   :  { %9960 = vmatprep.subr.bf16.mxu0 %v12684_v58  ;;  %9992 = vmatprep.subr.bf16.mxu1 %v12688_v27 }
0x1374   :  { %7042 = vmatprep.mubr.f32.mxu0 %v11255_v0  ;;  %7113 = vmatprep.mubr.f32.mxu1 %v11255_v0 }
0x1376   :  { %9962 = vmatpush1.bf16.msra.mxu0 %v12686_v44  ;;  %9994 = vmatpush1.bf16.msra.mxu1 %v12691_v24 }
0x1377   :  { %9964 = vmatprep.subr.bf16.mxu0 %v12696_v22  ;;  %9996 = vmatprep.subr.bf16.mxu1 %v12700_v59 }
0x137a   :  { %9966 = vmatpush1.bf16.msra.mxu0 %v12698_v32  ;;  %9998 = vmatpush1.bf16.msra.mxu1 %v12703_v17 }
0x137b   :  { %9968 = vmatprep.subr.bf16.mxu0 %v12708_v34  ;;  %10000 = vmatprep.subr.bf16.mxu1 %v12712_v25 }
0x137e   :  { %9970 = vmatpush1.bf16.msra.mxu0 %v12710_v7  ;;  %10002 = vmatpush1.bf16.msra.mxu1 %v12715_v35 }
0x137f   :  { %9972 = vmatprep.subr.bf16.mxu0 %v12720_v50  ;;  %10004 = vmatprep.subr.bf16.mxu1 %v12724_v57 }
0x1382   :  { %9974 = vmatpush1.bf16.msra.mxu0 %v12722_v19  ;;  %10006 = vmatpush1.bf16.msra.mxu1 %v12727_v4 }
0x1383   :  { %9976 = vmatprep.subr.bf16.mxu0 %v12731_v49  ;;  %10008 = vmatprep.subr.bf16.mxu1 %v12736_v41 }
0x1386   :  { %9978 = vmatpush1.bf16.msra.mxu0 %v12733_v42  ;;  %10010 = vmatpush1.bf16.msra.mxu1 %v12739_v36 }
0x1387   :  { %9980 = vmatprep.subr.bf16.mxu0 %v12741_v38  ;;  %10012 = vmatprep.subr.bf16.mxu1 %v12747_v60 }
0x138a   :  { %9982 = vmatpush1.bf16.msra.mxu0 %v12745_v33  ;;  %10014 = vmatpush1.bf16.msra.mxu1 %v12751_v23 }
0x138b   :  { %9984 = vmatprep.subr.bf16.mxu0 %v12753_v37  ;;  %10016 = vmatprep.subr.bf16.mxu1 %v12759_v45  ;;  %v7154_v37 = vld [vmem:[#allocation19 + $0x8] sm:$0xff] }
0x138c   :  { %v7158_v45 = vld [vmem:[#allocation19 + $0x28] sm:$0xff] }
0x138e   :  { %9986 = vmatpush1.bf16.msra.mxu0 %v12761_v29  ;;  %10018 = vmatpush1.bf16.msra.mxu1 %v12764_v18  ;;  %v7156_v29 = vld [vmem:[#allocation19 + $0x18] sm:$0xff]  ;;  %v12928_v18 = vpack.c.bf16 %v7158_v45, %v7154_v37 }
0x138f   :  { %v12930_v26 = vpack.c.bf16 %v7160_v43, %v7156_v29  ;;  %v7187_v29 = vld [vmem:[#allocation19 + $0x110] sm:$0xff] }
0x1390   :  { %10020 = vmatprep.subr.bf16.mxu0 %v12928_v18  ;;  %v7191_v43 = vld [vmem:[#allocation19 + $0x130] sm:$0xff] }
0x1391   :  { %10052 = vmatprep.subr.bf16.mxu1 %v12930_v26  ;;  %v12983_v21 = vpack.c.bf16 %v7191_v43, %v7187_v29  ;;  %v7215_v29 = vld [vmem:[#allocation19 + $0x1f0] sm:$0xff] }
0x1444   :  { %v6805_v40 = vpop.f32.mrb[38].mxu0  ;;  %v6876_v1 = vpop.f32.mrb[38].mxu1 }
0x1445   :  { %v10379_v58 = vadd.f32 %v6805_v40, %v12814_v54  ;;  %v6807_v44 = vpop.f32.mrb[39].mxu0  ;;  %v6878_v27 = vpop.f32.mrb[39].mxu1  ;;  %v10395_v59 = vadd.f32 %v6876_v1, %v12822_v46  ;;  %v12956_v1 = vpack.c.bf16 %v7173_v20, %v7169_v52  ;;  %v7208_v52 = vld [vmem:[#allocation19 + $0x1b8] sm:$0xff] }
0x1446   :  { %v10380_v24 = vadd.f32 %v6807_v44, %v12817_v31  ;;  %v10396_v17 = vadd.f32 %v6878_v27, %v12825_v48  ;;  %v7175_v44 = vld [vmem:[#allocation19 + $0xb0] sm:$0xff] }
0x1447   :  { %v8388_v22 = vmul.f32 -1.442695, %v10379_v58  ;;  %v8390_v34 = vmul.f32 -1.442695, %v10395_v59  ;;  %v7171_v58 = vld [vmem:[#allocation19 + $0x90] sm:$0xff] }
0x1448   :  { %v8389_v32 = vmul.f32 -1.442695, %v10380_v24  ;;  %v12959_v27 = vpack.c.bf16 %v7175_v44, %v7171_v58  ;;  %v7178_v24 = vld [vmem:[#allocation19 + $0xc8] sm:$0xff]  ;;  %v7201_v44 = vld [vmem:[#allocation19 + $0x180] sm:$0xff] }
0x1449   :  { %10807 = vpow2.f32 %v8388_v22  ;;  %v7182_v22 = vld [vmem:[#allocation19 + $0xe8] sm:$0xff] }
0x144a   :  { %10809 = vpow2.f32 %v8389_v32  ;;  %v7180_v32 = vld [vmem:[#allocation19 + $0xd8] sm:$0xff]  ;;  %v12964_v59 = vpack.c.bf16 %v7182_v22, %v7178_v24  ;;  %v7205_v24 = vld [vmem:[#allocation19 + $0x1a0] sm:$0xff]  ;;  %v7203_v22 = vld [vmem:[#allocation19 + $0x190] sm:$0xff] }
0x144b   :  { %10811 = vtanh.f32 %v10396_v17  ;;  %v7184_v17 = vld [vmem:[#allocation19 + $0xf8] sm:$0xff] }
0x144c   :  { %10813 = vpow2.f32 %v8390_v34  ;;  %v7177_v34 = vld [vmem:[#allocation19 + $0xc0] sm:$0xff] }
0x1453   :  { %v10808_v7 = vpop.eup %10807 }
0x1454   :  { %v6894_v25 = vadd.f32 1.0, %v10808_v7  ;;  %v10810_v35 = vpop.eup %10809  ;;  %v7181_v7 = vld [vmem:[#allocation19 + $0xe0] sm:$0xff] }
0x1455   :  { %v6895_v50 = vadd.f32 1.0, %v10810_v35  ;;  %v10812_v19 = vpop.eup %10811  ;;  %v12968_v35 = vpack.c.bf16 %v7181_v7, %v7177_v34  ;;  %v7210_v34 = vld [vmem:[#allocation19 + $0x1c8] sm:$0xff] }
0x1456   :  { %10815 = vrcp.f32 %v6894_v25  ;;  %v10814_v57 = vpop.eup %10813  ;;  %v12966_v25 = vpack.c.bf16 %v7184_v17, %v7180_v32  ;;  %v13004_v32 = vpack.c.bf16 %v7205_v24, %v7201_v44  ;;  %v7207_v17 = vld [vmem:[#allocation19 + $0x1b0] sm:$0xff]  ;;  %v7214_v7 = vld [vmem:[#allocation19 + $0x1e8] sm:$0xff] }
0x1457   :  { %10817 = vrcp.f32 %v6895_v50  ;;  %v6896_v41 = vadd.f32 1.0, %v10814_v57  ;;  %v7179_v50 = vld [vmem:[#allocation19 + $0xd0] sm:$0xff] }
0x1459   :  { %10819 = vrcp.f32 %v6896_v41 }
0x1460   :  { %v10816_v4 = vpop.eup %10815 }
0x1461   :  { %v6905_v49 = vmul.f32 %v10816_v4, %v10812_v19  ;;  %v10818_v42 = vpop.eup %10817  ;;  %v7183_v19 = vld [vmem:[#allocation19 + $0xf0] sm:$0xff]  ;;  %v7186_v4 = vld [vmem:[#allocation19 + $0x108] sm:$0xff] }
0x1462   :  { %v6904_v36 = vmul.f32 %v10818_v42, %v12875_v28  ;;  %v7176_v28 = vld [vmem:[#allocation19 + $0xb8] sm:$0xff]  ;;  %v12971_v57 = vpack.c.bf16 %v7183_v19, %v7179_v50  ;;  %v13008_v50 = vpack.c.bf16 %v7207_v17, %v7203_v22  ;;  %v13010_v19 = vpack.c.bf16 %v7214_v7, %v7210_v34 }
0x1463   :  { %v10820_v33 = vpop.eup %10819  ;;  %v12954_v40 = vpack.c.bf16 %v7176_v28, %v7172_v63  ;;  %v7188_v42 = vld [vmem:[#allocation19 + $0x118] sm:$0xff]  ;;  %v7206_v63 = vld [vmem:[#allocation19 + $0x1a8] sm:$0xff] }
0x1464   :  { %v12919_v38 = vadd.f32 %v6905_v49, %v6904_v36  ;;  %v7190_v49 = vld [vmem:[#allocation19 + $0x128] sm:$0xff]  ;;  %v7192_v36 = vld [vmem:[#allocation19 + $0x138] sm:$0xff]  ;;  %v12999_v20 = vpack.c.bf16 %v7206_v63, %v7202_v30 }
0x1465   :  { %v12976_v41 = vpack.c.bf16 %v7190_v49, %v7186_v4  ;;  %v12978_v37 = vpack.c.bf16 %v7192_v36, %v7188_v42  ;;  %v7204_v28 = vld [vmem:[#allocation19 + $0x198] sm:$0xff]  ;;  %v7209_v42 = vld [vmem:[#allocation19 + $0x1c0] sm:$0xff] }
0x1466   :  { %10821 = vtanh.f32 %v12919_v38  ;;  %v13001_v58 = vpack.c.bf16 %v7208_v52, %v7204_v28  ;;  %v7212_v4 = vld [vmem:[#allocation19 + $0x1d8] sm:$0xff] }
0x1467   :  { %v7216_v49 = vld [vmem:[#allocation19 + $0x1f8] sm:$0xff] }
0x1468   :  { %v13012_v36 = vpack.c.bf16 %v7216_v49, %v7212_v4 }
0x1470   :  { %v10822_v60 = vpop.eup %10821 }
0x1471   :  { %v12922_v23 = vmul.f32 %v10822_v60, %v10820_v33  ;;  %v7185_v33 = vld [vmem:[#allocation19 + $0x100] sm:$0xff] }
0x1472   :  { %v7189_v60 = vld [vmem:[#allocation19 + $0x120] sm:$0xff] }
0x1473   :  { %7043 = vmatmul.mubr.f32.vlgmr.msra.gmra.mrb[40].mxu0 %v12922_v23  ;;  %7114 = vmatmul.mubr.f32.vlgmr.msra.gmra.mrb[40].mxu1 %v12922_v23  ;;  %v12980_v45 = vpack.c.bf16 %v7189_v60, %v7185_v33  ;;  %v7213_v33 = vld [vmem:[#allocation19 + $0x1e0] sm:$0xff]  ;;  %v7211_v60 = vld [vmem:[#allocation19 + $0x1d0] sm:$0xff] }
0x1474   :  { %7281 = vmatprep.mubr.f32.mxu0 %v11255_v0  ;;  %7352 = vmatprep.mubr.f32.mxu1 %v11255_v0  ;;  %v13015_v43 = vpack.c.bf16 %v7213_v33, %v7209_v42  ;;  %v13019_v3 = vpack.c.bf16 %v7215_v29, %v7211_v60 }
0x1475   :  { %10022 = vmatpush1.bf16.msra.mxu0 %v12932_v2  ;;  %10054 = vmatpush1.bf16.msra.mxu1 %v12935_v5 }
0x1476   :  { %10024 = vmatprep.subr.bf16.mxu0 %v12940_v55  ;;  %10056 = vmatprep.subr.bf16.mxu1 %v12942_v39 }
0x1479   :  { %10026 = vmatpush1.bf16.msra.mxu0 %v12944_v10  ;;  %10058 = vmatpush1.bf16.msra.mxu1 %v12947_v12 }
0x147a   :  { %10028 = vmatprep.subr.bf16.mxu0 %v12952_v15  ;;  %10060 = vmatprep.subr.bf16.mxu1 %v12954_v40 }
0x147d   :  { %10030 = vmatpush1.bf16.msra.mxu0 %v12956_v1  ;;  %10062 = vmatpush1.bf16.msra.mxu1 %v12959_v27 }
0x147e   :  { %10032 = vmatprep.subr.bf16.mxu0 %v12964_v59  ;;  %10064 = vmatprep.subr.bf16.mxu1 %v12966_v25 }
0x1481   :  { %10034 = vmatpush1.bf16.msra.mxu0 %v12968_v35  ;;  %10066 = vmatpush1.bf16.msra.mxu1 %v12971_v57 }
0x1482   :  { %10036 = vmatprep.subr.bf16.mxu0 %v12976_v41  ;;  %10068 = vmatprep.subr.bf16.mxu1 %v12978_v37 }
0x1485   :  { %10038 = vmatpush1.bf16.msra.mxu0 %v12980_v45  ;;  %10070 = vmatpush1.bf16.msra.mxu1 %v12983_v21 }
0x1486   :  { %10040 = vmatprep.subr.bf16.mxu0 %v12988_v61  ;;  %10072 = vmatprep.subr.bf16.mxu1 %v12990_v16 }
0x1489   :  { %10042 = vmatpush1.bf16.msra.mxu0 %v12992_v9  ;;  %10074 = vmatpush1.bf16.msra.mxu1 %v12995_v51 }
0x148a   :  { %10044 = vmatprep.subr.bf16.mxu0 %v12999_v20  ;;  %10076 = vmatprep.subr.bf16.mxu1 %v13001_v58 }
0x148d   :  { %10046 = vmatpush1.bf16.msra.mxu0 %v13004_v32  ;;  %10078 = vmatpush1.bf16.msra.mxu1 %v13008_v50 }
0x148e   :  { %10048 = vmatprep.subr.bf16.mxu0 %v13010_v19  ;;  %10080 = vmatprep.subr.bf16.mxu1 %v13012_v36 }
0x1491   :  { %10050 = vmatpush1.bf16.msra.mxu0 %v13015_v43  ;;  %10082 = vmatpush1.bf16.msra.mxu1 %v13019_v3 }
0x1492   :  { %10084 = vmatprep.subr.bf16.mxu0 %v12928_v18  ;;  %10116 = vmatprep.subr.bf16.mxu1 %v12930_v26 }
0x1546   :  { %v7044_v62 = vpop.f32.mrb[40].mxu0  ;;  %v7115_v47 = vpop.f32.mrb[40].mxu1 }
0x1547   :  { %v10381_v6 = vadd.f32 %v7044_v62, %v12814_v54  ;;  %v7046_v11 = vpop.f32.mrb[41].mxu0  ;;  %v7117_v53 = vpop.f32.mrb[41].mxu1  ;;  %v10397_v63 = vadd.f32 %v7115_v47, %v12822_v46 }
0x1548   :  { %v10382_v14 = vadd.f32 %v7046_v11, %v12817_v31  ;;  %v10398_v28 = vadd.f32 %v7117_v53, %v12825_v48 }
0x1549   :  { %v8391_v56 = vmul.f32 -1.442695, %v10381_v6  ;;  %v8393_v52 = vmul.f32 -1.442695, %v10397_v63 }
0x154a   :  { %v8392_v30 = vmul.f32 -1.442695, %v10382_v14 }
0x154b   :  { %10823 = vpow2.f32 %v8391_v56 }
0x154c   :  { %10825 = vpow2.f32 %v8392_v30 }
0x154d   :  { %10827 = vtanh.f32 %v10398_v28 }
0x154e   :  { %10829 = vpow2.f32 %v8393_v52 }
0x1555   :  { %v10824_v44 = vpop.eup %10823 }
0x1556   :  { %v7133_v24 = vadd.f32 1.0, %v10824_v44  ;;  %v10826_v22 = vpop.eup %10825 }
0x1557   :  { %v7134_v17 = vadd.f32 1.0, %v10826_v22  ;;  %v10828_v34 = vpop.eup %10827 }
0x1558   :  { %10831 = vrcp.f32 %v7133_v24  ;;  %v10830_v7 = vpop.eup %10829 }
0x1559   :  { %10833 = vrcp.f32 %v7134_v17  ;;  %v7135_v33 = vadd.f32 1.0, %v10830_v7 }
0x155b   :  { %10835 = vrcp.f32 %v7135_v33 }
0x1562   :  { %v10832_v4 = vpop.eup %10831 }
0x1563   :  { %v7144_v49 = vmul.f32 %v10832_v4, %v10828_v34  ;;  %v10834_v42 = vpop.eup %10833 }
0x1564   :  { %v7143_v60 = vmul.f32 %v10834_v42, %v12919_v38 }
0x1565   :  { %v10836_v62 = vpop.eup %10835 }
0x1566   :  { %v13031_v29 = vadd.f32 %v7144_v49, %v7143_v60 }
0x1568   :  { %10837 = vtanh.f32 %v13031_v29 }
0x1572   :  { %v10838_v47 = vpop.eup %10837 }
0x1573   :  { %v13034_v6 = vmul.f32 %v10838_v47, %v10836_v62 }
0x1575   :  { %7282 = vmatmul.mubr.f32.vlgmr.msra.gmra.mrb[42].mxu0 %v13034_v6  ;;  %7353 = vmatmul.mubr.f32.vlgmr.msra.gmra.mrb[42].mxu1 %v13034_v6 }
0x1576   :  { %10086 = vmatpush1.bf16.msra.mxu0 %v12932_v2  ;;  %10118 = vmatpush1.bf16.msra.mxu1 %v12935_v5 }
0x1577   :  { %10088 = vmatprep.subr.bf16.mxu0 %v12940_v55  ;;  %10120 = vmatprep.subr.bf16.mxu1 %v12942_v39 }
0x1578   :  { %7520 = vmatprep.mubr.f32.mxu0 %v11255_v0  ;;  %7591 = vmatprep.mubr.f32.mxu1 %v11255_v0 }
0x157a   :  { %10090 = vmatpush1.bf16.msra.mxu0 %v12944_v10  ;;  %10122 = vmatpush1.bf16.msra.mxu1 %v12947_v12 }
0x157b   :  { %10092 = vmatprep.subr.bf16.mxu0 %v12952_v15  ;;  %10124 = vmatprep.subr.bf16.mxu1 %v12954_v40 }
0x157e   :  { %10094 = vmatpush1.bf16.msra.mxu0 %v12956_v1  ;;  %10126 = vmatpush1.bf16.msra.mxu1 %v12959_v27 }
0x157f   :  { %10096 = vmatprep.subr.bf16.mxu0 %v12964_v59  ;;  %10128 = vmatprep.subr.bf16.mxu1 %v12966_v25 }
0x1582   :  { %10098 = vmatpush1.bf16.msra.mxu0 %v12968_v35  ;;  %10130 = vmatpush1.bf16.msra.mxu1 %v12971_v57 }
0x1583   :  { %10100 = vmatprep.subr.bf16.mxu0 %v12976_v41  ;;  %10132 = vmatprep.subr.bf16.mxu1 %v12978_v37 }
0x1586   :  { %10102 = vmatpush1.bf16.msra.mxu0 %v12980_v45  ;;  %10134 = vmatpush1.bf16.msra.mxu1 %v12983_v21 }
0x1587   :  { %10104 = vmatprep.subr.bf16.mxu0 %v12988_v61  ;;  %10136 = vmatprep.subr.bf16.mxu1 %v12990_v16 }
0x158a   :  { %10106 = vmatpush1.bf16.msra.mxu0 %v12992_v9  ;;  %10138 = vmatpush1.bf16.msra.mxu1 %v12995_v51 }
0x158b   :  { %10108 = vmatprep.subr.bf16.mxu0 %v12999_v20  ;;  %10140 = vmatprep.subr.bf16.mxu1 %v13001_v58 }
0x158e   :  { %10110 = vmatpush1.bf16.msra.mxu0 %v13004_v32  ;;  %10142 = vmatpush1.bf16.msra.mxu1 %v13008_v50 }
0x158f   :  { %10112 = vmatprep.subr.bf16.mxu0 %v13010_v19  ;;  %10144 = vmatprep.subr.bf16.mxu1 %v13012_v36 }
0x1592   :  { %10114 = vmatpush1.bf16.msra.mxu0 %v13015_v43  ;;  %10146 = vmatpush1.bf16.msra.mxu1 %v13019_v3 }
0x1593   :  { %10148 = vmatprep.subr.bf16.mxu0 %v12928_v18  ;;  %10180 = vmatprep.subr.bf16.mxu1 %v12930_v26 }
0x1648   :  { %v7283_v38 = vpop.f32.mrb[42].mxu0  ;;  %v7354_v11 = vpop.f32.mrb[42].mxu1 }
0x1649   :  { %v10383_v53 = vadd.f32 %v7283_v38, %v12814_v54  ;;  %v7285_v14 = vpop.f32.mrb[43].mxu0  ;;  %v7356_v56 = vpop.f32.mrb[43].mxu1  ;;  %v10399_v52 = vadd.f32 %v7354_v11, %v12822_v46 }
0x164a   :  { %v10384_v30 = vadd.f32 %v7285_v14, %v12817_v31  ;;  %v10400_v44 = vadd.f32 %v7356_v56, %v12825_v48 }
0x164b   :  { %v8394_v63 = vmul.f32 -1.442695, %v10383_v53  ;;  %v8396_v24 = vmul.f32 -1.442695, %v10399_v52 }
0x164c   :  { %v8395_v28 = vmul.f32 -1.442695, %v10384_v30 }
0x164d   :  { %10839 = vpow2.f32 %v8394_v63 }
0x164e   :  { %10841 = vpow2.f32 %v8395_v28 }
0x164f   :  { %10843 = vtanh.f32 %v10400_v44 }
0x1650   :  { %10845 = vpow2.f32 %v8396_v24 }
0x1657   :  { %v10840_v22 = vpop.eup %10839 }
0x1658   :  { %v7372_v17 = vadd.f32 1.0, %v10840_v22  ;;  %v10842_v34 = vpop.eup %10841 }
0x1659   :  { %v7373_v7 = vadd.f32 1.0, %v10842_v34  ;;  %v10844_v4 = vpop.eup %10843 }
0x165a   :  { %10847 = vrcp.f32 %v7372_v17  ;;  %v10846_v49 = vpop.eup %10845 }
0x165b   :  { %10849 = vrcp.f32 %v7373_v7  ;;  %v7374_v62 = vadd.f32 1.0, %v10846_v49 }
0x165d   :  { %10851 = vrcp.f32 %v7374_v62 }
0x1664   :  { %v10848_v42 = vpop.eup %10847 }
0x1665   :  { %v7383_v33 = vmul.f32 %v10848_v42, %v10844_v4  ;;  %v10850_v60 = vpop.eup %10849 }
0x1666   :  { %v7382_v47 = vmul.f32 %v10850_v60, %v13031_v29 }
0x1667   :  { %v10852_v11 = vpop.eup %10851 }
0x1668   :  { %v13077_v38 = vadd.f32 %v7383_v33, %v7382_v47 }
0x166a   :  { %10853 = vtanh.f32 %v13077_v38 }
0x1674   :  { %v10854_v53 = vpop.eup %10853 }
0x1675   :  { %v13080_v14 = vmul.f32 %v10854_v53, %v10852_v11 }
0x1677   :  { %7521 = vmatmul.mubr.f32.vlgmr.msra.gmra.mrb[44].mxu0 %v13080_v14  ;;  %7592 = vmatmul.mubr.f32.vlgmr.msra.gmra.mrb[44].mxu1 %v13080_v14 }
0x1678   :  { %10150 = vmatpush1.bf16.msra.mxu0 %v12932_v2  ;;  %10182 = vmatpush1.bf16.msra.mxu1 %v12935_v5 }
0x1679   :  { %10152 = vmatprep.subr.bf16.mxu0 %v12940_v55  ;;  %10184 = vmatprep.subr.bf16.mxu1 %v12942_v39 }
0x167a   :  { %7759 = vmatprep.mubr.f32.mxu0 %v11255_v0  ;;  %7830 = vmatprep.mubr.f32.mxu1 %v11255_v0 }
0x167c   :  { %10154 = vmatpush1.bf16.msra.mxu0 %v12944_v10  ;;  %10186 = vmatpush1.bf16.msra.mxu1 %v12947_v12 }
0x167d   :  { %10156 = vmatprep.subr.bf16.mxu0 %v12952_v15  ;;  %10188 = vmatprep.subr.bf16.mxu1 %v12954_v40 }
0x1680   :  { %10158 = vmatpush1.bf16.msra.mxu0 %v12956_v1  ;;  %10190 = vmatpush1.bf16.msra.mxu1 %v12959_v27 }
0x1681   :  { %10160 = vmatprep.subr.bf16.mxu0 %v12964_v59  ;;  %10192 = vmatprep.subr.bf16.mxu1 %v12966_v25 }
0x1684   :  { %10162 = vmatpush1.bf16.msra.mxu0 %v12968_v35  ;;  %10194 = vmatpush1.bf16.msra.mxu1 %v12971_v57 }
0x1685   :  { %10164 = vmatprep.subr.bf16.mxu0 %v12976_v41  ;;  %10196 = vmatprep.subr.bf16.mxu1 %v12978_v37 }
0x1688   :  { %10166 = vmatpush1.bf16.msra.mxu0 %v12980_v45  ;;  %10198 = vmatpush1.bf16.msra.mxu1 %v12983_v21 }
0x1689   :  { %10168 = vmatprep.subr.bf16.mxu0 %v12988_v61  ;;  %10200 = vmatprep.subr.bf16.mxu1 %v12990_v16 }
0x168c   :  { %10170 = vmatpush1.bf16.msra.mxu0 %v12992_v9  ;;  %10202 = vmatpush1.bf16.msra.mxu1 %v12995_v51 }
0x168d   :  { %10172 = vmatprep.subr.bf16.mxu0 %v12999_v20  ;;  %10204 = vmatprep.subr.bf16.mxu1 %v13001_v58 }
0x1690   :  { %10174 = vmatpush1.bf16.msra.mxu0 %v13004_v32  ;;  %10206 = vmatpush1.bf16.msra.mxu1 %v13008_v50 }
0x1691   :  { %10176 = vmatprep.subr.bf16.mxu0 %v13010_v19  ;;  %10208 = vmatprep.subr.bf16.mxu1 %v13012_v36 }
0x1694   :  { %10178 = vmatpush1.bf16.msra.mxu0 %v13015_v43  ;;  %10210 = vmatpush1.bf16.msra.mxu1 %v13019_v3 }
0x1695   :  { %10212 = vmatprep.subr.bf16.mxu0 %v12928_v18  ;;  %10244 = vmatprep.subr.bf16.mxu1 %v12930_v26 }
0x174a   :  { %v7522_v29 = vpop.f32.mrb[44].mxu0  ;;  %v7593_v56 = vpop.f32.mrb[44].mxu1 }
0x174b   :  { %v10385_v30 = vadd.f32 %v7522_v29, %v12814_v54  ;;  %v7524_v63 = vpop.f32.mrb[45].mxu0  ;;  %v7595_v28 = vpop.f32.mrb[45].mxu1  ;;  %v10401_v22 = vadd.f32 %v7593_v56, %v12822_v46 }
0x174c   :  { %v10386_v52 = vadd.f32 %v7524_v63, %v12817_v31  ;;  %v10402_v17 = vadd.f32 %v7595_v28, %v12825_v48  ;;  %v8117_v63 = vld [vmem:[#allocation22 + $0x20] sm:$0xff]  ;;  %v8118_v28 = vld [vmem:[#allocation22 + $0x28] sm:$0xff] }
0x174d   :  { %v8397_v44 = vmul.f32 -1.442695, %v10385_v30  ;;  %v8399_v34 = vmul.f32 -1.442695, %v10401_v22 }
0x174e   :  { %v8398_v24 = vmul.f32 -1.442695, %v10386_v52  ;;  %v10283_v52 = vpack.c.bf16 %v8118_v28, %v8117_v63 }
0x174f   :  { %10855 = vpow2.f32 %v8397_v44  ;;  %v8119_v44 = vld [vmem:[#allocation22 + $0x30] sm:$0xff] }
0x1750   :  { %10857 = vpow2.f32 %v8398_v24  ;;  %v8120_v24 = vld [vmem:[#allocation22 + $0x38] sm:$0xff] }
0x1751   :  { %10859 = vtanh.f32 %v10402_v17  ;;  %v10287_v22 = vpack.c.bf16 %v8120_v24, %v8119_v44  ;;  %v8121_v17 = vld [vmem:[#allocation22 + $0x40] sm:$0xff] }
0x1752   :  { %10861 = vpow2.f32 %v8399_v34  ;;  %v8122_v34 = vld [vmem:[#allocation22 + $0x48] sm:$0xff] }
0x1759   :  { %v10856_v18 = vpop.eup %10855 }
0x175a   :  { %v7611_v7 = vadd.f32 1.0, %v10856_v18  ;;  %v10858_v26 = vpop.eup %10857  ;;  %v10291_v18 = vpack.c.bf16 %v8122_v34, %v8121_v17 }
0x175b   :  { %v7612_v4 = vadd.f32 1.0, %v10858_v26  ;;  %v10860_v49 = vpop.eup %10859  ;;  %v8124_v26 = vld [vmem:[#allocation22 + $0x58] sm:$0xff] }
0x175c   :  { %10863 = vrcp.f32 %v7611_v7  ;;  %v10862_v42 = vpop.eup %10861  ;;  %v8123_v7 = vld [vmem:[#allocation22 + $0x50] sm:$0xff] }
0x175d   :  { %10865 = vrcp.f32 %v7612_v4  ;;  %v7613_v47 = vadd.f32 1.0, %v10862_v42  ;;  %v10295_v4 = vpack.c.bf16 %v8124_v26, %v8123_v7  ;;  %v8126_v42 = vld [vmem:[#allocation22 + $0x68] sm:$0xff] }
0x175f   :  { %10867 = vrcp.f32 %v7613_v47 }
0x1766   :  { %v10864_v33 = vpop.eup %10863 }
0x1767   :  { %v7622_v60 = vmul.f32 %v10864_v33, %v10860_v49  ;;  %v10866_v62 = vpop.eup %10865  ;;  %v8125_v49 = vld [vmem:[#allocation22 + $0x60] sm:$0xff]  ;;  %v8127_v33 = vld [vmem:[#allocation22 + $0x70] sm:$0xff] }
0x1768   :  { %v7621_v11 = vmul.f32 %v10866_v62, %v13077_v38 }
0x1769   :  { %v10868_v29 = vpop.eup %10867 }
0x176a   :  { %v13123_v53 = vadd.f32 %v7622_v60, %v7621_v11  ;;  %v8128_v60 = vld [vmem:[#allocation22 + $0x78] sm:$0xff] }
0x176b   :  { %v10303_v62 = vpack.c.bf16 %v8128_v60, %v8127_v33 }
0x176c   :  { %10869 = vtanh.f32 %v13123_v53 }
0x1776   :  { %v10870_v56 = vpop.eup %10869 }
0x1777   :  { %v13126_v30 = vmul.f32 %v10870_v56, %v10868_v29 }
0x1779   :  { %7760 = vmatmul.mubr.f32.vlgmr.msra.gmra.mrb[46].mxu0 %v13126_v30  ;;  %7831 = vmatmul.mubr.f32.vlgmr.msra.gmra.mrb[46].mxu1 %v13126_v30 }
0x177a   :  { %10214 = vmatpush1.bf16.msra.mxu0 %v12932_v2  ;;  %10246 = vmatpush1.bf16.msra.mxu1 %v12935_v5  ;;  %v8114_v2 = vld [vmem:[#allocation22 + $0x8] sm:$0xff] }
0x177b   :  { %10216 = vmatprep.subr.bf16.mxu0 %v12940_v55  ;;  %10248 = vmatprep.subr.bf16.mxu1 %v12942_v39 }
0x177c   :  { %7998 = vmatprep.mubr.f32.mxu0 %v11255_v0  ;;  %8069 = vmatprep.mubr.f32.mxu1 %v11255_v0  ;;  %v8113_v0 = vld [vmem:[#allocation22] sm:$0xff] }
0x177d   :  { %v10275_v5 = vpack.c.bf16 %v8114_v2, %v8113_v0 }
0x177e   :  { %10218 = vmatpush1.bf16.msra.mxu0 %v12944_v10  ;;  %10250 = vmatpush1.bf16.msra.mxu1 %v12947_v12 }
0x177f   :  { %10220 = vmatprep.subr.bf16.mxu0 %v12952_v15  ;;  %10252 = vmatprep.subr.bf16.mxu1 %v12954_v40 }
0x1782   :  { %10222 = vmatpush1.bf16.msra.mxu0 %v12956_v1  ;;  %10254 = vmatpush1.bf16.msra.mxu1 %v12959_v27 }
0x1783   :  { %10224 = vmatprep.subr.bf16.mxu0 %v12964_v59  ;;  %10256 = vmatprep.subr.bf16.mxu1 %v12966_v25 }
0x1786   :  { %10226 = vmatpush1.bf16.msra.mxu0 %v12968_v35  ;;  %10258 = vmatpush1.bf16.msra.mxu1 %v12971_v57 }
0x1787   :  { %10228 = vmatprep.subr.bf16.mxu0 %v12976_v41  ;;  %10260 = vmatprep.subr.bf16.mxu1 %v12978_v37 }
0x178a   :  { %10230 = vmatpush1.bf16.msra.mxu0 %v12980_v45  ;;  %10262 = vmatpush1.bf16.msra.mxu1 %v12983_v21 }
0x178b   :  { %10232 = vmatprep.subr.bf16.mxu0 %v12988_v61  ;;  %10264 = vmatprep.subr.bf16.mxu1 %v12990_v16 }
0x178e   :  { %10234 = vmatpush1.bf16.msra.mxu0 %v12992_v9  ;;  %10266 = vmatpush1.bf16.msra.mxu1 %v12995_v51 }
0x178f   :  { %10236 = vmatprep.subr.bf16.mxu0 %v12999_v20  ;;  %10268 = vmatprep.subr.bf16.mxu1 %v13001_v58 }
0x1792   :  { %10238 = vmatpush1.bf16.msra.mxu0 %v13004_v32  ;;  %10270 = vmatpush1.bf16.msra.mxu1 %v13008_v50  ;;  %v8115_v50 = vld [vmem:[#allocation22 + $0x10] sm:$0xff] }
0x1793   :  { %10240 = vmatprep.subr.bf16.mxu0 %v13010_v19  ;;  %10272 = vmatprep.subr.bf16.mxu1 %v13012_v36  ;;  %v8116_v19 = vld [vmem:[#allocation22 + $0x18] sm:$0xff] }
0x1794   :  { %v10279_v38 = vpack.c.bf16 %v8116_v19, %v8115_v50 }
0x1796   :  { %10242 = vmatpush1.bf16.msra.mxu0 %v13015_v43  ;;  %10274 = vmatpush1.bf16.msra.mxu1 %v13019_v3 }
0x1797   :  { %10276 = vmatprep.subr.bf16.mxu0 %v10275_v5 }
0x184c   :  { %v7761_v55 = vpop.f32.mrb[46].mxu0  ;;  %v7832_v39 = vpop.f32.mrb[46].mxu1 }
0x184d   :  { %v10387_v10 = vadd.f32 %v7761_v55, %v12814_v54  ;;  %v7763_v12 = vpop.f32.mrb[47].mxu0  ;;  %v7834_v15 = vpop.f32.mrb[47].mxu1  ;;  %v10403_v59 = vadd.f32 %v7832_v39, %v12822_v46 }
0x184e   :  { %v10388_v40 = vadd.f32 %v7763_v12, %v12817_v31  ;;  %v10404_v25 = vadd.f32 %v7834_v15, %v12825_v48 }
0x184f   :  { %v8400_v1 = vmul.f32 -1.442695, %v10387_v10  ;;  %v8402_v35 = vmul.f32 -1.442695, %v10403_v59 }
0x1850   :  { %v8401_v27 = vmul.f32 -1.442695, %v10388_v40 }
0x1851   :  { %10871 = vpow2.f32 %v8400_v1  ;;  %v13180_v1 = vld [vmem:[#allocation23] ss:$0 sm:$0xff] }
0x1852   :  { %10873 = vpow2.f32 %v8401_v27 }
0x1853   :  { %10875 = vtanh.f32 %v10404_v25 }
0x1854   :  { %10877 = vpow2.f32 %v8402_v35 }
0x185b   :  { %v10872_v57 = vpop.eup %10871 }
0x185c   :  { %v7850_v41 = vadd.f32 1.0, %v10872_v57  ;;  %v10874_v37 = vpop.eup %10873 }
0x185d   :  { %v7851_v45 = vadd.f32 1.0, %v10874_v37  ;;  %v10876_v21 = vpop.eup %10875 }
0x185e   :  { %10879 = vrcp.f32 %v7850_v41  ;;  %v10878_v61 = vpop.eup %10877 }
0x185f   :  { %10881 = vrcp.f32 %v7851_v45  ;;  %v7852_v20 = vadd.f32 1.0, %v10878_v61 }
0x1861   :  { %10883 = vrcp.f32 %v7852_v20 }
0x1868   :  { %v10880_v16 = vpop.eup %10879 }
0x1869   :  { %v7861_v9 = vmul.f32 %v10880_v16, %v10876_v21  ;;  %v10882_v51 = vpop.eup %10881 }
0x186a   :  { %v7860_v58 = vmul.f32 %v10882_v51, %v13123_v53 }
0x186b   :  { %v10884_v36 = vpop.eup %10883 }
0x186c   :  { %v13167_v32 = vadd.f32 %v7861_v9, %v7860_v58 }
0x186e   :  { %10885 = vtanh.f32 %v13167_v32 }
0x1878   :  { %v10886_v43 = vpop.eup %10885 }
0x1879   :  { %v7864_v3 = vmul.f32 %v10886_v43, %v10884_v36 }
0x187b   :  { %7999 = vmatmul.mubr.f32.vlgmr.msra.gmra.mrb[48].mxu0 %v7864_v3  ;;  %8070 = vmatmul.mubr.f32.vlgmr.msra.gmra.mrb[48].mxu1 %v7864_v3 }
0x187c   :  { %10278 = vmatpush3.bf16.msra.mxu0 %v10275_v5  ;;  %8471 = vmatprep.mubr.f32.mxu0 %v12832_v13  ;;  %v10299_v13 = vpack.c.bf16 %v8126_v42, %v8125_v49 }
0x187d   :  { %10280 = vmatprep.subr.bf16.mxu0 %v10279_v38 }
0x1880   :  { %10282 = vmatpush3.bf16.msra.mxu0 %v10279_v38 }
0x1881   :  { %10284 = vmatprep.subr.bf16.mxu0 %v10283_v52 }
0x1884   :  { %10286 = vmatpush3.bf16.msra.mxu0 %v10283_v52 }
0x1885   :  { %10288 = vmatprep.subr.bf16.mxu0 %v10287_v22 }
0x1888   :  { %10290 = vmatpush3.bf16.msra.mxu0 %v10287_v22 }
0x1889   :  { %10292 = vmatprep.subr.bf16.mxu0 %v10291_v18 }
0x188c   :  { %10294 = vmatpush3.bf16.msra.mxu0 %v10291_v18 }
0x188d   :  { %10296 = vmatprep.subr.bf16.mxu0 %v10295_v4 }
0x1890   :  { %10298 = vmatpush3.bf16.msra.mxu0 %v10295_v4 }
0x1891   :  { %10300 = vmatprep.subr.bf16.mxu0 %v10299_v13 }
0x1894   :  { %10302 = vmatpush3.bf16.msra.mxu0 %v10299_v13 }
0x1895   :  { %10304 = vmatprep.subr.bf16.mxu0 %v10303_v62 }
0x1898   :  { %10306 = vmatpush3.bf16.msra.mxu0 %v10303_v62 }
0x189b   :  { %8472 = vmatmul.mubr.f32.vlgmr.msra.gmra.mrb[50].mxu0 %v12878_v8 }
0x189c   :  { %8474 = vmatprep.mubr.f32.mxu0 %v12922_v23 }
0x189f   :  { %8475 = vmatmul.mubr.f32.gmra.mrb[52].mxu0 %v13034_v6 }
0x18a0   :  { %8477 = vmatprep.mubr.f32.mxu0 %v13080_v14 }
0x18a3   :  { %8478 = vmatmul.mubr.f32.gmra.mrb[54].mxu0 %v13126_v30 }
0x18a4   :  { %8480 = vmatprep.mubr.f32.mxu0 %v7864_v3 }
0x194e   :  { %v8000_v47 = vpop.f32.mrb[48].mxu0  ;;  %v8071_v11 = vpop.f32.mrb[48].mxu1 }
0x194f   :  { %v10389_v53 = vadd.f32 %v8000_v47, %v12814_v54  ;;  %v8002_v29 = vpop.f32.mrb[49].mxu0  ;;  %v8073_v56 = vpop.f32.mrb[49].mxu1  ;;  %v10405_v8 = vadd.f32 %v8071_v11, %v12822_v46 }
0x1950   :  { %v10390_v0 = vadd.f32 %v8002_v29, %v12817_v31  ;;  %v10406_v23 = vadd.f32 %v8073_v56, %v12825_v48 }
0x1951   :  { %v8403_v2 = vmul.f32 -1.442695, %v10389_v53  ;;  %v8405_v6 = vmul.f32 -1.442695, %v10405_v8 }
0x1952   :  { %v8404_v5 = vmul.f32 -1.442695, %v10390_v0 }
0x1953   :  { %10887 = vpow2.f32 %v8403_v2 }
0x1954   :  { %10889 = vpow2.f32 %v8404_v5 }
0x1955   :  { %10891 = vtanh.f32 %v10406_v23 }
0x1956   :  { %10893 = vpow2.f32 %v8405_v6 }
0x195d   :  { %v10888_v14 = vpop.eup %10887 }
0x195e   :  { %v8089_v30 = vadd.f32 1.0, %v10888_v14  ;;  %v10890_v55 = vpop.eup %10889 }
0x195f   :  { %v8090_v54 = vadd.f32 1.0, %v10890_v55  ;;  %v10892_v39 = vpop.eup %10891 }
0x1960   :  { %10895 = vrcp.f32 %v8089_v30  ;;  %v10894_v10 = vpop.eup %10893 }
0x1961   :  { %10897 = vrcp.f32 %v8090_v54  ;;  %v8091_v40 = vadd.f32 1.0, %v10894_v10 }
0x1963   :  { %10899 = vrcp.f32 %v8091_v40 }
0x196a   :  { %v10896_v31 = vpop.eup %10895 }
0x196b   :  { %v8100_v12 = vmul.f32 %v10896_v31, %v10892_v39  ;;  %v10898_v15 = vpop.eup %10897 }
0x196c   :  { %v8099_v46 = vmul.f32 %v10898_v15, %v13167_v32 }
0x196d   :  { %v10900_v19 = vpop.eup %10899 }
0x196e   :  { %v8473_v48 = vpop.f32.mrb[50].mxu0  ;;  %v8101_v27 = vadd.f32 %v8100_v12, %v8099_v46 }
0x196f   :  { %v8208_v59 = vadd.f32 %v8473_v48, %v13180_v1  ;;  %v8202_v25 = vpop.f32.mrb[51].mxu0 }
0x1970   :  { %v8203_v35 = vadd.f32 %v13180_v1, %v8202_v25  ;;  %10901 = vtanh.f32 %v8101_v27 }
0x1971   :  { %v8408_v57 = vmul.f32 -1.442695, %v8208_v59 }
0x1972   :  { %v8407_v41 = vmul.f32 -1.442695, %v8203_v35  ;;  %v8476_v37 = vpop.f32.mrb[52].mxu0 }
0x1973   :  { %10903 = vpow2.f32 %v8408_v57  ;;  %v8218_v45 = vadd.f32 %v8476_v37, %v13180_v1  ;;  %v8212_v21 = vpop.f32.mrb[53].mxu0 }
0x1974   :  { %10905 = vpow2.f32 %v8407_v41  ;;  %v8213_v61 = vadd.f32 %v13180_v1, %v8212_v21 }
0x1975   :  { %v8410_v16 = vmul.f32 -1.442695, %v8218_v45 }
0x1976   :  { %v8409_v9 = vmul.f32 -1.442695, %v8213_v61  ;;  %v8479_v51 = vpop.f32.mrb[54].mxu0 }
0x1977   :  { %10907 = vpow2.f32 %v8410_v16  ;;  %v8228_v20 = vadd.f32 %v8479_v51, %v13180_v1  ;;  %v8222_v58 = vpop.f32.mrb[55].mxu0 }
0x1978   :  { %10909 = vpow2.f32 %v8409_v9  ;;  %v8223_v32 = vadd.f32 %v13180_v1, %v8222_v58 }
0x1979   :  { %v8412_v50 = vmul.f32 -1.442695, %v8228_v20 }
0x197a   :  { %v8411_v36 = vmul.f32 -1.442695, %v8223_v32  ;;  %v10902_v43 = vpop.eup %10901 }
0x197b   :  { %10911 = vpow2.f32 %v8412_v50  ;;  %v8103_v3 = vmul.f32 %v10902_v43, %v10900_v19 }
0x197c   :  { %10913 = vpow2.f32 %v8411_v36 }
0x197d   :  { %v10904_v38 = vpop.eup %10903  ;;  %8481 = vmatmul.mubr.f32.gmra.mrb[56].mxu0 %v8103_v3 }
0x197e   :  { %v10906_v63 = vpop.eup %10905  ;;  %v8266_v28 = vadd.f32 1.0, %v10904_v38 }
0x197f   :  { %v8265_v52 = vadd.f32 1.0, %v10906_v63 }
0x1980   :  { %10915 = vrcp.f32 %v8266_v28 }
0x1981   :  { %v10908_v44 = vpop.eup %10907  ;;  %10917 = vrcp.f32 %v8265_v52 }
0x1982   :  { %v10910_v24 = vpop.eup %10909  ;;  %v8268_v22 = vadd.f32 1.0, %v10908_v44 }
0x1983   :  { %v8267_v17 = vadd.f32 1.0, %v10910_v24 }
0x1984   :  { %10919 = vrcp.f32 %v8268_v22 }
0x1985   :  { %v10912_v34 = vpop.eup %10911  ;;  %10921 = vrcp.f32 %v8267_v17 }
0x1986   :  { %v10914_v18 = vpop.eup %10913  ;;  %v8270_v7 = vadd.f32 1.0, %v10912_v34 }
0x1987   :  { %v8269_v26 = vadd.f32 1.0, %v10914_v18 }
0x1988   :  { %10923 = vrcp.f32 %v8270_v7 }
0x1989   :  { %10925 = vrcp.f32 %v8269_v26 }
0x198a   :  { %v10916_v4 = vpop.eup %10915 }
0x198b   :  { %v10918_v49 = vpop.eup %10917  ;;  %8290 = vst [vmem:[#allocation25 + $0x8] sm:$0xff] %v10916_v4 }
0x198c   :  { %8289 = vst [vmem:[#allocation25] sm:$0xff] %v10918_v49 }
0x198e   :  { %v10920_v42 = vpop.eup %10919 }
0x198f   :  { %v10922_v13 = vpop.eup %10921  ;;  %8292 = vst [vmem:[#allocation25 + $0x18] sm:$0xff] %v10920_v42 }
0x1990   :  { %8291 = vst [vmem:[#allocation25 + $0x10] sm:$0xff] %v10922_v13 }
0x1992   :  { %v10924_v33 = vpop.eup %10923 }
0x1993   :  { %v10926_v60 = vpop.eup %10925  ;;  %8294 = vst [vmem:[#allocation25 + $0x28] sm:$0xff] %v10924_v33 }
0x1994   :  { %8293 = vst [vmem:[#allocation25 + $0x20] sm:$0xff] %v10926_v60 }
0x1a50   :  { %v8482_v62 = vpop.f32.mrb[56].mxu0 }
0x1a51   :  { %v8238_v47 = vadd.f32 %v8482_v62, %v13180_v1  ;;  %v8232_v11 = vpop.f32.mrb[57].mxu0 }
0x1a52   :  { %v8233_v53 = vadd.f32 %v13180_v1, %v8232_v11 }
0x1a53   :  { %v8414_v29 = vmul.f32 -1.442695, %v8238_v47 }
0x1a54   :  { %v8413_v56 = vmul.f32 -1.442695, %v8233_v53 }
0x1a55   :  { %10927 = vpow2.f32 %v8414_v29 }
0x1a56   :  { %10929 = vpow2.f32 %v8413_v56 }
0x1a5f   :  { %v10928_v0 = vpop.eup %10927 }
0x1a60   :  { %v10930_v2 = vpop.eup %10929  ;;  %v8272_v5 = vadd.f32 1.0, %v10928_v0 }
0x1a61   :  { %v8271_v8 = vadd.f32 1.0, %v10930_v2 }
0x1a62   :  { %10931 = vrcp.f32 %v8272_v5 }
0x1a63   :  { %10933 = vrcp.f32 %v8271_v8 }
0x1a6c   :  { %v10932_v23 = vpop.eup %10931 }
0x1a6d   :  { %v10934_v6 = vpop.eup %10933  ;;  %8296 = vst [vmem:[#allocation25 + $0x38] sm:$0xff] %v10932_v23 }
0x1a6e   :  { %8295 = vst [vmem:[#allocation25 + $0x30] sm:$0xff] %v10934_v6 }
0x1a6f   :  { %11210 = shalt.err (!%p11207_p2)
}
0x1a70   :  { %s11211_s24 = scalar_lea.hbm %s13215_s12, 1024 }
0x1a71   :  { %p11212_p3 = scmp.ne.s32.totalorder %s13215_s12, %s11211_s24  ;;  %p11215_p4 = scmp.lt.u32.totalorder %s11211_s24, %s13215_s12 }
0x1a73   :  { %p11217_p5 = pnand %p11215_p4, %p11212_p3 }
0x1a75   :  { %11220 = shalt.err (!%p11217_p5)
}
0x1a76   :  { %8306 = dma.vmem_to_hbm [thread:$0]  %s8304_s6, 1024, %s13215_s12, [#allocation7]  }
0x1a77   :  { %11235 = dma.done.wait [#allocation7], 1024  }
0x1a78   :  { %11236 = vsyncadd [#allocation7], 4294966272 }
0x1a79   :  { %8310 = vsyncpa [#allocation6], 1 }
0x1a7a   :  { %8311 = vsyncpa [#allocation9], 1 }
0x1a7b   :  { %8312 = vsyncpa [#allocation12], 1 }
0x1a7c   :  { %8313 = vsyncpa [#allocation15], 1 }
0x1a7d   :  { %8314 = vsyncpa [#allocation18], 1 }
0x1a7e   :  { %8315 = vsyncpa [#allocation21], 1 }
0x1a7f   :  { %8316 = vsyncpa [#allocation24], 1 }
0x1a80   :  { %8317 = vsyncpa [#allocation7], 1 }

</bundles_post_ra>
